<compile_context>
chip_gen: v6e
topology: v6e:2x2x1
jax: 0.10.0
libtpu: 0.0.40
codegen_flags: <defaults>
</compile_context>

<pallas_src>
import functools
from math import ceil

import numpy as np
import jax
import jax.numpy as jnp
from jax import lax
from jax.experimental import pallas as pl
from jax.experimental.pallas import tpu as pltpu


# ----------------------------- small helpers --------------------------------
def _mm(a, b):
    return jnp.dot(a, b, preferred_element_type=jnp.float32)


def _mm_t(a, b):
    # (i, d) x (j, d) -> (i, j): contract last dims of both operands on the MXU
    # without materializing an explicit transpose.
    return lax.dot_general(a, b, (((1,), (1,)), ((), ())),
                           preferred_element_type=jnp.float32)


def _softmax_exact(s):
    s = s - jnp.max(s, axis=-1, keepdims=True)
    e = jnp.exp(s)
    return e / jnp.sum(e, axis=-1, keepdims=True)


def _softmax_fast(s):
    # EUP approximate reciprocal for the denominator (free slot next to VPU/MXU).
    s = s - jnp.max(s, axis=-1, keepdims=True)
    e = jnp.exp(s)
    return e * pl.reciprocal(jnp.sum(e, axis=-1, keepdims=True), approx=True)


# ------------------------------- main kernel ---------------------------------
def _nystrom_kernel(x_ref, wqkv_ref, wqk_ref, wout_ref, bout_ref, convw_ref,
                    denom_ref, out_ref, *, Bt, N, DIM, H, DH, M, L, K, scale,
                    pinv_iters):
    INNER = H * DH
    PAD = K // 2
    bf16 = jnp.bfloat16

    # Fused QKV projection for all Bt folded batch elements at once
    # (layout-preserving (Bt, N, DIM) -> (Bt*N, DIM) merge, bf16 MXU, f32 acc).
    x2 = x_ref[...].reshape(Bt * N, DIM)
    qkv = _mm(x2.astype(bf16), wqkv_ref[...])                    # (Bt*N, 3*INNER) f32

    # Landmark q/k stay on a pure f32 path (segment-pool x, project with f32
    # w_qk): attn2 feeds the pinv iteration, which amplifies input noise by
    # ~1/sigma_min^2, so bf16-contaminated landmarks are avoided on purpose.
    x_l_parts = []
    for bb in range(Bt):
        x_l_parts.append(x_ref[bb].reshape(M, L, DIM).sum(axis=1) * (1.0 / L))
    x_l = jnp.concatenate(x_l_parts, axis=0) if Bt > 1 else x_l_parts[0]  # (Bt*M, DIM)
    qk_l_all = _mm(x_l, wqk_ref[...])                            # (Bt*M, 2*INNER) f32

    inv_denom = 1.0 / denom_ref[0, 0]                            # global pinv seed scale

    # Hoisted constants (broadcasts/iotas are NOT CSE'd by JAX -> keep them out
    # of the loops).
    ii = lax.broadcasted_iota(jnp.int32, (M, M), 0)
    jj = lax.broadcasted_iota(jnp.int32, (M, M), 1)
    I_m = (ii == jj).astype(jnp.float32)
    I7, I13, I15 = 7.0 * I_m, 13.0 * I_m, 15.0 * I_m
    row_idx = lax.broadcasted_iota(jnp.int32, (N, INNER), 0)
    convw = convw_ref[...]                                       # (K, INNER) f32

    o_rows = []
    for bb in range(Bt):
        qkv_b = qkv[bb * N:(bb + 1) * N]                         # (N, 3*INNER)
        qk_l = qk_l_all[bb * M:(bb + 1) * M]                     # (M, 2*INNER)
        v_all = qkv_b[:, 2 * INNER:]                             # (N, INNER)

        # Depthwise residual conv along the sequence axis for all heads at once:
        # each tap = XLU sublane roll + boundary mask (== zero padding), no
        # padded concat and no unaligned sublane slices.
        conv = jnp.zeros((N, INNER), jnp.float32)
        for kk in range(K):
            off = kk - PAD                                       # source row offset
            w_row = convw[kk:kk + 1, :]                          # (1, INNER)
            if off == 0:
                conv = conv + w_row * v_all
            else:
                shifted = pltpu.roll(v_all, shift=(-off) % N, axis=0)
                valid = jnp.logical_and(row_idx + off >= 0, row_idx + off < N)
                conv = conv + w_row * jnp.where(valid, shifted, 0.0)

        # Fused per-head loop: compute, pinv and consume each head immediately
        # (bounds live (N, M)/(M, N) intermediates to a single head).
        head_outs = []
        for h in range(H):
            q = qkv_b[:, h * DH:(h + 1) * DH] * scale                         # (N, DH)
            k = qkv_b[:, INNER + h * DH: INNER + (h + 1) * DH]                # (N, DH)
            v = qkv_b[:, 2 * INNER + h * DH: 2 * INNER + (h + 1) * DH]        # (N, DH)
            q_l = qk_l[:, h * DH:(h + 1) * DH] * scale                        # (M, DH)
            k_l = qk_l[:, INNER + h * DH: INNER + (h + 1) * DH]               # (M, DH)

            attn1 = _softmax_exact(_mm_t(q.astype(bf16), k_l.astype(bf16)))   # (N, M)
            attn2 = _softmax_exact(_mm_t(q_l, k_l))                           # (M, M) f32
            attn3 = _softmax_fast(_mm_t(q_l.astype(bf16), k.astype(bf16)))    # (M, N)
            a3v = _mm(attn3.astype(bf16), v.astype(bf16))                     # (M, DH)

            # Per-head Moore-Penrose pinv on (M, M) f32 operands.
            z = attn2.T * inv_denom

            def newton(z):
                xz = _mm(attn2, z)
                return 0.25 * _mm(z, I13 - _mm(xz, I15 - _mm(xz, I7 - xz)))

            if M >= 128:
                z = lax.fori_loop(0, pinv_iters, lambda _, zz: newton(zz), z)
            else:
                for _ in range(pinv_iters):
                    z = newton(z)

            # Re-associated: attn1 @ (z @ (attn3 @ v)).
            head_outs.append(_mm(attn1, _mm(z, a3v)))                         # (N, DH)

        o_rows.append(jnp.concatenate(head_outs, axis=-1) + conv)             # (N, INNER)

    o_cat = jnp.concatenate(o_rows, axis=0) if Bt > 1 else o_rows[0]          # (Bt*N, INNER)

    # Output projection (bf16 MXU inputs, f32 accumulate) + bias, for all Bt
    # folded batches at once; lane-dense (DIM multiple of 128) store.
    out = _mm(o_cat.astype(bf16), wout_ref[...]) + bout_ref[...]              # (Bt*N, DIM)
    out_ref[...] = out.reshape(Bt, N, DIM).astype(out_ref.dtype)


# --------------------------------- wrapper -----------------------------------
def nystrom_attention(x, w_qkv, w_out, b_out, conv_w, *, heads, dim_head,
                      num_landmarks, pinv_iterations=6, residual_conv_kernel=5,
                      batch_block=None):
    B, n, dim = x.shape
    m = num_landmarks
    pad_len = (m - n % m) % m
    if pad_len:
        x = jnp.pad(x, ((0, 0), (pad_len, 0), (0, 0)))           # F.pad(x, (0,0,pad_len,0))
    N = n + pad_len
    L = N // m
    inner = heads * dim_head
    K = residual_conv_kernel
    scale = dim_head ** -0.5

    x = x.astype(jnp.float32)
    w_qk = w_qkv[:, :2 * inner].astype(jnp.float32)

    # Pinv seed denominator (global max over batch & heads), computed in plain
    # JAX from the pooled-x landmarks -- no extra pallas pass, no second full
    # read of x through a Pallas pipeline.
    x_l = x.reshape(B, m, L, dim).sum(axis=2) * (1.0 / L)                      # (B, m, dim)
    qk_l = jnp.einsum('bmd,de->bme', x_l, w_qk)                                # (B, m, 2*inner)
    q_l = qk_l[..., :inner].reshape(B, m, heads, dim_head) * scale
    k_l = qk_l[..., inner:].reshape(B, m, heads, dim_head)
    sim2 = jnp.einsum('bihd,bjhd->bhij', q_l, k_l)                             # (B, h, m, m)
    attn2 = jax.nn.softmax(sim2, axis=-1)
    abs2 = jnp.abs(attn2)
    denom = (jnp.max(jnp.sum(abs2, axis=-1)) *
             jnp.max(jnp.sum(abs2, axis=-2))).reshape(1, 1).astype(jnp.float32)

    # Fold several batch elements per grid step so the row dimension of the big
    # MXU matmuls is >= ~128 and per-step overhead is amortized.
    if batch_block is None:
        target = max(1, min(B, (128 + N - 1) // N))
        batch_block = 1
        for c in range(target, 0, -1):
            if B % c == 0:
                batch_block = c
                break
    bt = batch_block
    assert B % bt == 0, "batch_block must divide the batch size"

    # Depthwise conv weights expanded to a per-lane map: (K, heads*dim_head).
    conv_w_exp = jnp.repeat(conv_w.T, dim_head, axis=1).astype(jnp.float32)
    w_qkv_bf = w_qkv.astype(jnp.bfloat16)        # pre-cast once; resident in VMEM
    w_out_bf = w_out.astype(jnp.bfloat16)
    b_out_f32 = b_out.reshape(1, dim).astype(jnp.float32)

    kern = functools.partial(
        _nystrom_kernel, Bt=bt, N=N, DIM=dim, H=heads, DH=dim_head, M=m, L=L,
        K=K, scale=scale, pinv_iters=pinv_iterations)

    out = pl.pallas_call(
        kern,
        out_shape=jax.ShapeDtypeStruct((B, N, dim), jnp.float32),
        grid=(B // bt,),
        in_specs=[
            pl.BlockSpec((bt, N, dim), lambda b: (b, 0, 0)),              # x (pipelined)
            pl.BlockSpec(memory_space=pltpu.MemorySpace.VMEM),            # w_qkv (bf16)
            pl.BlockSpec(memory_space=pltpu.MemorySpace.VMEM),            # w_qk (f32, pinv path)
            pl.BlockSpec(memory_space=pltpu.MemorySpace.VMEM),            # w_out (bf16)
            pl.BlockSpec(memory_space=pltpu.MemorySpace.VMEM),            # b_out
            pl.BlockSpec(memory_space=pltpu.MemorySpace.VMEM),            # conv weights
            pl.BlockSpec(memory_space=pltpu.MemorySpace.SMEM),            # denom (1,1)
        ],
        out_specs=pl.BlockSpec((bt, N, dim), lambda b: (b, 0, 0)),
        compiler_params=pltpu.CompilerParams(
            dimension_semantics=("parallel",),
            vmem_limit_bytes=64 * 1024 * 1024),
    )(x, w_qkv_bf, w_qk, w_out_bf, b_out_f32, conv_w_exp, denom)

    return out[:, -n:]                                            # out = out[:, -n:]


# ---------------- pure-JAX reference (mirrors the PyTorch forward, all f32) ---
def nystrom_reference(x, w_qkv, w_out, b_out, conv_w, heads, dim_head,
                      num_landmarks, pinv_iterations, K):
    b, n, dim = x.shape
    m = num_landmarks
    pad_len = (m - n % m) % m
    xp = jnp.pad(x, ((0, 0), (pad_len, 0), (0, 0)))
    N = n + pad_len
    qkv = xp @ w_qkv
    q, k, v = jnp.split(qkv, 3, axis=-1)
    rh = lambda t: t.reshape(b, N, heads, dim_head).transpose(0, 2, 1, 3)
    q, k, v = map(rh, (q, k, v))
    q = q * dim_head ** -0.5
    l = ceil(n / m)
    q_l = q.reshape(b, heads, m, l, dim_head).sum(3) / l
    k_l = k.reshape(b, heads, m, l, dim_head).sum(3) / l
    sim1 = jnp.einsum('bhid,bhjd->bhij', q, k_l)
    sim2 = jnp.einsum('bhid,bhjd->bhij', q_l, k_l)
    sim3 = jnp.einsum('bhid,bhjd->bhij', q_l, k)
    attn1, attn2, attn3 = (jax.nn.softmax(s, axis=-1) for s in (sim1, sim2, sim3))
    abs2 = jnp.abs(attn2)
    z = jnp.swapaxes(attn2, -1, -2) / (jnp.max(abs2.sum(-1)) * jnp.max(abs2.sum(-2)))
    I = jnp.eye(m)
    for _ in range(pinv_iterations):
        xz = attn2 @ z
        z = 0.25 * z @ (13 * I - xz @ (15 * I - xz @ (7 * I - xz)))
    out = attn1 @ z @ (attn3 @ v)
    pad = K // 2
    v_pad = jnp.pad(v, ((0, 0), (0, 0), (pad, pad), (0, 0)))
    conv = jnp.zeros_like(v)
    for kk in range(K):
        w_k = conv_w[:, kk][None, :, None, None]
        conv = conv + w_k * v_pad[:, :, kk:kk + N, :]
    out = out + conv
    out = out.transpose(0, 2, 1, 3).reshape(b, N, heads * dim_head)
    out = out @ w_out + b_out
    return out[:, -n:]


if __name__ == "__main__":
    key = jax.random.PRNGKey(0)
    B, n, dim = 2, 30, 128
    heads, dim_head = 4, 32
    inner = heads * dim_head
    num_landmarks = 8
    pinv_iters = 6
    K = 5                                  # residual_conv_kernel (odd)

    k1, k2, k3, k4, k5 = jax.random.split(key, 5)
    x      = jax.random.normal(k1, (B, n, dim), jnp.float32)
    w_qkv  = jax.random.normal(k2, (dim, 3 * inner), jnp.float32) * 0.1   # to_qkv (bias=False)
    w_out  = jax.random.normal(k3, (inner, dim), jnp.float32) * 0.1       # to_out Linear weight^T
    b_out  = jax.random.normal(k4, (1, dim), jnp.float32) * 0.1           # to_out Linear bias
    conv_w = jax.random.normal(k5, (heads, K), jnp.float32) * 0.1         # res_conv weight (h,1,K,1)->(h,K)

    out = nystrom_attention(x, w_qkv, w_out, b_out, conv_w,
                            heads=heads, dim_head=dim_head,
                            num_landmarks=num_landmarks,
                            pinv_iterations=pinv_iters,
                            residual_conv_kernel=K)
    out = jax.block_until_ready(out)

    ref = nystrom_reference(x, w_qkv, w_out, b_out, conv_w, heads, dim_head,
                            num_landmarks, pinv_iters, K)
    out_np, ref_np = np.asarray(out), np.asarray(ref)

    # Kernel uses bf16 MXU inputs (f32 accumulation) for the large matmuls and an
    # approximate EUP reciprocal in attn3's softmax, so compare against the pure
    # f32 reference with a norm-based check plus a loose elementwise check.
    rel = np.linalg.norm(out_np - ref_np) / np.linalg.norm(ref_np)
    assert rel < 3e-2, f"relative Frobenius error too large: {rel}"
    np.testing.assert_allclose(out_np, ref_np, rtol=5e-2, atol=5e-2)

    print("KERNEL_OK")
</pallas_src>

<mosaic_0001>
module attributes {stable_mosaic.version = 11 : i64} {
  func.func @_nystrom_kernel(%arg0: i32, %arg1: memref<2x32x128xf32, #tpu.memory_space<vmem>>, %arg2: memref<128x384xbf16, #tpu.memory_space<vmem>>, %arg3: memref<128x256xf32, #tpu.memory_space<vmem>>, %arg4: memref<128x128xbf16, #tpu.memory_space<vmem>>, %arg5: memref<1x128xf32, #tpu.memory_space<vmem>>, %arg6: memref<5x128xf32, #tpu.memory_space<vmem>>, %arg7: memref<1x1xf32, #tpu.memory_space<smem>>, %arg8: memref<2x32x128xf32, #tpu.memory_space<vmem>>) attributes {dimension_semantics = [#tpu.dimension_semantics<parallel>], iteration_bounds = array<i64: 1>, scalar_prefetch = 0 : i64, scratch_operands = 0 : i64, tpu.core_type = #tpu.core_type<tc>, window_params = [{transform_indices = @transform_0, window_bounds = array<i64: 2, 32, 128>}, {pipeline_mode = #tpu.pipeline_mode<synchronous>, transform_indices = @transform_1, window_bounds = array<i64: 128, 384>}, {pipeline_mode = #tpu.pipeline_mode<synchronous>, transform_indices = @transform_2, window_bounds = array<i64: 128, 256>}, {pipeline_mode = #tpu.pipeline_mode<synchronous>, transform_indices = @transform_3, window_bounds = array<i64: 128, 128>}, {pipeline_mode = #tpu.pipeline_mode<synchronous>, transform_indices = @transform_4, window_bounds = array<i64: 1, 128>}, {pipeline_mode = #tpu.pipeline_mode<synchronous>, transform_indices = @transform_5, window_bounds = array<i64: 5, 128>}, {transform_indices = @transform_6, window_bounds = array<i64: 1, 1>}, {transform_indices = @transform_7, window_bounds = array<i64: 2, 32, 128>}]} {
    %c0 = arith.constant 0 : index
    %c0_0 = arith.constant 0 : index
    %c0_1 = arith.constant 0 : index
    %0 = vector.load %arg1[%c0, %c0_0, %c0_1] : memref<2x32x128xf32, #tpu.memory_space<vmem>>, vector<2x32x128xf32>
    %1 = vector.shape_cast %0 : vector<2x32x128xf32> to vector<64x128xf32>
    %2 = arith.truncf %1 : vector<64x128xf32> to vector<64x128xbf16>
    %c0_2 = arith.constant 0 : index
    %c0_3 = arith.constant 0 : index
    %3 = vector.load %arg2[%c0_2, %c0_3] : memref<128x384xbf16, #tpu.memory_space<vmem>>, vector<128x384xbf16>
    %cst = arith.constant dense<0.000000e+00> : vector<64x384xf32>
    %4 = tpu.matmul %2, %3, %cst {dimension_numbers = #tpu.dot_dimension_numbers<[1], [0], [0], [1], [0, 0, 1, 1], [], []>} : vector<64x128xbf16>, vector<128x384xbf16>, vector<64x384xf32> -> vector<64x384xf32>
    %c0_4 = arith.constant 0 : index
    %c0_5 = arith.constant 0 : index
    %c0_6 = arith.constant 0 : index
    %5 = vector.load %arg1[%c0_4, %c0_5, %c0_6] : memref<2x32x128xf32, #tpu.memory_space<vmem>>, vector<1x32x128xf32>
    %6 = vector.shape_cast %5 : vector<1x32x128xf32> to vector<32x128xf32>
    %7 = vector.shape_cast %6 : vector<32x128xf32> to vector<8x4x128xf32>
    %cst_7 = arith.constant dense<0.000000e+00> : vector<8x128xf32>
    %8 = vector.multi_reduction <add>, %7, %cst_7 [1] : vector<8x4x128xf32> to vector<8x128xf32>
    %cst_8 = arith.constant 2.500000e-01 : f32
    %9 = vector.broadcast %cst_8 : f32 to vector<8x128xf32>
    %10 = arith.mulf %8, %9 : vector<8x128xf32>
    %c1 = arith.constant 1 : index
    %c0_9 = arith.constant 0 : index
    %c0_10 = arith.constant 0 : index
    %11 = vector.load %arg1[%c1, %c0_9, %c0_10] : memref<2x32x128xf32, #tpu.memory_space<vmem>>, vector<1x32x128xf32>
    %12 = vector.shape_cast %11 : vector<1x32x128xf32> to vector<32x128xf32>
    %13 = vector.shape_cast %12 : vector<32x128xf32> to vector<8x4x128xf32>
    %cst_11 = arith.constant dense<0.000000e+00> : vector<8x128xf32>
    %14 = vector.multi_reduction <add>, %13, %cst_11 [1] : vector<8x4x128xf32> to vector<8x128xf32>
    %cst_12 = arith.constant 2.500000e-01 : f32
    %15 = vector.broadcast %cst_12 : f32 to vector<8x128xf32>
    %16 = arith.mulf %14, %15 : vector<8x128xf32>
    %17 = tpu.concatenate %10, %16 in 0 : vector<8x128xf32>, vector<8x128xf32> -> vector<16x128xf32>
    %c0_13 = arith.constant 0 : index
    %c0_14 = arith.constant 0 : index
    %18 = vector.load %arg3[%c0_13, %c0_14] : memref<128x256xf32, #tpu.memory_space<vmem>>, vector<128x256xf32>
    %cst_15 = arith.constant dense<0.000000e+00> : vector<16x256xf32>
    %19 = tpu.matmul %17, %18, %cst_15 {dimension_numbers = #tpu.dot_dimension_numbers<[1], [0], [0], [1], [0, 0, 1, 1], [], []>} : vector<16x128xf32>, vector<128x256xf32>, vector<16x256xf32> -> vector<16x256xf32>
    %c0_16 = arith.constant 0 : index
    %c0_17 = arith.constant 0 : index
    %20 = memref.load %arg7[%c0_16, %c0_17] : memref<1x1xf32, #tpu.memory_space<smem>>
    %cst_18 = arith.constant 1.000000e+00 : f32
    %21 = arith.divf %cst_18, %20 : f32
    %22 = tpu.iota {dimensions = array<i32: 0>} : vector<8x8xi32>
    %23 = tpu.iota {dimensions = array<i32: 1>} : vector<8x8xi32>
    %24 = arith.cmpi eq, %22, %23 : vector<8x8xi32>
    %25 = arith.extui %24 : vector<8x8xi1> to vector<8x8xi32>
    %26 = arith.sitofp %25 : vector<8x8xi32> to vector<8x8xf32>
    %cst_19 = arith.constant 7.000000e+00 : f32
    %27 = vector.broadcast %cst_19 : f32 to vector<8x8xf32>
    %28 = arith.mulf %27, %26 : vector<8x8xf32>
    %cst_20 = arith.constant 1.300000e+01 : f32
    %29 = vector.broadcast %cst_20 : f32 to vector<8x8xf32>
    %30 = arith.mulf %29, %26 : vector<8x8xf32>
    %cst_21 = arith.constant 1.500000e+01 : f32
    %31 = vector.broadcast %cst_21 : f32 to vector<8x8xf32>
    %32 = arith.mulf %31, %26 : vector<8x8xf32>
    %33 = tpu.iota {dimensions = array<i32: 0>} : vector<32x128xi32>
    %c0_22 = arith.constant 0 : index
    %c0_23 = arith.constant 0 : index
    %34 = vector.load %arg6[%c0_22, %c0_23] : memref<5x128xf32, #tpu.memory_space<vmem>>, vector<5x128xf32>
    %35 = vector.extract_strided_slice %4 {offsets = [0, 0], sizes = [32, 384], strides = [1, 1]} : vector<64x384xf32> to vector<32x384xf32>
    %36 = vector.extract_strided_slice %19 {offsets = [0, 0], sizes = [8, 256], strides = [1, 1]} : vector<16x256xf32> to vector<8x256xf32>
    %37 = vector.extract_strided_slice %35 {offsets = [0, 256], sizes = [32, 128], strides = [1, 1]} : vector<32x384xf32> to vector<32x128xf32>
    %cst_24 = arith.constant 0.000000e+00 : f32
    %38 = vector.broadcast %cst_24 : f32 to vector<32x128xf32>
    %39 = vector.extract_strided_slice %34 {offsets = [0, 0], sizes = [1, 128], strides = [1, 1]} : vector<5x128xf32> to vector<1x128xf32>
    %c2_i32 = arith.constant 2 : i32
    %40 = tpu.dynamic_rotate %37 by %c2_i32 dim 0 : vector<32x128xf32>, i32 -> vector<32x128xf32>
    %c-2_i32 = arith.constant -2 : i32
    %41 = vector.broadcast %c-2_i32 : i32 to vector<32x128xi32>
    %42 = arith.addi %33, %41 : vector<32x128xi32>
    %c0_i32 = arith.constant 0 : i32
    %43 = vector.broadcast %c0_i32 : i32 to vector<32x128xi32>
    %44 = arith.cmpi sge, %42, %43 : vector<32x128xi32>
    %c-2_i32_25 = arith.constant -2 : i32
    %45 = vector.broadcast %c-2_i32_25 : i32 to vector<32x128xi32>
    %46 = arith.addi %33, %45 : vector<32x128xi32>
    %c32_i32 = arith.constant 32 : i32
    %47 = vector.broadcast %c32_i32 : i32 to vector<32x128xi32>
    %48 = arith.cmpi slt, %46, %47 : vector<32x128xi32>
    %49 = arith.andi %44, %48 : vector<32x128xi1>
    %cst_26 = arith.constant 0.000000e+00 : f32
    %50 = vector.broadcast %cst_26 : f32 to vector<32x128xf32>
    %51 = arith.select %49, %40, %50 : vector<32x128xi1>, vector<32x128xf32>
    %52 = vector.broadcast %39 : vector<1x128xf32> to vector<32x128xf32>
    %53 = arith.mulf %52, %51 : vector<32x128xf32>
    %54 = arith.addf %38, %53 : vector<32x128xf32>
    %55 = vector.extract_strided_slice %34 {offsets = [1, 0], sizes = [1, 128], strides = [1, 1]} : vector<5x128xf32> to vector<1x128xf32>
    %c1_i32 = arith.constant 1 : i32
    %56 = tpu.dynamic_rotate %37 by %c1_i32 dim 0 : vector<32x128xf32>, i32 -> vector<32x128xf32>
    %c-1_i32 = arith.constant -1 : i32
    %57 = vector.broadcast %c-1_i32 : i32 to vector<32x128xi32>
    %58 = arith.addi %33, %57 : vector<32x128xi32>
    %c0_i32_27 = arith.constant 0 : i32
    %59 = vector.broadcast %c0_i32_27 : i32 to vector<32x128xi32>
    %60 = arith.cmpi sge, %58, %59 : vector<32x128xi32>
    %c-1_i32_28 = arith.constant -1 : i32
    %61 = vector.broadcast %c-1_i32_28 : i32 to vector<32x128xi32>
    %62 = arith.addi %33, %61 : vector<32x128xi32>
    %c32_i32_29 = arith.constant 32 : i32
    %63 = vector.broadcast %c32_i32_29 : i32 to vector<32x128xi32>
    %64 = arith.cmpi slt, %62, %63 : vector<32x128xi32>
    %65 = arith.andi %60, %64 : vector<32x128xi1>
    %cst_30 = arith.constant 0.000000e+00 : f32
    %66 = vector.broadcast %cst_30 : f32 to vector<32x128xf32>
    %67 = arith.select %65, %56, %66 : vector<32x128xi1>, vector<32x128xf32>
    %68 = vector.broadcast %55 : vector<1x128xf32> to vector<32x128xf32>
    %69 = arith.mulf %68, %67 : vector<32x128xf32>
    %70 = arith.addf %54, %69 : vector<32x128xf32>
    %71 = vector.extract_strided_slice %34 {offsets = [2, 0], sizes = [1, 128], strides = [1, 1]} : vector<5x128xf32> to vector<1x128xf32>
    %72 = vector.broadcast %71 : vector<1x128xf32> to vector<32x128xf32>
    %73 = arith.mulf %72, %37 : vector<32x128xf32>
    %74 = arith.addf %70, %73 : vector<32x128xf32>
    %75 = vector.extract_strided_slice %34 {offsets = [3, 0], sizes = [1, 128], strides = [1, 1]} : vector<5x128xf32> to vector<1x128xf32>
    %c31_i32 = arith.constant 31 : i32
    %76 = tpu.dynamic_rotate %37 by %c31_i32 dim 0 : vector<32x128xf32>, i32 -> vector<32x128xf32>
    %c1_i32_31 = arith.constant 1 : i32
    %77 = vector.broadcast %c1_i32_31 : i32 to vector<32x128xi32>
    %78 = arith.addi %33, %77 : vector<32x128xi32>
    %c0_i32_32 = arith.constant 0 : i32
    %79 = vector.broadcast %c0_i32_32 : i32 to vector<32x128xi32>
    %80 = arith.cmpi sge, %78, %79 : vector<32x128xi32>
    %c1_i32_33 = arith.constant 1 : i32
    %81 = vector.broadcast %c1_i32_33 : i32 to vector<32x128xi32>
    %82 = arith.addi %33, %81 : vector<32x128xi32>
    %c32_i32_34 = arith.constant 32 : i32
    %83 = vector.broadcast %c32_i32_34 : i32 to vector<32x128xi32>
    %84 = arith.cmpi slt, %82, %83 : vector<32x128xi32>
    %85 = arith.andi %80, %84 : vector<32x128xi1>
    %cst_35 = arith.constant 0.000000e+00 : f32
    %86 = vector.broadcast %cst_35 : f32 to vector<32x128xf32>
    %87 = arith.select %85, %76, %86 : vector<32x128xi1>, vector<32x128xf32>
    %88 = vector.broadcast %75 : vector<1x128xf32> to vector<32x128xf32>
    %89 = arith.mulf %88, %87 : vector<32x128xf32>
    %90 = arith.addf %74, %89 : vector<32x128xf32>
    %91 = vector.extract_strided_slice %34 {offsets = [4, 0], sizes = [1, 128], strides = [1, 1]} : vector<5x128xf32> to vector<1x128xf32>
    %c30_i32 = arith.constant 30 : i32
    %92 = tpu.dynamic_rotate %37 by %c30_i32 dim 0 : vector<32x128xf32>, i32 -> vector<32x128xf32>
    %c2_i32_36 = arith.constant 2 : i32
    %93 = vector.broadcast %c2_i32_36 : i32 to vector<32x128xi32>
    %94 = arith.addi %33, %93 : vector<32x128xi32>
    %c0_i32_37 = arith.constant 0 : i32
    %95 = vector.broadcast %c0_i32_37 : i32 to vector<32x128xi32>
    %96 = arith.cmpi sge, %94, %95 : vector<32x128xi32>
    %c2_i32_38 = arith.constant 2 : i32
    %97 = vector.broadcast %c2_i32_38 : i32 to vector<32x128xi32>
    %98 = arith.addi %33, %97 : vector<32x128xi32>
    %c32_i32_39 = arith.constant 32 : i32
    %99 = vector.broadcast %c32_i32_39 : i32 to vector<32x128xi32>
    %100 = arith.cmpi slt, %98, %99 : vector<32x128xi32>
    %101 = arith.andi %96, %100 : vector<32x128xi1>
    %cst_40 = arith.constant 0.000000e+00 : f32
    %102 = vector.broadcast %cst_40 : f32 to vector<32x128xf32>
    %103 = arith.select %101, %92, %102 : vector<32x128xi1>, vector<32x128xf32>
    %104 = vector.broadcast %91 : vector<1x128xf32> to vector<32x128xf32>
    %105 = arith.mulf %104, %103 : vector<32x128xf32>
    %106 = arith.addf %90, %105 : vector<32x128xf32>
    %107 = vector.extract_strided_slice %35 {offsets = [0, 0], sizes = [32, 32], strides = [1, 1]} : vector<32x384xf32> to vector<32x32xf32>
    %cst_41 = arith.constant 0.176776692 : f32
    %108 = vector.broadcast %cst_41 : f32 to vector<32x32xf32>
    %109 = arith.mulf %107, %108 : vector<32x32xf32>
    %110 = vector.extract_strided_slice %35 {offsets = [0, 128], sizes = [32, 32], strides = [1, 1]} : vector<32x384xf32> to vector<32x32xf32>
    %111 = vector.extract_strided_slice %35 {offsets = [0, 256], sizes = [32, 32], strides = [1, 1]} : vector<32x384xf32> to vector<32x32xf32>
    %112 = vector.extract_strided_slice %36 {offsets = [0, 0], sizes = [8, 32], strides = [1, 1]} : vector<8x256xf32> to vector<8x32xf32>
    %cst_42 = arith.constant 0.176776692 : f32
    %113 = vector.broadcast %cst_42 : f32 to vector<8x32xf32>
    %114 = arith.mulf %112, %113 : vector<8x32xf32>
    %115 = vector.extract_strided_slice %36 {offsets = [0, 128], sizes = [8, 32], strides = [1, 1]} : vector<8x256xf32> to vector<8x32xf32>
    %116 = arith.truncf %109 : vector<32x32xf32> to vector<32x32xbf16>
    %117 = arith.truncf %115 : vector<8x32xf32> to vector<8x32xbf16>
    %cst_43 = arith.constant dense<0.000000e+00> : vector<32x8xf32>
    %118 = tpu.matmul %116, %117, %cst_43 {dimension_numbers = #tpu.dot_dimension_numbers<[1], [1], [0], [0], [0, 0, 1, 0], [], []>} : vector<32x32xbf16>, vector<8x32xbf16>, vector<32x8xf32> -> vector<32x8xf32>
    %cst_44 = arith.constant dense<0xFF800000> : vector<32xf32>
    %119 = vector.multi_reduction <maximumf>, %118, %cst_44 [1] : vector<32x8xf32> to vector<32xf32>
    %120 = vector.shape_cast %119 : vector<32xf32> to vector<32x1xf32>
    %121 = vector.broadcast %120 : vector<32x1xf32> to vector<32x8xf32>
    %122 = arith.subf %118, %121 : vector<32x8xf32>
    %123 = math.exp %122 : vector<32x8xf32>
    %cst_45 = arith.constant dense<0.000000e+00> : vector<32xf32>
    %124 = vector.multi_reduction <add>, %123, %cst_45 [1] : vector<32x8xf32> to vector<32xf32>
    %125 = vector.shape_cast %124 : vector<32xf32> to vector<32x1xf32>
    %126 = vector.broadcast %125 : vector<32x1xf32> to vector<32x8xf32>
    %127 = arith.divf %123, %126 : vector<32x8xf32>
    %cst_46 = arith.constant dense<0.000000e+00> : vector<8x8xf32>
    %128 = tpu.matmul %114, %115, %cst_46 {dimension_numbers = #tpu.dot_dimension_numbers<[1], [1], [0], [0], [0, 0, 1, 0], [], []>} : vector<8x32xf32>, vector<8x32xf32>, vector<8x8xf32> -> vector<8x8xf32>
    %cst_47 = arith.constant dense<0xFF800000> : vector<8xf32>
    %129 = vector.multi_reduction <maximumf>, %128, %cst_47 [1] : vector<8x8xf32> to vector<8xf32>
    %130 = vector.shape_cast %129 : vector<8xf32> to vector<8x1xf32>
    %131 = vector.broadcast %130 : vector<8x1xf32> to vector<8x8xf32>
    %132 = arith.subf %128, %131 : vector<8x8xf32>
    %133 = math.exp %132 : vector<8x8xf32>
    %cst_48 = arith.constant dense<0.000000e+00> : vector<8xf32>
    %134 = vector.multi_reduction <add>, %133, %cst_48 [1] : vector<8x8xf32> to vector<8xf32>
    %135 = vector.shape_cast %134 : vector<8xf32> to vector<8x1xf32>
    %136 = vector.broadcast %135 : vector<8x1xf32> to vector<8x8xf32>
    %137 = arith.divf %133, %136 : vector<8x8xf32>
    %138 = arith.truncf %114 : vector<8x32xf32> to vector<8x32xbf16>
    %139 = arith.truncf %110 : vector<32x32xf32> to vector<32x32xbf16>
    %cst_49 = arith.constant dense<0.000000e+00> : vector<8x32xf32>
    %140 = tpu.matmul %138, %139, %cst_49 {dimension_numbers = #tpu.dot_dimension_numbers<[1], [1], [0], [0], [0, 0, 1, 0], [], []>} : vector<8x32xbf16>, vector<32x32xbf16>, vector<8x32xf32> -> vector<8x32xf32>
    %cst_50 = arith.constant dense<0xFF800000> : vector<8xf32>
    %141 = vector.multi_reduction <maximumf>, %140, %cst_50 [1] : vector<8x32xf32> to vector<8xf32>
    %142 = vector.shape_cast %141 : vector<8xf32> to vector<8x1xf32>
    %143 = vector.broadcast %142 : vector<8x1xf32> to vector<8x32xf32>
    %144 = arith.subf %140, %143 : vector<8x32xf32>
    %145 = math.exp %144 : vector<8x32xf32>
    %cst_51 = arith.constant dense<0.000000e+00> : vector<8xf32>
    %146 = vector.multi_reduction <add>, %145, %cst_51 [1] : vector<8x32xf32> to vector<8xf32>
    %147 = vector.shape_cast %146 : vector<8xf32> to vector<8x1xf32>
    %148 = tpu.reciprocal %147 {approx = true} : vector<8x1xf32> -> vector<8x1xf32>
    %149 = vector.broadcast %148 : vector<8x1xf32> to vector<8x32xf32>
    %150 = arith.mulf %145, %149 : vector<8x32xf32>
    %151 = arith.truncf %150 : vector<8x32xf32> to vector<8x32xbf16>
    %152 = arith.truncf %111 : vector<32x32xf32> to vector<32x32xbf16>
    %cst_52 = arith.constant dense<0.000000e+00> : vector<8x32xf32>
    %153 = tpu.matmul %151, %152, %cst_52 {dimension_numbers = #tpu.dot_dimension_numbers<[1], [0], [0], [1], [0, 0, 1, 1], [], []>} : vector<8x32xbf16>, vector<32x32xbf16>, vector<8x32xf32> -> vector<8x32xf32>
    %154 = tpu.transpose %137, [1, 0] : vector<8x8xf32> -> vector<8x8xf32>
    %155 = vector.broadcast %21 : f32 to vector<8x8xf32>
    %156 = arith.mulf %154, %155 : vector<8x8xf32>
    %cst_53 = arith.constant dense<0.000000e+00> : vector<8x8xf32>
    %157 = tpu.matmul %137, %156, %cst_53 {dimension_numbers = #tpu.dot_dimension_numbers<[1], [0], [0], [1], [0, 0, 1, 1], [], []>} : vector<8x8xf32>, vector<8x8xf32>, vector<8x8xf32> -> vector<8x8xf32>
    %158 = arith.subf %28, %157 : vector<8x8xf32>
    %cst_54 = arith.constant dense<0.000000e+00> : vector<8x8xf32>
    %159 = tpu.matmul %157, %158, %cst_54 {dimension_numbers = #tpu.dot_dimension_numbers<[1], [0], [0], [1], [0, 0, 1, 1], [], []>} : vector<8x8xf32>, vector<8x8xf32>, vector<8x8xf32> -> vector<8x8xf32>
    %160 = arith.subf %32, %159 : vector<8x8xf32>
    %cst_55 = arith.constant dense<0.000000e+00> : vector<8x8xf32>
    %161 = tpu.matmul %157, %160, %cst_55 {dimension_numbers = #tpu.dot_dimension_numbers<[1], [0], [0], [1], [0, 0, 1, 1], [], []>} : vector<8x8xf32>, vector<8x8xf32>, vector<8x8xf32> -> vector<8x8xf32>
    %162 = arith.subf %30, %161 : vector<8x8xf32>
    %cst_56 = arith.constant dense<0.000000e+00> : vector<8x8xf32>
    %163 = tpu.matmul %156, %162, %cst_56 {dimension_numbers = #tpu.dot_dimension_numbers<[1], [0], [0], [1], [0, 0, 1, 1], [], []>} : vector<8x8xf32>, vector<8x8xf32>, vector<8x8xf32> -> vector<8x8xf32>
    %cst_57 = arith.constant 2.500000e-01 : f32
    %164 = vector.broadcast %cst_57 : f32 to vector<8x8xf32>
    %165 = arith.mulf %164, %163 : vector<8x8xf32>
    %cst_58 = arith.constant dense<0.000000e+00> : vector<8x8xf32>
    %166 = tpu.matmul %137, %165, %cst_58 {dimension_numbers = #tpu.dot_dimension_numbers<[1], [0], [0], [1], [0, 0, 1, 1], [], []>} : vector<8x8xf32>, vector<8x8xf32>, vector<8x8xf32> -> vector<8x8xf32>
    %167 = arith.subf %28, %166 : vector<8x8xf32>
    %cst_59 = arith.constant dense<0.000000e+00> : vector<8x8xf32>
    %168 = tpu.matmul %166, %167, %cst_59 {dimension_numbers = #tpu.dot_dimension_numbers<[1], [0], [0], [1], [0, 0, 1, 1], [], []>} : vector<8x8xf32>, vector<8x8xf32>, vector<8x8xf32> -> vector<8x8xf32>
    %169 = arith.subf %32, %168 : vector<8x8xf32>
    %cst_60 = arith.constant dense<0.000000e+00> : vector<8x8xf32>
    %170 = tpu.matmul %166, %169, %cst_60 {dimension_numbers = #tpu.dot_dimension_numbers<[1], [0], [0], [1], [0, 0, 1, 1], [], []>} : vector<8x8xf32>, vector<8x8xf32>, vector<8x8xf32> -> vector<8x8xf32>
    %171 = arith.subf %30, %170 : vector<8x8xf32>
    %cst_61 = arith.constant dense<0.000000e+00> : vector<8x8xf32>
    %172 = tpu.matmul %165, %171, %cst_61 {dimension_numbers = #tpu.dot_dimension_numbers<[1], [0], [0], [1], [0, 0, 1, 1], [], []>} : vector<8x8xf32>, vector<8x8xf32>, vector<8x8xf32> -> vector<8x8xf32>
    %cst_62 = arith.constant 2.500000e-01 : f32
    %173 = vector.broadcast %cst_62 : f32 to vector<8x8xf32>
    %174 = arith.mulf %173, %172 : vector<8x8xf32>
    %cst_63 = arith.constant dense<0.000000e+00> : vector<8x8xf32>
    %175 = tpu.matmul %137, %174, %cst_63 {dimension_numbers = #tpu.dot_dimension_numbers<[1], [0], [0], [1], [0, 0, 1, 1], [], []>} : vector<8x8xf32>, vector<8x8xf32>, vector<8x8xf32> -> vector<8x8xf32>
    %176 = arith.subf %28, %175 : vector<8x8xf32>
    %cst_64 = arith.constant dense<0.000000e+00> : vector<8x8xf32>
    %177 = tpu.matmul %175, %176, %cst_64 {dimension_numbers = #tpu.dot_dimension_numbers<[1], [0], [0], [1], [0, 0, 1, 1], [], []>} : vector<8x8xf32>, vector<8x8xf32>, vector<8x8xf32> -> vector<8x8xf32>
    %178 = arith.subf %32, %177 : vector<8x8xf32>
    %cst_65 = arith.constant dense<0.000000e+00> : vector<8x8xf32>
    %179 = tpu.matmul %175, %178, %cst_65 {dimension_numbers = #tpu.dot_dimension_numbers<[1], [0], [0], [1], [0, 0, 1, 1], [], []>} : vector<8x8xf32>, vector<8x8xf32>, vector<8x8xf32> -> vector<8x8xf32>
    %180 = arith.subf %30, %179 : vector<8x8xf32>
    %cst_66 = arith.constant dense<0.000000e+00> : vector<8x8xf32>
    %181 = tpu.matmul %174, %180, %cst_66 {dimension_numbers = #tpu.dot_dimension_numbers<[1], [0], [0], [1], [0, 0, 1, 1], [], []>} : vector<8x8xf32>, vector<8x8xf32>, vector<8x8xf32> -> vector<8x8xf32>
    %cst_67 = arith.constant 2.500000e-01 : f32
    %182 = vector.broadcast %cst_67 : f32 to vector<8x8xf32>
    %183 = arith.mulf %182, %181 : vector<8x8xf32>
    %cst_68 = arith.constant dense<0.000000e+00> : vector<8x8xf32>
    %184 = tpu.matmul %137, %183, %cst_68 {dimension_numbers = #tpu.dot_dimension_numbers<[1], [0], [0], [1], [0, 0, 1, 1], [], []>} : vector<8x8xf32>, vector<8x8xf32>, vector<8x8xf32> -> vector<8x8xf32>
    %185 = arith.subf %28, %184 : vector<8x8xf32>
    %cst_69 = arith.constant dense<0.000000e+00> : vector<8x8xf32>
    %186 = tpu.matmul %184, %185, %cst_69 {dimension_numbers = #tpu.dot_dimension_numbers<[1], [0], [0], [1], [0, 0, 1, 1], [], []>} : vector<8x8xf32>, vector<8x8xf32>, vector<8x8xf32> -> vector<8x8xf32>
    %187 = arith.subf %32, %186 : vector<8x8xf32>
    %cst_70 = arith.constant dense<0.000000e+00> : vector<8x8xf32>
    %188 = tpu.matmul %184, %187, %cst_70 {dimension_numbers = #tpu.dot_dimension_numbers<[1], [0], [0], [1], [0, 0, 1, 1], [], []>} : vector<8x8xf32>, vector<8x8xf32>, vector<8x8xf32> -> vector<8x8xf32>
    %189 = arith.subf %30, %188 : vector<8x8xf32>
    %cst_71 = arith.constant dense<0.000000e+00> : vector<8x8xf32>
    %190 = tpu.matmul %183, %189, %cst_71 {dimension_numbers = #tpu.dot_dimension_numbers<[1], [0], [0], [1], [0, 0, 1, 1], [], []>} : vector<8x8xf32>, vector<8x8xf32>, vector<8x8xf32> -> vector<8x8xf32>
    %cst_72 = arith.constant 2.500000e-01 : f32
    %191 = vector.broadcast %cst_72 : f32 to vector<8x8xf32>
    %192 = arith.mulf %191, %190 : vector<8x8xf32>
    %cst_73 = arith.constant dense<0.000000e+00> : vector<8x8xf32>
    %193 = tpu.matmul %137, %192, %cst_73 {dimension_numbers = #tpu.dot_dimension_numbers<[1], [0], [0], [1], [0, 0, 1, 1], [], []>} : vector<8x8xf32>, vector<8x8xf32>, vector<8x8xf32> -> vector<8x8xf32>
    %194 = arith.subf %28, %193 : vector<8x8xf32>
    %cst_74 = arith.constant dense<0.000000e+00> : vector<8x8xf32>
    %195 = tpu.matmul %193, %194, %cst_74 {dimension_numbers = #tpu.dot_dimension_numbers<[1], [0], [0], [1], [0, 0, 1, 1], [], []>} : vector<8x8xf32>, vector<8x8xf32>, vector<8x8xf32> -> vector<8x8xf32>
    %196 = arith.subf %32, %195 : vector<8x8xf32>
    %cst_75 = arith.constant dense<0.000000e+00> : vector<8x8xf32>
    %197 = tpu.matmul %193, %196, %cst_75 {dimension_numbers = #tpu.dot_dimension_numbers<[1], [0], [0], [1], [0, 0, 1, 1], [], []>} : vector<8x8xf32>, vector<8x8xf32>, vector<8x8xf32> -> vector<8x8xf32>
    %198 = arith.subf %30, %197 : vector<8x8xf32>
    %cst_76 = arith.constant dense<0.000000e+00> : vector<8x8xf32>
    %199 = tpu.matmul %192, %198, %cst_76 {dimension_numbers = #tpu.dot_dimension_numbers<[1], [0], [0], [1], [0, 0, 1, 1], [], []>} : vector<8x8xf32>, vector<8x8xf32>, vector<8x8xf32> -> vector<8x8xf32>
    %cst_77 = arith.constant 2.500000e-01 : f32
    %200 = vector.broadcast %cst_77 : f32 to vector<8x8xf32>
    %201 = arith.mulf %200, %199 : vector<8x8xf32>
    %cst_78 = arith.constant dense<0.000000e+00> : vector<8x8xf32>
    %202 = tpu.matmul %137, %201, %cst_78 {dimension_numbers = #tpu.dot_dimension_numbers<[1], [0], [0], [1], [0, 0, 1, 1], [], []>} : vector<8x8xf32>, vector<8x8xf32>, vector<8x8xf32> -> vector<8x8xf32>
    %203 = arith.subf %28, %202 : vector<8x8xf32>
    %cst_79 = arith.constant dense<0.000000e+00> : vector<8x8xf32>
    %204 = tpu.matmul %202, %203, %cst_79 {dimension_numbers = #tpu.dot_dimension_numbers<[1], [0], [0], [1], [0, 0, 1, 1], [], []>} : vector<8x8xf32>, vector<8x8xf32>, vector<8x8xf32> -> vector<8x8xf32>
    %205 = arith.subf %32, %204 : vector<8x8xf32>
    %cst_80 = arith.constant dense<0.000000e+00> : vector<8x8xf32>
    %206 = tpu.matmul %202, %205, %cst_80 {dimension_numbers = #tpu.dot_dimension_numbers<[1], [0], [0], [1], [0, 0, 1, 1], [], []>} : vector<8x8xf32>, vector<8x8xf32>, vector<8x8xf32> -> vector<8x8xf32>
    %207 = arith.subf %30, %206 : vector<8x8xf32>
    %cst_81 = arith.constant dense<0.000000e+00> : vector<8x8xf32>
    %208 = tpu.matmul %201, %207, %cst_81 {dimension_numbers = #tpu.dot_dimension_numbers<[1], [0], [0], [1], [0, 0, 1, 1], [], []>} : vector<8x8xf32>, vector<8x8xf32>, vector<8x8xf32> -> vector<8x8xf32>
    %cst_82 = arith.constant 2.500000e-01 : f32
    %209 = vector.broadcast %cst_82 : f32 to vector<8x8xf32>
    %210 = arith.mulf %209, %208 : vector<8x8xf32>
    %cst_83 = arith.constant dense<0.000000e+00> : vector<8x32xf32>
    %211 = tpu.matmul %210, %153, %cst_83 {dimension_numbers = #tpu.dot_dimension_numbers<[1], [0], [0], [1], [0, 0, 1, 1], [], []>} : vector<8x8xf32>, vector<8x32xf32>, vector<8x32xf32> -> vector<8x32xf32>
    %cst_84 = arith.constant dense<0.000000e+00> : vector<32x32xf32>
    %212 = tpu.matmul %127, %211, %cst_84 {dimension_numbers = #tpu.dot_dimension_numbers<[1], [0], [0], [1], [0, 0, 1, 1], [], []>} : vector<32x8xf32>, vector<8x32xf32>, vector<32x32xf32> -> vector<32x32xf32>
    %213 = vector.extract_strided_slice %35 {offsets = [0, 32], sizes = [32, 32], strides = [1, 1]} : vector<32x384xf32> to vector<32x32xf32>
    %cst_85 = arith.constant 0.176776692 : f32
    %214 = vector.broadcast %cst_85 : f32 to vector<32x32xf32>
    %215 = arith.mulf %213, %214 : vector<32x32xf32>
    %216 = vector.extract_strided_slice %35 {offsets = [0, 160], sizes = [32, 32], strides = [1, 1]} : vector<32x384xf32> to vector<32x32xf32>
    %217 = vector.extract_strided_slice %35 {offsets = [0, 288], sizes = [32, 32], strides = [1, 1]} : vector<32x384xf32> to vector<32x32xf32>
    %218 = vector.extract_strided_slice %36 {offsets = [0, 32], sizes = [8, 32], strides = [1, 1]} : vector<8x256xf32> to vector<8x32xf32>
    %cst_86 = arith.constant 0.176776692 : f32
    %219 = vector.broadcast %cst_86 : f32 to vector<8x32xf32>
    %220 = arith.mulf %218, %219 : vector<8x32xf32>
    %221 = vector.extract_strided_slice %36 {offsets = [0, 160], sizes = [8, 32], strides = [1, 1]} : vector<8x256xf32> to vector<8x32xf32>
    %222 = arith.truncf %215 : vector<32x32xf32> to vector<32x32xbf16>
    %223 = arith.truncf %221 : vector<8x32xf32> to vector<8x32xbf16>
    %cst_87 = arith.constant dense<0.000000e+00> : vector<32x8xf32>
    %224 = tpu.matmul %222, %223, %cst_87 {dimension_numbers = #tpu.dot_dimension_numbers<[1], [1], [0], [0], [0, 0, 1, 0], [], []>} : vector<32x32xbf16>, vector<8x32xbf16>, vector<32x8xf32> -> vector<32x8xf32>
    %cst_88 = arith.constant dense<0xFF800000> : vector<32xf32>
    %225 = vector.multi_reduction <maximumf>, %224, %cst_88 [1] : vector<32x8xf32> to vector<32xf32>
    %226 = vector.shape_cast %225 : vector<32xf32> to vector<32x1xf32>
    %227 = vector.broadcast %226 : vector<32x1xf32> to vector<32x8xf32>
    %228 = arith.subf %224, %227 : vector<32x8xf32>
    %229 = math.exp %228 : vector<32x8xf32>
    %cst_89 = arith.constant dense<0.000000e+00> : vector<32xf32>
    %230 = vector.multi_reduction <add>, %229, %cst_89 [1] : vector<32x8xf32> to vector<32xf32>
    %231 = vector.shape_cast %230 : vector<32xf32> to vector<32x1xf32>
    %232 = vector.broadcast %231 : vector<32x1xf32> to vector<32x8xf32>
    %233 = arith.divf %229, %232 : vector<32x8xf32>
    %cst_90 = arith.constant dense<0.000000e+00> : vector<8x8xf32>
    %234 = tpu.matmul %220, %221, %cst_90 {dimension_numbers = #tpu.dot_dimension_numbers<[1], [1], [0], [0], [0, 0, 1, 0], [], []>} : vector<8x32xf32>, vector<8x32xf32>, vector<8x8xf32> -> vector<8x8xf32>
    %cst_91 = arith.constant dense<0xFF800000> : vector<8xf32>
    %235 = vector.multi_reduction <maximumf>, %234, %cst_91 [1] : vector<8x8xf32> to vector<8xf32>
    %236 = vector.shape_cast %235 : vector<8xf32> to vector<8x1xf32>
    %237 = vector.broadcast %236 : vector<8x1xf32> to vector<8x8xf32>
    %238 = arith.subf %234, %237 : vector<8x8xf32>
    %239 = math.exp %238 : vector<8x8xf32>
    %cst_92 = arith.constant dense<0.000000e+00> : vector<8xf32>
    %240 = vector.multi_reduction <add>, %239, %cst_92 [1] : vector<8x8xf32> to vector<8xf32>
    %241 = vector.shape_cast %240 : vector<8xf32> to vector<8x1xf32>
    %242 = vector.broadcast %241 : vector<8x1xf32> to vector<8x8xf32>
    %243 = arith.divf %239, %242 : vector<8x8xf32>
    %244 = arith.truncf %220 : vector<8x32xf32> to vector<8x32xbf16>
    %245 = arith.truncf %216 : vector<32x32xf32> to vector<32x32xbf16>
    %cst_93 = arith.constant dense<0.000000e+00> : vector<8x32xf32>
    %246 = tpu.matmul %244, %245, %cst_93 {dimension_numbers = #tpu.dot_dimension_numbers<[1], [1], [0], [0], [0, 0, 1, 0], [], []>} : vector<8x32xbf16>, vector<32x32xbf16>, vector<8x32xf32> -> vector<8x32xf32>
    %cst_94 = arith.constant dense<0xFF800000> : vector<8xf32>
    %247 = vector.multi_reduction <maximumf>, %246, %cst_94 [1] : vector<8x32xf32> to vector<8xf32>
    %248 = vector.shape_cast %247 : vector<8xf32> to vector<8x1xf32>
    %249 = vector.broadcast %248 : vector<8x1xf32> to vector<8x32xf32>
    %250 = arith.subf %246, %249 : vector<8x32xf32>
    %251 = math.exp %250 : vector<8x32xf32>
    %cst_95 = arith.constant dense<0.000000e+00> : vector<8xf32>
    %252 = vector.multi_reduction <add>, %251, %cst_95 [1] : vector<8x32xf32> to vector<8xf32>
    %253 = vector.shape_cast %252 : vector<8xf32> to vector<8x1xf32>
    %254 = tpu.reciprocal %253 {approx = true} : vector<8x1xf32> -> vector<8x1xf32>
    %255 = vector.broadcast %254 : vector<8x1xf32> to vector<8x32xf32>
    %256 = arith.mulf %251, %255 : vector<8x32xf32>
    %257 = arith.truncf %256 : vector<8x32xf32> to vector<8x32xbf16>
    %258 = arith.truncf %217 : vector<32x32xf32> to vector<32x32xbf16>
    %cst_96 = arith.constant dense<0.000000e+00> : vector<8x32xf32>
    %259 = tpu.matmul %257, %258, %cst_96 {dimension_numbers = #tpu.dot_dimension_numbers<[1], [0], [0], [1], [0, 0, 1, 1], [], []>} : vector<8x32xbf16>, vector<32x32xbf16>, vector<8x32xf32> -> vector<8x32xf32>
    %260 = tpu.transpose %243, [1, 0] : vector<8x8xf32> -> vector<8x8xf32>
    %261 = vector.broadcast %21 : f32 to vector<8x8xf32>
    %262 = arith.mulf %260, %261 : vector<8x8xf32>
    %cst_97 = arith.constant dense<0.000000e+00> : vector<8x8xf32>
    %263 = tpu.matmul %243, %262, %cst_97 {dimension_numbers = #tpu.dot_dimension_numbers<[1], [0], [0], [1], [0, 0, 1, 1], [], []>} : vector<8x8xf32>, vector<8x8xf32>, vector<8x8xf32> -> vector<8x8xf32>
    %264 = arith.subf %28, %263 : vector<8x8xf32>
    %cst_98 = arith.constant dense<0.000000e+00> : vector<8x8xf32>
    %265 = tpu.matmul %263, %264, %cst_98 {dimension_numbers = #tpu.dot_dimension_numbers<[1], [0], [0], [1], [0, 0, 1, 1], [], []>} : vector<8x8xf32>, vector<8x8xf32>, vector<8x8xf32> -> vector<8x8xf32>
    %266 = arith.subf %32, %265 : vector<8x8xf32>
    %cst_99 = arith.constant dense<0.000000e+00> : vector<8x8xf32>
    %267 = tpu.matmul %263, %266, %cst_99 {dimension_numbers = #tpu.dot_dimension_numbers<[1], [0], [0], [1], [0, 0, 1, 1], [], []>} : vector<8x8xf32>, vector<8x8xf32>, vector<8x8xf32> -> vector<8x8xf32>
    %268 = arith.subf %30, %267 : vector<8x8xf32>
    %cst_100 = arith.constant dense<0.000000e+00> : vector<8x8xf32>
    %269 = tpu.matmul %262, %268, %cst_100 {dimension_numbers = #tpu.dot_dimension_numbers<[1], [0], [0], [1], [0, 0, 1, 1], [], []>} : vector<8x8xf32>, vector<8x8xf32>, vector<8x8xf32> -> vector<8x8xf32>
    %cst_101 = arith.constant 2.500000e-01 : f32
    %270 = vector.broadcast %cst_101 : f32 to vector<8x8xf32>
    %271 = arith.mulf %270, %269 : vector<8x8xf32>
    %cst_102 = arith.constant dense<0.000000e+00> : vector<8x8xf32>
    %272 = tpu.matmul %243, %271, %cst_102 {dimension_numbers = #tpu.dot_dimension_numbers<[1], [0], [0], [1], [0, 0, 1, 1], [], []>} : vector<8x8xf32>, vector<8x8xf32>, vector<8x8xf32> -> vector<8x8xf32>
    %273 = arith.subf %28, %272 : vector<8x8xf32>
    %cst_103 = arith.constant dense<0.000000e+00> : vector<8x8xf32>
    %274 = tpu.matmul %272, %273, %cst_103 {dimension_numbers = #tpu.dot_dimension_numbers<[1], [0], [0], [1], [0, 0, 1, 1], [], []>} : vector<8x8xf32>, vector<8x8xf32>, vector<8x8xf32> -> vector<8x8xf32>
    %275 = arith.subf %32, %274 : vector<8x8xf32>
    %cst_104 = arith.constant dense<0.000000e+00> : vector<8x8xf32>
    %276 = tpu.matmul %272, %275, %cst_104 {dimension_numbers = #tpu.dot_dimension_numbers<[1], [0], [0], [1], [0, 0, 1, 1], [], []>} : vector<8x8xf32>, vector<8x8xf32>, vector<8x8xf32> -> vector<8x8xf32>
    %277 = arith.subf %30, %276 : vector<8x8xf32>
    %cst_105 = arith.constant dense<0.000000e+00> : vector<8x8xf32>
    %278 = tpu.matmul %271, %277, %cst_105 {dimension_numbers = #tpu.dot_dimension_numbers<[1], [0], [0], [1], [0, 0, 1, 1], [], []>} : vector<8x8xf32>, vector<8x8xf32>, vector<8x8xf32> -> vector<8x8xf32>
    %cst_106 = arith.constant 2.500000e-01 : f32
    %279 = vector.broadcast %cst_106 : f32 to vector<8x8xf32>
    %280 = arith.mulf %279, %278 : vector<8x8xf32>
    %cst_107 = arith.constant dense<0.000000e+00> : vector<8x8xf32>
    %281 = tpu.matmul %243, %280, %cst_107 {dimension_numbers = #tpu.dot_dimension_numbers<[1], [0], [0], [1], [0, 0, 1, 1], [], []>} : vector<8x8xf32>, vector<8x8xf32>, vector<8x8xf32> -> vector<8x8xf32>
    %282 = arith.subf %28, %281 : vector<8x8xf32>
    %cst_108 = arith.constant dense<0.000000e+00> : vector<8x8xf32>
    %283 = tpu.matmul %281, %282, %cst_108 {dimension_numbers = #tpu.dot_dimension_numbers<[1], [0], [0], [1], [0, 0, 1, 1], [], []>} : vector<8x8xf32>, vector<8x8xf32>, vector<8x8xf32> -> vector<8x8xf32>
    %284 = arith.subf %32, %283 : vector<8x8xf32>
    %cst_109 = arith.constant dense<0.000000e+00> : vector<8x8xf32>
    %285 = tpu.matmul %281, %284, %cst_109 {dimension_numbers = #tpu.dot_dimension_numbers<[1], [0], [0], [1], [0, 0, 1, 1], [], []>} : vector<8x8xf32>, vector<8x8xf32>, vector<8x8xf32> -> vector<8x8xf32>
    %286 = arith.subf %30, %285 : vector<8x8xf32>
    %cst_110 = arith.constant dense<0.000000e+00> : vector<8x8xf32>
    %287 = tpu.matmul %280, %286, %cst_110 {dimension_numbers = #tpu.dot_dimension_numbers<[1], [0], [0], [1], [0, 0, 1, 1], [], []>} : vector<8x8xf32>, vector<8x8xf32>, vector<8x8xf32> -> vector<8x8xf32>
    %cst_111 = arith.constant 2.500000e-01 : f32
    %288 = vector.broadcast %cst_111 : f32 to vector<8x8xf32>
    %289 = arith.mulf %288, %287 : vector<8x8xf32>
    %cst_112 = arith.constant dense<0.000000e+00> : vector<8x8xf32>
    %290 = tpu.matmul %243, %289, %cst_112 {dimension_numbers = #tpu.dot_dimension_numbers<[1], [0], [0], [1], [0, 0, 1, 1], [], []>} : vector<8x8xf32>, vector<8x8xf32>, vector<8x8xf32> -> vector<8x8xf32>
    %291 = arith.subf %28, %290 : vector<8x8xf32>
    %cst_113 = arith.constant dense<0.000000e+00> : vector<8x8xf32>
    %292 = tpu.matmul %290, %291, %cst_113 {dimension_numbers = #tpu.dot_dimension_numbers<[1], [0], [0], [1], [0, 0, 1, 1], [], []>} : vector<8x8xf32>, vector<8x8xf32>, vector<8x8xf32> -> vector<8x8xf32>
    %293 = arith.subf %32, %292 : vector<8x8xf32>
    %cst_114 = arith.constant dense<0.000000e+00> : vector<8x8xf32>
    %294 = tpu.matmul %290, %293, %cst_114 {dimension_numbers = #tpu.dot_dimension_numbers<[1], [0], [0], [1], [0, 0, 1, 1], [], []>} : vector<8x8xf32>, vector<8x8xf32>, vector<8x8xf32> -> vector<8x8xf32>
    %295 = arith.subf %30, %294 : vector<8x8xf32>
    %cst_115 = arith.constant dense<0.000000e+00> : vector<8x8xf32>
    %296 = tpu.matmul %289, %295, %cst_115 {dimension_numbers = #tpu.dot_dimension_numbers<[1], [0], [0], [1], [0, 0, 1, 1], [], []>} : vector<8x8xf32>, vector<8x8xf32>, vector<8x8xf32> -> vector<8x8xf32>
    %cst_116 = arith.constant 2.500000e-01 : f32
    %297 = vector.broadcast %cst_116 : f32 to vector<8x8xf32>
    %298 = arith.mulf %297, %296 : vector<8x8xf32>
    %cst_117 = arith.constant dense<0.000000e+00> : vector<8x8xf32>
    %299 = tpu.matmul %243, %298, %cst_117 {dimension_numbers = #tpu.dot_dimension_numbers<[1], [0], [0], [1], [0, 0, 1, 1], [], []>} : vector<8x8xf32>, vector<8x8xf32>, vector<8x8xf32> -> vector<8x8xf32>
    %300 = arith.subf %28, %299 : vector<8x8xf32>
    %cst_118 = arith.constant dense<0.000000e+00> : vector<8x8xf32>
    %301 = tpu.matmul %299, %300, %cst_118 {dimension_numbers = #tpu.dot_dimension_numbers<[1], [0], [0], [1], [0, 0, 1, 1], [], []>} : vector<8x8xf32>, vector<8x8xf32>, vector<8x8xf32> -> vector<8x8xf32>
    %302 = arith.subf %32, %301 : vector<8x8xf32>
    %cst_119 = arith.constant dense<0.000000e+00> : vector<8x8xf32>
    %303 = tpu.matmul %299, %302, %cst_119 {dimension_numbers = #tpu.dot_dimension_numbers<[1], [0], [0], [1], [0, 0, 1, 1], [], []>} : vector<8x8xf32>, vector<8x8xf32>, vector<8x8xf32> -> vector<8x8xf32>
    %304 = arith.subf %30, %303 : vector<8x8xf32>
    %cst_120 = arith.constant dense<0.000000e+00> : vector<8x8xf32>
    %305 = tpu.matmul %298, %304, %cst_120 {dimension_numbers = #tpu.dot_dimension_numbers<[1], [0], [0], [1], [0, 0, 1, 1], [], []>} : vector<8x8xf32>, vector<8x8xf32>, vector<8x8xf32> -> vector<8x8xf32>
    %cst_121 = arith.constant 2.500000e-01 : f32
    %306 = vector.broadcast %cst_121 : f32 to vector<8x8xf32>
    %307 = arith.mulf %306, %305 : vector<8x8xf32>
    %cst_122 = arith.constant dense<0.000000e+00> : vector<8x8xf32>
    %308 = tpu.matmul %243, %307, %cst_122 {dimension_numbers = #tpu.dot_dimension_numbers<[1], [0], [0], [1], [0, 0, 1, 1], [], []>} : vector<8x8xf32>, vector<8x8xf32>, vector<8x8xf32> -> vector<8x8xf32>
    %309 = arith.subf %28, %308 : vector<8x8xf32>
    %cst_123 = arith.constant dense<0.000000e+00> : vector<8x8xf32>
    %310 = tpu.matmul %308, %309, %cst_123 {dimension_numbers = #tpu.dot_dimension_numbers<[1], [0], [0], [1], [0, 0, 1, 1], [], []>} : vector<8x8xf32>, vector<8x8xf32>, vector<8x8xf32> -> vector<8x8xf32>
    %311 = arith.subf %32, %310 : vector<8x8xf32>
    %cst_124 = arith.constant dense<0.000000e+00> : vector<8x8xf32>
    %312 = tpu.matmul %308, %311, %cst_124 {dimension_numbers = #tpu.dot_dimension_numbers<[1], [0], [0], [1], [0, 0, 1, 1], [], []>} : vector<8x8xf32>, vector<8x8xf32>, vector<8x8xf32> -> vector<8x8xf32>
    %313 = arith.subf %30, %312 : vector<8x8xf32>
    %cst_125 = arith.constant dense<0.000000e+00> : vector<8x8xf32>
    %314 = tpu.matmul %307, %313, %cst_125 {dimension_numbers = #tpu.dot_dimension_numbers<[1], [0], [0], [1], [0, 0, 1, 1], [], []>} : vector<8x8xf32>, vector<8x8xf32>, vector<8x8xf32> -> vector<8x8xf32>
    %cst_126 = arith.constant 2.500000e-01 : f32
    %315 = vector.broadcast %cst_126 : f32 to vector<8x8xf32>
    %316 = arith.mulf %315, %314 : vector<8x8xf32>
    %cst_127 = arith.constant dense<0.000000e+00> : vector<8x32xf32>
    %317 = tpu.matmul %316, %259, %cst_127 {dimension_numbers = #tpu.dot_dimension_numbers<[1], [0], [0], [1], [0, 0, 1, 1], [], []>} : vector<8x8xf32>, vector<8x32xf32>, vector<8x32xf32> -> vector<8x32xf32>
    %cst_128 = arith.constant dense<0.000000e+00> : vector<32x32xf32>
    %318 = tpu.matmul %233, %317, %cst_128 {dimension_numbers = #tpu.dot_dimension_numbers<[1], [0], [0], [1], [0, 0, 1, 1], [], []>} : vector<32x8xf32>, vector<8x32xf32>, vector<32x32xf32> -> vector<32x32xf32>
    %319 = vector.extract_strided_slice %35 {offsets = [0, 64], sizes = [32, 32], strides = [1, 1]} : vector<32x384xf32> to vector<32x32xf32>
    %cst_129 = arith.constant 0.176776692 : f32
    %320 = vector.broadcast %cst_129 : f32 to vector<32x32xf32>
    %321 = arith.mulf %319, %320 : vector<32x32xf32>
    %322 = vector.extract_strided_slice %35 {offsets = [0, 192], sizes = [32, 32], strides = [1, 1]} : vector<32x384xf32> to vector<32x32xf32>
    %323 = vector.extract_strided_slice %35 {offsets = [0, 320], sizes = [32, 32], strides = [1, 1]} : vector<32x384xf32> to vector<32x32xf32>
    %324 = vector.extract_strided_slice %36 {offsets = [0, 64], sizes = [8, 32], strides = [1, 1]} : vector<8x256xf32> to vector<8x32xf32>
    %cst_130 = arith.constant 0.176776692 : f32
    %325 = vector.broadcast %cst_130 : f32 to vector<8x32xf32>
    %326 = arith.mulf %324, %325 : vector<8x32xf32>
    %327 = vector.extract_strided_slice %36 {offsets = [0, 192], sizes = [8, 32], strides = [1, 1]} : vector<8x256xf32> to vector<8x32xf32>
    %328 = arith.truncf %321 : vector<32x32xf32> to vector<32x32xbf16>
    %329 = arith.truncf %327 : vector<8x32xf32> to vector<8x32xbf16>
    %cst_131 = arith.constant dense<0.000000e+00> : vector<32x8xf32>
    %330 = tpu.matmul %328, %329, %cst_131 {dimension_numbers = #tpu.dot_dimension_numbers<[1], [1], [0], [0], [0, 0, 1, 0], [], []>} : vector<32x32xbf16>, vector<8x32xbf16>, vector<32x8xf32> -> vector<32x8xf32>
    %cst_132 = arith.constant dense<0xFF800000> : vector<32xf32>
    %331 = vector.multi_reduction <maximumf>, %330, %cst_132 [1] : vector<32x8xf32> to vector<32xf32>
    %332 = vector.shape_cast %331 : vector<32xf32> to vector<32x1xf32>
    %333 = vector.broadcast %332 : vector<32x1xf32> to vector<32x8xf32>
    %334 = arith.subf %330, %333 : vector<32x8xf32>
    %335 = math.exp %334 : vector<32x8xf32>
    %cst_133 = arith.constant dense<0.000000e+00> : vector<32xf32>
    %336 = vector.multi_reduction <add>, %335, %cst_133 [1] : vector<32x8xf32> to vector<32xf32>
    %337 = vector.shape_cast %336 : vector<32xf32> to vector<32x1xf32>
    %338 = vector.broadcast %337 : vector<32x1xf32> to vector<32x8xf32>
    %339 = arith.divf %335, %338 : vector<32x8xf32>
    %cst_134 = arith.constant dense<0.000000e+00> : vector<8x8xf32>
    %340 = tpu.matmul %326, %327, %cst_134 {dimension_numbers = #tpu.dot_dimension_numbers<[1], [1], [0], [0], [0, 0, 1, 0], [], []>} : vector<8x32xf32>, vector<8x32xf32>, vector<8x8xf32> -> vector<8x8xf32>
    %cst_135 = arith.constant dense<0xFF800000> : vector<8xf32>
    %341 = vector.multi_reduction <maximumf>, %340, %cst_135 [1] : vector<8x8xf32> to vector<8xf32>
    %342 = vector.shape_cast %341 : vector<8xf32> to vector<8x1xf32>
    %343 = vector.broadcast %342 : vector<8x1xf32> to vector<8x8xf32>
    %344 = arith.subf %340, %343 : vector<8x8xf32>
    %345 = math.exp %344 : vector<8x8xf32>
    %cst_136 = arith.constant dense<0.000000e+00> : vector<8xf32>
    %346 = vector.multi_reduction <add>, %345, %cst_136 [1] : vector<8x8xf32> to vector<8xf32>
    %347 = vector.shape_cast %346 : vector<8xf32> to vector<8x1xf32>
    %348 = vector.broadcast %347 : vector<8x1xf32> to vector<8x8xf32>
    %349 = arith.divf %345, %348 : vector<8x8xf32>
    %350 = arith.truncf %326 : vector<8x32xf32> to vector<8x32xbf16>
    %351 = arith.truncf %322 : vector<32x32xf32> to vector<32x32xbf16>
    %cst_137 = arith.constant dense<0.000000e+00> : vector<8x32xf32>
    %352 = tpu.matmul %350, %351, %cst_137 {dimension_numbers = #tpu.dot_dimension_numbers<[1], [1], [0], [0], [0, 0, 1, 0], [], []>} : vector<8x32xbf16>, vector<32x32xbf16>, vector<8x32xf32> -> vector<8x32xf32>
    %cst_138 = arith.constant dense<0xFF800000> : vector<8xf32>
    %353 = vector.multi_reduction <maximumf>, %352, %cst_138 [1] : vector<8x32xf32> to vector<8xf32>
    %354 = vector.shape_cast %353 : vector<8xf32> to vector<8x1xf32>
    %355 = vector.broadcast %354 : vector<8x1xf32> to vector<8x32xf32>
    %356 = arith.subf %352, %355 : vector<8x32xf32>
    %357 = math.exp %356 : vector<8x32xf32>
    %cst_139 = arith.constant dense<0.000000e+00> : vector<8xf32>
    %358 = vector.multi_reduction <add>, %357, %cst_139 [1] : vector<8x32xf32> to vector<8xf32>
    %359 = vector.shape_cast %358 : vector<8xf32> to vector<8x1xf32>
    %360 = tpu.reciprocal %359 {approx = true} : vector<8x1xf32> -> vector<8x1xf32>
    %361 = vector.broadcast %360 : vector<8x1xf32> to vector<8x32xf32>
    %362 = arith.mulf %357, %361 : vector<8x32xf32>
    %363 = arith.truncf %362 : vector<8x32xf32> to vector<8x32xbf16>
    %364 = arith.truncf %323 : vector<32x32xf32> to vector<32x32xbf16>
    %cst_140 = arith.constant dense<0.000000e+00> : vector<8x32xf32>
    %365 = tpu.matmul %363, %364, %cst_140 {dimension_numbers = #tpu.dot_dimension_numbers<[1], [0], [0], [1], [0, 0, 1, 1], [], []>} : vector<8x32xbf16>, vector<32x32xbf16>, vector<8x32xf32> -> vector<8x32xf32>
    %366 = tpu.transpose %349, [1, 0] : vector<8x8xf32> -> vector<8x8xf32>
    %367 = vector.broadcast %21 : f32 to vector<8x8xf32>
    %368 = arith.mulf %366, %367 : vector<8x8xf32>
    %cst_141 = arith.constant dense<0.000000e+00> : vector<8x8xf32>
    %369 = tpu.matmul %349, %368, %cst_141 {dimension_numbers = #tpu.dot_dimension_numbers<[1], [0], [0], [1], [0, 0, 1, 1], [], []>} : vector<8x8xf32>, vector<8x8xf32>, vector<8x8xf32> -> vector<8x8xf32>
    %370 = arith.subf %28, %369 : vector<8x8xf32>
    %cst_142 = arith.constant dense<0.000000e+00> : vector<8x8xf32>
    %371 = tpu.matmul %369, %370, %cst_142 {dimension_numbers = #tpu.dot_dimension_numbers<[1], [0], [0], [1], [0, 0, 1, 1], [], []>} : vector<8x8xf32>, vector<8x8xf32>, vector<8x8xf32> -> vector<8x8xf32>
    %372 = arith.subf %32, %371 : vector<8x8xf32>
    %cst_143 = arith.constant dense<0.000000e+00> : vector<8x8xf32>
    %373 = tpu.matmul %369, %372, %cst_143 {dimension_numbers = #tpu.dot_dimension_numbers<[1], [0], [0], [1], [0, 0, 1, 1], [], []>} : vector<8x8xf32>, vector<8x8xf32>, vector<8x8xf32> -> vector<8x8xf32>
    %374 = arith.subf %30, %373 : vector<8x8xf32>
    %cst_144 = arith.constant dense<0.000000e+00> : vector<8x8xf32>
    %375 = tpu.matmul %368, %374, %cst_144 {dimension_numbers = #tpu.dot_dimension_numbers<[1], [0], [0], [1], [0, 0, 1, 1], [], []>} : vector<8x8xf32>, vector<8x8xf32>, vector<8x8xf32> -> vector<8x8xf32>
    %cst_145 = arith.constant 2.500000e-01 : f32
    %376 = vector.broadcast %cst_145 : f32 to vector<8x8xf32>
    %377 = arith.mulf %376, %375 : vector<8x8xf32>
    %cst_146 = arith.constant dense<0.000000e+00> : vector<8x8xf32>
    %378 = tpu.matmul %349, %377, %cst_146 {dimension_numbers = #tpu.dot_dimension_numbers<[1], [0], [0], [1], [0, 0, 1, 1], [], []>} : vector<8x8xf32>, vector<8x8xf32>, vector<8x8xf32> -> vector<8x8xf32>
    %379 = arith.subf %28, %378 : vector<8x8xf32>
    %cst_147 = arith.constant dense<0.000000e+00> : vector<8x8xf32>
    %380 = tpu.matmul %378, %379, %cst_147 {dimension_numbers = #tpu.dot_dimension_numbers<[1], [0], [0], [1], [0, 0, 1, 1], [], []>} : vector<8x8xf32>, vector<8x8xf32>, vector<8x8xf32> -> vector<8x8xf32>
    %381 = arith.subf %32, %380 : vector<8x8xf32>
    %cst_148 = arith.constant dense<0.000000e+00> : vector<8x8xf32>
    %382 = tpu.matmul %378, %381, %cst_148 {dimension_numbers = #tpu.dot_dimension_numbers<[1], [0], [0], [1], [0, 0, 1, 1], [], []>} : vector<8x8xf32>, vector<8x8xf32>, vector<8x8xf32> -> vector<8x8xf32>
    %383 = arith.subf %30, %382 : vector<8x8xf32>
    %cst_149 = arith.constant dense<0.000000e+00> : vector<8x8xf32>
    %384 = tpu.matmul %377, %383, %cst_149 {dimension_numbers = #tpu.dot_dimension_numbers<[1], [0], [0], [1], [0, 0, 1, 1], [], []>} : vector<8x8xf32>, vector<8x8xf32>, vector<8x8xf32> -> vector<8x8xf32>
    %cst_150 = arith.constant 2.500000e-01 : f32
    %385 = vector.broadcast %cst_150 : f32 to vector<8x8xf32>
    %386 = arith.mulf %385, %384 : vector<8x8xf32>
    %cst_151 = arith.constant dense<0.000000e+00> : vector<8x8xf32>
    %387 = tpu.matmul %349, %386, %cst_151 {dimension_numbers = #tpu.dot_dimension_numbers<[1], [0], [0], [1], [0, 0, 1, 1], [], []>} : vector<8x8xf32>, vector<8x8xf32>, vector<8x8xf32> -> vector<8x8xf32>
    %388 = arith.subf %28, %387 : vector<8x8xf32>
    %cst_152 = arith.constant dense<0.000000e+00> : vector<8x8xf32>
    %389 = tpu.matmul %387, %388, %cst_152 {dimension_numbers = #tpu.dot_dimension_numbers<[1], [0], [0], [1], [0, 0, 1, 1], [], []>} : vector<8x8xf32>, vector<8x8xf32>, vector<8x8xf32> -> vector<8x8xf32>
    %390 = arith.subf %32, %389 : vector<8x8xf32>
    %cst_153 = arith.constant dense<0.000000e+00> : vector<8x8xf32>
    %391 = tpu.matmul %387, %390, %cst_153 {dimension_numbers = #tpu.dot_dimension_numbers<[1], [0], [0], [1], [0, 0, 1, 1], [], []>} : vector<8x8xf32>, vector<8x8xf32>, vector<8x8xf32> -> vector<8x8xf32>
    %392 = arith.subf %30, %391 : vector<8x8xf32>
    %cst_154 = arith.constant dense<0.000000e+00> : vector<8x8xf32>
    %393 = tpu.matmul %386, %392, %cst_154 {dimension_numbers = #tpu.dot_dimension_numbers<[1], [0], [0], [1], [0, 0, 1, 1], [], []>} : vector<8x8xf32>, vector<8x8xf32>, vector<8x8xf32> -> vector<8x8xf32>
    %cst_155 = arith.constant 2.500000e-01 : f32
    %394 = vector.broadcast %cst_155 : f32 to vector<8x8xf32>
    %395 = arith.mulf %394, %393 : vector<8x8xf32>
    %cst_156 = arith.constant dense<0.000000e+00> : vector<8x8xf32>
    %396 = tpu.matmul %349, %395, %cst_156 {dimension_numbers = #tpu.dot_dimension_numbers<[1], [0], [0], [1], [0, 0, 1, 1], [], []>} : vector<8x8xf32>, vector<8x8xf32>, vector<8x8xf32> -> vector<8x8xf32>
    %397 = arith.subf %28, %396 : vector<8x8xf32>
    %cst_157 = arith.constant dense<0.000000e+00> : vector<8x8xf32>
    %398 = tpu.matmul %396, %397, %cst_157 {dimension_numbers = #tpu.dot_dimension_numbers<[1], [0], [0], [1], [0, 0, 1, 1], [], []>} : vector<8x8xf32>, vector<8x8xf32>, vector<8x8xf32> -> vector<8x8xf32>
    %399 = arith.subf %32, %398 : vector<8x8xf32>
    %cst_158 = arith.constant dense<0.000000e+00> : vector<8x8xf32>
    %400 = tpu.matmul %396, %399, %cst_158 {dimension_numbers = #tpu.dot_dimension_numbers<[1], [0], [0], [1], [0, 0, 1, 1], [], []>} : vector<8x8xf32>, vector<8x8xf32>, vector<8x8xf32> -> vector<8x8xf32>
    %401 = arith.subf %30, %400 : vector<8x8xf32>
    %cst_159 = arith.constant dense<0.000000e+00> : vector<8x8xf32>
    %402 = tpu.matmul %395, %401, %cst_159 {dimension_numbers = #tpu.dot_dimension_numbers<[1], [0], [0], [1], [0, 0, 1, 1], [], []>} : vector<8x8xf32>, vector<8x8xf32>, vector<8x8xf32> -> vector<8x8xf32>
    %cst_160 = arith.constant 2.500000e-01 : f32
    %403 = vector.broadcast %cst_160 : f32 to vector<8x8xf32>
    %404 = arith.mulf %403, %402 : vector<8x8xf32>
    %cst_161 = arith.constant dense<0.000000e+00> : vector<8x8xf32>
    %405 = tpu.matmul %349, %404, %cst_161 {dimension_numbers = #tpu.dot_dimension_numbers<[1], [0], [0], [1], [0, 0, 1, 1], [], []>} : vector<8x8xf32>, vector<8x8xf32>, vector<8x8xf32> -> vector<8x8xf32>
    %406 = arith.subf %28, %405 : vector<8x8xf32>
    %cst_162 = arith.constant dense<0.000000e+00> : vector<8x8xf32>
    %407 = tpu.matmul %405, %406, %cst_162 {dimension_numbers = #tpu.dot_dimension_numbers<[1], [0], [0], [1], [0, 0, 1, 1], [], []>} : vector<8x8xf32>, vector<8x8xf32>, vector<8x8xf32> -> vector<8x8xf32>
    %408 = arith.subf %32, %407 : vector<8x8xf32>
    %cst_163 = arith.constant dense<0.000000e+00> : vector<8x8xf32>
    %409 = tpu.matmul %405, %408, %cst_163 {dimension_numbers = #tpu.dot_dimension_numbers<[1], [0], [0], [1], [0, 0, 1, 1], [], []>} : vector<8x8xf32>, vector<8x8xf32>, vector<8x8xf32> -> vector<8x8xf32>
    %410 = arith.subf %30, %409 : vector<8x8xf32>
    %cst_164 = arith.constant dense<0.000000e+00> : vector<8x8xf32>
    %411 = tpu.matmul %404, %410, %cst_164 {dimension_numbers = #tpu.dot_dimension_numbers<[1], [0], [0], [1], [0, 0, 1, 1], [], []>} : vector<8x8xf32>, vector<8x8xf32>, vector<8x8xf32> -> vector<8x8xf32>
    %cst_165 = arith.constant 2.500000e-01 : f32
    %412 = vector.broadcast %cst_165 : f32 to vector<8x8xf32>
    %413 = arith.mulf %412, %411 : vector<8x8xf32>
    %cst_166 = arith.constant dense<0.000000e+00> : vector<8x8xf32>
    %414 = tpu.matmul %349, %413, %cst_166 {dimension_numbers = #tpu.dot_dimension_numbers<[1], [0], [0], [1], [0, 0, 1, 1], [], []>} : vector<8x8xf32>, vector<8x8xf32>, vector<8x8xf32> -> vector<8x8xf32>
    %415 = arith.subf %28, %414 : vector<8x8xf32>
    %cst_167 = arith.constant dense<0.000000e+00> : vector<8x8xf32>
    %416 = tpu.matmul %414, %415, %cst_167 {dimension_numbers = #tpu.dot_dimension_numbers<[1], [0], [0], [1], [0, 0, 1, 1], [], []>} : vector<8x8xf32>, vector<8x8xf32>, vector<8x8xf32> -> vector<8x8xf32>
    %417 = arith.subf %32, %416 : vector<8x8xf32>
    %cst_168 = arith.constant dense<0.000000e+00> : vector<8x8xf32>
    %418 = tpu.matmul %414, %417, %cst_168 {dimension_numbers = #tpu.dot_dimension_numbers<[1], [0], [0], [1], [0, 0, 1, 1], [], []>} : vector<8x8xf32>, vector<8x8xf32>, vector<8x8xf32> -> vector<8x8xf32>
    %419 = arith.subf %30, %418 : vector<8x8xf32>
    %cst_169 = arith.constant dense<0.000000e+00> : vector<8x8xf32>
    %420 = tpu.matmul %413, %419, %cst_169 {dimension_numbers = #tpu.dot_dimension_numbers<[1], [0], [0], [1], [0, 0, 1, 1], [], []>} : vector<8x8xf32>, vector<8x8xf32>, vector<8x8xf32> -> vector<8x8xf32>
    %cst_170 = arith.constant 2.500000e-01 : f32
    %421 = vector.broadcast %cst_170 : f32 to vector<8x8xf32>
    %422 = arith.mulf %421, %420 : vector<8x8xf32>
    %cst_171 = arith.constant dense<0.000000e+00> : vector<8x32xf32>
    %423 = tpu.matmul %422, %365, %cst_171 {dimension_numbers = #tpu.dot_dimension_numbers<[1], [0], [0], [1], [0, 0, 1, 1], [], []>} : vector<8x8xf32>, vector<8x32xf32>, vector<8x32xf32> -> vector<8x32xf32>
    %cst_172 = arith.constant dense<0.000000e+00> : vector<32x32xf32>
    %424 = tpu.matmul %339, %423, %cst_172 {dimension_numbers = #tpu.dot_dimension_numbers<[1], [0], [0], [1], [0, 0, 1, 1], [], []>} : vector<32x8xf32>, vector<8x32xf32>, vector<32x32xf32> -> vector<32x32xf32>
    %425 = vector.extract_strided_slice %35 {offsets = [0, 96], sizes = [32, 32], strides = [1, 1]} : vector<32x384xf32> to vector<32x32xf32>
    %cst_173 = arith.constant 0.176776692 : f32
    %426 = vector.broadcast %cst_173 : f32 to vector<32x32xf32>
    %427 = arith.mulf %425, %426 : vector<32x32xf32>
    %428 = vector.extract_strided_slice %35 {offsets = [0, 224], sizes = [32, 32], strides = [1, 1]} : vector<32x384xf32> to vector<32x32xf32>
    %429 = vector.extract_strided_slice %35 {offsets = [0, 352], sizes = [32, 32], strides = [1, 1]} : vector<32x384xf32> to vector<32x32xf32>
    %430 = vector.extract_strided_slice %36 {offsets = [0, 96], sizes = [8, 32], strides = [1, 1]} : vector<8x256xf32> to vector<8x32xf32>
    %cst_174 = arith.constant 0.176776692 : f32
    %431 = vector.broadcast %cst_174 : f32 to vector<8x32xf32>
    %432 = arith.mulf %430, %431 : vector<8x32xf32>
    %433 = vector.extract_strided_slice %36 {offsets = [0, 224], sizes = [8, 32], strides = [1, 1]} : vector<8x256xf32> to vector<8x32xf32>
    %434 = arith.truncf %427 : vector<32x32xf32> to vector<32x32xbf16>
    %435 = arith.truncf %433 : vector<8x32xf32> to vector<8x32xbf16>
    %cst_175 = arith.constant dense<0.000000e+00> : vector<32x8xf32>
    %436 = tpu.matmul %434, %435, %cst_175 {dimension_numbers = #tpu.dot_dimension_numbers<[1], [1], [0], [0], [0, 0, 1, 0], [], []>} : vector<32x32xbf16>, vector<8x32xbf16>, vector<32x8xf32> -> vector<32x8xf32>
    %cst_176 = arith.constant dense<0xFF800000> : vector<32xf32>
    %437 = vector.multi_reduction <maximumf>, %436, %cst_176 [1] : vector<32x8xf32> to vector<32xf32>
    %438 = vector.shape_cast %437 : vector<32xf32> to vector<32x1xf32>
    %439 = vector.broadcast %438 : vector<32x1xf32> to vector<32x8xf32>
    %440 = arith.subf %436, %439 : vector<32x8xf32>
    %441 = math.exp %440 : vector<32x8xf32>
    %cst_177 = arith.constant dense<0.000000e+00> : vector<32xf32>
    %442 = vector.multi_reduction <add>, %441, %cst_177 [1] : vector<32x8xf32> to vector<32xf32>
    %443 = vector.shape_cast %442 : vector<32xf32> to vector<32x1xf32>
    %444 = vector.broadcast %443 : vector<32x1xf32> to vector<32x8xf32>
    %445 = arith.divf %441, %444 : vector<32x8xf32>
    %cst_178 = arith.constant dense<0.000000e+00> : vector<8x8xf32>
    %446 = tpu.matmul %432, %433, %cst_178 {dimension_numbers = #tpu.dot_dimension_numbers<[1], [1], [0], [0], [0, 0, 1, 0], [], []>} : vector<8x32xf32>, vector<8x32xf32>, vector<8x8xf32> -> vector<8x8xf32>
    %cst_179 = arith.constant dense<0xFF800000> : vector<8xf32>
    %447 = vector.multi_reduction <maximumf>, %446, %cst_179 [1] : vector<8x8xf32> to vector<8xf32>
    %448 = vector.shape_cast %447 : vector<8xf32> to vector<8x1xf32>
    %449 = vector.broadcast %448 : vector<8x1xf32> to vector<8x8xf32>
    %450 = arith.subf %446, %449 : vector<8x8xf32>
    %451 = math.exp %450 : vector<8x8xf32>
    %cst_180 = arith.constant dense<0.000000e+00> : vector<8xf32>
    %452 = vector.multi_reduction <add>, %451, %cst_180 [1] : vector<8x8xf32> to vector<8xf32>
    %453 = vector.shape_cast %452 : vector<8xf32> to vector<8x1xf32>
    %454 = vector.broadcast %453 : vector<8x1xf32> to vector<8x8xf32>
    %455 = arith.divf %451, %454 : vector<8x8xf32>
    %456 = arith.truncf %432 : vector<8x32xf32> to vector<8x32xbf16>
    %457 = arith.truncf %428 : vector<32x32xf32> to vector<32x32xbf16>
    %cst_181 = arith.constant dense<0.000000e+00> : vector<8x32xf32>
    %458 = tpu.matmul %456, %457, %cst_181 {dimension_numbers = #tpu.dot_dimension_numbers<[1], [1], [0], [0], [0, 0, 1, 0], [], []>} : vector<8x32xbf16>, vector<32x32xbf16>, vector<8x32xf32> -> vector<8x32xf32>
    %cst_182 = arith.constant dense<0xFF800000> : vector<8xf32>
    %459 = vector.multi_reduction <maximumf>, %458, %cst_182 [1] : vector<8x32xf32> to vector<8xf32>
    %460 = vector.shape_cast %459 : vector<8xf32> to vector<8x1xf32>
    %461 = vector.broadcast %460 : vector<8x1xf32> to vector<8x32xf32>
    %462 = arith.subf %458, %461 : vector<8x32xf32>
    %463 = math.exp %462 : vector<8x32xf32>
    %cst_183 = arith.constant dense<0.000000e+00> : vector<8xf32>
    %464 = vector.multi_reduction <add>, %463, %cst_183 [1] : vector<8x32xf32> to vector<8xf32>
    %465 = vector.shape_cast %464 : vector<8xf32> to vector<8x1xf32>
    %466 = tpu.reciprocal %465 {approx = true} : vector<8x1xf32> -> vector<8x1xf32>
    %467 = vector.broadcast %466 : vector<8x1xf32> to vector<8x32xf32>
    %468 = arith.mulf %463, %467 : vector<8x32xf32>
    %469 = arith.truncf %468 : vector<8x32xf32> to vector<8x32xbf16>
    %470 = arith.truncf %429 : vector<32x32xf32> to vector<32x32xbf16>
    %cst_184 = arith.constant dense<0.000000e+00> : vector<8x32xf32>
    %471 = tpu.matmul %469, %470, %cst_184 {dimension_numbers = #tpu.dot_dimension_numbers<[1], [0], [0], [1], [0, 0, 1, 1], [], []>} : vector<8x32xbf16>, vector<32x32xbf16>, vector<8x32xf32> -> vector<8x32xf32>
    %472 = tpu.transpose %455, [1, 0] : vector<8x8xf32> -> vector<8x8xf32>
    %473 = vector.broadcast %21 : f32 to vector<8x8xf32>
    %474 = arith.mulf %472, %473 : vector<8x8xf32>
    %cst_185 = arith.constant dense<0.000000e+00> : vector<8x8xf32>
    %475 = tpu.matmul %455, %474, %cst_185 {dimension_numbers = #tpu.dot_dimension_numbers<[1], [0], [0], [1], [0, 0, 1, 1], [], []>} : vector<8x8xf32>, vector<8x8xf32>, vector<8x8xf32> -> vector<8x8xf32>
    %476 = arith.subf %28, %475 : vector<8x8xf32>
    %cst_186 = arith.constant dense<0.000000e+00> : vector<8x8xf32>
    %477 = tpu.matmul %475, %476, %cst_186 {dimension_numbers = #tpu.dot_dimension_numbers<[1], [0], [0], [1], [0, 0, 1, 1], [], []>} : vector<8x8xf32>, vector<8x8xf32>, vector<8x8xf32> -> vector<8x8xf32>
    %478 = arith.subf %32, %477 : vector<8x8xf32>
    %cst_187 = arith.constant dense<0.000000e+00> : vector<8x8xf32>
    %479 = tpu.matmul %475, %478, %cst_187 {dimension_numbers = #tpu.dot_dimension_numbers<[1], [0], [0], [1], [0, 0, 1, 1], [], []>} : vector<8x8xf32>, vector<8x8xf32>, vector<8x8xf32> -> vector<8x8xf32>
    %480 = arith.subf %30, %479 : vector<8x8xf32>
    %cst_188 = arith.constant dense<0.000000e+00> : vector<8x8xf32>
    %481 = tpu.matmul %474, %480, %cst_188 {dimension_numbers = #tpu.dot_dimension_numbers<[1], [0], [0], [1], [0, 0, 1, 1], [], []>} : vector<8x8xf32>, vector<8x8xf32>, vector<8x8xf32> -> vector<8x8xf32>
    %cst_189 = arith.constant 2.500000e-01 : f32
    %482 = vector.broadcast %cst_189 : f32 to vector<8x8xf32>
    %483 = arith.mulf %482, %481 : vector<8x8xf32>
    %cst_190 = arith.constant dense<0.000000e+00> : vector<8x8xf32>
    %484 = tpu.matmul %455, %483, %cst_190 {dimension_numbers = #tpu.dot_dimension_numbers<[1], [0], [0], [1], [0, 0, 1, 1], [], []>} : vector<8x8xf32>, vector<8x8xf32>, vector<8x8xf32> -> vector<8x8xf32>
    %485 = arith.subf %28, %484 : vector<8x8xf32>
    %cst_191 = arith.constant dense<0.000000e+00> : vector<8x8xf32>
    %486 = tpu.matmul %484, %485, %cst_191 {dimension_numbers = #tpu.dot_dimension_numbers<[1], [0], [0], [1], [0, 0, 1, 1], [], []>} : vector<8x8xf32>, vector<8x8xf32>, vector<8x8xf32> -> vector<8x8xf32>
    %487 = arith.subf %32, %486 : vector<8x8xf32>
    %cst_192 = arith.constant dense<0.000000e+00> : vector<8x8xf32>
    %488 = tpu.matmul %484, %487, %cst_192 {dimension_numbers = #tpu.dot_dimension_numbers<[1], [0], [0], [1], [0, 0, 1, 1], [], []>} : vector<8x8xf32>, vector<8x8xf32>, vector<8x8xf32> -> vector<8x8xf32>
    %489 = arith.subf %30, %488 : vector<8x8xf32>
    %cst_193 = arith.constant dense<0.000000e+00> : vector<8x8xf32>
    %490 = tpu.matmul %483, %489, %cst_193 {dimension_numbers = #tpu.dot_dimension_numbers<[1], [0], [0], [1], [0, 0, 1, 1], [], []>} : vector<8x8xf32>, vector<8x8xf32>, vector<8x8xf32> -> vector<8x8xf32>
    %cst_194 = arith.constant 2.500000e-01 : f32
    %491 = vector.broadcast %cst_194 : f32 to vector<8x8xf32>
    %492 = arith.mulf %491, %490 : vector<8x8xf32>
    %cst_195 = arith.constant dense<0.000000e+00> : vector<8x8xf32>
    %493 = tpu.matmul %455, %492, %cst_195 {dimension_numbers = #tpu.dot_dimension_numbers<[1], [0], [0], [1], [0, 0, 1, 1], [], []>} : vector<8x8xf32>, vector<8x8xf32>, vector<8x8xf32> -> vector<8x8xf32>
    %494 = arith.subf %28, %493 : vector<8x8xf32>
    %cst_196 = arith.constant dense<0.000000e+00> : vector<8x8xf32>
    %495 = tpu.matmul %493, %494, %cst_196 {dimension_numbers = #tpu.dot_dimension_numbers<[1], [0], [0], [1], [0, 0, 1, 1], [], []>} : vector<8x8xf32>, vector<8x8xf32>, vector<8x8xf32> -> vector<8x8xf32>
    %496 = arith.subf %32, %495 : vector<8x8xf32>
    %cst_197 = arith.constant dense<0.000000e+00> : vector<8x8xf32>
    %497 = tpu.matmul %493, %496, %cst_197 {dimension_numbers = #tpu.dot_dimension_numbers<[1], [0], [0], [1], [0, 0, 1, 1], [], []>} : vector<8x8xf32>, vector<8x8xf32>, vector<8x8xf32> -> vector<8x8xf32>
    %498 = arith.subf %30, %497 : vector<8x8xf32>
    %cst_198 = arith.constant dense<0.000000e+00> : vector<8x8xf32>
    %499 = tpu.matmul %492, %498, %cst_198 {dimension_numbers = #tpu.dot_dimension_numbers<[1], [0], [0], [1], [0, 0, 1, 1], [], []>} : vector<8x8xf32>, vector<8x8xf32>, vector<8x8xf32> -> vector<8x8xf32>
    %cst_199 = arith.constant 2.500000e-01 : f32
    %500 = vector.broadcast %cst_199 : f32 to vector<8x8xf32>
    %501 = arith.mulf %500, %499 : vector<8x8xf32>
    %cst_200 = arith.constant dense<0.000000e+00> : vector<8x8xf32>
    %502 = tpu.matmul %455, %501, %cst_200 {dimension_numbers = #tpu.dot_dimension_numbers<[1], [0], [0], [1], [0, 0, 1, 1], [], []>} : vector<8x8xf32>, vector<8x8xf32>, vector<8x8xf32> -> vector<8x8xf32>
    %503 = arith.subf %28, %502 : vector<8x8xf32>
    %cst_201 = arith.constant dense<0.000000e+00> : vector<8x8xf32>
    %504 = tpu.matmul %502, %503, %cst_201 {dimension_numbers = #tpu.dot_dimension_numbers<[1], [0], [0], [1], [0, 0, 1, 1], [], []>} : vector<8x8xf32>, vector<8x8xf32>, vector<8x8xf32> -> vector<8x8xf32>
    %505 = arith.subf %32, %504 : vector<8x8xf32>
    %cst_202 = arith.constant dense<0.000000e+00> : vector<8x8xf32>
    %506 = tpu.matmul %502, %505, %cst_202 {dimension_numbers = #tpu.dot_dimension_numbers<[1], [0], [0], [1], [0, 0, 1, 1], [], []>} : vector<8x8xf32>, vector<8x8xf32>, vector<8x8xf32> -> vector<8x8xf32>
    %507 = arith.subf %30, %506 : vector<8x8xf32>
    %cst_203 = arith.constant dense<0.000000e+00> : vector<8x8xf32>
    %508 = tpu.matmul %501, %507, %cst_203 {dimension_numbers = #tpu.dot_dimension_numbers<[1], [0], [0], [1], [0, 0, 1, 1], [], []>} : vector<8x8xf32>, vector<8x8xf32>, vector<8x8xf32> -> vector<8x8xf32>
    %cst_204 = arith.constant 2.500000e-01 : f32
    %509 = vector.broadcast %cst_204 : f32 to vector<8x8xf32>
    %510 = arith.mulf %509, %508 : vector<8x8xf32>
    %cst_205 = arith.constant dense<0.000000e+00> : vector<8x8xf32>
    %511 = tpu.matmul %455, %510, %cst_205 {dimension_numbers = #tpu.dot_dimension_numbers<[1], [0], [0], [1], [0, 0, 1, 1], [], []>} : vector<8x8xf32>, vector<8x8xf32>, vector<8x8xf32> -> vector<8x8xf32>
    %512 = arith.subf %28, %511 : vector<8x8xf32>
    %cst_206 = arith.constant dense<0.000000e+00> : vector<8x8xf32>
    %513 = tpu.matmul %511, %512, %cst_206 {dimension_numbers = #tpu.dot_dimension_numbers<[1], [0], [0], [1], [0, 0, 1, 1], [], []>} : vector<8x8xf32>, vector<8x8xf32>, vector<8x8xf32> -> vector<8x8xf32>
    %514 = arith.subf %32, %513 : vector<8x8xf32>
    %cst_207 = arith.constant dense<0.000000e+00> : vector<8x8xf32>
    %515 = tpu.matmul %511, %514, %cst_207 {dimension_numbers = #tpu.dot_dimension_numbers<[1], [0], [0], [1], [0, 0, 1, 1], [], []>} : vector<8x8xf32>, vector<8x8xf32>, vector<8x8xf32> -> vector<8x8xf32>
    %516 = arith.subf %30, %515 : vector<8x8xf32>
    %cst_208 = arith.constant dense<0.000000e+00> : vector<8x8xf32>
    %517 = tpu.matmul %510, %516, %cst_208 {dimension_numbers = #tpu.dot_dimension_numbers<[1], [0], [0], [1], [0, 0, 1, 1], [], []>} : vector<8x8xf32>, vector<8x8xf32>, vector<8x8xf32> -> vector<8x8xf32>
    %cst_209 = arith.constant 2.500000e-01 : f32
    %518 = vector.broadcast %cst_209 : f32 to vector<8x8xf32>
    %519 = arith.mulf %518, %517 : vector<8x8xf32>
    %cst_210 = arith.constant dense<0.000000e+00> : vector<8x8xf32>
    %520 = tpu.matmul %455, %519, %cst_210 {dimension_numbers = #tpu.dot_dimension_numbers<[1], [0], [0], [1], [0, 0, 1, 1], [], []>} : vector<8x8xf32>, vector<8x8xf32>, vector<8x8xf32> -> vector<8x8xf32>
    %521 = arith.subf %28, %520 : vector<8x8xf32>
    %cst_211 = arith.constant dense<0.000000e+00> : vector<8x8xf32>
    %522 = tpu.matmul %520, %521, %cst_211 {dimension_numbers = #tpu.dot_dimension_numbers<[1], [0], [0], [1], [0, 0, 1, 1], [], []>} : vector<8x8xf32>, vector<8x8xf32>, vector<8x8xf32> -> vector<8x8xf32>
    %523 = arith.subf %32, %522 : vector<8x8xf32>
    %cst_212 = arith.constant dense<0.000000e+00> : vector<8x8xf32>
    %524 = tpu.matmul %520, %523, %cst_212 {dimension_numbers = #tpu.dot_dimension_numbers<[1], [0], [0], [1], [0, 0, 1, 1], [], []>} : vector<8x8xf32>, vector<8x8xf32>, vector<8x8xf32> -> vector<8x8xf32>
    %525 = arith.subf %30, %524 : vector<8x8xf32>
    %cst_213 = arith.constant dense<0.000000e+00> : vector<8x8xf32>
    %526 = tpu.matmul %519, %525, %cst_213 {dimension_numbers = #tpu.dot_dimension_numbers<[1], [0], [0], [1], [0, 0, 1, 1], [], []>} : vector<8x8xf32>, vector<8x8xf32>, vector<8x8xf32> -> vector<8x8xf32>
    %cst_214 = arith.constant 2.500000e-01 : f32
    %527 = vector.broadcast %cst_214 : f32 to vector<8x8xf32>
    %528 = arith.mulf %527, %526 : vector<8x8xf32>
    %cst_215 = arith.constant dense<0.000000e+00> : vector<8x32xf32>
    %529 = tpu.matmul %528, %471, %cst_215 {dimension_numbers = #tpu.dot_dimension_numbers<[1], [0], [0], [1], [0, 0, 1, 1], [], []>} : vector<8x8xf32>, vector<8x32xf32>, vector<8x32xf32> -> vector<8x32xf32>
    %cst_216 = arith.constant dense<0.000000e+00> : vector<32x32xf32>
    %530 = tpu.matmul %445, %529, %cst_216 {dimension_numbers = #tpu.dot_dimension_numbers<[1], [0], [0], [1], [0, 0, 1, 1], [], []>} : vector<32x8xf32>, vector<8x32xf32>, vector<32x32xf32> -> vector<32x32xf32>
    %531 = tpu.concatenate %212, %318, %424, %530 in 1 : vector<32x32xf32>, vector<32x32xf32>, vector<32x32xf32>, vector<32x32xf32> -> vector<32x128xf32>
    %532 = arith.addf %531, %106 : vector<32x128xf32>
    %533 = vector.extract_strided_slice %4 {offsets = [32, 0], sizes = [32, 384], strides = [1, 1]} : vector<64x384xf32> to vector<32x384xf32>
    %534 = vector.extract_strided_slice %19 {offsets = [8, 0], sizes = [8, 256], strides = [1, 1]} : vector<16x256xf32> to vector<8x256xf32>
    %535 = vector.extract_strided_slice %533 {offsets = [0, 256], sizes = [32, 128], strides = [1, 1]} : vector<32x384xf32> to vector<32x128xf32>
    %cst_217 = arith.constant 0.000000e+00 : f32
    %536 = vector.broadcast %cst_217 : f32 to vector<32x128xf32>
    %537 = vector.extract_strided_slice %34 {offsets = [0, 0], sizes = [1, 128], strides = [1, 1]} : vector<5x128xf32> to vector<1x128xf32>
    %c2_i32_218 = arith.constant 2 : i32
    %538 = tpu.dynamic_rotate %535 by %c2_i32_218 dim 0 : vector<32x128xf32>, i32 -> vector<32x128xf32>
    %c-2_i32_219 = arith.constant -2 : i32
    %539 = vector.broadcast %c-2_i32_219 : i32 to vector<32x128xi32>
    %540 = arith.addi %33, %539 : vector<32x128xi32>
    %c0_i32_220 = arith.constant 0 : i32
    %541 = vector.broadcast %c0_i32_220 : i32 to vector<32x128xi32>
    %542 = arith.cmpi sge, %540, %541 : vector<32x128xi32>
    %c-2_i32_221 = arith.constant -2 : i32
    %543 = vector.broadcast %c-2_i32_221 : i32 to vector<32x128xi32>
    %544 = arith.addi %33, %543 : vector<32x128xi32>
    %c32_i32_222 = arith.constant 32 : i32
    %545 = vector.broadcast %c32_i32_222 : i32 to vector<32x128xi32>
    %546 = arith.cmpi slt, %544, %545 : vector<32x128xi32>
    %547 = arith.andi %542, %546 : vector<32x128xi1>
    %cst_223 = arith.constant 0.000000e+00 : f32
    %548 = vector.broadcast %cst_223 : f32 to vector<32x128xf32>
    %549 = arith.select %547, %538, %548 : vector<32x128xi1>, vector<32x128xf32>
    %550 = vector.broadcast %537 : vector<1x128xf32> to vector<32x128xf32>
    %551 = arith.mulf %550, %549 : vector<32x128xf32>
    %552 = arith.addf %536, %551 : vector<32x128xf32>
    %553 = vector.extract_strided_slice %34 {offsets = [1, 0], sizes = [1, 128], strides = [1, 1]} : vector<5x128xf32> to vector<1x128xf32>
    %c1_i32_224 = arith.constant 1 : i32
    %554 = tpu.dynamic_rotate %535 by %c1_i32_224 dim 0 : vector<32x128xf32>, i32 -> vector<32x128xf32>
    %c-1_i32_225 = arith.constant -1 : i32
    %555 = vector.broadcast %c-1_i32_225 : i32 to vector<32x128xi32>
    %556 = arith.addi %33, %555 : vector<32x128xi32>
    %c0_i32_226 = arith.constant 0 : i32
    %557 = vector.broadcast %c0_i32_226 : i32 to vector<32x128xi32>
    %558 = arith.cmpi sge, %556, %557 : vector<32x128xi32>
    %c-1_i32_227 = arith.constant -1 : i32
    %559 = vector.broadcast %c-1_i32_227 : i32 to vector<32x128xi32>
    %560 = arith.addi %33, %559 : vector<32x128xi32>
    %c32_i32_228 = arith.constant 32 : i32
    %561 = vector.broadcast %c32_i32_228 : i32 to vector<32x128xi32>
    %562 = arith.cmpi slt, %560, %561 : vector<32x128xi32>
    %563 = arith.andi %558, %562 : vector<32x128xi1>
    %cst_229 = arith.constant 0.000000e+00 : f32
    %564 = vector.broadcast %cst_229 : f32 to vector<32x128xf32>
    %565 = arith.select %563, %554, %564 : vector<32x128xi1>, vector<32x128xf32>
    %566 = vector.broadcast %553 : vector<1x128xf32> to vector<32x128xf32>
    %567 = arith.mulf %566, %565 : vector<32x128xf32>
    %568 = arith.addf %552, %567 : vector<32x128xf32>
    %569 = vector.extract_strided_slice %34 {offsets = [2, 0], sizes = [1, 128], strides = [1, 1]} : vector<5x128xf32> to vector<1x128xf32>
    %570 = vector.broadcast %569 : vector<1x128xf32> to vector<32x128xf32>
    %571 = arith.mulf %570, %535 : vector<32x128xf32>
    %572 = arith.addf %568, %571 : vector<32x128xf32>
    %573 = vector.extract_strided_slice %34 {offsets = [3, 0], sizes = [1, 128], strides = [1, 1]} : vector<5x128xf32> to vector<1x128xf32>
    %c31_i32_230 = arith.constant 31 : i32
    %574 = tpu.dynamic_rotate %535 by %c31_i32_230 dim 0 : vector<32x128xf32>, i32 -> vector<32x128xf32>
    %c1_i32_231 = arith.constant 1 : i32
    %575 = vector.broadcast %c1_i32_231 : i32 to vector<32x128xi32>
    %576 = arith.addi %33, %575 : vector<32x128xi32>
    %c0_i32_232 = arith.constant 0 : i32
    %577 = vector.broadcast %c0_i32_232 : i32 to vector<32x128xi32>
    %578 = arith.cmpi sge, %576, %577 : vector<32x128xi32>
    %c1_i32_233 = arith.constant 1 : i32
    %579 = vector.broadcast %c1_i32_233 : i32 to vector<32x128xi32>
    %580 = arith.addi %33, %579 : vector<32x128xi32>
    %c32_i32_234 = arith.constant 32 : i32
    %581 = vector.broadcast %c32_i32_234 : i32 to vector<32x128xi32>
    %582 = arith.cmpi slt, %580, %581 : vector<32x128xi32>
    %583 = arith.andi %578, %582 : vector<32x128xi1>
    %cst_235 = arith.constant 0.000000e+00 : f32
    %584 = vector.broadcast %cst_235 : f32 to vector<32x128xf32>
    %585 = arith.select %583, %574, %584 : vector<32x128xi1>, vector<32x128xf32>
    %586 = vector.broadcast %573 : vector<1x128xf32> to vector<32x128xf32>
    %587 = arith.mulf %586, %585 : vector<32x128xf32>
    %588 = arith.addf %572, %587 : vector<32x128xf32>
    %589 = vector.extract_strided_slice %34 {offsets = [4, 0], sizes = [1, 128], strides = [1, 1]} : vector<5x128xf32> to vector<1x128xf32>
    %c30_i32_236 = arith.constant 30 : i32
    %590 = tpu.dynamic_rotate %535 by %c30_i32_236 dim 0 : vector<32x128xf32>, i32 -> vector<32x128xf32>
    %c2_i32_237 = arith.constant 2 : i32
    %591 = vector.broadcast %c2_i32_237 : i32 to vector<32x128xi32>
    %592 = arith.addi %33, %591 : vector<32x128xi32>
    %c0_i32_238 = arith.constant 0 : i32
    %593 = vector.broadcast %c0_i32_238 : i32 to vector<32x128xi32>
    %594 = arith.cmpi sge, %592, %593 : vector<32x128xi32>
    %c2_i32_239 = arith.constant 2 : i32
    %595 = vector.broadcast %c2_i32_239 : i32 to vector<32x128xi32>
    %596 = arith.addi %33, %595 : vector<32x128xi32>
    %c32_i32_240 = arith.constant 32 : i32
    %597 = vector.broadcast %c32_i32_240 : i32 to vector<32x128xi32>
    %598 = arith.cmpi slt, %596, %597 : vector<32x128xi32>
    %599 = arith.andi %594, %598 : vector<32x128xi1>
    %cst_241 = arith.constant 0.000000e+00 : f32
    %600 = vector.broadcast %cst_241 : f32 to vector<32x128xf32>
    %601 = arith.select %599, %590, %600 : vector<32x128xi1>, vector<32x128xf32>
    %602 = vector.broadcast %589 : vector<1x128xf32> to vector<32x128xf32>
    %603 = arith.mulf %602, %601 : vector<32x128xf32>
    %604 = arith.addf %588, %603 : vector<32x128xf32>
    %605 = vector.extract_strided_slice %533 {offsets = [0, 0], sizes = [32, 32], strides = [1, 1]} : vector<32x384xf32> to vector<32x32xf32>
    %cst_242 = arith.constant 0.176776692 : f32
    %606 = vector.broadcast %cst_242 : f32 to vector<32x32xf32>
    %607 = arith.mulf %605, %606 : vector<32x32xf32>
    %608 = vector.extract_strided_slice %533 {offsets = [0, 128], sizes = [32, 32], strides = [1, 1]} : vector<32x384xf32> to vector<32x32xf32>
    %609 = vector.extract_strided_slice %533 {offsets = [0, 256], sizes = [32, 32], strides = [1, 1]} : vector<32x384xf32> to vector<32x32xf32>
    %610 = vector.extract_strided_slice %534 {offsets = [0, 0], sizes = [8, 32], strides = [1, 1]} : vector<8x256xf32> to vector<8x32xf32>
    %cst_243 = arith.constant 0.176776692 : f32
    %611 = vector.broadcast %cst_243 : f32 to vector<8x32xf32>
    %612 = arith.mulf %610, %611 : vector<8x32xf32>
    %613 = vector.extract_strided_slice %534 {offsets = [0, 128], sizes = [8, 32], strides = [1, 1]} : vector<8x256xf32> to vector<8x32xf32>
    %614 = arith.truncf %607 : vector<32x32xf32> to vector<32x32xbf16>
    %615 = arith.truncf %613 : vector<8x32xf32> to vector<8x32xbf16>
    %cst_244 = arith.constant dense<0.000000e+00> : vector<32x8xf32>
    %616 = tpu.matmul %614, %615, %cst_244 {dimension_numbers = #tpu.dot_dimension_numbers<[1], [1], [0], [0], [0, 0, 1, 0], [], []>} : vector<32x32xbf16>, vector<8x32xbf16>, vector<32x8xf32> -> vector<32x8xf32>
    %cst_245 = arith.constant dense<0xFF800000> : vector<32xf32>
    %617 = vector.multi_reduction <maximumf>, %616, %cst_245 [1] : vector<32x8xf32> to vector<32xf32>
    %618 = vector.shape_cast %617 : vector<32xf32> to vector<32x1xf32>
    %619 = vector.broadcast %618 : vector<32x1xf32> to vector<32x8xf32>
    %620 = arith.subf %616, %619 : vector<32x8xf32>
    %621 = math.exp %620 : vector<32x8xf32>
    %cst_246 = arith.constant dense<0.000000e+00> : vector<32xf32>
    %622 = vector.multi_reduction <add>, %621, %cst_246 [1] : vector<32x8xf32> to vector<32xf32>
    %623 = vector.shape_cast %622 : vector<32xf32> to vector<32x1xf32>
    %624 = vector.broadcast %623 : vector<32x1xf32> to vector<32x8xf32>
    %625 = arith.divf %621, %624 : vector<32x8xf32>
    %cst_247 = arith.constant dense<0.000000e+00> : vector<8x8xf32>
    %626 = tpu.matmul %612, %613, %cst_247 {dimension_numbers = #tpu.dot_dimension_numbers<[1], [1], [0], [0], [0, 0, 1, 0], [], []>} : vector<8x32xf32>, vector<8x32xf32>, vector<8x8xf32> -> vector<8x8xf32>
    %cst_248 = arith.constant dense<0xFF800000> : vector<8xf32>
    %627 = vector.multi_reduction <maximumf>, %626, %cst_248 [1] : vector<8x8xf32> to vector<8xf32>
    %628 = vector.shape_cast %627 : vector<8xf32> to vector<8x1xf32>
    %629 = vector.broadcast %628 : vector<8x1xf32> to vector<8x8xf32>
    %630 = arith.subf %626, %629 : vector<8x8xf32>
    %631 = math.exp %630 : vector<8x8xf32>
    %cst_249 = arith.constant dense<0.000000e+00> : vector<8xf32>
    %632 = vector.multi_reduction <add>, %631, %cst_249 [1] : vector<8x8xf32> to vector<8xf32>
    %633 = vector.shape_cast %632 : vector<8xf32> to vector<8x1xf32>
    %634 = vector.broadcast %633 : vector<8x1xf32> to vector<8x8xf32>
    %635 = arith.divf %631, %634 : vector<8x8xf32>
    %636 = arith.truncf %612 : vector<8x32xf32> to vector<8x32xbf16>
    %637 = arith.truncf %608 : vector<32x32xf32> to vector<32x32xbf16>
    %cst_250 = arith.constant dense<0.000000e+00> : vector<8x32xf32>
    %638 = tpu.matmul %636, %637, %cst_250 {dimension_numbers = #tpu.dot_dimension_numbers<[1], [1], [0], [0], [0, 0, 1, 0], [], []>} : vector<8x32xbf16>, vector<32x32xbf16>, vector<8x32xf32> -> vector<8x32xf32>
    %cst_251 = arith.constant dense<0xFF800000> : vector<8xf32>
    %639 = vector.multi_reduction <maximumf>, %638, %cst_251 [1] : vector<8x32xf32> to vector<8xf32>
    %640 = vector.shape_cast %639 : vector<8xf32> to vector<8x1xf32>
    %641 = vector.broadcast %640 : vector<8x1xf32> to vector<8x32xf32>
    %642 = arith.subf %638, %641 : vector<8x32xf32>
    %643 = math.exp %642 : vector<8x32xf32>
    %cst_252 = arith.constant dense<0.000000e+00> : vector<8xf32>
    %644 = vector.multi_reduction <add>, %643, %cst_252 [1] : vector<8x32xf32> to vector<8xf32>
    %645 = vector.shape_cast %644 : vector<8xf32> to vector<8x1xf32>
    %646 = tpu.reciprocal %645 {approx = true} : vector<8x1xf32> -> vector<8x1xf32>
    %647 = vector.broadcast %646 : vector<8x1xf32> to vector<8x32xf32>
    %648 = arith.mulf %643, %647 : vector<8x32xf32>
    %649 = arith.truncf %648 : vector<8x32xf32> to vector<8x32xbf16>
    %650 = arith.truncf %609 : vector<32x32xf32> to vector<32x32xbf16>
    %cst_253 = arith.constant dense<0.000000e+00> : vector<8x32xf32>
    %651 = tpu.matmul %649, %650, %cst_253 {dimension_numbers = #tpu.dot_dimension_numbers<[1], [0], [0], [1], [0, 0, 1, 1], [], []>} : vector<8x32xbf16>, vector<32x32xbf16>, vector<8x32xf32> -> vector<8x32xf32>
    %652 = tpu.transpose %635, [1, 0] : vector<8x8xf32> -> vector<8x8xf32>
    %653 = vector.broadcast %21 : f32 to vector<8x8xf32>
    %654 = arith.mulf %652, %653 : vector<8x8xf32>
    %cst_254 = arith.constant dense<0.000000e+00> : vector<8x8xf32>
    %655 = tpu.matmul %635, %654, %cst_254 {dimension_numbers = #tpu.dot_dimension_numbers<[1], [0], [0], [1], [0, 0, 1, 1], [], []>} : vector<8x8xf32>, vector<8x8xf32>, vector<8x8xf32> -> vector<8x8xf32>
    %656 = arith.subf %28, %655 : vector<8x8xf32>
    %cst_255 = arith.constant dense<0.000000e+00> : vector<8x8xf32>
    %657 = tpu.matmul %655, %656, %cst_255 {dimension_numbers = #tpu.dot_dimension_numbers<[1], [0], [0], [1], [0, 0, 1, 1], [], []>} : vector<8x8xf32>, vector<8x8xf32>, vector<8x8xf32> -> vector<8x8xf32>
    %658 = arith.subf %32, %657 : vector<8x8xf32>
    %cst_256 = arith.constant dense<0.000000e+00> : vector<8x8xf32>
    %659 = tpu.matmul %655, %658, %cst_256 {dimension_numbers = #tpu.dot_dimension_numbers<[1], [0], [0], [1], [0, 0, 1, 1], [], []>} : vector<8x8xf32>, vector<8x8xf32>, vector<8x8xf32> -> vector<8x8xf32>
    %660 = arith.subf %30, %659 : vector<8x8xf32>
    %cst_257 = arith.constant dense<0.000000e+00> : vector<8x8xf32>
    %661 = tpu.matmul %654, %660, %cst_257 {dimension_numbers = #tpu.dot_dimension_numbers<[1], [0], [0], [1], [0, 0, 1, 1], [], []>} : vector<8x8xf32>, vector<8x8xf32>, vector<8x8xf32> -> vector<8x8xf32>
    %cst_258 = arith.constant 2.500000e-01 : f32
    %662 = vector.broadcast %cst_258 : f32 to vector<8x8xf32>
    %663 = arith.mulf %662, %661 : vector<8x8xf32>
    %cst_259 = arith.constant dense<0.000000e+00> : vector<8x8xf32>
    %664 = tpu.matmul %635, %663, %cst_259 {dimension_numbers = #tpu.dot_dimension_numbers<[1], [0], [0], [1], [0, 0, 1, 1], [], []>} : vector<8x8xf32>, vector<8x8xf32>, vector<8x8xf32> -> vector<8x8xf32>
    %665 = arith.subf %28, %664 : vector<8x8xf32>
    %cst_260 = arith.constant dense<0.000000e+00> : vector<8x8xf32>
    %666 = tpu.matmul %664, %665, %cst_260 {dimension_numbers = #tpu.dot_dimension_numbers<[1], [0], [0], [1], [0, 0, 1, 1], [], []>} : vector<8x8xf32>, vector<8x8xf32>, vector<8x8xf32> -> vector<8x8xf32>
    %667 = arith.subf %32, %666 : vector<8x8xf32>
    %cst_261 = arith.constant dense<0.000000e+00> : vector<8x8xf32>
    %668 = tpu.matmul %664, %667, %cst_261 {dimension_numbers = #tpu.dot_dimension_numbers<[1], [0], [0], [1], [0, 0, 1, 1], [], []>} : vector<8x8xf32>, vector<8x8xf32>, vector<8x8xf32> -> vector<8x8xf32>
    %669 = arith.subf %30, %668 : vector<8x8xf32>
    %cst_262 = arith.constant dense<0.000000e+00> : vector<8x8xf32>
    %670 = tpu.matmul %663, %669, %cst_262 {dimension_numbers = #tpu.dot_dimension_numbers<[1], [0], [0], [1], [0, 0, 1, 1], [], []>} : vector<8x8xf32>, vector<8x8xf32>, vector<8x8xf32> -> vector<8x8xf32>
    %cst_263 = arith.constant 2.500000e-01 : f32
    %671 = vector.broadcast %cst_263 : f32 to vector<8x8xf32>
    %672 = arith.mulf %671, %670 : vector<8x8xf32>
    %cst_264 = arith.constant dense<0.000000e+00> : vector<8x8xf32>
    %673 = tpu.matmul %635, %672, %cst_264 {dimension_numbers = #tpu.dot_dimension_numbers<[1], [0], [0], [1], [0, 0, 1, 1], [], []>} : vector<8x8xf32>, vector<8x8xf32>, vector<8x8xf32> -> vector<8x8xf32>
    %674 = arith.subf %28, %673 : vector<8x8xf32>
    %cst_265 = arith.constant dense<0.000000e+00> : vector<8x8xf32>
    %675 = tpu.matmul %673, %674, %cst_265 {dimension_numbers = #tpu.dot_dimension_numbers<[1], [0], [0], [1], [0, 0, 1, 1], [], []>} : vector<8x8xf32>, vector<8x8xf32>, vector<8x8xf32> -> vector<8x8xf32>
    %676 = arith.subf %32, %675 : vector<8x8xf32>
    %cst_266 = arith.constant dense<0.000000e+00> : vector<8x8xf32>
    %677 = tpu.matmul %673, %676, %cst_266 {dimension_numbers = #tpu.dot_dimension_numbers<[1], [0], [0], [1], [0, 0, 1, 1], [], []>} : vector<8x8xf32>, vector<8x8xf32>, vector<8x8xf32> -> vector<8x8xf32>
    %678 = arith.subf %30, %677 : vector<8x8xf32>
    %cst_267 = arith.constant dense<0.000000e+00> : vector<8x8xf32>
    %679 = tpu.matmul %672, %678, %cst_267 {dimension_numbers = #tpu.dot_dimension_numbers<[1], [0], [0], [1], [0, 0, 1, 1], [], []>} : vector<8x8xf32>, vector<8x8xf32>, vector<8x8xf32> -> vector<8x8xf32>
    %cst_268 = arith.constant 2.500000e-01 : f32
    %680 = vector.broadcast %cst_268 : f32 to vector<8x8xf32>
    %681 = arith.mulf %680, %679 : vector<8x8xf32>
    %cst_269 = arith.constant dense<0.000000e+00> : vector<8x8xf32>
    %682 = tpu.matmul %635, %681, %cst_269 {dimension_numbers = #tpu.dot_dimension_numbers<[1], [0], [0], [1], [0, 0, 1, 1], [], []>} : vector<8x8xf32>, vector<8x8xf32>, vector<8x8xf32> -> vector<8x8xf32>
    %683 = arith.subf %28, %682 : vector<8x8xf32>
    %cst_270 = arith.constant dense<0.000000e+00> : vector<8x8xf32>
    %684 = tpu.matmul %682, %683, %cst_270 {dimension_numbers = #tpu.dot_dimension_numbers<[1], [0], [0], [1], [0, 0, 1, 1], [], []>} : vector<8x8xf32>, vector<8x8xf32>, vector<8x8xf32> -> vector<8x8xf32>
    %685 = arith.subf %32, %684 : vector<8x8xf32>
    %cst_271 = arith.constant dense<0.000000e+00> : vector<8x8xf32>
    %686 = tpu.matmul %682, %685, %cst_271 {dimension_numbers = #tpu.dot_dimension_numbers<[1], [0], [0], [1], [0, 0, 1, 1], [], []>} : vector<8x8xf32>, vector<8x8xf32>, vector<8x8xf32> -> vector<8x8xf32>
    %687 = arith.subf %30, %686 : vector<8x8xf32>
    %cst_272 = arith.constant dense<0.000000e+00> : vector<8x8xf32>
    %688 = tpu.matmul %681, %687, %cst_272 {dimension_numbers = #tpu.dot_dimension_numbers<[1], [0], [0], [1], [0, 0, 1, 1], [], []>} : vector<8x8xf32>, vector<8x8xf32>, vector<8x8xf32> -> vector<8x8xf32>
    %cst_273 = arith.constant 2.500000e-01 : f32
    %689 = vector.broadcast %cst_273 : f32 to vector<8x8xf32>
    %690 = arith.mulf %689, %688 : vector<8x8xf32>
    %cst_274 = arith.constant dense<0.000000e+00> : vector<8x8xf32>
    %691 = tpu.matmul %635, %690, %cst_274 {dimension_numbers = #tpu.dot_dimension_numbers<[1], [0], [0], [1], [0, 0, 1, 1], [], []>} : vector<8x8xf32>, vector<8x8xf32>, vector<8x8xf32> -> vector<8x8xf32>
    %692 = arith.subf %28, %691 : vector<8x8xf32>
    %cst_275 = arith.constant dense<0.000000e+00> : vector<8x8xf32>
    %693 = tpu.matmul %691, %692, %cst_275 {dimension_numbers = #tpu.dot_dimension_numbers<[1], [0], [0], [1], [0, 0, 1, 1], [], []>} : vector<8x8xf32>, vector<8x8xf32>, vector<8x8xf32> -> vector<8x8xf32>
    %694 = arith.subf %32, %693 : vector<8x8xf32>
    %cst_276 = arith.constant dense<0.000000e+00> : vector<8x8xf32>
    %695 = tpu.matmul %691, %694, %cst_276 {dimension_numbers = #tpu.dot_dimension_numbers<[1], [0], [0], [1], [0, 0, 1, 1], [], []>} : vector<8x8xf32>, vector<8x8xf32>, vector<8x8xf32> -> vector<8x8xf32>
    %696 = arith.subf %30, %695 : vector<8x8xf32>
    %cst_277 = arith.constant dense<0.000000e+00> : vector<8x8xf32>
    %697 = tpu.matmul %690, %696, %cst_277 {dimension_numbers = #tpu.dot_dimension_numbers<[1], [0], [0], [1], [0, 0, 1, 1], [], []>} : vector<8x8xf32>, vector<8x8xf32>, vector<8x8xf32> -> vector<8x8xf32>
    %cst_278 = arith.constant 2.500000e-01 : f32
    %698 = vector.broadcast %cst_278 : f32 to vector<8x8xf32>
    %699 = arith.mulf %698, %697 : vector<8x8xf32>
    %cst_279 = arith.constant dense<0.000000e+00> : vector<8x8xf32>
    %700 = tpu.matmul %635, %699, %cst_279 {dimension_numbers = #tpu.dot_dimension_numbers<[1], [0], [0], [1], [0, 0, 1, 1], [], []>} : vector<8x8xf32>, vector<8x8xf32>, vector<8x8xf32> -> vector<8x8xf32>
    %701 = arith.subf %28, %700 : vector<8x8xf32>
    %cst_280 = arith.constant dense<0.000000e+00> : vector<8x8xf32>
    %702 = tpu.matmul %700, %701, %cst_280 {dimension_numbers = #tpu.dot_dimension_numbers<[1], [0], [0], [1], [0, 0, 1, 1], [], []>} : vector<8x8xf32>, vector<8x8xf32>, vector<8x8xf32> -> vector<8x8xf32>
    %703 = arith.subf %32, %702 : vector<8x8xf32>
    %cst_281 = arith.constant dense<0.000000e+00> : vector<8x8xf32>
    %704 = tpu.matmul %700, %703, %cst_281 {dimension_numbers = #tpu.dot_dimension_numbers<[1], [0], [0], [1], [0, 0, 1, 1], [], []>} : vector<8x8xf32>, vector<8x8xf32>, vector<8x8xf32> -> vector<8x8xf32>
    %705 = arith.subf %30, %704 : vector<8x8xf32>
    %cst_282 = arith.constant dense<0.000000e+00> : vector<8x8xf32>
    %706 = tpu.matmul %699, %705, %cst_282 {dimension_numbers = #tpu.dot_dimension_numbers<[1], [0], [0], [1], [0, 0, 1, 1], [], []>} : vector<8x8xf32>, vector<8x8xf32>, vector<8x8xf32> -> vector<8x8xf32>
    %cst_283 = arith.constant 2.500000e-01 : f32
    %707 = vector.broadcast %cst_283 : f32 to vector<8x8xf32>
    %708 = arith.mulf %707, %706 : vector<8x8xf32>
    %cst_284 = arith.constant dense<0.000000e+00> : vector<8x32xf32>
    %709 = tpu.matmul %708, %651, %cst_284 {dimension_numbers = #tpu.dot_dimension_numbers<[1], [0], [0], [1], [0, 0, 1, 1], [], []>} : vector<8x8xf32>, vector<8x32xf32>, vector<8x32xf32> -> vector<8x32xf32>
    %cst_285 = arith.constant dense<0.000000e+00> : vector<32x32xf32>
    %710 = tpu.matmul %625, %709, %cst_285 {dimension_numbers = #tpu.dot_dimension_numbers<[1], [0], [0], [1], [0, 0, 1, 1], [], []>} : vector<32x8xf32>, vector<8x32xf32>, vector<32x32xf32> -> vector<32x32xf32>
    %711 = vector.extract_strided_slice %533 {offsets = [0, 32], sizes = [32, 32], strides = [1, 1]} : vector<32x384xf32> to vector<32x32xf32>
    %cst_286 = arith.constant 0.176776692 : f32
    %712 = vector.broadcast %cst_286 : f32 to vector<32x32xf32>
    %713 = arith.mulf %711, %712 : vector<32x32xf32>
    %714 = vector.extract_strided_slice %533 {offsets = [0, 160], sizes = [32, 32], strides = [1, 1]} : vector<32x384xf32> to vector<32x32xf32>
    %715 = vector.extract_strided_slice %533 {offsets = [0, 288], sizes = [32, 32], strides = [1, 1]} : vector<32x384xf32> to vector<32x32xf32>
    %716 = vector.extract_strided_slice %534 {offsets = [0, 32], sizes = [8, 32], strides = [1, 1]} : vector<8x256xf32> to vector<8x32xf32>
    %cst_287 = arith.constant 0.176776692 : f32
    %717 = vector.broadcast %cst_287 : f32 to vector<8x32xf32>
    %718 = arith.mulf %716, %717 : vector<8x32xf32>
    %719 = vector.extract_strided_slice %534 {offsets = [0, 160], sizes = [8, 32], strides = [1, 1]} : vector<8x256xf32> to vector<8x32xf32>
    %720 = arith.truncf %713 : vector<32x32xf32> to vector<32x32xbf16>
    %721 = arith.truncf %719 : vector<8x32xf32> to vector<8x32xbf16>
    %cst_288 = arith.constant dense<0.000000e+00> : vector<32x8xf32>
    %722 = tpu.matmul %720, %721, %cst_288 {dimension_numbers = #tpu.dot_dimension_numbers<[1], [1], [0], [0], [0, 0, 1, 0], [], []>} : vector<32x32xbf16>, vector<8x32xbf16>, vector<32x8xf32> -> vector<32x8xf32>
    %cst_289 = arith.constant dense<0xFF800000> : vector<32xf32>
    %723 = vector.multi_reduction <maximumf>, %722, %cst_289 [1] : vector<32x8xf32> to vector<32xf32>
    %724 = vector.shape_cast %723 : vector<32xf32> to vector<32x1xf32>
    %725 = vector.broadcast %724 : vector<32x1xf32> to vector<32x8xf32>
    %726 = arith.subf %722, %725 : vector<32x8xf32>
    %727 = math.exp %726 : vector<32x8xf32>
    %cst_290 = arith.constant dense<0.000000e+00> : vector<32xf32>
    %728 = vector.multi_reduction <add>, %727, %cst_290 [1] : vector<32x8xf32> to vector<32xf32>
    %729 = vector.shape_cast %728 : vector<32xf32> to vector<32x1xf32>
    %730 = vector.broadcast %729 : vector<32x1xf32> to vector<32x8xf32>
    %731 = arith.divf %727, %730 : vector<32x8xf32>
    %cst_291 = arith.constant dense<0.000000e+00> : vector<8x8xf32>
    %732 = tpu.matmul %718, %719, %cst_291 {dimension_numbers = #tpu.dot_dimension_numbers<[1], [1], [0], [0], [0, 0, 1, 0], [], []>} : vector<8x32xf32>, vector<8x32xf32>, vector<8x8xf32> -> vector<8x8xf32>
    %cst_292 = arith.constant dense<0xFF800000> : vector<8xf32>
    %733 = vector.multi_reduction <maximumf>, %732, %cst_292 [1] : vector<8x8xf32> to vector<8xf32>
    %734 = vector.shape_cast %733 : vector<8xf32> to vector<8x1xf32>
    %735 = vector.broadcast %734 : vector<8x1xf32> to vector<8x8xf32>
    %736 = arith.subf %732, %735 : vector<8x8xf32>
    %737 = math.exp %736 : vector<8x8xf32>
    %cst_293 = arith.constant dense<0.000000e+00> : vector<8xf32>
    %738 = vector.multi_reduction <add>, %737, %cst_293 [1] : vector<8x8xf32> to vector<8xf32>
    %739 = vector.shape_cast %738 : vector<8xf32> to vector<8x1xf32>
    %740 = vector.broadcast %739 : vector<8x1xf32> to vector<8x8xf32>
    %741 = arith.divf %737, %740 : vector<8x8xf32>
    %742 = arith.truncf %718 : vector<8x32xf32> to vector<8x32xbf16>
    %743 = arith.truncf %714 : vector<32x32xf32> to vector<32x32xbf16>
    %cst_294 = arith.constant dense<0.000000e+00> : vector<8x32xf32>
    %744 = tpu.matmul %742, %743, %cst_294 {dimension_numbers = #tpu.dot_dimension_numbers<[1], [1], [0], [0], [0, 0, 1, 0], [], []>} : vector<8x32xbf16>, vector<32x32xbf16>, vector<8x32xf32> -> vector<8x32xf32>
    %cst_295 = arith.constant dense<0xFF800000> : vector<8xf32>
    %745 = vector.multi_reduction <maximumf>, %744, %cst_295 [1] : vector<8x32xf32> to vector<8xf32>
    %746 = vector.shape_cast %745 : vector<8xf32> to vector<8x1xf32>
    %747 = vector.broadcast %746 : vector<8x1xf32> to vector<8x32xf32>
    %748 = arith.subf %744, %747 : vector<8x32xf32>
    %749 = math.exp %748 : vector<8x32xf32>
    %cst_296 = arith.constant dense<0.000000e+00> : vector<8xf32>
    %750 = vector.multi_reduction <add>, %749, %cst_296 [1] : vector<8x32xf32> to vector<8xf32>
    %751 = vector.shape_cast %750 : vector<8xf32> to vector<8x1xf32>
    %752 = tpu.reciprocal %751 {approx = true} : vector<8x1xf32> -> vector<8x1xf32>
    %753 = vector.broadcast %752 : vector<8x1xf32> to vector<8x32xf32>
    %754 = arith.mulf %749, %753 : vector<8x32xf32>
    %755 = arith.truncf %754 : vector<8x32xf32> to vector<8x32xbf16>
    %756 = arith.truncf %715 : vector<32x32xf32> to vector<32x32xbf16>
    %cst_297 = arith.constant dense<0.000000e+00> : vector<8x32xf32>
    %757 = tpu.matmul %755, %756, %cst_297 {dimension_numbers = #tpu.dot_dimension_numbers<[1], [0], [0], [1], [0, 0, 1, 1], [], []>} : vector<8x32xbf16>, vector<32x32xbf16>, vector<8x32xf32> -> vector<8x32xf32>
    %758 = tpu.transpose %741, [1, 0] : vector<8x8xf32> -> vector<8x8xf32>
    %759 = vector.broadcast %21 : f32 to vector<8x8xf32>
    %760 = arith.mulf %758, %759 : vector<8x8xf32>
    %cst_298 = arith.constant dense<0.000000e+00> : vector<8x8xf32>
    %761 = tpu.matmul %741, %760, %cst_298 {dimension_numbers = #tpu.dot_dimension_numbers<[1], [0], [0], [1], [0, 0, 1, 1], [], []>} : vector<8x8xf32>, vector<8x8xf32>, vector<8x8xf32> -> vector<8x8xf32>
    %762 = arith.subf %28, %761 : vector<8x8xf32>
    %cst_299 = arith.constant dense<0.000000e+00> : vector<8x8xf32>
    %763 = tpu.matmul %761, %762, %cst_299 {dimension_numbers = #tpu.dot_dimension_numbers<[1], [0], [0], [1], [0, 0, 1, 1], [], []>} : vector<8x8xf32>, vector<8x8xf32>, vector<8x8xf32> -> vector<8x8xf32>
    %764 = arith.subf %32, %763 : vector<8x8xf32>
    %cst_300 = arith.constant dense<0.000000e+00> : vector<8x8xf32>
    %765 = tpu.matmul %761, %764, %cst_300 {dimension_numbers = #tpu.dot_dimension_numbers<[1], [0], [0], [1], [0, 0, 1, 1], [], []>} : vector<8x8xf32>, vector<8x8xf32>, vector<8x8xf32> -> vector<8x8xf32>
    %766 = arith.subf %30, %765 : vector<8x8xf32>
    %cst_301 = arith.constant dense<0.000000e+00> : vector<8x8xf32>
    %767 = tpu.matmul %760, %766, %cst_301 {dimension_numbers = #tpu.dot_dimension_numbers<[1], [0], [0], [1], [0, 0, 1, 1], [], []>} : vector<8x8xf32>, vector<8x8xf32>, vector<8x8xf32> -> vector<8x8xf32>
    %cst_302 = arith.constant 2.500000e-01 : f32
    %768 = vector.broadcast %cst_302 : f32 to vector<8x8xf32>
    %769 = arith.mulf %768, %767 : vector<8x8xf32>
    %cst_303 = arith.constant dense<0.000000e+00> : vector<8x8xf32>
    %770 = tpu.matmul %741, %769, %cst_303 {dimension_numbers = #tpu.dot_dimension_numbers<[1], [0], [0], [1], [0, 0, 1, 1], [], []>} : vector<8x8xf32>, vector<8x8xf32>, vector<8x8xf32> -> vector<8x8xf32>
    %771 = arith.subf %28, %770 : vector<8x8xf32>
    %cst_304 = arith.constant dense<0.000000e+00> : vector<8x8xf32>
    %772 = tpu.matmul %770, %771, %cst_304 {dimension_numbers = #tpu.dot_dimension_numbers<[1], [0], [0], [1], [0, 0, 1, 1], [], []>} : vector<8x8xf32>, vector<8x8xf32>, vector<8x8xf32> -> vector<8x8xf32>
    %773 = arith.subf %32, %772 : vector<8x8xf32>
    %cst_305 = arith.constant dense<0.000000e+00> : vector<8x8xf32>
    %774 = tpu.matmul %770, %773, %cst_305 {dimension_numbers = #tpu.dot_dimension_numbers<[1], [0], [0], [1], [0, 0, 1, 1], [], []>} : vector<8x8xf32>, vector<8x8xf32>, vector<8x8xf32> -> vector<8x8xf32>
    %775 = arith.subf %30, %774 : vector<8x8xf32>
    %cst_306 = arith.constant dense<0.000000e+00> : vector<8x8xf32>
    %776 = tpu.matmul %769, %775, %cst_306 {dimension_numbers = #tpu.dot_dimension_numbers<[1], [0], [0], [1], [0, 0, 1, 1], [], []>} : vector<8x8xf32>, vector<8x8xf32>, vector<8x8xf32> -> vector<8x8xf32>
    %cst_307 = arith.constant 2.500000e-01 : f32
    %777 = vector.broadcast %cst_307 : f32 to vector<8x8xf32>
    %778 = arith.mulf %777, %776 : vector<8x8xf32>
    %cst_308 = arith.constant dense<0.000000e+00> : vector<8x8xf32>
    %779 = tpu.matmul %741, %778, %cst_308 {dimension_numbers = #tpu.dot_dimension_numbers<[1], [0], [0], [1], [0, 0, 1, 1], [], []>} : vector<8x8xf32>, vector<8x8xf32>, vector<8x8xf32> -> vector<8x8xf32>
    %780 = arith.subf %28, %779 : vector<8x8xf32>
    %cst_309 = arith.constant dense<0.000000e+00> : vector<8x8xf32>
    %781 = tpu.matmul %779, %780, %cst_309 {dimension_numbers = #tpu.dot_dimension_numbers<[1], [0], [0], [1], [0, 0, 1, 1], [], []>} : vector<8x8xf32>, vector<8x8xf32>, vector<8x8xf32> -> vector<8x8xf32>
    %782 = arith.subf %32, %781 : vector<8x8xf32>
    %cst_310 = arith.constant dense<0.000000e+00> : vector<8x8xf32>
    %783 = tpu.matmul %779, %782, %cst_310 {dimension_numbers = #tpu.dot_dimension_numbers<[1], [0], [0], [1], [0, 0, 1, 1], [], []>} : vector<8x8xf32>, vector<8x8xf32>, vector<8x8xf32> -> vector<8x8xf32>
    %784 = arith.subf %30, %783 : vector<8x8xf32>
    %cst_311 = arith.constant dense<0.000000e+00> : vector<8x8xf32>
    %785 = tpu.matmul %778, %784, %cst_311 {dimension_numbers = #tpu.dot_dimension_numbers<[1], [0], [0], [1], [0, 0, 1, 1], [], []>} : vector<8x8xf32>, vector<8x8xf32>, vector<8x8xf32> -> vector<8x8xf32>
    %cst_312 = arith.constant 2.500000e-01 : f32
    %786 = vector.broadcast %cst_312 : f32 to vector<8x8xf32>
    %787 = arith.mulf %786, %785 : vector<8x8xf32>
    %cst_313 = arith.constant dense<0.000000e+00> : vector<8x8xf32>
    %788 = tpu.matmul %741, %787, %cst_313 {dimension_numbers = #tpu.dot_dimension_numbers<[1], [0], [0], [1], [0, 0, 1, 1], [], []>} : vector<8x8xf32>, vector<8x8xf32>, vector<8x8xf32> -> vector<8x8xf32>
    %789 = arith.subf %28, %788 : vector<8x8xf32>
    %cst_314 = arith.constant dense<0.000000e+00> : vector<8x8xf32>
    %790 = tpu.matmul %788, %789, %cst_314 {dimension_numbers = #tpu.dot_dimension_numbers<[1], [0], [0], [1], [0, 0, 1, 1], [], []>} : vector<8x8xf32>, vector<8x8xf32>, vector<8x8xf32> -> vector<8x8xf32>
    %791 = arith.subf %32, %790 : vector<8x8xf32>
    %cst_315 = arith.constant dense<0.000000e+00> : vector<8x8xf32>
    %792 = tpu.matmul %788, %791, %cst_315 {dimension_numbers = #tpu.dot_dimension_numbers<[1], [0], [0], [1], [0, 0, 1, 1], [], []>} : vector<8x8xf32>, vector<8x8xf32>, vector<8x8xf32> -> vector<8x8xf32>
    %793 = arith.subf %30, %792 : vector<8x8xf32>
    %cst_316 = arith.constant dense<0.000000e+00> : vector<8x8xf32>
    %794 = tpu.matmul %787, %793, %cst_316 {dimension_numbers = #tpu.dot_dimension_numbers<[1], [0], [0], [1], [0, 0, 1, 1], [], []>} : vector<8x8xf32>, vector<8x8xf32>, vector<8x8xf32> -> vector<8x8xf32>
    %cst_317 = arith.constant 2.500000e-01 : f32
    %795 = vector.broadcast %cst_317 : f32 to vector<8x8xf32>
    %796 = arith.mulf %795, %794 : vector<8x8xf32>
    %cst_318 = arith.constant dense<0.000000e+00> : vector<8x8xf32>
    %797 = tpu.matmul %741, %796, %cst_318 {dimension_numbers = #tpu.dot_dimension_numbers<[1], [0], [0], [1], [0, 0, 1, 1], [], []>} : vector<8x8xf32>, vector<8x8xf32>, vector<8x8xf32> -> vector<8x8xf32>
    %798 = arith.subf %28, %797 : vector<8x8xf32>
    %cst_319 = arith.constant dense<0.000000e+00> : vector<8x8xf32>
    %799 = tpu.matmul %797, %798, %cst_319 {dimension_numbers = #tpu.dot_dimension_numbers<[1], [0], [0], [1], [0, 0, 1, 1], [], []>} : vector<8x8xf32>, vector<8x8xf32>, vector<8x8xf32> -> vector<8x8xf32>
    %800 = arith.subf %32, %799 : vector<8x8xf32>
    %cst_320 = arith.constant dense<0.000000e+00> : vector<8x8xf32>
    %801 = tpu.matmul %797, %800, %cst_320 {dimension_numbers = #tpu.dot_dimension_numbers<[1], [0], [0], [1], [0, 0, 1, 1], [], []>} : vector<8x8xf32>, vector<8x8xf32>, vector<8x8xf32> -> vector<8x8xf32>
    %802 = arith.subf %30, %801 : vector<8x8xf32>
    %cst_321 = arith.constant dense<0.000000e+00> : vector<8x8xf32>
    %803 = tpu.matmul %796, %802, %cst_321 {dimension_numbers = #tpu.dot_dimension_numbers<[1], [0], [0], [1], [0, 0, 1, 1], [], []>} : vector<8x8xf32>, vector<8x8xf32>, vector<8x8xf32> -> vector<8x8xf32>
    %cst_322 = arith.constant 2.500000e-01 : f32
    %804 = vector.broadcast %cst_322 : f32 to vector<8x8xf32>
    %805 = arith.mulf %804, %803 : vector<8x8xf32>
    %cst_323 = arith.constant dense<0.000000e+00> : vector<8x8xf32>
    %806 = tpu.matmul %741, %805, %cst_323 {dimension_numbers = #tpu.dot_dimension_numbers<[1], [0], [0], [1], [0, 0, 1, 1], [], []>} : vector<8x8xf32>, vector<8x8xf32>, vector<8x8xf32> -> vector<8x8xf32>
    %807 = arith.subf %28, %806 : vector<8x8xf32>
    %cst_324 = arith.constant dense<0.000000e+00> : vector<8x8xf32>
    %808 = tpu.matmul %806, %807, %cst_324 {dimension_numbers = #tpu.dot_dimension_numbers<[1], [0], [0], [1], [0, 0, 1, 1], [], []>} : vector<8x8xf32>, vector<8x8xf32>, vector<8x8xf32> -> vector<8x8xf32>
    %809 = arith.subf %32, %808 : vector<8x8xf32>
    %cst_325 = arith.constant dense<0.000000e+00> : vector<8x8xf32>
    %810 = tpu.matmul %806, %809, %cst_325 {dimension_numbers = #tpu.dot_dimension_numbers<[1], [0], [0], [1], [0, 0, 1, 1], [], []>} : vector<8x8xf32>, vector<8x8xf32>, vector<8x8xf32> -> vector<8x8xf32>
    %811 = arith.subf %30, %810 : vector<8x8xf32>
    %cst_326 = arith.constant dense<0.000000e+00> : vector<8x8xf32>
    %812 = tpu.matmul %805, %811, %cst_326 {dimension_numbers = #tpu.dot_dimension_numbers<[1], [0], [0], [1], [0, 0, 1, 1], [], []>} : vector<8x8xf32>, vector<8x8xf32>, vector<8x8xf32> -> vector<8x8xf32>
    %cst_327 = arith.constant 2.500000e-01 : f32
    %813 = vector.broadcast %cst_327 : f32 to vector<8x8xf32>
    %814 = arith.mulf %813, %812 : vector<8x8xf32>
    %cst_328 = arith.constant dense<0.000000e+00> : vector<8x32xf32>
    %815 = tpu.matmul %814, %757, %cst_328 {dimension_numbers = #tpu.dot_dimension_numbers<[1], [0], [0], [1], [0, 0, 1, 1], [], []>} : vector<8x8xf32>, vector<8x32xf32>, vector<8x32xf32> -> vector<8x32xf32>
    %cst_329 = arith.constant dense<0.000000e+00> : vector<32x32xf32>
    %816 = tpu.matmul %731, %815, %cst_329 {dimension_numbers = #tpu.dot_dimension_numbers<[1], [0], [0], [1], [0, 0, 1, 1], [], []>} : vector<32x8xf32>, vector<8x32xf32>, vector<32x32xf32> -> vector<32x32xf32>
    %817 = vector.extract_strided_slice %533 {offsets = [0, 64], sizes = [32, 32], strides = [1, 1]} : vector<32x384xf32> to vector<32x32xf32>
    %cst_330 = arith.constant 0.176776692 : f32
    %818 = vector.broadcast %cst_330 : f32 to vector<32x32xf32>
    %819 = arith.mulf %817, %818 : vector<32x32xf32>
    %820 = vector.extract_strided_slice %533 {offsets = [0, 192], sizes = [32, 32], strides = [1, 1]} : vector<32x384xf32> to vector<32x32xf32>
    %821 = vector.extract_strided_slice %533 {offsets = [0, 320], sizes = [32, 32], strides = [1, 1]} : vector<32x384xf32> to vector<32x32xf32>
    %822 = vector.extract_strided_slice %534 {offsets = [0, 64], sizes = [8, 32], strides = [1, 1]} : vector<8x256xf32> to vector<8x32xf32>
    %cst_331 = arith.constant 0.176776692 : f32
    %823 = vector.broadcast %cst_331 : f32 to vector<8x32xf32>
    %824 = arith.mulf %822, %823 : vector<8x32xf32>
    %825 = vector.extract_strided_slice %534 {offsets = [0, 192], sizes = [8, 32], strides = [1, 1]} : vector<8x256xf32> to vector<8x32xf32>
    %826 = arith.truncf %819 : vector<32x32xf32> to vector<32x32xbf16>
    %827 = arith.truncf %825 : vector<8x32xf32> to vector<8x32xbf16>
    %cst_332 = arith.constant dense<0.000000e+00> : vector<32x8xf32>
    %828 = tpu.matmul %826, %827, %cst_332 {dimension_numbers = #tpu.dot_dimension_numbers<[1], [1], [0], [0], [0, 0, 1, 0], [], []>} : vector<32x32xbf16>, vector<8x32xbf16>, vector<32x8xf32> -> vector<32x8xf32>
    %cst_333 = arith.constant dense<0xFF800000> : vector<32xf32>
    %829 = vector.multi_reduction <maximumf>, %828, %cst_333 [1] : vector<32x8xf32> to vector<32xf32>
    %830 = vector.shape_cast %829 : vector<32xf32> to vector<32x1xf32>
    %831 = vector.broadcast %830 : vector<32x1xf32> to vector<32x8xf32>
    %832 = arith.subf %828, %831 : vector<32x8xf32>
    %833 = math.exp %832 : vector<32x8xf32>
    %cst_334 = arith.constant dense<0.000000e+00> : vector<32xf32>
    %834 = vector.multi_reduction <add>, %833, %cst_334 [1] : vector<32x8xf32> to vector<32xf32>
    %835 = vector.shape_cast %834 : vector<32xf32> to vector<32x1xf32>
    %836 = vector.broadcast %835 : vector<32x1xf32> to vector<32x8xf32>
    %837 = arith.divf %833, %836 : vector<32x8xf32>
    %cst_335 = arith.constant dense<0.000000e+00> : vector<8x8xf32>
    %838 = tpu.matmul %824, %825, %cst_335 {dimension_numbers = #tpu.dot_dimension_numbers<[1], [1], [0], [0], [0, 0, 1, 0], [], []>} : vector<8x32xf32>, vector<8x32xf32>, vector<8x8xf32> -> vector<8x8xf32>
    %cst_336 = arith.constant dense<0xFF800000> : vector<8xf32>
    %839 = vector.multi_reduction <maximumf>, %838, %cst_336 [1] : vector<8x8xf32> to vector<8xf32>
    %840 = vector.shape_cast %839 : vector<8xf32> to vector<8x1xf32>
    %841 = vector.broadcast %840 : vector<8x1xf32> to vector<8x8xf32>
    %842 = arith.subf %838, %841 : vector<8x8xf32>
    %843 = math.exp %842 : vector<8x8xf32>
    %cst_337 = arith.constant dense<0.000000e+00> : vector<8xf32>
    %844 = vector.multi_reduction <add>, %843, %cst_337 [1] : vector<8x8xf32> to vector<8xf32>
    %845 = vector.shape_cast %844 : vector<8xf32> to vector<8x1xf32>
    %846 = vector.broadcast %845 : vector<8x1xf32> to vector<8x8xf32>
    %847 = arith.divf %843, %846 : vector<8x8xf32>
    %848 = arith.truncf %824 : vector<8x32xf32> to vector<8x32xbf16>
    %849 = arith.truncf %820 : vector<32x32xf32> to vector<32x32xbf16>
    %cst_338 = arith.constant dense<0.000000e+00> : vector<8x32xf32>
    %850 = tpu.matmul %848, %849, %cst_338 {dimension_numbers = #tpu.dot_dimension_numbers<[1], [1], [0], [0], [0, 0, 1, 0], [], []>} : vector<8x32xbf16>, vector<32x32xbf16>, vector<8x32xf32> -> vector<8x32xf32>
    %cst_339 = arith.constant dense<0xFF800000> : vector<8xf32>
    %851 = vector.multi_reduction <maximumf>, %850, %cst_339 [1] : vector<8x32xf32> to vector<8xf32>
    %852 = vector.shape_cast %851 : vector<8xf32> to vector<8x1xf32>
    %853 = vector.broadcast %852 : vector<8x1xf32> to vector<8x32xf32>
    %854 = arith.subf %850, %853 : vector<8x32xf32>
    %855 = math.exp %854 : vector<8x32xf32>
    %cst_340 = arith.constant dense<0.000000e+00> : vector<8xf32>
    %856 = vector.multi_reduction <add>, %855, %cst_340 [1] : vector<8x32xf32> to vector<8xf32>
    %857 = vector.shape_cast %856 : vector<8xf32> to vector<8x1xf32>
    %858 = tpu.reciprocal %857 {approx = true} : vector<8x1xf32> -> vector<8x1xf32>
    %859 = vector.broadcast %858 : vector<8x1xf32> to vector<8x32xf32>
    %860 = arith.mulf %855, %859 : vector<8x32xf32>
    %861 = arith.truncf %860 : vector<8x32xf32> to vector<8x32xbf16>
    %862 = arith.truncf %821 : vector<32x32xf32> to vector<32x32xbf16>
    %cst_341 = arith.constant dense<0.000000e+00> : vector<8x32xf32>
    %863 = tpu.matmul %861, %862, %cst_341 {dimension_numbers = #tpu.dot_dimension_numbers<[1], [0], [0], [1], [0, 0, 1, 1], [], []>} : vector<8x32xbf16>, vector<32x32xbf16>, vector<8x32xf32> -> vector<8x32xf32>
    %864 = tpu.transpose %847, [1, 0] : vector<8x8xf32> -> vector<8x8xf32>
    %865 = vector.broadcast %21 : f32 to vector<8x8xf32>
    %866 = arith.mulf %864, %865 : vector<8x8xf32>
    %cst_342 = arith.constant dense<0.000000e+00> : vector<8x8xf32>
    %867 = tpu.matmul %847, %866, %cst_342 {dimension_numbers = #tpu.dot_dimension_numbers<[1], [0], [0], [1], [0, 0, 1, 1], [], []>} : vector<8x8xf32>, vector<8x8xf32>, vector<8x8xf32> -> vector<8x8xf32>
    %868 = arith.subf %28, %867 : vector<8x8xf32>
    %cst_343 = arith.constant dense<0.000000e+00> : vector<8x8xf32>
    %869 = tpu.matmul %867, %868, %cst_343 {dimension_numbers = #tpu.dot_dimension_numbers<[1], [0], [0], [1], [0, 0, 1, 1], [], []>} : vector<8x8xf32>, vector<8x8xf32>, vector<8x8xf32> -> vector<8x8xf32>
    %870 = arith.subf %32, %869 : vector<8x8xf32>
    %cst_344 = arith.constant dense<0.000000e+00> : vector<8x8xf32>
    %871 = tpu.matmul %867, %870, %cst_344 {dimension_numbers = #tpu.dot_dimension_numbers<[1], [0], [0], [1], [0, 0, 1, 1], [], []>} : vector<8x8xf32>, vector<8x8xf32>, vector<8x8xf32> -> vector<8x8xf32>
    %872 = arith.subf %30, %871 : vector<8x8xf32>
    %cst_345 = arith.constant dense<0.000000e+00> : vector<8x8xf32>
    %873 = tpu.matmul %866, %872, %cst_345 {dimension_numbers = #tpu.dot_dimension_numbers<[1], [0], [0], [1], [0, 0, 1, 1], [], []>} : vector<8x8xf32>, vector<8x8xf32>, vector<8x8xf32> -> vector<8x8xf32>
    %cst_346 = arith.constant 2.500000e-01 : f32
    %874 = vector.broadcast %cst_346 : f32 to vector<8x8xf32>
    %875 = arith.mulf %874, %873 : vector<8x8xf32>
    %cst_347 = arith.constant dense<0.000000e+00> : vector<8x8xf32>
    %876 = tpu.matmul %847, %875, %cst_347 {dimension_numbers = #tpu.dot_dimension_numbers<[1], [0], [0], [1], [0, 0, 1, 1], [], []>} : vector<8x8xf32>, vector<8x8xf32>, vector<8x8xf32> -> vector<8x8xf32>
    %877 = arith.subf %28, %876 : vector<8x8xf32>
    %cst_348 = arith.constant dense<0.000000e+00> : vector<8x8xf32>
    %878 = tpu.matmul %876, %877, %cst_348 {dimension_numbers = #tpu.dot_dimension_numbers<[1], [0], [0], [1], [0, 0, 1, 1], [], []>} : vector<8x8xf32>, vector<8x8xf32>, vector<8x8xf32> -> vector<8x8xf32>
    %879 = arith.subf %32, %878 : vector<8x8xf32>
    %cst_349 = arith.constant dense<0.000000e+00> : vector<8x8xf32>
    %880 = tpu.matmul %876, %879, %cst_349 {dimension_numbers = #tpu.dot_dimension_numbers<[1], [0], [0], [1], [0, 0, 1, 1], [], []>} : vector<8x8xf32>, vector<8x8xf32>, vector<8x8xf32> -> vector<8x8xf32>
    %881 = arith.subf %30, %880 : vector<8x8xf32>
    %cst_350 = arith.constant dense<0.000000e+00> : vector<8x8xf32>
    %882 = tpu.matmul %875, %881, %cst_350 {dimension_numbers = #tpu.dot_dimension_numbers<[1], [0], [0], [1], [0, 0, 1, 1], [], []>} : vector<8x8xf32>, vector<8x8xf32>, vector<8x8xf32> -> vector<8x8xf32>
    %cst_351 = arith.constant 2.500000e-01 : f32
    %883 = vector.broadcast %cst_351 : f32 to vector<8x8xf32>
    %884 = arith.mulf %883, %882 : vector<8x8xf32>
    %cst_352 = arith.constant dense<0.000000e+00> : vector<8x8xf32>
    %885 = tpu.matmul %847, %884, %cst_352 {dimension_numbers = #tpu.dot_dimension_numbers<[1], [0], [0], [1], [0, 0, 1, 1], [], []>} : vector<8x8xf32>, vector<8x8xf32>, vector<8x8xf32> -> vector<8x8xf32>
    %886 = arith.subf %28, %885 : vector<8x8xf32>
    %cst_353 = arith.constant dense<0.000000e+00> : vector<8x8xf32>
    %887 = tpu.matmul %885, %886, %cst_353 {dimension_numbers = #tpu.dot_dimension_numbers<[1], [0], [0], [1], [0, 0, 1, 1], [], []>} : vector<8x8xf32>, vector<8x8xf32>, vector<8x8xf32> -> vector<8x8xf32>
    %888 = arith.subf %32, %887 : vector<8x8xf32>
    %cst_354 = arith.constant dense<0.000000e+00> : vector<8x8xf32>
    %889 = tpu.matmul %885, %888, %cst_354 {dimension_numbers = #tpu.dot_dimension_numbers<[1], [0], [0], [1], [0, 0, 1, 1], [], []>} : vector<8x8xf32>, vector<8x8xf32>, vector<8x8xf32> -> vector<8x8xf32>
    %890 = arith.subf %30, %889 : vector<8x8xf32>
    %cst_355 = arith.constant dense<0.000000e+00> : vector<8x8xf32>
    %891 = tpu.matmul %884, %890, %cst_355 {dimension_numbers = #tpu.dot_dimension_numbers<[1], [0], [0], [1], [0, 0, 1, 1], [], []>} : vector<8x8xf32>, vector<8x8xf32>, vector<8x8xf32> -> vector<8x8xf32>
    %cst_356 = arith.constant 2.500000e-01 : f32
    %892 = vector.broadcast %cst_356 : f32 to vector<8x8xf32>
    %893 = arith.mulf %892, %891 : vector<8x8xf32>
    %cst_357 = arith.constant dense<0.000000e+00> : vector<8x8xf32>
    %894 = tpu.matmul %847, %893, %cst_357 {dimension_numbers = #tpu.dot_dimension_numbers<[1], [0], [0], [1], [0, 0, 1, 1], [], []>} : vector<8x8xf32>, vector<8x8xf32>, vector<8x8xf32> -> vector<8x8xf32>
    %895 = arith.subf %28, %894 : vector<8x8xf32>
    %cst_358 = arith.constant dense<0.000000e+00> : vector<8x8xf32>
    %896 = tpu.matmul %894, %895, %cst_358 {dimension_numbers = #tpu.dot_dimension_numbers<[1], [0], [0], [1], [0, 0, 1, 1], [], []>} : vector<8x8xf32>, vector<8x8xf32>, vector<8x8xf32> -> vector<8x8xf32>
    %897 = arith.subf %32, %896 : vector<8x8xf32>
    %cst_359 = arith.constant dense<0.000000e+00> : vector<8x8xf32>
    %898 = tpu.matmul %894, %897, %cst_359 {dimension_numbers = #tpu.dot_dimension_numbers<[1], [0], [0], [1], [0, 0, 1, 1], [], []>} : vector<8x8xf32>, vector<8x8xf32>, vector<8x8xf32> -> vector<8x8xf32>
    %899 = arith.subf %30, %898 : vector<8x8xf32>
    %cst_360 = arith.constant dense<0.000000e+00> : vector<8x8xf32>
    %900 = tpu.matmul %893, %899, %cst_360 {dimension_numbers = #tpu.dot_dimension_numbers<[1], [0], [0], [1], [0, 0, 1, 1], [], []>} : vector<8x8xf32>, vector<8x8xf32>, vector<8x8xf32> -> vector<8x8xf32>
    %cst_361 = arith.constant 2.500000e-01 : f32
    %901 = vector.broadcast %cst_361 : f32 to vector<8x8xf32>
    %902 = arith.mulf %901, %900 : vector<8x8xf32>
    %cst_362 = arith.constant dense<0.000000e+00> : vector<8x8xf32>
    %903 = tpu.matmul %847, %902, %cst_362 {dimension_numbers = #tpu.dot_dimension_numbers<[1], [0], [0], [1], [0, 0, 1, 1], [], []>} : vector<8x8xf32>, vector<8x8xf32>, vector<8x8xf32> -> vector<8x8xf32>
    %904 = arith.subf %28, %903 : vector<8x8xf32>
    %cst_363 = arith.constant dense<0.000000e+00> : vector<8x8xf32>
    %905 = tpu.matmul %903, %904, %cst_363 {dimension_numbers = #tpu.dot_dimension_numbers<[1], [0], [0], [1], [0, 0, 1, 1], [], []>} : vector<8x8xf32>, vector<8x8xf32>, vector<8x8xf32> -> vector<8x8xf32>
    %906 = arith.subf %32, %905 : vector<8x8xf32>
    %cst_364 = arith.constant dense<0.000000e+00> : vector<8x8xf32>
    %907 = tpu.matmul %903, %906, %cst_364 {dimension_numbers = #tpu.dot_dimension_numbers<[1], [0], [0], [1], [0, 0, 1, 1], [], []>} : vector<8x8xf32>, vector<8x8xf32>, vector<8x8xf32> -> vector<8x8xf32>
    %908 = arith.subf %30, %907 : vector<8x8xf32>
    %cst_365 = arith.constant dense<0.000000e+00> : vector<8x8xf32>
    %909 = tpu.matmul %902, %908, %cst_365 {dimension_numbers = #tpu.dot_dimension_numbers<[1], [0], [0], [1], [0, 0, 1, 1], [], []>} : vector<8x8xf32>, vector<8x8xf32>, vector<8x8xf32> -> vector<8x8xf32>
    %cst_366 = arith.constant 2.500000e-01 : f32
    %910 = vector.broadcast %cst_366 : f32 to vector<8x8xf32>
    %911 = arith.mulf %910, %909 : vector<8x8xf32>
    %cst_367 = arith.constant dense<0.000000e+00> : vector<8x8xf32>
    %912 = tpu.matmul %847, %911, %cst_367 {dimension_numbers = #tpu.dot_dimension_numbers<[1], [0], [0], [1], [0, 0, 1, 1], [], []>} : vector<8x8xf32>, vector<8x8xf32>, vector<8x8xf32> -> vector<8x8xf32>
    %913 = arith.subf %28, %912 : vector<8x8xf32>
    %cst_368 = arith.constant dense<0.000000e+00> : vector<8x8xf32>
    %914 = tpu.matmul %912, %913, %cst_368 {dimension_numbers = #tpu.dot_dimension_numbers<[1], [0], [0], [1], [0, 0, 1, 1], [], []>} : vector<8x8xf32>, vector<8x8xf32>, vector<8x8xf32> -> vector<8x8xf32>
    %915 = arith.subf %32, %914 : vector<8x8xf32>
    %cst_369 = arith.constant dense<0.000000e+00> : vector<8x8xf32>
    %916 = tpu.matmul %912, %915, %cst_369 {dimension_numbers = #tpu.dot_dimension_numbers<[1], [0], [0], [1], [0, 0, 1, 1], [], []>} : vector<8x8xf32>, vector<8x8xf32>, vector<8x8xf32> -> vector<8x8xf32>
    %917 = arith.subf %30, %916 : vector<8x8xf32>
    %cst_370 = arith.constant dense<0.000000e+00> : vector<8x8xf32>
    %918 = tpu.matmul %911, %917, %cst_370 {dimension_numbers = #tpu.dot_dimension_numbers<[1], [0], [0], [1], [0, 0, 1, 1], [], []>} : vector<8x8xf32>, vector<8x8xf32>, vector<8x8xf32> -> vector<8x8xf32>
    %cst_371 = arith.constant 2.500000e-01 : f32
    %919 = vector.broadcast %cst_371 : f32 to vector<8x8xf32>
    %920 = arith.mulf %919, %918 : vector<8x8xf32>
    %cst_372 = arith.constant dense<0.000000e+00> : vector<8x32xf32>
    %921 = tpu.matmul %920, %863, %cst_372 {dimension_numbers = #tpu.dot_dimension_numbers<[1], [0], [0], [1], [0, 0, 1, 1], [], []>} : vector<8x8xf32>, vector<8x32xf32>, vector<8x32xf32> -> vector<8x32xf32>
    %cst_373 = arith.constant dense<0.000000e+00> : vector<32x32xf32>
    %922 = tpu.matmul %837, %921, %cst_373 {dimension_numbers = #tpu.dot_dimension_numbers<[1], [0], [0], [1], [0, 0, 1, 1], [], []>} : vector<32x8xf32>, vector<8x32xf32>, vector<32x32xf32> -> vector<32x32xf32>
    %923 = vector.extract_strided_slice %533 {offsets = [0, 96], sizes = [32, 32], strides = [1, 1]} : vector<32x384xf32> to vector<32x32xf32>
    %cst_374 = arith.constant 0.176776692 : f32
    %924 = vector.broadcast %cst_374 : f32 to vector<32x32xf32>
    %925 = arith.mulf %923, %924 : vector<32x32xf32>
    %926 = vector.extract_strided_slice %533 {offsets = [0, 224], sizes = [32, 32], strides = [1, 1]} : vector<32x384xf32> to vector<32x32xf32>
    %927 = vector.extract_strided_slice %533 {offsets = [0, 352], sizes = [32, 32], strides = [1, 1]} : vector<32x384xf32> to vector<32x32xf32>
    %928 = vector.extract_strided_slice %534 {offsets = [0, 96], sizes = [8, 32], strides = [1, 1]} : vector<8x256xf32> to vector<8x32xf32>
    %cst_375 = arith.constant 0.176776692 : f32
    %929 = vector.broadcast %cst_375 : f32 to vector<8x32xf32>
    %930 = arith.mulf %928, %929 : vector<8x32xf32>
    %931 = vector.extract_strided_slice %534 {offsets = [0, 224], sizes = [8, 32], strides = [1, 1]} : vector<8x256xf32> to vector<8x32xf32>
    %932 = arith.truncf %925 : vector<32x32xf32> to vector<32x32xbf16>
    %933 = arith.truncf %931 : vector<8x32xf32> to vector<8x32xbf16>
    %cst_376 = arith.constant dense<0.000000e+00> : vector<32x8xf32>
    %934 = tpu.matmul %932, %933, %cst_376 {dimension_numbers = #tpu.dot_dimension_numbers<[1], [1], [0], [0], [0, 0, 1, 0], [], []>} : vector<32x32xbf16>, vector<8x32xbf16>, vector<32x8xf32> -> vector<32x8xf32>
    %cst_377 = arith.constant dense<0xFF800000> : vector<32xf32>
    %935 = vector.multi_reduction <maximumf>, %934, %cst_377 [1] : vector<32x8xf32> to vector<32xf32>
    %936 = vector.shape_cast %935 : vector<32xf32> to vector<32x1xf32>
    %937 = vector.broadcast %936 : vector<32x1xf32> to vector<32x8xf32>
    %938 = arith.subf %934, %937 : vector<32x8xf32>
    %939 = math.exp %938 : vector<32x8xf32>
    %cst_378 = arith.constant dense<0.000000e+00> : vector<32xf32>
    %940 = vector.multi_reduction <add>, %939, %cst_378 [1] : vector<32x8xf32> to vector<32xf32>
    %941 = vector.shape_cast %940 : vector<32xf32> to vector<32x1xf32>
    %942 = vector.broadcast %941 : vector<32x1xf32> to vector<32x8xf32>
    %943 = arith.divf %939, %942 : vector<32x8xf32>
    %cst_379 = arith.constant dense<0.000000e+00> : vector<8x8xf32>
    %944 = tpu.matmul %930, %931, %cst_379 {dimension_numbers = #tpu.dot_dimension_numbers<[1], [1], [0], [0], [0, 0, 1, 0], [], []>} : vector<8x32xf32>, vector<8x32xf32>, vector<8x8xf32> -> vector<8x8xf32>
    %cst_380 = arith.constant dense<0xFF800000> : vector<8xf32>
    %945 = vector.multi_reduction <maximumf>, %944, %cst_380 [1] : vector<8x8xf32> to vector<8xf32>
    %946 = vector.shape_cast %945 : vector<8xf32> to vector<8x1xf32>
    %947 = vector.broadcast %946 : vector<8x1xf32> to vector<8x8xf32>
    %948 = arith.subf %944, %947 : vector<8x8xf32>
    %949 = math.exp %948 : vector<8x8xf32>
    %cst_381 = arith.constant dense<0.000000e+00> : vector<8xf32>
    %950 = vector.multi_reduction <add>, %949, %cst_381 [1] : vector<8x8xf32> to vector<8xf32>
    %951 = vector.shape_cast %950 : vector<8xf32> to vector<8x1xf32>
    %952 = vector.broadcast %951 : vector<8x1xf32> to vector<8x8xf32>
    %953 = arith.divf %949, %952 : vector<8x8xf32>
    %954 = arith.truncf %930 : vector<8x32xf32> to vector<8x32xbf16>
    %955 = arith.truncf %926 : vector<32x32xf32> to vector<32x32xbf16>
    %cst_382 = arith.constant dense<0.000000e+00> : vector<8x32xf32>
    %956 = tpu.matmul %954, %955, %cst_382 {dimension_numbers = #tpu.dot_dimension_numbers<[1], [1], [0], [0], [0, 0, 1, 0], [], []>} : vector<8x32xbf16>, vector<32x32xbf16>, vector<8x32xf32> -> vector<8x32xf32>
    %cst_383 = arith.constant dense<0xFF800000> : vector<8xf32>
    %957 = vector.multi_reduction <maximumf>, %956, %cst_383 [1] : vector<8x32xf32> to vector<8xf32>
    %958 = vector.shape_cast %957 : vector<8xf32> to vector<8x1xf32>
    %959 = vector.broadcast %958 : vector<8x1xf32> to vector<8x32xf32>
    %960 = arith.subf %956, %959 : vector<8x32xf32>
    %961 = math.exp %960 : vector<8x32xf32>
    %cst_384 = arith.constant dense<0.000000e+00> : vector<8xf32>
    %962 = vector.multi_reduction <add>, %961, %cst_384 [1] : vector<8x32xf32> to vector<8xf32>
    %963 = vector.shape_cast %962 : vector<8xf32> to vector<8x1xf32>
    %964 = tpu.reciprocal %963 {approx = true} : vector<8x1xf32> -> vector<8x1xf32>
    %965 = vector.broadcast %964 : vector<8x1xf32> to vector<8x32xf32>
    %966 = arith.mulf %961, %965 : vector<8x32xf32>
    %967 = arith.truncf %966 : vector<8x32xf32> to vector<8x32xbf16>
    %968 = arith.truncf %927 : vector<32x32xf32> to vector<32x32xbf16>
    %cst_385 = arith.constant dense<0.000000e+00> : vector<8x32xf32>
    %969 = tpu.matmul %967, %968, %cst_385 {dimension_numbers = #tpu.dot_dimension_numbers<[1], [0], [0], [1], [0, 0, 1, 1], [], []>} : vector<8x32xbf16>, vector<32x32xbf16>, vector<8x32xf32> -> vector<8x32xf32>
    %970 = tpu.transpose %953, [1, 0] : vector<8x8xf32> -> vector<8x8xf32>
    %971 = vector.broadcast %21 : f32 to vector<8x8xf32>
    %972 = arith.mulf %970, %971 : vector<8x8xf32>
    %cst_386 = arith.constant dense<0.000000e+00> : vector<8x8xf32>
    %973 = tpu.matmul %953, %972, %cst_386 {dimension_numbers = #tpu.dot_dimension_numbers<[1], [0], [0], [1], [0, 0, 1, 1], [], []>} : vector<8x8xf32>, vector<8x8xf32>, vector<8x8xf32> -> vector<8x8xf32>
    %974 = arith.subf %28, %973 : vector<8x8xf32>
    %cst_387 = arith.constant dense<0.000000e+00> : vector<8x8xf32>
    %975 = tpu.matmul %973, %974, %cst_387 {dimension_numbers = #tpu.dot_dimension_numbers<[1], [0], [0], [1], [0, 0, 1, 1], [], []>} : vector<8x8xf32>, vector<8x8xf32>, vector<8x8xf32> -> vector<8x8xf32>
    %976 = arith.subf %32, %975 : vector<8x8xf32>
    %cst_388 = arith.constant dense<0.000000e+00> : vector<8x8xf32>
    %977 = tpu.matmul %973, %976, %cst_388 {dimension_numbers = #tpu.dot_dimension_numbers<[1], [0], [0], [1], [0, 0, 1, 1], [], []>} : vector<8x8xf32>, vector<8x8xf32>, vector<8x8xf32> -> vector<8x8xf32>
    %978 = arith.subf %30, %977 : vector<8x8xf32>
    %cst_389 = arith.constant dense<0.000000e+00> : vector<8x8xf32>
    %979 = tpu.matmul %972, %978, %cst_389 {dimension_numbers = #tpu.dot_dimension_numbers<[1], [0], [0], [1], [0, 0, 1, 1], [], []>} : vector<8x8xf32>, vector<8x8xf32>, vector<8x8xf32> -> vector<8x8xf32>
    %cst_390 = arith.constant 2.500000e-01 : f32
    %980 = vector.broadcast %cst_390 : f32 to vector<8x8xf32>
    %981 = arith.mulf %980, %979 : vector<8x8xf32>
    %cst_391 = arith.constant dense<0.000000e+00> : vector<8x8xf32>
    %982 = tpu.matmul %953, %981, %cst_391 {dimension_numbers = #tpu.dot_dimension_numbers<[1], [0], [0], [1], [0, 0, 1, 1], [], []>} : vector<8x8xf32>, vector<8x8xf32>, vector<8x8xf32> -> vector<8x8xf32>
    %983 = arith.subf %28, %982 : vector<8x8xf32>
    %cst_392 = arith.constant dense<0.000000e+00> : vector<8x8xf32>
    %984 = tpu.matmul %982, %983, %cst_392 {dimension_numbers = #tpu.dot_dimension_numbers<[1], [0], [0], [1], [0, 0, 1, 1], [], []>} : vector<8x8xf32>, vector<8x8xf32>, vector<8x8xf32> -> vector<8x8xf32>
    %985 = arith.subf %32, %984 : vector<8x8xf32>
    %cst_393 = arith.constant dense<0.000000e+00> : vector<8x8xf32>
    %986 = tpu.matmul %982, %985, %cst_393 {dimension_numbers = #tpu.dot_dimension_numbers<[1], [0], [0], [1], [0, 0, 1, 1], [], []>} : vector<8x8xf32>, vector<8x8xf32>, vector<8x8xf32> -> vector<8x8xf32>
    %987 = arith.subf %30, %986 : vector<8x8xf32>
    %cst_394 = arith.constant dense<0.000000e+00> : vector<8x8xf32>
    %988 = tpu.matmul %981, %987, %cst_394 {dimension_numbers = #tpu.dot_dimension_numbers<[1], [0], [0], [1], [0, 0, 1, 1], [], []>} : vector<8x8xf32>, vector<8x8xf32>, vector<8x8xf32> -> vector<8x8xf32>
    %cst_395 = arith.constant 2.500000e-01 : f32
    %989 = vector.broadcast %cst_395 : f32 to vector<8x8xf32>
    %990 = arith.mulf %989, %988 : vector<8x8xf32>
    %cst_396 = arith.constant dense<0.000000e+00> : vector<8x8xf32>
    %991 = tpu.matmul %953, %990, %cst_396 {dimension_numbers = #tpu.dot_dimension_numbers<[1], [0], [0], [1], [0, 0, 1, 1], [], []>} : vector<8x8xf32>, vector<8x8xf32>, vector<8x8xf32> -> vector<8x8xf32>
    %992 = arith.subf %28, %991 : vector<8x8xf32>
    %cst_397 = arith.constant dense<0.000000e+00> : vector<8x8xf32>
    %993 = tpu.matmul %991, %992, %cst_397 {dimension_numbers = #tpu.dot_dimension_numbers<[1], [0], [0], [1], [0, 0, 1, 1], [], []>} : vector<8x8xf32>, vector<8x8xf32>, vector<8x8xf32> -> vector<8x8xf32>
    %994 = arith.subf %32, %993 : vector<8x8xf32>
    %cst_398 = arith.constant dense<0.000000e+00> : vector<8x8xf32>
    %995 = tpu.matmul %991, %994, %cst_398 {dimension_numbers = #tpu.dot_dimension_numbers<[1], [0], [0], [1], [0, 0, 1, 1], [], []>} : vector<8x8xf32>, vector<8x8xf32>, vector<8x8xf32> -> vector<8x8xf32>
    %996 = arith.subf %30, %995 : vector<8x8xf32>
    %cst_399 = arith.constant dense<0.000000e+00> : vector<8x8xf32>
    %997 = tpu.matmul %990, %996, %cst_399 {dimension_numbers = #tpu.dot_dimension_numbers<[1], [0], [0], [1], [0, 0, 1, 1], [], []>} : vector<8x8xf32>, vector<8x8xf32>, vector<8x8xf32> -> vector<8x8xf32>
    %cst_400 = arith.constant 2.500000e-01 : f32
    %998 = vector.broadcast %cst_400 : f32 to vector<8x8xf32>
    %999 = arith.mulf %998, %997 : vector<8x8xf32>
    %cst_401 = arith.constant dense<0.000000e+00> : vector<8x8xf32>
    %1000 = tpu.matmul %953, %999, %cst_401 {dimension_numbers = #tpu.dot_dimension_numbers<[1], [0], [0], [1], [0, 0, 1, 1], [], []>} : vector<8x8xf32>, vector<8x8xf32>, vector<8x8xf32> -> vector<8x8xf32>
    %1001 = arith.subf %28, %1000 : vector<8x8xf32>
    %cst_402 = arith.constant dense<0.000000e+00> : vector<8x8xf32>
    %1002 = tpu.matmul %1000, %1001, %cst_402 {dimension_numbers = #tpu.dot_dimension_numbers<[1], [0], [0], [1], [0, 0, 1, 1], [], []>} : vector<8x8xf32>, vector<8x8xf32>, vector<8x8xf32> -> vector<8x8xf32>
    %1003 = arith.subf %32, %1002 : vector<8x8xf32>
    %cst_403 = arith.constant dense<0.000000e+00> : vector<8x8xf32>
    %1004 = tpu.matmul %1000, %1003, %cst_403 {dimension_numbers = #tpu.dot_dimension_numbers<[1], [0], [0], [1], [0, 0, 1, 1], [], []>} : vector<8x8xf32>, vector<8x8xf32>, vector<8x8xf32> -> vector<8x8xf32>
    %1005 = arith.subf %30, %1004 : vector<8x8xf32>
    %cst_404 = arith.constant dense<0.000000e+00> : vector<8x8xf32>
    %1006 = tpu.matmul %999, %1005, %cst_404 {dimension_numbers = #tpu.dot_dimension_numbers<[1], [0], [0], [1], [0, 0, 1, 1], [], []>} : vector<8x8xf32>, vector<8x8xf32>, vector<8x8xf32> -> vector<8x8xf32>
    %cst_405 = arith.constant 2.500000e-01 : f32
    %1007 = vector.broadcast %cst_405 : f32 to vector<8x8xf32>
    %1008 = arith.mulf %1007, %1006 : vector<8x8xf32>
    %cst_406 = arith.constant dense<0.000000e+00> : vector<8x8xf32>
    %1009 = tpu.matmul %953, %1008, %cst_406 {dimension_numbers = #tpu.dot_dimension_numbers<[1], [0], [0], [1], [0, 0, 1, 1], [], []>} : vector<8x8xf32>, vector<8x8xf32>, vector<8x8xf32> -> vector<8x8xf32>
    %1010 = arith.subf %28, %1009 : vector<8x8xf32>
    %cst_407 = arith.constant dense<0.000000e+00> : vector<8x8xf32>
    %1011 = tpu.matmul %1009, %1010, %cst_407 {dimension_numbers = #tpu.dot_dimension_numbers<[1], [0], [0], [1], [0, 0, 1, 1], [], []>} : vector<8x8xf32>, vector<8x8xf32>, vector<8x8xf32> -> vector<8x8xf32>
    %1012 = arith.subf %32, %1011 : vector<8x8xf32>
    %cst_408 = arith.constant dense<0.000000e+00> : vector<8x8xf32>
    %1013 = tpu.matmul %1009, %1012, %cst_408 {dimension_numbers = #tpu.dot_dimension_numbers<[1], [0], [0], [1], [0, 0, 1, 1], [], []>} : vector<8x8xf32>, vector<8x8xf32>, vector<8x8xf32> -> vector<8x8xf32>
    %1014 = arith.subf %30, %1013 : vector<8x8xf32>
    %cst_409 = arith.constant dense<0.000000e+00> : vector<8x8xf32>
    %1015 = tpu.matmul %1008, %1014, %cst_409 {dimension_numbers = #tpu.dot_dimension_numbers<[1], [0], [0], [1], [0, 0, 1, 1], [], []>} : vector<8x8xf32>, vector<8x8xf32>, vector<8x8xf32> -> vector<8x8xf32>
    %cst_410 = arith.constant 2.500000e-01 : f32
    %1016 = vector.broadcast %cst_410 : f32 to vector<8x8xf32>
    %1017 = arith.mulf %1016, %1015 : vector<8x8xf32>
    %cst_411 = arith.constant dense<0.000000e+00> : vector<8x8xf32>
    %1018 = tpu.matmul %953, %1017, %cst_411 {dimension_numbers = #tpu.dot_dimension_numbers<[1], [0], [0], [1], [0, 0, 1, 1], [], []>} : vector<8x8xf32>, vector<8x8xf32>, vector<8x8xf32> -> vector<8x8xf32>
    %1019 = arith.subf %28, %1018 : vector<8x8xf32>
    %cst_412 = arith.constant dense<0.000000e+00> : vector<8x8xf32>
    %1020 = tpu.matmul %1018, %1019, %cst_412 {dimension_numbers = #tpu.dot_dimension_numbers<[1], [0], [0], [1], [0, 0, 1, 1], [], []>} : vector<8x8xf32>, vector<8x8xf32>, vector<8x8xf32> -> vector<8x8xf32>
    %1021 = arith.subf %32, %1020 : vector<8x8xf32>
    %cst_413 = arith.constant dense<0.000000e+00> : vector<8x8xf32>
    %1022 = tpu.matmul %1018, %1021, %cst_413 {dimension_numbers = #tpu.dot_dimension_numbers<[1], [0], [0], [1], [0, 0, 1, 1], [], []>} : vector<8x8xf32>, vector<8x8xf32>, vector<8x8xf32> -> vector<8x8xf32>
    %1023 = arith.subf %30, %1022 : vector<8x8xf32>
    %cst_414 = arith.constant dense<0.000000e+00> : vector<8x8xf32>
    %1024 = tpu.matmul %1017, %1023, %cst_414 {dimension_numbers = #tpu.dot_dimension_numbers<[1], [0], [0], [1], [0, 0, 1, 1], [], []>} : vector<8x8xf32>, vector<8x8xf32>, vector<8x8xf32> -> vector<8x8xf32>
    %cst_415 = arith.constant 2.500000e-01 : f32
    %1025 = vector.broadcast %cst_415 : f32 to vector<8x8xf32>
    %1026 = arith.mulf %1025, %1024 : vector<8x8xf32>
    %cst_416 = arith.constant dense<0.000000e+00> : vector<8x32xf32>
    %1027 = tpu.matmul %1026, %969, %cst_416 {dimension_numbers = #tpu.dot_dimension_numbers<[1], [0], [0], [1], [0, 0, 1, 1], [], []>} : vector<8x8xf32>, vector<8x32xf32>, vector<8x32xf32> -> vector<8x32xf32>
    %cst_417 = arith.constant dense<0.000000e+00> : vector<32x32xf32>
    %1028 = tpu.matmul %943, %1027, %cst_417 {dimension_numbers = #tpu.dot_dimension_numbers<[1], [0], [0], [1], [0, 0, 1, 1], [], []>} : vector<32x8xf32>, vector<8x32xf32>, vector<32x32xf32> -> vector<32x32xf32>
    %1029 = tpu.concatenate %710, %816, %922, %1028 in 1 : vector<32x32xf32>, vector<32x32xf32>, vector<32x32xf32>, vector<32x32xf32> -> vector<32x128xf32>
    %1030 = arith.addf %1029, %604 : vector<32x128xf32>
    %1031 = tpu.concatenate %532, %1030 in 0 : vector<32x128xf32>, vector<32x128xf32> -> vector<64x128xf32>
    %1032 = arith.truncf %1031 : vector<64x128xf32> to vector<64x128xbf16>
    %c0_418 = arith.constant 0 : index
    %c0_419 = arith.constant 0 : index
    %1033 = vector.load %arg4[%c0_418, %c0_419] : memref<128x128xbf16, #tpu.memory_space<vmem>>, vector<128x128xbf16>
    %cst_420 = arith.constant dense<0.000000e+00> : vector<64x128xf32>
    %1034 = tpu.matmul %1032, %1033, %cst_420 {dimension_numbers = #tpu.dot_dimension_numbers<[1], [0], [0], [1], [0, 0, 1, 1], [], []>} : vector<64x128xbf16>, vector<128x128xbf16>, vector<64x128xf32> -> vector<64x128xf32>
    %c0_421 = arith.constant 0 : index
    %c0_422 = arith.constant 0 : index
    %1035 = vector.load %arg5[%c0_421, %c0_422] : memref<1x128xf32, #tpu.memory_space<vmem>>, vector<1x128xf32>
    %1036 = vector.broadcast %1035 : vector<1x128xf32> to vector<64x128xf32>
    %1037 = arith.addf %1034, %1036 : vector<64x128xf32>
    %1038 = vector.shape_cast %1037 : vector<64x128xf32> to vector<2x32x128xf32>
    %c0_423 = arith.constant 0 : index
    %c0_424 = arith.constant 0 : index
    %c0_425 = arith.constant 0 : index
    %1039 = vector.load %arg8[%c0_423, %c0_424, %c0_425] : memref<2x32x128xf32, #tpu.memory_space<vmem>>, vector<2x32x128xf32>
    tpu.vector_store %arg8[%c0_423, %c0_424, %c0_425], %1038 {strides = array<i32>} : memref<2x32x128xf32, #tpu.memory_space<vmem>>, vector<2x32x128xf32>,
    return
  }
  func.func @transform_0(%arg0: i32) -> (i32, i32, i32) {
    %c0_i32 = arith.constant 0 : i32
    %c0_i32_0 = arith.constant 0 : i32
    %c0_i32_1 = arith.constant 0 : i32
    return %arg0, %c0_i32, %c0_i32_0 : i32, i32, i32
  }
  func.func @transform_1(%arg0: i32) -> (i32, i32) {
    %c0_i32 = arith.constant 0 : i32
    %c0_i32_0 = arith.constant 0 : i32
    %c0_i32_1 = arith.constant 0 : i32
    return %c0_i32, %c0_i32_0 : i32, i32
  }
  func.func @transform_2(%arg0: i32) -> (i32, i32) {
    %c0_i32 = arith.constant 0 : i32
    %c0_i32_0 = arith.constant 0 : i32
    %c0_i32_1 = arith.constant 0 : i32
    return %c0_i32, %c0_i32_0 : i32, i32
  }
  func.func @transform_3(%arg0: i32) -> (i32, i32) {
    %c0_i32 = arith.constant 0 : i32
    %c0_i32_0 = arith.constant 0 : i32
    %c0_i32_1 = arith.constant 0 : i32
    return %c0_i32, %c0_i32_0 : i32, i32
  }
  func.func @transform_4(%arg0: i32) -> (i32, i32) {
    %c0_i32 = arith.constant 0 : i32
    %c0_i32_0 = arith.constant 0 : i32
    %c0_i32_1 = arith.constant 0 : i32
    return %c0_i32, %c0_i32_0 : i32, i32
  }
  func.func @transform_5(%arg0: i32) -> (i32, i32) {
    %c0_i32 = arith.constant 0 : i32
    %c0_i32_0 = arith.constant 0 : i32
    %c0_i32_1 = arith.constant 0 : i32
    return %c0_i32, %c0_i32_0 : i32, i32
  }
  func.func @transform_6(%arg0: i32) -> (i32, i32) {
    %c0_i32 = arith.constant 0 : i32
    %c0_i32_0 = arith.constant 0 : i32
    %c0_i32_1 = arith.constant 0 : i32
    return %c0_i32, %c0_i32_0 : i32, i32
  }
  func.func @transform_7(%arg0: i32) -> (i32, i32, i32) {
    %c0_i32 = arith.constant 0 : i32
    %c0_i32_0 = arith.constant 0 : i32
    %c0_i32_1 = arith.constant 0 : i32
    return %arg0, %c0_i32, %c0_i32_0 : i32, i32, i32
  }
}

</mosaic_0001>

<bundles_post_ra>
// kernel: tpu_custom_call.1
= control target key start
LH: loop header
LB: loop body
LE: loop exit
PB: predicated region body
PF: predicated region fallthrough
CT: control target
= control target key end

     0   :  { %13 = vsyncpa [#allocation4], 0  ;;  %s24332_s0 = inlined_call_operand.hbm [shape: f32[2,32,128], index: 0, kind: input, shape index: {}]   ;;  %s24333_s1 = inlined_call_operand.hbm [shape: bf16[128,384], index: 1, kind: input, shape index: {}]   ;;  %s24334_s2 = inlined_call_operand.hbm [shape: f32[128,256], index: 2, kind: input, shape index: {}]   ;;  %s24335_s3 = inlined_call_operand.hbm [shape: bf16[128,128], index: 3, kind: input, shape index: {}]   ;;  %s24336_s4 = inlined_call_operand.vmem [shape: f32[1,128], index: 4, kind: input, shape index: {}]   ;;  %s24337_s5 = inlined_call_operand.vmem [shape: f32[5,128], index: 5, kind: input, shape index: {}]   ;;  %s24338_s6 = inlined_call_operand.<no memory space> [shape: f32[1,1], index: 6, kind: input, shape index: {}]   ;;  %s24339_s7 = inlined_call_operand.hbm [shape: f32[2,32,128], index: 7, kind: output, shape index: {}]  }
   0x1   :  { %14 = vsyncpa [#allocation7], 0 }
   0x2   :  { %15 = vsyncpa [#allocation10], 0 }
   0x3   :  { %16 = vsyncpa [#allocation5], 0  ;;  %s21932_s24 = smov [#allocation6]  }
   0x4   :  { %s34_s25 = sshll.u32 %s21932_s24, 4  ;;  %s35_s25 = int_to_ptr.vmem [resolvable:$true] %s34_s25 }
   0x5   :  { %s21832_s26 = scalar_lea.vmem %s35_s25, 3072  ;;  %p21837_p1 = scmp.lt.s32.totalorder %s35_s25, %s35_s25 }
   0x6   :  { %p21833_p0 = scmp.ne.s32.totalorder %s35_s25, %s21832_s26  ;;  %p21838_p2 = scmp.lt.s32.totalorder %s21832_s26, %s21832_s26 }
   0x8   :  { %p21839_p3 = por %p21838_p2, %p21837_p1 }
   0xa   :  { %p21840_p4 = pnand %p21839_p3, %p21833_p0 }
   0xc   :  { %21843 = shalt.err (!%p21840_p4)
}
   0xd   :  { %s21933_s27 = smov 192   ;;  %s21934_s28 = smov 12  }
   0xe   :  { %40 = dma.hbm_to_vmem [thread:$0]  %s24333_s1, 3072, %s35_s25, [#allocation7], %s21933_s27, %s21933_s27, %s21934_s28  }
   0xf   :  { %s21935_s8 = smov [#allocation3]  }
  0x10   :  { %s22_s9 = sshll.u32 %s21935_s8, 4  ;;  %s23_s9 = int_to_ptr.vmem [resolvable:$true] %s22_s9 }
  0x11   :  { %s21852_s10 = scalar_lea.vmem %s23_s9, 1024  ;;  %p21857_p6 = scmp.lt.s32.totalorder %s23_s9, %s23_s9 }
  0x12   :  { %p21853_p5 = scmp.ne.s32.totalorder %s23_s9, %s21852_s10  ;;  %p21858_p7 = scmp.lt.s32.totalorder %s21852_s10, %s21852_s10 }
  0x14   :  { %p21859_p8 = por %p21858_p7, %p21857_p6 }
  0x16   :  { %p21860_p9 = pnand %p21859_p8, %p21853_p5 }
  0x18   :  { %21863 = shalt.err (!%p21860_p9)
}
  0x19   :  { %s21936_s11 = smov 128   ;;  %s21937_s12 = smov 8  }
  0x1a   :  { %28 = dma.hbm_to_vmem [thread:$0]  %s24332_s0, 1024, %s23_s9, [#allocation4], %s21936_s11, %s21936_s11, %s21937_s12  }
  0x1b   :  { %s21938_s1 = smov [#allocation8]  }
  0x1c   :  { %s46_s15 = sshll.u32 %s21938_s1, 4  ;;  %s47_s15 = int_to_ptr.vmem [resolvable:$true] %s46_s15 }
  0x1d   :  { %s21872_s16 = scalar_lea.vmem %s47_s15, 4096  ;;  %p21877_p11 = scmp.lt.s32.totalorder %s47_s15, %s47_s15 }
  0x1e   :  { %p21873_p10 = scmp.ne.s32.totalorder %s47_s15, %s21872_s16  ;;  %p21878_p12 = scmp.lt.s32.totalorder %s21872_s16, %s21872_s16 }
  0x20   :  { %p21879_p13 = por %p21878_p12, %p21877_p11 }
  0x22   :  { %p21880_p0 = pnand %p21879_p13, %p21873_p10 }
  0x24   :  { %21883 = shalt.err (!%p21880_p0)
}
  0x25   :  { %s21939_s17 = smov 256   ;;  %s21940_s18 = smov 16  }
  0x26   :  { %52 = dma.hbm_to_vmem [thread:$0]  %s24334_s2, 4096, %s47_s15, [#allocation7], %s21939_s17, %s21939_s17, %s21940_s18  }
  0x27   :  { %s21941_s21 = smov [#allocation9]  }
  0x28   :  { %s58_s22 = sshll.u32 %s21941_s21, 4  ;;  %s59_s22 = int_to_ptr.vmem [resolvable:$true] %s58_s22 }
  0x29   :  { %s21892_s0 = scalar_lea.vmem %s59_s22, 1024  ;;  %p21897_p2 = scmp.lt.s32.totalorder %s59_s22, %s59_s22 }
  0x2a   :  { %p21893_p1 = scmp.ne.s32.totalorder %s59_s22, %s21892_s0  ;;  %p21898_p3 = scmp.lt.s32.totalorder %s21892_s0, %s21892_s0 }
  0x2c   :  { %p21899_p4 = por %p21898_p3, %p21897_p2 }
  0x2e   :  { %p21900_p5 = pnand %p21899_p4, %p21893_p1 }
  0x30   :  { %21903 = shalt.err (!%p21900_p5)
}
  0x31   :  { %s21942_s23 = smov 64   ;;  %s21943_s24 = smov 4  }
  0x32   :  { %64 = dma.hbm_to_vmem [thread:$0]  %s24335_s3, 1024, %s59_s22, [#allocation10], %s21942_s23, %s21942_s23, %s21943_s24  }
  0x33   :  { %21924 = dma.done.wait [#allocation4], 1024  }
  0x34   :  { %21925 = vsyncadd [#allocation4], 4294966272 }
  0x35   :  { %21926 = dma.done.wait [#allocation7], 7168  }
  0x36   :  { %21927 = vsyncadd [#allocation7], 4294960128 }
  0x37   :  { %21928 = dma.done.wait [#allocation10], 1024  }
  0x38   :  { %21929 = vsyncadd [#allocation10], 4294966272  ;;  %v21944_v0 = vmov 0   ;;  %v21582_v1 = vld [vmem:[#allocation6 + $0xac] ss:$12 sps:$4 sm:$0xff]   ;;  %v84_v8 = vld [vmem:[#allocation3] sm:$0xff] }
  0x39   :  { %288 = vmatprep.mubr.bf16.mxu0 %v21944_v0  ;;  %v21584_v2 = vld [vmem:[#allocation6 + $0xa8] ss:$12 sps:$4 sm:$0xff]   ;;  %256 = vmatprep.subr.bf16.mxu0 %v21582_v1  ;;  %v21587_v4 = vld [vmem:[#allocation6 + $0x90] ss:$12 sps:$4 sm:$0xff]   ;;  %v21590_v6 = vld [vmem:[#allocation6 + $0x78] ss:$12 sps:$4 sm:$0xff]   ;;  %v402_v11 = vcombine.high %v84_v8, %v84_v8 }
  0x3a   :  { %v21585_v3 = vld [vmem:[#allocation6 + $0x94] ss:$12 sps:$4 sm:$0xff]   ;;  %257 = vmatpush1.bf16.msra.mxu0 %v21584_v2  ;;  %v21588_v5 = vld [vmem:[#allocation6 + $0x7c] ss:$12 sps:$4 sm:$0xff]   ;;  %v21591_v7 = vld [vmem:[#allocation6 + $0x64] ss:$12 sps:$4 sm:$0xff]  }
  0x3b   :  { %258 = vmatprep.subr.bf16.mxu0 %v21585_v3  ;;  %vm410_vm0 = vcmask 1043456   ;;  %v21593_v9 = vld [vmem:[#allocation6 + $0x60] ss:$12 sps:$4 sm:$0xff]   ;;  %v21596_v18 = vld [vmem:[#allocation6 + $0x48] ss:$12 sps:$4 sm:$0xff]   ;;  %v87_v35 = vld [vmem:[#allocation3 + $0x18] sm:$0xff] }
  0x3c   :  { %v85_v10 = vld [vmem:[#allocation3 + $0x8] sm:$0xff]  ;;  %v411_v15 = vsel %vm410_vm0, %v84_v8, 0.0  ;;  %v418_v16 = vsel %vm410_vm0, %v402_v11, 0.0  ;;  %v21597_v19 = vld [vmem:[#allocation6 + $0x34] ss:$12 sps:$4 sm:$0xff]   ;;  %v453_v42 = vsel %vm410_vm0, %v87_v35, 0.0  ;;  %v405_v47 = vcombine.high %v87_v35, %v87_v35 }
  0x3d   :  { %v21594_v12 = vld [vmem:[#allocation6 + $0x4c] ss:$12 sps:$4 sm:$0xff]   ;;  %v22008_v13 = vpack.c.bf16 %v85_v10, %v84_v8  ;;  %v403_v14 = vcombine.high %v85_v10, %v85_v10  ;;  %v425_v17 = vsel %vm410_vm0, %v85_v10, 0.0  ;;  %v412_v20 = vrot.slane %v411_v15, 4  ;;  %v21599_v24 = vld [vmem:[#allocation6 + $0x30] ss:$12 sps:$4 sm:$0xff]  }
  0x3e   :  { %259 = vmatpush1.bf16.msra.mxu0 %v21587_v4  ;;  %v419_v21 = vrot.slane %v418_v16, 4  ;;  %v426_v22 = vrot.slane %v425_v17, 4  ;;  %v22015_v25 = vld [vmem:[#allocation3 + $0x10] sm:$0xff]  ;;  %v21600_v26 = vld [vmem:[#allocation6 + $0x1c] ss:$12 sps:$4 sm:$0xff]   ;;  %v454_v49 = vrot.slane %v453_v42, 4 }
  0x3f   :  { %260 = vmatprep.subr.bf16.mxu0 %v21588_v5  ;;  %20242 = vmatprep.mubr.bf16.mxu1 %v22008_v13  ;;  %v432_v23 = vsel %vm410_vm0, %v403_v14, 0.0  ;;  %v404_v27 = vcombine.high %v22015_v25, %v22015_v25  ;;  %v413_v28 = vadd.f32 %v412_v20, %v411_v15  ;;  %v439_v32 = vsel %vm410_vm0, %v22015_v25, 0.0  ;;  %v21602_v33 = vld [vmem:[#allocation6 + $0x18] ss:$12 sps:$4 sm:$0xff]   ;;  %v21605_v43 = vld [vmem:[#allocation6] ss:$12 sps:$4 sm:$0xff]  }
  0x40   :  { %v433_v29 = vrot.slane %v432_v23, 4  ;;  %v420_v30 = vadd.f32 %v419_v21, %v418_v16  ;;  %v427_v31 = vadd.f32 %v426_v22, %v425_v17  ;;  %v21603_v34 = vld [vmem:[#allocation6 + $0x4] ss:$12 sps:$4 sm:$0xff]   ;;  %v440_v41 = vrot.slane %v439_v32, 4  ;;  %v626_v50 = vld [vmem:[#allocation8 + $0xf8] sm:$0xff]  ;;  %v624_v57 = vld [vmem:[#allocation8 + $0xe8] sm:$0xff] }
  0x41   :  { %v414_v36 = vrot.slane %v413_v28, 2  ;;  %v446_v38 = vsel %vm410_vm0, %v404_v27, 0.0  ;;  %v21610_v44 = vld [vmem:[#allocation6 + $0xb0] ss:$12 sps:$4 sm:$0xff]   ;;  %v21611_v46 = vld [vmem:[#allocation6 + $0x98] ss:$12 sps:$4 sm:$0xff]   ;;  %v455_v61 = vadd.f32 %v454_v49, %v453_v42 }
  0x42   :  { %261 = vmatpush1.bf16.msra.mxu0 %v21590_v6  ;;  %v434_v37 = vadd.f32 %v433_v29, %v432_v23  ;;  %v421_v39 = vrot.slane %v420_v30, 2  ;;  %v428_v40 = vrot.slane %v427_v31, 2  ;;  %v447_v45 = vrot.slane %v446_v38, 4  ;;  %20226 = vmatprep.subr.bf16.mxu1 %v21610_v44  ;;  %v21612_v55 = vld [vmem:[#allocation6 + $0x80] ss:$12 sps:$4 sm:$0xff]   ;;  %v625_v56 = vld [vmem:[#allocation8 + $0xf0] sm:$0xff] }
  0x43   :  { %262 = vmatprep.subr.bf16.mxu0 %v21591_v7  ;;  %v415_v51 = vadd.f32 %v414_v36, %v413_v28  ;;  %v441_v54 = vadd.f32 %v440_v41, %v439_v32  ;;  %20227 = vmatpush3.bf16.msra.mxu1 %v21610_v44  ;;  %v623_v59 = vld [vmem:[#allocation8 + $0xe0] sm:$0xff]  ;;  %v460_v62 = vsel %vm410_vm0, %v405_v47, 0.0  ;;  %v622_v63 = vld [vmem:[#allocation8 + $0xd8] sm:$0xff]  ;;  %v621_v5 = vld [vmem:[#allocation8 + $0xd0] sm:$0xff]  ;;  %vm564_vm1 = vcmask 1041409   ;;  %s21947_s28 = smov 96  }
  0x44   :  { %v435_v48 = vrot.slane %v434_v37, 2  ;;  %v422_v52 = vadd.f32 %v421_v39, %v420_v30  ;;  %v429_v53 = vadd.f32 %v428_v40, %v427_v31  ;;  %20228 = vmatprep.subr.bf16.mxu1 %v21611_v46  ;;  %v448_v58 = vadd.f32 %v447_v45, %v446_v38  ;;  %v21613_v6 = vld [vmem:[#allocation6 + $0x68] ss:$12 sps:$4 sm:$0xff]   ;;  %v619_v10 = vld [vmem:[#allocation8 + $0xc0] sm:$0xff]  ;;  %v618_v14 = vld [vmem:[#allocation8 + $0xb8] sm:$0xff]  ;;  %s21948_s29 = smov 32  }
  0x45   :  { %v416_v1 = vrot.slane %v415_v51, 1  ;;  %v442_v4 = vrot.slane %v441_v54, 2  ;;  %v620_v7 = vld [vmem:[#allocation8 + $0xc8] sm:$0xff]  ;;  %v617_v17 = vld [vmem:[#allocation8 + $0xb0] sm:$0xff]  ;;  %v615_v27 = vld [vmem:[#allocation8 + $0xa0] sm:$0xff]  ;;  %vm566_vm2 = vcmask 1042434  }
  0x46   :  { %263 = vmatpush1.bf16.msra.mxu0 %v21593_v9  ;;  %v436_v60 = vadd.f32 %v435_v48, %v434_v37  ;;  %v423_v2 = vrot.slane %v422_v52, 1  ;;  %v430_v3 = vrot.slane %v429_v53, 1  ;;  %v449_v8 = vrot.slane %v448_v58, 2  ;;  %v616_v22 = vld [vmem:[#allocation8 + $0xa8] sm:$0xff]  ;;  %v21615_v28 = vld [vmem:[#allocation6 + $0x38] ss:$12 sps:$4 sm:$0xff]  }
  0x47   :  { %264 = vmatprep.subr.bf16.mxu0 %v21594_v12  ;;  %20229 = vmatpush3.bf16.msra.mxu1 %v21611_v46  ;;  %v461_v9 = vrot.slane %v460_v62, 4  ;;  %v456_v12 = vrot.slane %v455_v61, 2  ;;  %v417_v15 = vadd.f32 %v416_v1, %v415_v51  ;;  %v614_v29 = vld [vmem:[#allocation8 + $0x98] sm:$0xff]  ;;  %v22031_v30 = vld [vmem:[#allocation3 + $0x20] sm:$0xff]  ;;  %v22033_v31 = vld [vmem:[#allocation3 + $0x28] sm:$0xff]  ;;  %vm568_vm3 = vcmask 1043459  }
  0x48   :  { %20230 = vmatprep.subr.bf16.mxu1 %v21612_v55  ;;  %v437_v11 = vrot.slane %v436_v60, 1  ;;  %v424_v16 = vadd.f32 %v423_v2, %v422_v52  ;;  %v431_v21 = vadd.f32 %v430_v3, %v429_v53  ;;  %v450_v23 = vadd.f32 %v449_v8, %v448_v58  ;;  %v612_v37 = vld [vmem:[#allocation8 + $0x88] sm:$0xff]  ;;  %v611_v40 = vld [vmem:[#allocation8 + $0x80] sm:$0xff]  ;;  %v609_v46 = vld [vmem:[#allocation8 + $0x70] sm:$0xff] }
  0x49   :  { %v462_v20 = vadd.f32 %v461_v9, %v460_v62  ;;  %v22038_v41 = vpack.c.bf16 %v22033_v31, %v22031_v30  ;;  %v21616_v49 = vld [vmem:[#allocation6 + $0x20] ss:$12 sps:$4 sm:$0xff]   ;;  %vm570_vm4 = vcmask 1044484   ;;  %vm572_vm5 = vcmask 1045509   ;;  %v602_v3 = vld [vmem:[#allocation8 + $0x38] sm:$0xff] }
  0x4a   :  { %265 = vmatpush1.bf16.msra.mxu0 %v21596_v18  ;;  %v443_v18 = vadd.f32 %v442_v4, %v441_v54  ;;  %v438_v32 = vadd.f32 %v437_v11, %v436_v60  ;;  %v469_v36 = vmul.f32 0.25, %v431_v21  ;;  %v451_v38 = vrot.slane %v450_v23, 1  ;;  %v607_v52 = vld [vmem:[#allocation8 + $0x60] sm:$0xff]  ;;  %v21617_v54 = vld [vmem:[#allocation6 + $0x8] ss:$12 sps:$4 sm:$0xff]  }
  0x4b   :  { %266 = vmatprep.subr.bf16.mxu0 %v21597_v19  ;;  %20231 = vmatpush3.bf16.msra.mxu1 %v21612_v55  ;;  %v21614_v19 = vld [vmem:[#allocation6 + $0x50] ss:$12 sps:$4 sm:$0xff]   ;;  %v604_v62 = vld [vmem:[#allocation8 + $0x48] sm:$0xff]  ;;  %v603_v1 = vld [vmem:[#allocation8 + $0x40] sm:$0xff]  ;;  %vm24341_vm6 = vcmask 1046534   ;;  %v24343_v11 = vmov 0.0  }
  0x4c   :  { %20232 = vmatprep.subr.bf16.mxu1 %v21613_v6  ;;  %v470_v45 = vmul.f32 0.25, %v438_v32  ;;  %v452_v51 = vadd.f32 %v451_v38, %v450_v23  ;;  %v606_v55 = vld [vmem:[#allocation8 + $0x58] sm:$0xff]  ;;  %v605_v60 = vld [vmem:[#allocation8 + $0x50] sm:$0xff]  ;;  %v599_v9 = vld [vmem:[#allocation8 + $0x20] sm:$0xff]  ;;  %vm24340_vm7 = vcmask 1047559   ;;  %vm906_vm8 = vcmask 261120  }
  0x4d   :  { %vm21946_vm9 = vmmov 0  }
  0x4e   :  { %267 = vmatpush1.bf16.msra.mxu0 %v21599_v24  ;;  %v467_v24 = vmul.f32 0.25, %v417_v15 }
  0x4f   :  { %268 = vmatprep.subr.bf16.mxu0 %v21600_v26  ;;  %v468_v26 = vmul.f32 0.25, %v424_v16  ;;  %20233 = vmatpush3.bf16.msra.mxu1 %v21613_v6  ;;  %v596_v16 = vld [vmem:[#allocation8 + $0x8] sm:$0xff] }
  0x50   :  { %20234 = vmatprep.subr.bf16.mxu1 %v21614_v19 }
  0x51   :  { %v565_v39 = vsel %vm564_vm1, %v468_v26, %v467_v24 }
  0x52   :  { %269 = vmatpush1.bf16.msra.mxu0 %v21602_v33  ;;  %v463_v33 = vrot.slane %v462_v20, 2  ;;  %v567_v48 = vsel %vm566_vm2, %v469_v36, %v565_v39 }
  0x53   :  { %270 = vmatprep.subr.bf16.mxu0 %v21603_v34  ;;  %v613_v34 = vld [vmem:[#allocation8 + $0x90] sm:$0xff]  ;;  %20235 = vmatpush3.bf16.msra.mxu1 %v21614_v19 }
  0x54   :  { %20236 = vmatprep.subr.bf16.mxu1 %v21615_v28  ;;  %v464_v44 = vadd.f32 %v463_v33, %v462_v20 }
  0x56   :  { %271 = vmatpush1.bf16.msra.mxu0 %v21605_v43  ;;  %v610_v43 = vld [vmem:[#allocation8 + $0x78] sm:$0xff]  ;;  %v465_v58 = vrot.slane %v464_v44, 1 }
  0x57   :  { %627 = vmatprep.subr.mxu0 %v626_v50  ;;  %v608_v50 = vld [vmem:[#allocation8 + $0x68] sm:$0xff]  ;;  %20237 = vmatpush3.bf16.msra.mxu1 %v21615_v28 }
  0x58   :  { %20238 = vmatprep.subr.bf16.mxu1 %v21616_v49  ;;  %v466_v4 = vadd.f32 %v465_v58, %v464_v44 }
  0x59   :  { %289 = vmatmul.mubr.bf16.vlgmr.msra.gmra.mxu0 %v22008_v13  ;;  %v22027_v13 = vpack.c.bf16 %v87_v35, %v22015_v25  ;;  %v444_v25 = vrot.slane %v443_v18, 1  ;;  %v457_v35 = vadd.f32 %v456_v12, %v455_v61 }
  0x5a   :  { %628 = vmatpush1.msra.mxu0 %v625_v56  ;;  %298 = vmatprep.mubr.bf16.mxu0 %v21944_v0  ;;  %v22043_v56 = vld [vmem:[#allocation3 + $0x30] sm:$0xff]  ;;  %v474_v12 = vmul.f32 0.25, %v466_v4 }
  0x5b   :  { %629 = vmatprep.subr.mxu0 %v624_v57  ;;  %v445_v42 = vadd.f32 %v444_v25, %v443_v18  ;;  %v458_v47 = vrot.slane %v457_v35, 1  ;;  %v22045_v57 = vld [vmem:[#allocation3 + $0x38] sm:$0xff]  ;;  %20239 = vmatpush3.bf16.msra.mxu1 %v21616_v49 }
  0x5c   :  { %630 = vmatpush1.msra.mxu0 %v623_v59  ;;  %v569_v59 = vsel %vm568_vm3, %v470_v45, %v567_v48  ;;  %20240 = vmatprep.subr.bf16.mxu1 %v21617_v54 }
  0x5d   :  { %631 = vmatprep.subr.mxu0 %v622_v63  ;;  %v471_v53 = vmul.f32 0.25, %v445_v42  ;;  %v459_v61 = vadd.f32 %v458_v47, %v457_v35  ;;  %v472_v63 = vmul.f32 0.25, %v452_v51 }
  0x5e   :  { %632 = vmatpush1.msra.mxu0 %v621_v5  ;;  %v601_v5 = vld [vmem:[#allocation8 + $0x30] sm:$0xff] }
  0x5f   :  { %633 = vmatprep.subr.mxu0 %v620_v7  ;;  %v571_v2 = vsel %vm570_vm4, %v471_v53, %v569_v59  ;;  %v473_v6 = vmul.f32 0.25, %v459_v61  ;;  %v600_v7 = vld [vmem:[#allocation8 + $0x28] sm:$0xff]  ;;  %20241 = vmatpush3.bf16.msra.mxu1 %v21617_v54 }
  0x60   :  { %634 = vmatpush1.msra.mxu0 %v619_v10  ;;  %v573_v8 = vsel %vm572_vm5, %v472_v63, %v571_v2  ;;  %v598_v10 = vld [vmem:[#allocation8 + $0x18] sm:$0xff] }
  0x61   :  { %299 = vmatmul.mubr.bf16.gmra.mxu0 %v22027_v13  ;;  %635 = vmatprep.subr.mxu0 %v618_v14  ;;  %v597_v14 = vld [vmem:[#allocation8 + $0x10] sm:$0xff]  ;;  %v575_v15 = vsel %vm24341_vm6, %v473_v6, %v573_v8  ;;  %v721_v8 = vld [vmem:[%s24337_s5] sm:$0x1f] }
  0x62   :  { %636 = vmatpush1.msra.mxu0 %v617_v17  ;;  %308 = vmatprep.mubr.bf16.mxu0 %v21944_v0  ;;  %v595_v17 = vld [vmem:[#allocation8] sm:$0xff]  ;;  %v577_v18 = vsel %vm24340_vm7, %v474_v12, %v575_v15 }
  0x63   :  { %637 = vmatprep.subr.mxu0 %v616_v22  ;;  %20243 = vmatmul.mubr.bf16.vlgmr.msra.gmra.mxu1 %v22027_v13 }
  0x64   :  { %638 = vmatpush1.msra.mxu0 %v615_v27  ;;  %20246 = vmatprep.mubr.bf16.mxu1 %v22038_v41 }
  0x65   :  { %639 = vmatprep.subr.mxu0 %v614_v29 }
  0x66   :  { %640 = vmatpush1.msra.mxu0 %v613_v34 }
  0x67   :  { %641 = vmatprep.subr.mxu0 %v612_v37 }
  0x68   :  { %642 = vmatpush1.msra.mxu0 %v611_v40 }
  0x69   :  { %309 = vmatmul.mubr.bf16.gmra.mxu0 %v22038_v41  ;;  %643 = vmatprep.subr.mxu0 %v610_v43 }
  0x6a   :  { %644 = vmatpush1.msra.mxu0 %v609_v46  ;;  %318 = vmatprep.mubr.bf16.mxu0 %v21944_v0  ;;  %v95_v0 = vpack.c.bf16 %v22045_v57, %v22043_v56 }
  0x6b   :  { %645 = vmatprep.subr.mxu0 %v608_v50 }
  0x6c   :  { %646 = vmatpush1.msra.mxu0 %v607_v52  ;;  %20247 = vmatmul.mubr.bf16.gmra.mxu1 %v95_v0 }
  0x6d   :  { %647 = vmatprep.subr.mxu0 %v606_v55 }
  0x6e   :  { %648 = vmatpush1.msra.mxu0 %v605_v60 }
  0x6f   :  { %649 = vmatprep.subr.mxu0 %v604_v62 }
  0x70   :  { %650 = vmatpush1.msra.mxu0 %v603_v1 }
  0x71   :  { %319 = vmatmul.mubr.bf16.gmra.mxu0 %v95_v0  ;;  %651 = vmatprep.subr.mxu0 %v602_v3  ;;  %v24342_v3 = vlaneseq }
  0x72   :  { %652 = vmatpush1.msra.mxu0 %v601_v5  ;;  %691 = vmatprep.mubr.f32.mxu0 %v24343_v11 }
  0x73   :  { %653 = vmatprep.subr.mxu0 %v600_v7  ;;  %v22144_v5 = vshrl.u32 %v24342_v3, 7 }
  0x74   :  { %654 = vmatpush1.msra.mxu0 %v599_v9 }
  0x75   :  { %655 = vmatprep.subr.mxu0 %v598_v10  ;;  %v806_v7 = vsub.s32 2, %v22144_v5  ;;  %vm726_vm10 = vcmp.lt.s32.totalorder %v22144_v5, 2  ;;  %vm767_vm11 = vcmp.lt.s32.totalorder %v22144_v5, 1  ;;  %vm820_vm14 = vcmp.lt.s32.totalorder %v22144_v5, 7 }
  0x76   :  { %656 = vmatpush1.msra.mxu0 %v597_v14  ;;  %vm861_vm15 = vcmp.lt.s32.totalorder %v22144_v5, 6 }
  0x77   :  { %657 = vmatprep.subr.mxu0 %v596_v16  ;;  %v22156_v10 = vrot.slane %v721_v8, %v806_v7  ;;  %v753_v16 = vsub.s32 0, %v22144_v5 }
  0x78   :  { %658 = vmatpush1.msra.mxu0 %v595_v17  ;;  %v794_v17 = vsub.s32 1, %v22144_v5 }
  0x79   :  { %692 = vmatmul.mubr.f32.vlgmr.msra.gmra.mxu0 %v577_v18  ;;  %20269 = vmatprep.subr.bf16.mxu0 %v24343_v11  ;;  %24377 = vst [vmem:[#allocation21_spill] sm:$0xff] %v22156_v10 }
  0x7a   :  { %697 = vmatprep.mubr.f32.mxu0 %v24343_v11 }
 0x119   :  { %v290_v19 = vpop.f32.mrf.mxu0 }
 0x11a   :  { %v898_v21 = vmul.f32 0.17677669, %v290_v19 }
 0x11b   :  { %v292_v20 = vpop.f32.mrf.mxu0 }
 0x11d   :  { %v294_v13 = vpop.f32.mrf.mxu0 }
 0x11e   :  { %v899_v22 = vmul.f32 0.17677669, %v294_v13  ;;  %v720_v13 = vadd.s32 24, %v22144_v5 }
 0x11f   :  { %v296_v23 = vpop.f32.mrf.mxu0 }
 0x120   :  { %v22059_v24 = vpack.c.bf16 %v899_v22, %v898_v21  ;;  %v22126_v63 = vpack.c.bf16 %v296_v23, %v292_v20  ;;  %v22166_v20 = vadd.s32 4294967294, %v22144_v5 }
 0x121   :  { %v300_v26 = vpop.f32.mrf.mxu0 }
 0x122   :  { %20252 = vmatprep.mubr.msk.bf16.mxu1 %vm906_vm8, %v22059_v24  ;;  %v900_v58 = vmul.f32 0.17677669, %v300_v26  ;;  %v1104_v1 = vsel %vm906_vm8, %v22126_v63, 0  ;;  %24378 = vst [vmem:[#allocation22_spill] sm:$0xff] %v22166_v20  ;;  %v22173_v26 = vadd.s32 4294967295, %v22144_v5  ;;  %vm735_vm12 = vcmp.ge.s32.totalorder %v22166_v20, 0 }
 0x123   :  { %v302_v27 = vpop.f32.mrf.mxu0  ;;  %v22071_v40 = vpop.f32.mrf.mxu1 }
 0x124   :  { %24372 = vst [vmem:[#allocation16_spill] sm:$0xff] %v22071_v40  ;;  %24379 = vst [vmem:[#allocation23_spill] sm:$0xff] %v22173_v26  ;;  %vm776_vm13 = vcmp.ge.s32.totalorder %v22173_v26, 0 }
 0x125   :  { %v304_v25 = vpop.f32.mrf.mxu0  ;;  %v22073_v42 = vpop.f32.mrf.mxu1 }
 0x126   :  { %24373 = vst [vmem:[#allocation17_spill] sm:$0xff] %v22073_v42  ;;  %v901_v55 = vmul.f32 0.17677669, %v304_v25 }
 0x127   :  { %v306_v28 = vpop.f32.mrf.mxu0  ;;  %v22077_v46 = vpop.f32.mrf.mxu1 }
 0x128   :  { %24374 = vst [vmem:[#allocation18_spill] sm:$0xff] %v22077_v46  ;;  %v22083_v49 = vpack.c.bf16 %v22077_v46, %v22071_v40  ;;  %v22106_v59 = vpack.c.bf16 %v901_v55, %v900_v58  ;;  %v22115_v60 = vpack.c.bf16 %v306_v28, %v302_v27 }
 0x129   :  { %v310_v29 = vpop.f32.mrf.mxu0  ;;  %v22085_v50 = vpop.f32.mrf.mxu1 }
 0x12a   :  { %v10092_v34 = vmul.f32 0.17677669, %v310_v29  ;;  %24375 = vst [vmem:[#allocation19_spill] sm:$0xff] %v22085_v50  ;;  %20270 = vmatpush3.bf16.msra.mxu0 %v22083_v49  ;;  %v22092_v52 = vpack.c.bf16 %v22085_v50, %v22073_v42  ;;  %v1107_v62 = vsel %vm906_vm8, %v22115_v60, 0  ;;  %v847_v29 = vsub.s32 3, %v22144_v5 }
 0x12b   :  { %v22063_v32 = vpop.f32.mrf.mxu0  ;;  %20271 = vmatprep.subr.bf16.mxu0 %v24343_v11 }
 0x12c   :  { %v22139_v2 = vpop.f32.mrf.mxu1  ;;  %v22202_v58 = vrot.slane %v721_v8, %v847_v29 }
 0x12d   :  { %v314_v33 = vpop.f32.mrf.mxu0  ;;  %v10006_v12 = vrot.slane %v22139_v2, 6  ;;  %v10026_v21 = vrot.slane %v22139_v2, 7  ;;  %v24346_v22 = vrot.slane %v22139_v2, 1  ;;  %v24345_v23 = vrot.slane %v22139_v2, 2 }
 0x12e   :  { %v10093_v35 = vmul.f32 0.17677669, %v314_v33  ;;  %20272 = vmatpush3.bf16.msra.mxu0 %v22092_v52  ;;  %v22141_v4 = vpop.f32.mrf.mxu1  ;;  %24384 = vst [vmem:[#allocation28_spill] sm:$0xff] %v22202_v58 }
 0x12f   :  { %v22065_v36 = vpop.f32.mrf.mxu0  ;;  %20287 = vmatprep.subr.mxu0 %v24343_v11  ;;  %v10004_v14 = vrot.slane %v22141_v4, 6  ;;  %v10024_v15 = vrot.slane %v22141_v4, 7 }
 0x130   :  { %v22067_v37 = vpack.c.bf16 %v10093_v35, %v10092_v34  ;;  %v22146_v6 = vpop.f32.mrf.mxu1  ;;  %v22180_v34 = vrot.slane %v721_v8, %v753_v16  ;;  %v22182_v35 = vrot.slane %v721_v8, %v794_v17 }
 0x131   :  { %v320_v38 = vpop.f32.mrf.mxu0  ;;  %v10007_v27 = vrot.slane %v22146_v6, 6  ;;  %v10027_v25 = vrot.slane %v22146_v6, 7  ;;  %v10055_v28 = vrot.slane %v22146_v6, 1  ;;  %v10075_v33 = vrot.slane %v22146_v6, 2 }
 0x132   :  { %v10094_v43 = vmul.f32 0.17677669, %v320_v38  ;;  %v22152_v9 = vpop.f32.mrf.mxu1  ;;  %24380 = vst [vmem:[#allocation24_spill] sm:$0xff] %v22180_v34  ;;  %24381 = vst [vmem:[#allocation25_spill] sm:$0xff] %v22182_v35  ;;  %v888_v38 = vsub.s32 4, %v22144_v5 }
 0x133   :  { %v22069_v39 = vpop.f32.mrf.mxu0  ;;  %24376 = vst [vmem:[#allocation20_spill] sm:$0xff] %v22152_v9  ;;  %v10005_v18 = vrot.slane %v22152_v9, 6  ;;  %v10025_v19 = vrot.slane %v22152_v9, 7  ;;  %v10073_v17 = vrot.slane %v22152_v9, 2  ;;  %v10011_v29 = vsel %vm726_vm10, %v10007_v27, %v10004_v14 }
 0x134   :  { %v22208_v7 = vrot.slane %v721_v8, %v888_v38 }
 0x135   :  { %v324_v41 = vpop.f32.mrf.mxu0 }
 0x136   :  { %v10095_v44 = vmul.f32 0.17677669, %v324_v41  ;;  %v22186_v41 = vadd.s32 1, %v720_v13  ;;  %24385 = vst [vmem:[#allocation29_spill] sm:$0xff] %v22208_v7 }
 0x137   :  { %v22075_v45 = vpop.f32.mrf.mxu0 }
 0x138   :  { %v22079_v47 = vpack.c.bf16 %v10095_v44, %v10094_v43  ;;  %24382 = vst [vmem:[#allocation26_spill] sm:$0xff] %v22186_v41  ;;  %v10010_v43 = vsel %vm726_vm10, %v10004_v14, %v10005_v18  ;;  %v10030_v44 = vsel %vm767_vm11, %v10024_v15, %v10025_v19  ;;  %vm24371_vm7 = vcmp.lt.s32.totalorder %v22186_v41, 32 }
 0x139   :  { %v693_v48 = vpop.f32.mrf.mxu0  ;;  %v10037_v55 = vmul.f32 %v10030_v44, %v22182_v35  ;;  %v10077_v44 = vsel %vm861_vm15, %v10073_v17, %v24345_v23 }
 0x13a   :  { %v22117_v61 = vmul.f32 0.17677669, %v693_v48  ;;  %v22197_v48 = vadd.s32 2, %v720_v13 }
 0x13b   :  { %v22087_v51 = vpop.f32.mrf.mxu0 }
 0x13c   :  { %v22096_v53 = vpack.c.bf16 %v22087_v51, %v22087_v51  ;;  %v22133_v0 = vpack.c.bf16 %v22117_v61, %v22117_v61  ;;  %24383 = vst [vmem:[#allocation27_spill] sm:$0xff] %v22197_v48  ;;  %vm24347_vm6 = vcmp.lt.s32.totalorder %v22197_v48, 32 }
 0x13e   :  { %21554 = vmatprep.subr.msk.bf16.mxu1 %vm906_vm8, %v22096_v53  ;;  %v914_v54 = vsel %vm906_vm8, %v22096_v53, 0 }
 0x13f   :  { %20251 = vmatpush3.bf16.xpose.msra.mxu1 %v914_v54  ;;  %v10017_v54 = vmul.f32 %v10010_v43, %v22180_v34  ;;  %v10031_v43 = vsel %vm767_vm11, %v10027_v25, %v10024_v15  ;;  %v10044_v15 = vmul.f32 %v22156_v10, %v22141_v4 }
 0x140   :  { %20256 = vmatprep.subr.mxu1 %v24343_v11  ;;  %v10032_v14 = vsel %vm776_vm13, %v10031_v43, 0.0  ;;  %v10028_v43 = vsel %vm767_vm11, %v10026_v21, %v10027_v25 }
 0x141   :  { %v10041_v16 = vadd.f32 %v10037_v55, %v10017_v54  ;;  %v10085_v54 = vmul.f32 %v10077_v44, %v22208_v7  ;;  %v10012_v55 = vsel %vm735_vm12, %v10011_v29, 0.0  ;;  %v10008_v29 = vsel %vm726_vm10, %v10006_v12, %v10007_v27 }
 0x146   :  { %20253 = vmatmul.mubr.msk.bf16.vlgmr.msra.gmra.mxu1 %vm906_vm8, %v22106_v59 }
 0x147   :  { %20257 = vmatpush3.xpose.msk.msra.mxu1 %vm906_vm8, %v22087_v51  ;;  %20258 = vmatprep.mubr.msk.f32.mxu1 %vm21946_vm9, %v24343_v11 }
 0x148   :  { %20261 = vmatprep.subr.bf16.mxu1 %v24343_v11 }
 0x14e   :  { %20259 = vmatmul.mubr.msk.f32.vlgmr.msra.gmra.mxu1 %vm906_vm8, %v22117_v61 }
 0x14f   :  { %20262 = vmatpush3.bf16.xpose.msra.mxu1 %v1107_v62  ;;  %20265 = vmatprep.mubr.msk.bf16.mxu1 %vm21946_vm9, %v24343_v11  ;;  %v10045_v62 = vmul.f32 %v22156_v10, %v22152_v9 }
 0x150   :  { %20263 = vmatprep.subr.bf16.mxu1 %v24343_v11 }
 0x151   :  { %v10049_v8 = vadd.f32 %v10045_v62, %v10041_v16  ;;  %v10016_v62 = vmul.f32 %v10012_v55, %v22180_v34  ;;  %v10036_v16 = vmul.f32 %v10032_v14, %v22182_v35  ;;  %v10019_v14 = vmul.f32 %v10008_v29, %v22180_v34 }
 0x153   :  { %v10040_v44 = vadd.f32 %v10036_v16, %v10016_v62 }
 0x157   :  { %20264 = vmatpush3.bf16.xpose.msra.mxu1 %v1104_v1  ;;  %v10053_v1 = vrot.slane %v22152_v9, 1 }
 0x158   :  { %20277 = vmatprep.subr.mxu1 %v24343_v11 }
 0x159   :  { %v10057_v13 = vsel %vm820_vm14, %v10053_v1, %v24346_v22  ;;  %v10039_v22 = vmul.f32 %v10028_v43, %v22182_v35 }
 0x15a   :  { %v10065_v38 = vmul.f32 %v10057_v13, %v22202_v58  ;;  %v10052_v13 = vrot.slane %v22141_v4, 1 }
 0x15b   :  { %v10043_v16 = vadd.f32 %v10039_v22, %v10019_v14  ;;  %v10046_v14 = vmul.f32 %v22139_v2, %v22156_v10 }
 0x15c   :  { %v10069_v3 = vadd.f32 %v10065_v38, %v10049_v8  ;;  %v10047_v8 = vmul.f32 %v22146_v6, %v22156_v10  ;;  %v10058_v55 = vsel %vm820_vm14, %v10052_v13, %v10053_v1  ;;  %v10059_v25 = vsel %vm820_vm14, %v10055_v28, %v10052_v13 }
 0x15d   :  { %v10064_v23 = vmul.f32 %v10058_v55, %v22202_v58  ;;  %v10063_v1 = vsel %vm24371_vm7, %v10059_v25, 0.0  ;;  %vm24394_vm7 = vcmask 1047559  }
 0x15e   :  { %20266 = vmatmul.mubr.msk.bf16.vlgmr.msra.gmra.mxu1 %vm906_vm8, %v22133_v0  ;;  %v22247_v38 = vadd.f32 %v10085_v54, %v10069_v3  ;;  %v10048_v3 = vadd.f32 %v10044_v15, %v10040_v44  ;;  %v10009_v15 = vsel %vm726_vm10, %v10005_v18, %v10006_v12  ;;  %v10051_v22 = vadd.f32 %v10047_v8, %v10043_v16 }
 0x15f   :  { %20279 = vmatprep.mubr.msk.f32.mxu1 %vm21946_vm9, %v24343_v11  ;;  %v10072_v11 = vrot.slane %v22141_v4, 2  ;;  %v10018_v44 = vmul.f32 %v10009_v15, %v22180_v34  ;;  %v24387_v12 = vrot.slane %v22139_v2, 1 }
 0x160   :  { %24386 = vst [vmem:[#allocation30_spill] sm:$0xff] %v22247_v38  ;;  %v10068_v13 = vadd.f32 %v10064_v23, %v10048_v3 }
 0x161   :  { %v10078_v27 = vsel %vm861_vm15, %v10072_v11, %v10073_v17  ;;  %v10079_v62 = vsel %vm861_vm15, %v10075_v33, %v10072_v11  ;;  %v10067_v17 = vmul.f32 %v10063_v1, %v22202_v58  ;;  %v10029_v11 = vsel %vm767_vm11, %v10025_v19, %v10026_v21 }
 0x162   :  { %v10084_v54 = vmul.f32 %v10078_v27, %v22208_v7  ;;  %v10083_v29 = vsel %vm24347_vm6, %v10079_v62, 0.0  ;;  %v10038_v55 = vmul.f32 %v10029_v11, %v22182_v35  ;;  %v10056_v18 = vsel %vm820_vm14, %v24387_v12, %v10055_v28 }
 0x163   :  { %v10087_v43 = vmul.f32 %v10083_v29, %v22208_v7  ;;  %v10066_v27 = vmul.f32 %v10056_v18, %v22202_v58  ;;  %v24389_v19 = vrot.slane %v22139_v2, 2  ;;  %v10071_v8 = vadd.f32 %v10067_v17, %v10051_v22 }
 0x164   :  { %v22293_v23 = vadd.f32 %v10084_v54, %v10068_v13  ;;  %v10042_v25 = vadd.f32 %v10038_v55, %v10018_v44  ;;  %vm965_vm6 = vcmask 64512  }
 0x165   :  { %v10076_v21 = vsel %vm861_vm15, %v24389_v19, %v10075_v33  ;;  %v22303_v1 = vadd.f32 %v10087_v43, %v10071_v8 }
 0x166   :  { %24388 = vst [vmem:[#allocation31_spill] sm:$0xff] %v22293_v23  ;;  %v10086_v3 = vmul.f32 %v10076_v21, %v22208_v7  ;;  %v10050_v62 = vadd.f32 %v10046_v14, %v10042_v25  ;;  %v705_v21 = vstv %s24338_s6  ;;  %v487_v23 = vcombine.high %v22045_v57, %v22045_v57 }
 0x167   :  { %24390 = vst [vmem:[#allocation32_spill] sm:$0xff] %v22303_v1  ;;  %v520_v1 = vsel %vm410_vm0, %v22043_v56, 0.0 }
 0x168   :  { %v10070_v16 = vadd.f32 %v10066_v27, %v10050_v62 }
 0x16a   :  { %v22305_v28 = vadd.f32 %v10086_v3, %v10070_v16 }
 0x16c   :  { %24391 = vst [vmem:[#allocation33_spill] sm:$0xff] %v22305_v28 }
 0x206   :  { %v22307_v54 = vpop.f32.mrf.mxu1 }
 0x208   :  { %v22309_v29 = vpop.f32.mrf.mxu1 }
 0x20a   :  { %v22311_v15 = vpop.f32.mrf.mxu1 }
 0x20c   :  { %v22313_v13 = vpop.f32.mrf.mxu1 }
 0x20e   :  { %v1082_v11 = vpop.f32.mrf.mxu1 }
 0x20f   :  { %v1086_v33 = vsel %vm965_vm6, %v1082_v11, -inf }
 0x210   :  { %1087 = vmax.xlane.f32.xlu0 %v1086_v33  ;;  %v20260_v17 = vpop.f32.mrf.mxu1 }
 0x21e   :  { %v1143_v43 = vpop.f32.mrf.mxu1 }
 0x21f   :  { %v1149_v16 = vsel %vm906_vm8, %v1143_v43, -inf }
 0x220   :  { %v20267_v44 = vpop.f32.mrf.mxu1 }
 0x221   :  { %v24392_v44 = vmov 0.0  }
 0x222   :  { %v1146_v22 = vpop.f32.mrf.mxu1 }
 0x224   :  { %v20268_v55 = vpop.f32.mrf.mxu1 }
 0x299   :  { %v1088_v14 = vpop.xlane.xlu0 %1087 }
 0x29a   :  { %v1089_v12 = vsub.f32 %v1082_v11, %v1088_v14 }
 0x29c   :  { %v1090_v18 = vmul.f32 1.442695, %v1089_v12 }
 0x29e   :  { %21630 = vpow2.f32 %v1090_v18 }
 0x29f   :  { %21632 = vrcp.f32 %v705_v21  ;;  %v966_v21 = vsel %vm965_vm6, %v22309_v29, -inf }
 0x2ab   :  { %v21631_v27 = vpop.eup %21630 }
 0x2ac   :  { %v1092_v19 = vsel %vm965_vm6, %v21631_v27, 0.0  ;;  %v21633_v8 = vpop.eup %21632 }
 0x2ad   :  { %1093 = vadd.xlane.f32.xlu0 %v1092_v19  ;;  %21562 = vpush %v21633_v8  ;;  %v972_v19 = vsel %vm965_vm6, %v22307_v54, -inf  ;;  %v492_v8 = vsel %vm410_vm0, %v22031_v30, 0.0 }
 0x2de   :  { %s21563_s6 = spop %21562 }
 0x2df   :  { %v22330_v11 = vstv %s21563_s6 }
 0x336   :  { %v1094_v25 = vpop.xlane.xlu0 %1093 }
 0x337   :  { %21634 = vrcp.f32 %v1094_v25 }
 0x344   :  { %v21635_v3 = vpop.eup %21634 }
 0x345   :  { %v22320_v62 = vmul.f32 %v21635_v3, %v21631_v27  ;;  %v484_v27 = vcombine.high %v22031_v30, %v22031_v30  ;;  %v975_v3 = vsel %vm965_vm6, %v22311_v15, -inf }
 0x347   :  { %1206 = vxpose.xlu1.b32.start.end [1/1] (short) (narrow) %v22320_v62, 8  ;;  %v499_v25 = vsel %vm410_vm0, %v484_v27, 0.0 }
 0x36e   :  { %1150 = vmax.xlane.f32.xlu1 %v1149_v16  ;;  %v493_v16 = vrot.slane %v492_v8, 4 }
 0x370   :  { %v494_v28 = vadd.f32 %v493_v16, %v492_v8  ;;  %v534_v8 = vsel %vm410_vm0, %v22045_v57, 0.0 }
 0x371   :  { %v535_v34 = vrot.slane %v534_v8, 4 }
 0x372   :  { %v495_v41 = vrot.slane %v494_v28, 2 }
 0x37f   :  { %3266 = vrot.lane.b32.xlu1 %v22087_v51, %s21947_s28 }
 0x383   :  { %3360 = vrot.lane.b32.xlu1 %v22115_v60, %s21947_s28 }
 0x387   :  { %3358 = vrot.lane.b32.xlu1 %v22126_v63, %s21947_s28 }
 0x3c3   :  { %v1222_v33 = vpop.trf.xlu1 }
 0x3c4   :  { %v22333_v17 = vmul.f32 %v22330_v11, %v1222_v33  ;;  %v500_v33 = vrot.slane %v499_v25, 4 }
 0x3c6   :  { %20278 = vmatpush3.msra.mxu1 %v22333_v17  ;;  %v501_v27 = vadd.f32 %v500_v33, %v499_v25  ;;  %v541_v25 = vsel %vm410_vm0, %v487_v23, 0.0 }
 0x3c7   :  { %20280 = vmatmul.mubr.msk.f32.vlgmr.msra.gmra.mxu1 %vm965_vm6, %v22320_v62  ;;  %20282 = vmatprep.subr.mxu1 %v24392_v44 }
 0x3c8   :  { %20284 = vmatprep.mubr.msk.f32.mxu1 %vm21946_vm9, %v24392_v44  ;;  %v502_v7 = vrot.slane %v501_v27, 2 }
 0x3ca   :  { %v503_v16 = vadd.f32 %v502_v7, %v501_v27 }
 0x3cc   :  { %v504_v26 = vrot.slane %v503_v16, 1 }
 0x3ce   :  { %v505_v46 = vadd.f32 %v504_v26, %v503_v16 }
 0x3d0   :  { %v549_v27 = vmul.f32 0.25, %v505_v46 }
 0x3f7   :  { %v1151_v22 = vpop.xlane.xlu1 %1150 }
 0x3f8   :  { %v1152_v55 = vsub.f32 %v1143_v43, %v1151_v22  ;;  %v485_v43 = vcombine.high %v22033_v31, %v22033_v31  ;;  %v506_v22 = vsel %vm410_vm0, %v22033_v31, 0.0  ;;  %v521_v31 = vrot.slane %v520_v1, 4 }
 0x3fa   :  { %v1153_v14 = vmul.f32 1.442695, %v1152_v55  ;;  %v969_v55 = vsel %vm965_vm6, %v22313_v13, -inf  ;;  %v513_v30 = vsel %vm410_vm0, %v485_v43, 0.0  ;;  %v522_v43 = vadd.f32 %v521_v31, %v520_v1 }
 0x3fb   :  { %v536_v31 = vadd.f32 %v535_v34, %v534_v8 }
 0x3fc   :  { %21636 = vpow2.f32 %v1153_v14  ;;  %v486_v14 = vcombine.high %v22043_v56, %v22043_v56  ;;  %v496_v56 = vadd.f32 %v495_v41, %v494_v28 }
 0x3fe   :  { %v527_v48 = vsel %vm410_vm0, %v486_v14, 0.0  ;;  %v542_v14 = vrot.slane %v541_v25, 4  ;;  %vm24393_vm0 = vcmask 1046534  }
 0x3ff   :  { %v528_v10 = vrot.slane %v527_v48, 4 }
 0x400   :  { %v543_v50 = vadd.f32 %v542_v14, %v541_v25 }
 0x401   :  { %v529_v35 = vadd.f32 %v528_v10, %v527_v48  ;;  %v537_v10 = vrot.slane %v536_v31, 2 }
 0x409   :  { %v22341_v12 = vpop.eup %21636 }
 0x40a   :  { %v1155_v18 = vsel %vm906_vm8, %v22341_v12, 0.0 }
 0x40b   :  { %1156 = vadd.xlane.f32.xlu0 %v1155_v18  ;;  %v507_v18 = vrot.slane %v506_v22, 4 }
 0x40d   :  { %v508_v38 = vadd.f32 %v507_v18, %v506_v22  ;;  %v523_v18 = vrot.slane %v522_v43, 2 }
 0x40f   :  { %967 = vmax.xlane.f32.xlu0 %v966_v21  ;;  %v514_v21 = vrot.slane %v513_v30, 4  ;;  %v509_v40 = vrot.slane %v508_v38, 2  ;;  %v524_v1 = vadd.f32 %v523_v18, %v522_v43 }
 0x411   :  { %v515_v58 = vadd.f32 %v514_v21, %v513_v30  ;;  %v510_v22 = vadd.f32 %v509_v40, %v508_v38  ;;  %v530_v21 = vrot.slane %v529_v35, 2  ;;  %v525_v28 = vrot.slane %v524_v1, 1 }
 0x412   :  { %v544_v40 = vrot.slane %v543_v50, 2 }
 0x413   :  { %970 = vmax.xlane.f32.xlu0 %v969_v55  ;;  %v516_v33 = vrot.slane %v515_v58, 2  ;;  %v497_v55 = vrot.slane %v496_v56, 1  ;;  %v511_v20 = vrot.slane %v510_v22, 1  ;;  %v531_v41 = vadd.f32 %v530_v21, %v529_v35 }
 0x414   :  { %v526_v42 = vadd.f32 %v525_v28, %v524_v1 }
 0x415   :  { %v517_v30 = vadd.f32 %v516_v33, %v515_v58  ;;  %v498_v57 = vadd.f32 %v497_v55, %v496_v56  ;;  %v512_v7 = vadd.f32 %v511_v20, %v510_v22  ;;  %v532_v38 = vrot.slane %v531_v41, 1 }
 0x416   :  { %v538_v58 = vadd.f32 %v537_v10, %v536_v31  ;;  %v545_v33 = vadd.f32 %v544_v40, %v543_v50  ;;  %v552_v35 = vmul.f32 0.25, %v526_v42  ;;  %v24395_v42 = vlaneseq }
 0x417   :  { %973 = vmax.xlane.f32.xlu0 %v972_v19  ;;  %v518_v23 = vrot.slane %v517_v30, 1  ;;  %v548_v19 = vmul.f32 0.25, %v498_v57  ;;  %v550_v9 = vmul.f32 0.25, %v512_v7  ;;  %v533_v43 = vadd.f32 %v532_v38, %v531_v41 }
 0x418   :  { %v539_v26 = vrot.slane %v538_v58, 1  ;;  %v546_v25 = vrot.slane %v545_v33, 1 }
 0x419   :  { %v519_v48 = vadd.f32 %v518_v23, %v517_v30  ;;  %v587_v8 = vsel %vm564_vm1, %v549_v27, %v548_v19  ;;  %v553_v56 = vmul.f32 0.25, %v533_v43 }
 0x41a   :  { %v588_v20 = vsel %vm566_vm2, %v550_v9, %v587_v8  ;;  %v540_v16 = vadd.f32 %v539_v26, %v538_v58  ;;  %v547_v22 = vadd.f32 %v546_v25, %v545_v33  ;;  %v711_v9 = vand.u32 127, %v24395_v42 }
 0x41b   :  { %976 = vmax.xlane.f32.xlu0 %v975_v3  ;;  %v551_v34 = vmul.f32 0.25, %v519_v48  ;;  %vm9990_vm2 = vcmask 523264  }
 0x41c   :  { %v554_v50 = vmul.f32 0.25, %v540_v16  ;;  %v555_v14 = vmul.f32 0.25, %v547_v22  ;;  %vm712_vm1 = vcmp.eq.s32.totalorder %v22144_v5, %v711_v9 }
 0x41d   :  { %v589_v3 = vsel %vm568_vm3, %v551_v34, %v588_v20  ;;  %v19384_v21 = vsel %vm712_vm1, 1.0, %v24392_v44  ;;  %vm9995_vm3 = vcmask 785408  }
 0x41e   :  { %v590_v46 = vsel %vm570_vm4, %v552_v35, %v589_v3  ;;  %v22385_v1 = vmul.f32 7.0, %v19384_v21  ;;  %v22420_v3 = vmul.f32 15.0, %v19384_v21  ;;  %v22433_v9 = vmul.f32 13.0, %v19384_v21 }
 0x41f   :  { %v591_v18 = vsel %vm572_vm5, %v553_v56, %v590_v46 }
 0x420   :  { %v592_v55 = vsel %vm24393_vm0, %v554_v50, %v591_v18 }
 0x421   :  { %v593_v30 = vsel %vm24394_vm7, %v555_v14, %v592_v55 }
 0x422   :  { %698 = vmatmul.mubr.f32.gmra.mxu0 %v593_v30 }
 0x423   :  { %20273 = vmatprep.mubr.msk.bf16.mxu0 %vm21946_vm9, %v24392_v44 }
 0x487   :  { %v1309_v31 = vpop.f32.mrf.mxu1 }
 0x488   :  { %v1313_v57 = vsub.f32 %v22385_v1, %v1309_v31 }
 0x489   :  { %v20281_v23 = vpop.f32.mrf.mxu1 }
 0x48a   :  { %20283 = vmatpush3.msra.mxu1 %v1313_v57 }
 0x48b   :  { %20285 = vmatmul.mubr.msk.f32.vlgmr.msra.gmra.mxu1 %vm965_vm6, %v1309_v31  ;;  %20292 = vmatprep.subr.mxu1 %v24392_v44 }
 0x48c   :  { %20294 = vmatprep.mubr.msk.f32.mxu1 %vm21946_vm9, %v24392_v44 }
 0x494   :  { %v1157_v41 = vpop.xlane.xlu0 %1156 }
 0x495   :  { %21638 = vrcp.f32 %v1157_v41 }
 0x498   :  { %v968_v7 = vpop.xlane.xlu0 %967 }
 0x499   :  { %v978_v28 = vsub.f32 %v22309_v29, %v968_v7 }
 0x49b   :  { %v982_v10 = vmul.f32 1.442695, %v978_v28 }
 0x49c   :  { %v971_v40 = vpop.xlane.xlu0 %970 }
 0x49d   :  { %21640 = vpow2.f32 %v982_v10  ;;  %v979_v48 = vsub.f32 %v22313_v13, %v971_v40 }
 0x49f   :  { %v984_v38 = vmul.f32 1.442695, %v979_v48 }
 0x4a0   :  { %v974_v19 = vpop.xlane.xlu0 %973 }
 0x4a1   :  { %21642 = vpow2.f32 %v984_v38  ;;  %v980_v27 = vsub.f32 %v22307_v54, %v974_v19 }
 0x4a2   :  { %v21639_v58 = vpop.eup %21638 }
 0x4a3   :  { %v1159_v33 = vmul.f32 %v21639_v58, %v22341_v12  ;;  %v986_v43 = vmul.f32 1.442695, %v980_v27 }
 0x4a4   :  { %v977_v34 = vpop.xlane.xlu0 %976 }
 0x4a5   :  { %v1160_v8 = vpack.c.bf16 %v1159_v33, %v1159_v33  ;;  %21644 = vpow2.f32 %v986_v43  ;;  %v981_v26 = vsub.f32 %v22311_v15, %v977_v34 }
 0x4a7   :  { %v988_v29 = vmul.f32 1.442695, %v981_v26  ;;  %20274 = vmatmul.mubr.msk.bf16.vlgmr.msra.gmra.mxu0 %vm906_vm8, %v1160_v8 }
 0x4a8   :  { %20289 = vmatprep.mubr.msk.f32.mxu0 %vm21946_vm9, %v24392_v44 }
 0x4a9   :  { %21646 = vpow2.f32 %v988_v29 }
 0x4aa   :  { %v22400_v13 = vpop.eup %21640 }
 0x4ab   :  { %v990_v54 = vsel %vm965_vm6, %v22400_v13, 0.0 }
 0x4ac   :  { %991 = vadd.xlane.f32.xlu0 %v990_v54 }
 0x4ae   :  { %v22404_v12 = vpop.eup %21642 }
 0x4af   :  { %v993_v25 = vsel %vm965_vm6, %v22404_v12, 0.0 }
 0x4b0   :  { %994 = vadd.xlane.f32.xlu0 %v993_v25 }
 0x4b2   :  { %v22408_v15 = vpop.eup %21644 }
 0x4b3   :  { %v996_v35 = vsel %vm965_vm6, %v22408_v15, 0.0 }
 0x4b4   :  { %997 = vadd.xlane.f32.xlu0 %v996_v35 }
 0x4b6   :  { %v22412_v20 = vpop.eup %21646 }
 0x4b7   :  { %v999_v56 = vsel %vm965_vm6, %v22412_v20, 0.0 }
 0x4b8   :  { %1000 = vadd.xlane.f32.xlu0 %v999_v56 }
 0x4ce   :  { %3264 = vrot.lane.b32.xlu0 %v22117_v61, %s21947_s28 }
 0x4d2   :  { %3354 = vrot.lane.b32.xlu0 %v22133_v0, %s21947_s28 }
 0x4e2   :  { %v22427_v18 = vpop.f32.mrf.mxu0 }
 0x4e4   :  { %v22429_v50 = vpop.f32.mrf.mxu0 }
 0x54b   :  { %v1383_v16 = vpop.f32.mrf.mxu1 }
 0x54c   :  { %v1387_v22 = vsub.f32 %v22420_v3, %v1383_v16 }
 0x54d   :  { %v20286_v46 = vpop.f32.mrf.mxu1 }
 0x54e   :  { %20288 = vmatpush3.msra.mxu0 %v1387_v22 }
 0x54f   :  { %20290 = vmatmul.mubr.msk.f32.vlgmr.msra.gmra.mxu0 %vm965_vm6, %v1309_v31  ;;  %20297 = vmatprep.subr.mxu0 %v24392_v44 }
 0x550   :  { %20299 = vmatprep.mubr.msk.f32.mxu0 %vm21946_vm9, %v24392_v44 }
 0x567   :  { %v22431_v14 = vpop.f32.mrf.mxu0 }
 0x569   :  { %v20275_v55 = vpop.f32.mrf.mxu0 }
 0x56b   :  { %v1203_v30 = vpop.f32.mrf.mxu0 }
 0x56d   :  { %v20276_v42 = vpop.f32.mrf.mxu0 }
 0x60f   :  { %v1454_v57 = vpop.f32.mrf.mxu0 }
 0x610   :  { %v1458_v23 = vsub.f32 %v22433_v9, %v1454_v57 }
 0x611   :  { %v20291_v31 = vpop.f32.mrf.mxu0 }
 0x612   :  { %20293 = vmatpush3.msra.mxu1 %v1458_v23 }
 0x613   :  { %20295 = vmatmul.mubr.msk.f32.vlgmr.msra.gmra.mxu1 %vm965_vm6, %v22333_v17  ;;  %20302 = vmatprep.subr.mxu1 %v24392_v44 }
 0x614   :  { %20304 = vmatprep.mubr.msk.f32.mxu1 %vm21946_vm9, %v24392_v44 }
 0x6d3   :  { %v1528_v41 = vpop.f32.mrf.mxu1 }
 0x6d4   :  { %v1532_v7 = vmul.f32 0.25, %v1528_v41 }
 0x6d5   :  { %v20296_v28 = vpop.f32.mrf.mxu1 }
 0x6d6   :  { %20298 = vmatpush3.msra.mxu0 %v1532_v7 }
 0x6d7   :  { %20300 = vmatmul.mubr.msk.f32.vlgmr.msra.gmra.mxu0 %vm965_vm6, %v22320_v62  ;;  %20307 = vmatprep.subr.mxu0 %v24392_v44 }
 0x6d8   :  { %20309 = vmatprep.mubr.msk.f32.mxu0 %vm21946_vm9, %v24392_v44 }
 0x797   :  { %v1599_v21 = vpop.f32.mrf.mxu0 }
 0x798   :  { %v1603_v17 = vsub.f32 %v22385_v1, %v1599_v21 }
 0x799   :  { %v20301_v10 = vpop.f32.mrf.mxu0 }
 0x79a   :  { %20303 = vmatpush3.msra.mxu1 %v1603_v17 }
 0x79b   :  { %20305 = vmatmul.mubr.msk.f32.vlgmr.msra.gmra.mxu1 %vm965_vm6, %v1599_v21  ;;  %20312 = vmatprep.subr.mxu1 %v24392_v44 }
 0x79c   :  { %20314 = vmatprep.mubr.msk.f32.mxu1 %vm21946_vm9, %v24392_v44 }
 0x85b   :  { %v1673_v40 = vpop.f32.mrf.mxu1 }
 0x85c   :  { %v1677_v48 = vsub.f32 %v22420_v3, %v1673_v40 }
 0x85d   :  { %v20306_v38 = vpop.f32.mrf.mxu1 }
 0x85e   :  { %20308 = vmatpush3.msra.mxu0 %v1677_v48 }
 0x85f   :  { %20310 = vmatmul.mubr.msk.f32.vlgmr.msra.gmra.mxu0 %vm965_vm6, %v1599_v21  ;;  %20317 = vmatprep.subr.mxu0 %v24392_v44 }
 0x860   :  { %20319 = vmatprep.mubr.msk.f32.mxu0 %vm21946_vm9, %v24392_v44 }
 0x91f   :  { %v1744_v19 = vpop.f32.mrf.mxu0 }
 0x920   :  { %v1748_v27 = vsub.f32 %v22433_v9, %v1744_v19 }
 0x921   :  { %v20311_v58 = vpop.f32.mrf.mxu0 }
 0x922   :  { %20313 = vmatpush3.msra.mxu1 %v1748_v27 }
 0x923   :  { %20315 = vmatmul.mubr.msk.f32.vlgmr.msra.gmra.mxu1 %vm965_vm6, %v1532_v7  ;;  %20322 = vmatprep.subr.mxu1 %v24392_v44 }
 0x924   :  { %20324 = vmatprep.mubr.msk.f32.mxu1 %vm21946_vm9, %v24392_v44 }
 0x9e3   :  { %v1818_v33 = vpop.f32.mrf.mxu1 }
 0x9e4   :  { %v1822_v43 = vmul.f32 0.25, %v1818_v33 }
 0x9e5   :  { %v20316_v34 = vpop.f32.mrf.mxu1 }
 0x9e6   :  { %20318 = vmatpush3.msra.mxu0 %v1822_v43 }
 0x9e7   :  { %20320 = vmatmul.mubr.msk.f32.vlgmr.msra.gmra.mxu0 %vm965_vm6, %v22320_v62  ;;  %20327 = vmatprep.subr.mxu0 %v24392_v44 }
 0x9e8   :  { %20329 = vmatprep.mubr.msk.f32.mxu0 %vm21946_vm9, %v24392_v44 }
 0xaa7   :  { %v1889_v8 = vpop.f32.mrf.mxu0 }
 0xaa8   :  { %v1893_v26 = vsub.f32 %v22385_v1, %v1889_v8 }
 0xaa9   :  { %v20321_v29 = vpop.f32.mrf.mxu0 }
 0xaaa   :  { %20323 = vmatpush3.msra.mxu1 %v1893_v26 }
 0xaab   :  { %20325 = vmatmul.mubr.msk.f32.vlgmr.msra.gmra.mxu1 %vm965_vm6, %v1889_v8  ;;  %20332 = vmatprep.subr.mxu1 %v24392_v44 }
 0xaac   :  { %20334 = vmatprep.mubr.msk.f32.mxu1 %vm21946_vm9, %v24392_v44 }
 0xb6b   :  { %v1963_v54 = vpop.f32.mrf.mxu1 }
 0xb6c   :  { %v1967_v25 = vsub.f32 %v22420_v3, %v1963_v54 }
 0xb6d   :  { %v20326_v35 = vpop.f32.mrf.mxu1 }
 0xb6e   :  { %20328 = vmatpush3.msra.mxu0 %v1967_v25 }
 0xb6f   :  { %20330 = vmatmul.mubr.msk.f32.vlgmr.msra.gmra.mxu0 %vm965_vm6, %v1889_v8  ;;  %20337 = vmatprep.subr.mxu0 %v24392_v44 }
 0xb70   :  { %20339 = vmatprep.mubr.msk.f32.mxu0 %vm21946_vm9, %v24392_v44 }
 0xc2f   :  { %v2034_v56 = vpop.f32.mrf.mxu0 }
 0xc30   :  { %v2038_v16 = vsub.f32 %v22433_v9, %v2034_v56 }
 0xc31   :  { %v20331_v22 = vpop.f32.mrf.mxu0 }
 0xc32   :  { %20333 = vmatpush3.msra.mxu1 %v2038_v16 }
 0xc33   :  { %20335 = vmatmul.mubr.msk.f32.vlgmr.msra.gmra.mxu1 %vm965_vm6, %v1822_v43  ;;  %20342 = vmatprep.subr.mxu1 %v24392_v44 }
 0xc34   :  { %20344 = vmatprep.mubr.msk.f32.mxu1 %vm21946_vm9, %v24392_v44 }
 0xcf3   :  { %v2108_v46 = vpop.f32.mrf.mxu1 }
 0xcf4   :  { %v2112_v55 = vmul.f32 0.25, %v2108_v46 }
 0xcf5   :  { %v20336_v30 = vpop.f32.mrf.mxu1 }
 0xcf6   :  { %20338 = vmatpush3.msra.mxu0 %v2112_v55 }
 0xcf7   :  { %20340 = vmatmul.mubr.msk.f32.vlgmr.msra.gmra.mxu0 %vm965_vm6, %v22320_v62  ;;  %20347 = vmatprep.subr.mxu0 %v24392_v44 }
 0xcf8   :  { %20349 = vmatprep.mubr.msk.f32.mxu0 %vm21946_vm9, %v24392_v44 }
 0xdb7   :  { %v2179_v42 = vpop.f32.mrf.mxu0 }
 0xdb8   :  { %v2183_v57 = vsub.f32 %v22385_v1, %v2179_v42 }
 0xdb9   :  { %v20341_v23 = vpop.f32.mrf.mxu0 }
 0xdba   :  { %20343 = vmatpush3.msra.mxu1 %v2183_v57 }
 0xdbb   :  { %20345 = vmatmul.mubr.msk.f32.vlgmr.msra.gmra.mxu1 %vm965_vm6, %v2179_v42  ;;  %20352 = vmatprep.subr.mxu1 %v24392_v44 }
 0xdbc   :  { %20354 = vmatprep.mubr.msk.f32.mxu1 %vm21946_vm9, %v24392_v44 }
 0xe7b   :  { %v2253_v31 = vpop.f32.mrf.mxu1 }
 0xe7c   :  { %v2257_v41 = vsub.f32 %v22420_v3, %v2253_v31 }
 0xe7d   :  { %v20346_v7 = vpop.f32.mrf.mxu1 }
 0xe7e   :  { %20348 = vmatpush3.msra.mxu0 %v2257_v41 }
 0xe7f   :  { %20350 = vmatmul.mubr.msk.f32.vlgmr.msra.gmra.mxu0 %vm965_vm6, %v2179_v42  ;;  %20357 = vmatprep.subr.mxu0 %v24392_v44 }
 0xe80   :  { %20359 = vmatprep.mubr.msk.f32.mxu0 %vm21946_vm9, %v24392_v44 }
 0xf3f   :  { %v2324_v28 = vpop.f32.mrf.mxu0 }
 0xf40   :  { %v2328_v21 = vsub.f32 %v22433_v9, %v2324_v28 }
 0xf41   :  { %v20351_v17 = vpop.f32.mrf.mxu0 }
 0xf42   :  { %20353 = vmatpush3.msra.mxu1 %v2328_v21 }
 0xf43   :  { %20355 = vmatmul.mubr.msk.f32.vlgmr.msra.gmra.mxu1 %vm965_vm6, %v2112_v55  ;;  %20362 = vmatprep.subr.mxu1 %v24392_v44  ;;  %v992_v55 = vpop.xlane.xlu0 %991 }
 0xf44   :  { %20364 = vmatprep.mubr.msk.f32.mxu1 %vm21946_vm9, %v24392_v44  ;;  %21648 = vrcp.f32 %v992_v55 }
 0xf47   :  { %v995_v28 = vpop.xlane.xlu0 %994 }
 0xf48   :  { %21650 = vrcp.f32 %v995_v28 }
 0xf4b   :  { %v998_v21 = vpop.xlane.xlu0 %997 }
 0xf4c   :  { %21652 = vrcp.f32 %v998_v21 }
 0xf4f   :  { %v1001_v17 = vpop.xlane.xlu0 %1000 }
 0xf50   :  { %21654 = vrcp.f32 %v1001_v17 }
 0xf51   :  { %v21649_v30 = vpop.eup %21648 }
 0xf52   :  { %v1003_v31 = vmul.f32 %v21649_v30, %v22400_v13 }
0x1003   :  { %v2398_v10 = vpop.f32.mrf.mxu1 }
0x1004   :  { %v2402_v40 = vmul.f32 0.25, %v2398_v10  ;;  %v21651_v10 = vpop.eup %21650 }
0x1005   :  { %v20356_v48 = vpop.f32.mrf.mxu1  ;;  %v1005_v13 = vmul.f32 %v21651_v10, %v22404_v12 }
0x1006   :  { %20358 = vmatpush3.msra.mxu0 %v2402_v40 }
0x1007   :  { %20360 = vmatmul.mubr.msk.f32.vlgmr.msra.gmra.mxu0 %vm965_vm6, %v22320_v62  ;;  %20367 = vmatprep.subr.mxu0 %v24392_v44 }
0x1008   :  { %20369 = vmatprep.mubr.msk.f32.mxu0 %vm21946_vm9, %v24392_v44 }
0x10c7   :  { %v2469_v38 = vpop.f32.mrf.mxu0 }
0x10c8   :  { %v2473_v19 = vsub.f32 %v22385_v1, %v2469_v38 }
0x10c9   :  { %v20361_v27 = vpop.f32.mrf.mxu0 }
0x10ca   :  { %20363 = vmatpush3.msra.mxu1 %v2473_v19  ;;  %v3267_v19 = vpop.permute.xlu1 %3266 }
0x10cb   :  { %20365 = vmatmul.mubr.msk.f32.vlgmr.msra.gmra.mxu1 %vm965_vm6, %v2469_v38  ;;  %20372 = vmatprep.subr.mxu1 %v24392_v44 }
0x10cc   :  { %20374 = vmatprep.mubr.msk.f32.mxu1 %vm21946_vm9, %v24392_v44 }
0x10ce   :  { %v3361_v12 = vpop.permute.xlu1 %3360 }
0x118b   :  { %v2543_v58 = vpop.f32.mrf.mxu1 }
0x118c   :  { %v2547_v33 = vsub.f32 %v22420_v3, %v2543_v58 }
0x118d   :  { %v20366_v43 = vpop.f32.mrf.mxu1 }
0x118e   :  { %20368 = vmatpush3.msra.mxu0 %v2547_v33  ;;  %v3265_v43 = vpop.permute.xlu0 %3264 }
0x118f   :  { %20370 = vmatmul.mubr.msk.f32.vlgmr.msra.gmra.mxu0 %vm965_vm6, %v2469_v38  ;;  %20377 = vmatprep.subr.mxu0 %v24392_v44 }
0x1190   :  { %20379 = vmatprep.mubr.msk.f32.mxu0 %vm21946_vm9, %v24392_v44 }
0x124f   :  { %v2614_v34 = vpop.f32.mrf.mxu0 }
0x1250   :  { %v2618_v8 = vsub.f32 %v22433_v9, %v2614_v34 }
0x1251   :  { %v20371_v26 = vpop.f32.mrf.mxu0 }
0x1252   :  { %20373 = vmatpush3.msra.mxu1 %v2618_v8  ;;  %v3355_v8 = vpop.permute.xlu0 %3354 }
0x1253   :  { %20375 = vmatmul.mubr.msk.f32.vlgmr.msra.gmra.mxu1 %vm965_vm6, %v2402_v40  ;;  %20382 = vmatprep.subr.mxu1 %v24392_v44  ;;  %v21653_v40 = vpop.eup %21652 }
0x1254   :  { %20384 = vmatprep.mubr.msk.f32.mxu1 %vm21946_vm9, %v24392_v44  ;;  %v21655_v38 = vpop.eup %21654  ;;  %v1007_v58 = vmul.f32 %v21653_v40, %v22408_v15  ;;  %v3369_v15 = vsel %vm906_vm8, %v3361_v12, 0 }
0x1255   :  { %v1009_v33 = vmul.f32 %v21655_v38, %v22412_v20  ;;  %v3359_v20 = vpop.permute.xlu1 %3358 }
0x1256   :  { %v3366_v34 = vsel %vm906_vm8, %v3359_v20, 0 }
0x1313   :  { %v2688_v29 = vpop.f32.mrf.mxu1 }
0x1314   :  { %v2692_v54 = vmul.f32 0.25, %v2688_v29 }
0x1315   :  { %v20376_v25 = vpop.f32.mrf.mxu1 }
0x1316   :  { %20378 = vmatpush3.msra.mxu0 %v2692_v54 }
0x1317   :  { %20380 = vmatmul.mubr.msk.f32.vlgmr.msra.gmra.mxu0 %vm965_vm6, %v22320_v62  ;;  %20387 = vmatprep.subr.mxu0 %v24392_v44 }
0x1318   :  { %20389 = vmatprep.mubr.msk.f32.mxu0 %vm21946_vm9, %v24392_v44 }
0x13d7   :  { %v2759_v35 = vpop.f32.mrf.mxu0 }
0x13d8   :  { %v2763_v56 = vsub.f32 %v22385_v1, %v2759_v35 }
0x13d9   :  { %v20381_v16 = vpop.f32.mrf.mxu0 }
0x13da   :  { %20383 = vmatpush3.msra.mxu1 %v2763_v56 }
0x13db   :  { %20385 = vmatmul.mubr.msk.f32.vlgmr.msra.gmra.mxu1 %vm965_vm6, %v2759_v35  ;;  %20392 = vmatprep.subr.mxu1 %v24392_v44 }
0x13dc   :  { %20394 = vmatprep.mubr.msk.f32.mxu1 %vm21946_vm9, %v24392_v44 }
0x149b   :  { %v2833_v22 = vpop.f32.mrf.mxu1 }
0x149c   :  { %v2837_v62 = vsub.f32 %v22420_v3, %v2833_v22 }
0x149d   :  { %v20386_v46 = vpop.f32.mrf.mxu1 }
0x149e   :  { %20388 = vmatpush3.msra.mxu0 %v2837_v62 }
0x149f   :  { %20390 = vmatmul.mubr.msk.f32.vlgmr.msra.gmra.mxu0 %vm965_vm6, %v2759_v35  ;;  %20397 = vmatprep.subr.mxu0 %v24392_v44 }
0x14a0   :  { %20398 = vmatpush3.msra.mxu0 %v22431_v14  ;;  %20399 = vmatprep.mubr.msk.f32.mxu0 %vm21946_vm9, %v24392_v44 }
0x155f   :  { %v2904_v42 = vpop.f32.mrf.mxu0 }
0x1560   :  { %v2908_v57 = vsub.f32 %v22433_v9, %v2904_v42 }
0x1561   :  { %v20391_v23 = vpop.f32.mrf.mxu0 }
0x1562   :  { %20393 = vmatpush3.msra.mxu1 %v2908_v57 }
0x1563   :  { %20395 = vmatmul.mubr.msk.f32.vlgmr.msra.gmra.mxu1 %vm965_vm6, %v2692_v54 }
0x1564   :  { %20404 = vmatprep.mubr.msk.f32.mxu1 %vm965_vm6, %v1003_v31 }
0x1623   :  { %v2978_v41 = vpop.f32.mrf.mxu1 }
0x1624   :  { %v2982_v7 = vmul.f32 0.25, %v2978_v41 }
0x1625   :  { %v20396_v14 = vpop.f32.mrf.mxu1 }
0x1626   :  { %20400 = vmatmul.mubr.msk.f32.vlgmr.msra.gmra.mxu0 %vm965_vm6, %v2982_v7 }
0x16e6   :  { %v3052_v48 = vpop.f32.mrf.mxu0 }
0x16e7   :  { %20402 = vmatprep.subr.mxu1 %v3052_v48 }
0x16e8   :  { %v20401_v27 = vpop.f32.mrf.mxu0  ;;  %20403 = vmatpush3.msra.mxu1 %v3052_v48 }
0x16e9   :  { %20405 = vmatmul.mubr.msk.f32.vlgmr.msra.gmra.mxu1 %vm965_vm6, %v1005_v13  ;;  %20416 = vmatprep.subr.mxu1 %v24392_v44 }
0x16ea   :  { %20407 = vmatprep.mubr.msk.f32.mxu1 %vm965_vm6, %v1007_v58  ;;  %20417 = vmatpush3.xpose.msk.msra.mxu1 %vm906_vm8, %v3267_v19 }
0x16eb   :  { %20421 = vmatprep.subr.bf16.mxu1 %v24392_v44 }
0x16ed   :  { %20408 = vmatmul.mubr.msk.f32.gmra.mxu1 %vm965_vm6, %v1009_v33 }
0x16ee   :  { %20418 = vmatprep.mubr.msk.f32.mxu1 %vm21946_vm9, %v24392_v44 }
0x16f1   :  { %20419 = vmatmul.mubr.msk.f32.vlgmr.msra.gmra.mxu1 %vm906_vm8, %v3265_v43 }
0x16f2   :  { %20422 = vmatpush3.bf16.xpose.msra.mxu1 %v3369_v15  ;;  %20425 = vmatprep.mubr.msk.bf16.mxu1 %vm21946_vm9, %v24392_v44 }
0x16f3   :  { %20423 = vmatprep.subr.bf16.mxu1 %v24392_v44 }
0x16fa   :  { %20424 = vmatpush3.bf16.xpose.msra.mxu1 %v3366_v34 }
0x16fb   :  { %20429 = vmatprep.subr.bf16.mxu1 %v24392_v44 }
0x1701   :  { %20426 = vmatmul.mubr.msk.bf16.vlgmr.msra.gmra.mxu1 %vm906_vm8, %v3355_v8 }
0x1702   :  { %20433 = vmatprep.mubr.msk.bf16.mxu1 %vm21946_vm9, %v24392_v44 }
0x17a9   :  { %v22563_v26 = vpop.f32.mrf.mxu1 }
0x17ab   :  { %v22565_v29 = vpop.f32.mrf.mxu1 }
0x17ad   :  { %v22567_v54 = vpop.f32.mrf.mxu1 }
0x17af   :  { %v22569_v25 = vpop.f32.mrf.mxu1 }
0x17b1   :  { %v3338_v35 = vpop.f32.mrf.mxu1 }
0x17b2   :  { %v3342_v56 = vsel %vm965_vm6, %v3338_v35, -inf }
0x17b3   :  { %3343 = vmax.xlane.f32.xlu1 %v3342_v56  ;;  %v20420_v16 = vpop.f32.mrf.mxu1 }
0x17c1   :  { %v3405_v22 = vpop.f32.mrf.mxu1 }
0x17c2   :  { %v3411_v62 = vsel %vm906_vm8, %v3405_v22, -inf }
0x17c3   :  { %3412 = vmax.xlane.f32.xlu0 %v3411_v62  ;;  %v20427_v46 = vpop.f32.mrf.mxu1 }
0x17c5   :  { %v3408_v55 = vpop.f32.mrf.mxu1 }
0x17c7   :  { %v20428_v30 = vpop.f32.mrf.mxu1 }
0x183c   :  { %v3344_v42 = vpop.xlane.xlu1 %3343 }
0x183d   :  { %v3345_v57 = vsub.f32 %v3338_v35, %v3344_v42 }
0x183f   :  { %v3346_v23 = vmul.f32 1.442695, %v3345_v57 }
0x1841   :  { %21656 = vpow2.f32 %v3346_v23 }
0x184c   :  { %v3413_v31 = vpop.xlane.xlu0 %3412 }
0x184d   :  { %v3414_v41 = vsub.f32 %v3405_v22, %v3413_v31 }
0x184e   :  { %v21657_v7 = vpop.eup %21656 }
0x184f   :  { %v3415_v14 = vmul.f32 1.442695, %v3414_v41  ;;  %v3348_v28 = vsel %vm965_vm6, %v21657_v7, 0.0 }
0x1850   :  { %3349 = vadd.xlane.f32.xlu0 %v3348_v28 }
0x1851   :  { %21658 = vpow2.f32 %v3415_v14 }
0x185e   :  { %v21659_v21 = vpop.eup %21658 }
0x185f   :  { %v3417_v17 = vsel %vm906_vm8, %v21659_v21, 0.0 }
0x1860   :  { %3418 = vadd.xlane.f32.xlu1 %v3417_v17 }
0x1866   :  { %3427 = vrot.lane.b32.xlu0 %v22083_v49, %s21947_s28 }
0x186a   :  { %3160 = vrot.lane.b32.xlu0 %v22096_v53, %s21947_s28 }
0x186e   :  { %3155 = vrot.lane.b32.xlu0 %v22059_v24, %s21947_s28 }
0x1871   :  { %3425 = vrot.lane.b32.xlu1 %v22092_v52, %s21947_s28 }
0x1872   :  { %3157 = vrot.lane.b32.xlu0 %v22106_v59, %s21947_s28 }
0x18d9   :  { %v3350_v10 = vpop.xlane.xlu0 %3349 }
0x18da   :  { %21660 = vrcp.f32 %v3350_v10 }
0x18dd   :  { %v3428_v40 = vpop.permute.xlu0 %3427 }
0x18de   :  { %20430 = vmatpush3.bf16.msra.mxu1 %v3428_v40 }
0x18df   :  { %20431 = vmatprep.subr.bf16.mxu1 %v24392_v44 }
0x18e1   :  { %v3161_v48 = vpop.permute.xlu0 %3160 }
0x18e2   :  { %21555 = vmatprep.subr.msk.bf16.mxu0 %vm906_vm8, %v3161_v48  ;;  %v3169_v13 = vsel %vm906_vm8, %v3161_v48, 0 }
0x18e3   :  { %20411 = vmatpush3.bf16.xpose.msra.mxu0 %v3169_v13 }
0x18e4   :  { %20447 = vmatprep.subr.mxu0 %v24392_v44 }
0x18e5   :  { %v3156_v38 = vpop.permute.xlu0 %3155 }
0x18e6   :  { %20412 = vmatprep.mubr.msk.bf16.mxu0 %vm906_vm8, %v3156_v38 }
0x18e7   :  { %v21661_v19 = vpop.eup %21660 }
0x18e8   :  { %v22590_v27 = vmul.f32 %v21661_v19, %v21657_v7 }
0x18e9   :  { %v3419_v58 = vpop.xlane.xlu1 %3418  ;;  %v3158_v33 = vpop.permute.xlu0 %3157 }
0x18ea   :  { %21662 = vrcp.f32 %v3419_v58  ;;  %3474 = vxpose.xlu1.b32.start.end [1/1] (short) (narrow) %v22590_v27, 8  ;;  %20413 = vmatmul.mubr.msk.bf16.vlgmr.msra.gmra.mxu0 %vm906_vm8, %v3158_v33 }
0x18eb   :  { %20449 = vmatprep.mubr.msk.f32.mxu0 %vm21946_vm9, %v24392_v44 }
0x18ed   :  { %v3426_v12 = vpop.permute.xlu1 %3425 }
0x18ee   :  { %20432 = vmatpush3.bf16.msra.mxu1 %v3426_v12 }
0x18ef   :  { %20437 = vmatprep.subr.mxu1 %v24392_v44 }
0x18f7   :  { %v21663_v43 = vpop.eup %21662 }
0x18f8   :  { %v3421_v15 = vmul.f32 %v21663_v43, %v21659_v21 }
0x18fa   :  { %v3422_v20 = vpack.c.bf16 %v3421_v15, %v3421_v15 }
0x18fc   :  { %20434 = vmatmul.mubr.msk.bf16.vlgmr.msra.gmra.mxu1 %vm906_vm8, %v3422_v20 }
0x18fd   :  { %20439 = vmatprep.mubr.msk.f32.mxu1 %vm21946_vm9, %v24392_v44 }
0x1966   :  { %v3490_v34 = vpop.trf.xlu1 }
0x1967   :  { %v22601_v8 = vmul.f32 %v3490_v34, %v22330_v11 }
0x1969   :  { %20438 = vmatpush3.msra.mxu1 %v22601_v8 }
0x196a   :  { %20440 = vmatmul.mubr.msk.f32.vlgmr.msra.gmra.mxu1 %vm965_vm6, %v22590_v27  ;;  %20442 = vmatprep.subr.mxu1 %v24392_v44 }
0x196b   :  { %20444 = vmatprep.mubr.msk.f32.mxu1 %vm21946_vm9, %v24392_v44 }
0x19aa   :  { %v20414_v35 = vpop.f32.mrf.mxu0 }
0x19ab   :  { %v3226_v46 = vsel %vm965_vm6, %v20414_v35, -inf }
0x19ac   :  { %v3205_v56 = vpop.f32.mrf.mxu0 }
0x19ad   :  { %v3220_v16 = vsel %vm965_vm6, %v3205_v56, -inf }
0x19ae   :  { %3221 = vmax.xlane.f32.xlu0 %v3220_v16  ;;  %v20415_v22 = vpop.f32.mrf.mxu0 }
0x19af   :  { %v3229_v30 = vsel %vm965_vm6, %v20415_v22, -inf }
0x19b0   :  { %v3208_v62 = vpop.f32.mrf.mxu0 }
0x19b1   :  { %v3223_v55 = vsel %vm965_vm6, %v3208_v62, -inf }
0x19b2   :  { %3227 = vmax.xlane.f32.xlu0 %v3226_v46  ;;  %3224 = vmax.xlane.f32.xlu1 %v3223_v55 }
0x19b6   :  { %3230 = vmax.xlane.f32.xlu0 %v3229_v30 }
0x19bc   :  { %v22613_v42 = vpop.f32.mrf.mxu1 }
0x19be   :  { %v20435_v57 = vpop.f32.mrf.mxu1 }
0x19c0   :  { %v3471_v23 = vpop.f32.mrf.mxu1 }
0x19c2   :  { %v20436_v31 = vpop.f32.mrf.mxu1 }
0x19c3   :  { %5528 = vrot.lane.b32.xlu1 %v22117_v61, %s21942_s23 }
0x19c7   :  { %5621 = vrot.lane.b32.xlu1 %v22115_v60, %s21942_s23 }
0x19cb   :  { %5619 = vrot.lane.b32.xlu1 %v22126_v63, %s21942_s23 }
0x1a2a   :  { %v3576_v41 = vpop.f32.mrf.mxu1 }
0x1a2b   :  { %v3580_v7 = vsub.f32 %v22385_v1, %v3576_v41 }
0x1a2c   :  { %v20441_v14 = vpop.f32.mrf.mxu1 }
0x1a2d   :  { %20443 = vmatpush3.msra.mxu1 %v3580_v7 }
0x1a2e   :  { %20445 = vmatmul.mubr.msk.f32.vlgmr.msra.gmra.mxu1 %vm965_vm6, %v3576_v41  ;;  %20452 = vmatprep.subr.mxu1 %v24392_v44 }
0x1a2f   :  { %20454 = vmatprep.mubr.msk.f32.mxu1 %vm21946_vm9, %v24392_v44 }
0x1a37   :  { %v3222_v28 = vpop.xlane.xlu0 %3221 }
0x1a38   :  { %v3232_v21 = vsub.f32 %v3205_v56, %v3222_v28 }
0x1a3a   :  { %v3236_v17 = vmul.f32 1.442695, %v3232_v21 }
0x1a3b   :  { %v3228_v10 = vpop.xlane.xlu0 %3227  ;;  %v3225_v40 = vpop.xlane.xlu1 %3224 }
0x1a3c   :  { %21664 = vpow2.f32 %v3236_v17  ;;  %v3234_v48 = vsub.f32 %v20414_v35, %v3228_v10  ;;  %v3233_v13 = vsub.f32 %v3208_v62, %v3225_v40 }
0x1a3e   :  { %v3238_v38 = vmul.f32 1.442695, %v3233_v13  ;;  %v3240_v19 = vmul.f32 1.442695, %v3234_v48 }
0x1a3f   :  { %v3231_v58 = vpop.xlane.xlu0 %3230 }
0x1a40   :  { %v3235_v33 = vsub.f32 %v20415_v22, %v3231_v58  ;;  %21666 = vpow2.f32 %v3238_v38 }
0x1a41   :  { %21668 = vpow2.f32 %v3240_v19 }
0x1a42   :  { %v3242_v12 = vmul.f32 1.442695, %v3235_v33 }
0x1a44   :  { %21670 = vpow2.f32 %v3242_v12 }
0x1a49   :  { %v22626_v43 = vpop.eup %21664 }
0x1a4a   :  { %v3244_v15 = vsel %vm965_vm6, %v22626_v43, 0.0 }
0x1a4b   :  { %3245 = vadd.xlane.f32.xlu0 %v3244_v15 }
0x1a4d   :  { %v22630_v20 = vpop.eup %21666 }
0x1a4e   :  { %v3247_v34 = vsel %vm965_vm6, %v22630_v20, 0.0  ;;  %v22634_v35 = vpop.eup %21668 }
0x1a4f   :  { %3248 = vadd.xlane.f32.xlu0 %v3247_v34  ;;  %v3250_v56 = vsel %vm965_vm6, %v22634_v35, 0.0 }
0x1a51   :  { %v22638_v16 = vpop.eup %21670 }
0x1a52   :  { %v3253_v22 = vsel %vm965_vm6, %v22638_v16, 0.0 }
0x1a53   :  { %3251 = vadd.xlane.f32.xlu0 %v3250_v56 }
0x1a57   :  { %3254 = vadd.xlane.f32.xlu0 %v3253_v22 }
0x1a6d   :  { %5530 = vrot.lane.b32.xlu0 %v22087_v51, %s21942_s23 }
0x1a71   :  { %5424 = vrot.lane.b32.xlu0 %v22096_v53, %s21942_s23 }
0x1a75   :  { %5420 = vrot.lane.b32.xlu0 %v22059_v24, %s21942_s23 }
0x1a79   :  { %5422 = vrot.lane.b32.xlu0 %v22106_v59, %s21942_s23 }
0x1a7d   :  { %5617 = vrot.lane.b32.xlu0 %v22133_v0, %s21942_s23 }
0x1aee   :  { %v3650_v62 = vpop.f32.mrf.mxu1 }
0x1aef   :  { %v3654_v46 = vsub.f32 %v22420_v3, %v3650_v62 }
0x1af0   :  { %v20446_v55 = vpop.f32.mrf.mxu1 }
0x1af1   :  { %20448 = vmatpush3.msra.mxu0 %v3654_v46 }
0x1af2   :  { %20450 = vmatmul.mubr.msk.f32.vlgmr.msra.gmra.mxu0 %vm965_vm6, %v3576_v41  ;;  %20457 = vmatprep.subr.mxu0 %v24392_v44 }
0x1af3   :  { %20459 = vmatprep.mubr.msk.f32.mxu0 %vm21946_vm9, %v24392_v44 }
0x1bb2   :  { %v3721_v30 = vpop.f32.mrf.mxu0 }
0x1bb3   :  { %v3725_v57 = vsub.f32 %v22433_v9, %v3721_v30 }
0x1bb4   :  { %v20451_v23 = vpop.f32.mrf.mxu0 }
0x1bb5   :  { %20453 = vmatpush3.msra.mxu1 %v3725_v57 }
0x1bb6   :  { %20455 = vmatmul.mubr.msk.f32.vlgmr.msra.gmra.mxu1 %vm965_vm6, %v22601_v8  ;;  %20462 = vmatprep.subr.mxu1 %v24392_v44 }
0x1bb7   :  { %20464 = vmatprep.mubr.msk.f32.mxu1 %vm21946_vm9, %v24392_v44 }
0x1c76   :  { %v3795_v31 = vpop.f32.mrf.mxu1 }
0x1c77   :  { %v3799_v41 = vmul.f32 0.25, %v3795_v31 }
0x1c78   :  { %v20456_v7 = vpop.f32.mrf.mxu1 }
0x1c79   :  { %20458 = vmatpush3.msra.mxu0 %v3799_v41 }
0x1c7a   :  { %20460 = vmatmul.mubr.msk.f32.vlgmr.msra.gmra.mxu0 %vm965_vm6, %v22590_v27  ;;  %20467 = vmatprep.subr.mxu0 %v24392_v44 }
0x1c7b   :  { %20469 = vmatprep.mubr.msk.f32.mxu0 %vm21946_vm9, %v24392_v44 }
0x1d3a   :  { %v3866_v14 = vpop.f32.mrf.mxu0 }
0x1d3b   :  { %v3870_v8 = vsub.f32 %v22385_v1, %v3866_v14 }
0x1d3c   :  { %v20461_v28 = vpop.f32.mrf.mxu0 }
0x1d3d   :  { %20463 = vmatpush3.msra.mxu1 %v3870_v8 }
0x1d3e   :  { %20465 = vmatmul.mubr.msk.f32.vlgmr.msra.gmra.mxu1 %vm965_vm6, %v3866_v14  ;;  %20472 = vmatprep.subr.mxu1 %v24392_v44 }
0x1d3f   :  { %20474 = vmatprep.mubr.msk.f32.mxu1 %vm21946_vm9, %v24392_v44 }
0x1dfe   :  { %v3940_v21 = vpop.f32.mrf.mxu1 }
0x1dff   :  { %v3944_v17 = vsub.f32 %v22420_v3, %v3940_v21 }
0x1e00   :  { %v20466_v10 = vpop.f32.mrf.mxu1 }
0x1e01   :  { %20468 = vmatpush3.msra.mxu0 %v3944_v17 }
0x1e02   :  { %20470 = vmatmul.mubr.msk.f32.vlgmr.msra.gmra.mxu0 %vm965_vm6, %v3866_v14  ;;  %20477 = vmatprep.subr.mxu0 %v24392_v44 }
0x1e03   :  { %20479 = vmatprep.mubr.msk.f32.mxu0 %vm21946_vm9, %v24392_v44 }
0x1ec2   :  { %v4011_v40 = vpop.f32.mrf.mxu0 }
0x1ec3   :  { %v4015_v48 = vsub.f32 %v22433_v9, %v4011_v40 }
0x1ec4   :  { %v20471_v13 = vpop.f32.mrf.mxu0 }
0x1ec5   :  { %20473 = vmatpush3.msra.mxu1 %v4015_v48 }
0x1ec6   :  { %20475 = vmatmul.mubr.msk.f32.vlgmr.msra.gmra.mxu1 %vm965_vm6, %v3799_v41  ;;  %20482 = vmatprep.subr.mxu1 %v24392_v44 }
0x1ec7   :  { %20484 = vmatprep.mubr.msk.f32.mxu1 %vm21946_vm9, %v24392_v44 }
0x1f86   :  { %v4085_v38 = vpop.f32.mrf.mxu1 }
0x1f87   :  { %v4089_v19 = vmul.f32 0.25, %v4085_v38 }
0x1f88   :  { %v20476_v58 = vpop.f32.mrf.mxu1 }
0x1f89   :  { %20478 = vmatpush3.msra.mxu0 %v4089_v19 }
0x1f8a   :  { %20480 = vmatmul.mubr.msk.f32.vlgmr.msra.gmra.mxu0 %vm965_vm6, %v22590_v27  ;;  %20487 = vmatprep.subr.mxu0 %v24392_v44 }
0x1f8b   :  { %20489 = vmatprep.mubr.msk.f32.mxu0 %vm21946_vm9, %v24392_v44 }
0x204a   :  { %v4156_v33 = vpop.f32.mrf.mxu0 }
0x204b   :  { %v4160_v12 = vsub.f32 %v22385_v1, %v4156_v33 }
0x204c   :  { %v20481_v15 = vpop.f32.mrf.mxu0 }
0x204d   :  { %20483 = vmatpush3.msra.mxu1 %v4160_v12 }
0x204e   :  { %20485 = vmatmul.mubr.msk.f32.vlgmr.msra.gmra.mxu1 %vm965_vm6, %v4156_v33  ;;  %20492 = vmatprep.subr.mxu1 %v24392_v44 }
0x204f   :  { %20494 = vmatprep.mubr.msk.f32.mxu1 %vm21946_vm9, %v24392_v44 }
0x210e   :  { %v4230_v34 = vpop.f32.mrf.mxu1 }
0x210f   :  { %v4234_v56 = vsub.f32 %v22420_v3, %v4230_v34 }
0x2110   :  { %v20486_v22 = vpop.f32.mrf.mxu1 }
0x2111   :  { %20488 = vmatpush3.msra.mxu0 %v4234_v56 }
0x2112   :  { %20490 = vmatmul.mubr.msk.f32.vlgmr.msra.gmra.mxu0 %vm965_vm6, %v4156_v33  ;;  %20497 = vmatprep.subr.mxu0 %v24392_v44 }
0x2113   :  { %20499 = vmatprep.mubr.msk.f32.mxu0 %vm21946_vm9, %v24392_v44 }
0x21d2   :  { %v4301_v62 = vpop.f32.mrf.mxu0 }
0x21d3   :  { %v4305_v46 = vsub.f32 %v22433_v9, %v4301_v62 }
0x21d4   :  { %v20491_v55 = vpop.f32.mrf.mxu0 }
0x21d5   :  { %20493 = vmatpush3.msra.mxu1 %v4305_v46 }
0x21d6   :  { %20495 = vmatmul.mubr.msk.f32.vlgmr.msra.gmra.mxu1 %vm965_vm6, %v4089_v19  ;;  %20502 = vmatprep.subr.mxu1 %v24392_v44 }
0x21d7   :  { %20504 = vmatprep.mubr.msk.f32.mxu1 %vm21946_vm9, %v24392_v44 }
0x2296   :  { %v4375_v30 = vpop.f32.mrf.mxu1 }
0x2297   :  { %v4379_v57 = vmul.f32 0.25, %v4375_v30 }
0x2298   :  { %v20496_v23 = vpop.f32.mrf.mxu1 }
0x2299   :  { %20498 = vmatpush3.msra.mxu0 %v4379_v57 }
0x229a   :  { %20500 = vmatmul.mubr.msk.f32.vlgmr.msra.gmra.mxu0 %vm965_vm6, %v22590_v27  ;;  %20507 = vmatprep.subr.mxu0 %v24392_v44 }
0x229b   :  { %20509 = vmatprep.mubr.msk.f32.mxu0 %vm21946_vm9, %v24392_v44 }
0x235a   :  { %v4446_v31 = vpop.f32.mrf.mxu0 }
0x235b   :  { %v4450_v41 = vsub.f32 %v22385_v1, %v4446_v31 }
0x235c   :  { %v20501_v7 = vpop.f32.mrf.mxu0 }
0x235d   :  { %20503 = vmatpush3.msra.mxu1 %v4450_v41 }
0x235e   :  { %20505 = vmatmul.mubr.msk.f32.vlgmr.msra.gmra.mxu1 %vm965_vm6, %v4446_v31  ;;  %20512 = vmatprep.subr.mxu1 %v24392_v44 }
0x235f   :  { %20514 = vmatprep.mubr.msk.f32.mxu1 %vm21946_vm9, %v24392_v44 }
0x241e   :  { %v4520_v14 = vpop.f32.mrf.mxu1 }
0x241f   :  { %v4524_v8 = vsub.f32 %v22420_v3, %v4520_v14 }
0x2420   :  { %v20506_v28 = vpop.f32.mrf.mxu1 }
0x2421   :  { %20508 = vmatpush3.msra.mxu0 %v4524_v8 }
0x2422   :  { %20510 = vmatmul.mubr.msk.f32.vlgmr.msra.gmra.mxu0 %vm965_vm6, %v4446_v31  ;;  %20517 = vmatprep.subr.mxu0 %v24392_v44  ;;  %v3246_v31 = vpop.xlane.xlu0 %3245 }
0x2423   :  { %20519 = vmatprep.mubr.msk.f32.mxu0 %vm21946_vm9, %v24392_v44  ;;  %21672 = vrcp.f32 %v3246_v31 }
0x2426   :  { %v3249_v41 = vpop.xlane.xlu0 %3248 }
0x2427   :  { %21674 = vrcp.f32 %v3249_v41 }
0x24e2   :  { %v4591_v21 = vpop.f32.mrf.mxu0 }
0x24e3   :  { %v4595_v17 = vsub.f32 %v22433_v9, %v4591_v21 }
0x24e4   :  { %v20511_v10 = vpop.f32.mrf.mxu0 }
0x24e5   :  { %20513 = vmatpush3.msra.mxu1 %v4595_v17  ;;  %v21673_v10 = vpop.eup %21672 }
0x24e6   :  { %20515 = vmatmul.mubr.msk.f32.vlgmr.msra.gmra.mxu1 %vm965_vm6, %v4379_v57  ;;  %20522 = vmatprep.subr.mxu1 %v24392_v44 }
0x24e7   :  { %20524 = vmatprep.mubr.msk.f32.mxu1 %vm21946_vm9, %v24392_v44 }
0x25a6   :  { %v4665_v40 = vpop.f32.mrf.mxu1 }
0x25a7   :  { %v4669_v48 = vmul.f32 0.25, %v4665_v40 }
0x25a8   :  { %v20516_v13 = vpop.f32.mrf.mxu1 }
0x25a9   :  { %20518 = vmatpush3.msra.mxu0 %v4669_v48 }
0x25aa   :  { %20520 = vmatmul.mubr.msk.f32.vlgmr.msra.gmra.mxu0 %vm965_vm6, %v22590_v27  ;;  %20527 = vmatprep.subr.mxu0 %v24392_v44 }
0x25ab   :  { %20529 = vmatprep.mubr.msk.f32.mxu0 %vm21946_vm9, %v24392_v44 }
0x266a   :  { %v4736_v38 = vpop.f32.mrf.mxu0 }
0x266b   :  { %v4740_v19 = vsub.f32 %v22385_v1, %v4736_v38 }
0x266c   :  { %v20521_v58 = vpop.f32.mrf.mxu0 }
0x266d   :  { %20523 = vmatpush3.msra.mxu1 %v4740_v19  ;;  %v5529_v58 = vpop.permute.xlu1 %5528 }
0x266e   :  { %20525 = vmatmul.mubr.msk.f32.vlgmr.msra.gmra.mxu1 %vm965_vm6, %v4736_v38  ;;  %20532 = vmatprep.subr.mxu1 %v24392_v44 }
0x266f   :  { %20534 = vmatprep.mubr.msk.f32.mxu1 %vm21946_vm9, %v24392_v44 }
0x272e   :  { %v4810_v33 = vpop.f32.mrf.mxu1 }
0x272f   :  { %v4814_v12 = vsub.f32 %v22420_v3, %v4810_v33 }
0x2730   :  { %v20526_v15 = vpop.f32.mrf.mxu1 }
0x2731   :  { %20528 = vmatpush3.msra.mxu0 %v4814_v12 }
0x2732   :  { %20530 = vmatmul.mubr.msk.f32.vlgmr.msra.gmra.mxu0 %vm965_vm6, %v4736_v38  ;;  %20537 = vmatprep.subr.mxu0 %v24392_v44  ;;  %v3257_v38 = vmul.f32 %v21673_v10, %v22626_v43 }
0x2733   :  { %20539 = vmatprep.mubr.msk.f32.mxu0 %vm21946_vm9, %v24392_v44 }
0x27f2   :  { %v4881_v34 = vpop.f32.mrf.mxu0 }
0x27f3   :  { %v4885_v56 = vsub.f32 %v22433_v9, %v4881_v34  ;;  %v5622_v34 = vpop.permute.xlu1 %5621 }
0x27f4   :  { %v20531_v22 = vpop.f32.mrf.mxu0 }
0x27f5   :  { %20533 = vmatpush3.msra.mxu1 %v4885_v56  ;;  %v5630_v56 = vsel %vm906_vm8, %v5622_v34, 0 }
0x27f6   :  { %20535 = vmatmul.mubr.msk.f32.vlgmr.msra.gmra.mxu1 %vm965_vm6, %v4669_v48  ;;  %20542 = vmatprep.subr.mxu1 %v24392_v44 }
0x27f7   :  { %20544 = vmatprep.mubr.msk.f32.mxu1 %vm21946_vm9, %v24392_v44  ;;  %v5620_v22 = vpop.permute.xlu1 %5619 }
0x28b6   :  { %v4955_v62 = vpop.f32.mrf.mxu1 }
0x28b7   :  { %v4959_v46 = vmul.f32 0.25, %v4955_v62  ;;  %v5627_v62 = vsel %vm906_vm8, %v5620_v22, 0 }
0x28b8   :  { %v20536_v55 = vpop.f32.mrf.mxu1 }
0x28b9   :  { %20538 = vmatpush3.msra.mxu0 %v4959_v46  ;;  %v21675_v55 = vpop.eup %21674 }
0x28ba   :  { %20540 = vmatmul.mubr.msk.f32.vlgmr.msra.gmra.mxu0 %vm965_vm6, %v22590_v27  ;;  %20547 = vmatprep.subr.mxu0 %v24392_v44  ;;  %v3252_v27 = vpop.xlane.xlu0 %3251 }
0x28bb   :  { %20549 = vmatprep.mubr.msk.f32.mxu0 %vm21946_vm9, %v24392_v44  ;;  %21676 = vrcp.f32 %v3252_v27 }
0x28be   :  { %v3255_v7 = vpop.xlane.xlu0 %3254 }
0x28bf   :  { %21678 = vrcp.f32 %v3255_v7 }
0x28c2   :  { %v5531_v14 = vpop.permute.xlu0 %5530 }
0x28c6   :  { %v5425_v17 = vpop.permute.xlu0 %5424 }
0x28c7   :  { %v5433_v15 = vsel %vm906_vm8, %v5425_v17, 0 }
0x28ca   :  { %v5421_v12 = vpop.permute.xlu0 %5420 }
0x28ce   :  { %v5423_v43 = vpop.permute.xlu0 %5422 }
0x297a   :  { %v5026_v30 = vpop.f32.mrf.mxu0 }
0x297b   :  { %v5030_v57 = vsub.f32 %v22385_v1, %v5026_v30 }
0x297c   :  { %v20541_v23 = vpop.f32.mrf.mxu0 }
0x297d   :  { %20543 = vmatpush3.msra.mxu1 %v5030_v57  ;;  %v3259_v23 = vmul.f32 %v21675_v55, %v22630_v20 }
0x297e   :  { %20545 = vmatmul.mubr.msk.f32.vlgmr.msra.gmra.mxu1 %vm965_vm6, %v5026_v30  ;;  %20552 = vmatprep.subr.mxu1 %v24392_v44 }
0x297f   :  { %20554 = vmatprep.mubr.msk.f32.mxu1 %vm21946_vm9, %v24392_v44 }
0x2a3e   :  { %v5100_v8 = vpop.f32.mrf.mxu1 }
0x2a3f   :  { %v5104_v28 = vsub.f32 %v22420_v3, %v5100_v8 }
0x2a40   :  { %v20546_v21 = vpop.f32.mrf.mxu1 }
0x2a41   :  { %20548 = vmatpush3.msra.mxu0 %v5104_v28 }
0x2a42   :  { %20550 = vmatmul.mubr.msk.f32.vlgmr.msra.gmra.mxu0 %vm965_vm6, %v5026_v30  ;;  %20557 = vmatprep.subr.mxu0 %v24392_v44  ;;  %v21677_v30 = vpop.eup %21676 }
0x2a43   :  { %20558 = vmatpush3.msra.mxu0 %v22613_v42  ;;  %20559 = vmatprep.mubr.msk.f32.mxu0 %vm21946_vm9, %v24392_v44  ;;  %v21679_v31 = vpop.eup %21678  ;;  %v3261_v28 = vmul.f32 %v21677_v30, %v22634_v35 }
0x2a44   :  { %21556 = vmatprep.subr.msk.bf16.mxu0 %vm906_vm8, %v5425_v17  ;;  %v3263_v41 = vmul.f32 %v21679_v31, %v22638_v16 }
0x2b02   :  { %v5171_v40 = vpop.f32.mrf.mxu0 }
0x2b03   :  { %v5175_v48 = vsub.f32 %v22433_v9, %v5171_v40 }
0x2b04   :  { %v20551_v13 = vpop.f32.mrf.mxu0 }
0x2b05   :  { %20553 = vmatpush3.msra.mxu1 %v5175_v48 }
0x2b06   :  { %20555 = vmatmul.mubr.msk.f32.vlgmr.msra.gmra.mxu1 %vm965_vm6, %v4959_v46  ;;  %v5618_v46 = vpop.permute.xlu0 %5617 }
0x2b07   :  { %20564 = vmatprep.mubr.msk.f32.mxu1 %vm965_vm6, %v3257_v38 }
0x2bc6   :  { %v5245_v19 = vpop.f32.mrf.mxu1 }
0x2bc7   :  { %v5249_v42 = vmul.f32 0.25, %v5245_v19 }
0x2bc8   :  { %v20556_v33 = vpop.f32.mrf.mxu1 }
0x2bc9   :  { %20560 = vmatmul.mubr.msk.f32.vlgmr.msra.gmra.mxu0 %vm965_vm6, %v5249_v42 }
0x2bca   :  { %20571 = vmatpush3.bf16.xpose.msra.mxu0 %v5433_v15  ;;  %20572 = vmatprep.mubr.msk.bf16.mxu0 %vm906_vm8, %v5421_v12 }
0x2bcb   :  { %20581 = vmatprep.subr.bf16.mxu0 %v24392_v44 }
0x2bd1   :  { %20573 = vmatmul.mubr.msk.bf16.vlgmr.msra.gmra.mxu0 %vm906_vm8, %v5423_v43 }
0x2bd2   :  { %20582 = vmatpush3.bf16.xpose.msra.mxu0 %v5630_v56  ;;  %20585 = vmatprep.mubr.msk.bf16.mxu0 %vm21946_vm9, %v24392_v44 }
0x2bd3   :  { %20583 = vmatprep.subr.bf16.mxu0 %v24392_v44 }
0x2bda   :  { %20584 = vmatpush3.bf16.xpose.msra.mxu0 %v5627_v62 }
0x2bdb   :  { %20607 = vmatprep.subr.mxu0 %v24392_v44 }
0x2be1   :  { %20586 = vmatmul.mubr.msk.bf16.vlgmr.msra.gmra.mxu0 %vm906_vm8, %v5618_v46 }
0x2be2   :  { %20609 = vmatprep.mubr.msk.f32.mxu0 %vm21946_vm9, %v24392_v44 }
0x2c89   :  { %v5319_v57 = vpop.f32.mrf.mxu0 }
0x2c8a   :  { %20562 = vmatprep.subr.mxu1 %v5319_v57 }
0x2c8b   :  { %v20561_v8 = vpop.f32.mrf.mxu0  ;;  %20563 = vmatpush3.msra.mxu1 %v5319_v57 }
0x2c8c   :  { %20565 = vmatmul.mubr.msk.f32.vlgmr.msra.gmra.mxu1 %vm965_vm6, %v3259_v23  ;;  %20576 = vmatprep.subr.mxu1 %v24392_v44 }
0x2c8d   :  { %20567 = vmatprep.mubr.msk.f32.mxu1 %vm965_vm6, %v3261_v28  ;;  %20577 = vmatpush3.xpose.msk.msra.mxu1 %vm906_vm8, %v5531_v14 }
0x2c8e   :  { %20589 = vmatprep.subr.bf16.mxu1 %v24392_v44 }
0x2c90   :  { %20568 = vmatmul.mubr.msk.f32.gmra.mxu1 %vm965_vm6, %v3263_v41 }
0x2c91   :  { %20578 = vmatprep.mubr.msk.f32.mxu1 %vm21946_vm9, %v24392_v44  ;;  %v22789_v20 = vpop.f32.mrf.mxu0 }
0x2c92   :  { %v5490_v23 = vsel %vm965_vm6, %v22789_v20, -inf }
0x2c93   :  { %v5469_v35 = vpop.f32.mrf.mxu0 }
0x2c94   :  { %20579 = vmatmul.mubr.msk.f32.vlgmr.msra.gmra.mxu1 %vm906_vm8, %v5529_v58  ;;  %v5484_v30 = vsel %vm965_vm6, %v5469_v35, -inf }
0x2c95   :  { %20593 = vmatprep.mubr.msk.bf16.mxu1 %vm21946_vm9, %v24392_v44  ;;  %v22794_v27 = vpop.f32.mrf.mxu0 }
0x2c96   :  { %v5493_v31 = vsel %vm965_vm6, %v22794_v27, -inf }
0x2c97   :  { %v22796_v7 = vpop.f32.mrf.mxu0 }
0x2c98   :  { %v5487_v57 = vsel %vm965_vm6, %v22796_v7, -inf }
0x2ca1   :  { %v5666_v16 = vpop.f32.mrf.mxu0 }
0x2ca2   :  { %v5672_v14 = vsel %vm906_vm8, %v5666_v16, -inf }
0x2ca3   :  { %5673 = vmax.xlane.f32.xlu0 %v5672_v14  ;;  %v20587_v21 = vpop.f32.mrf.mxu0 }
0x2ca5   :  { %v5669_v17 = vpop.f32.mrf.mxu0 }
0x2ca7   :  { %v20588_v10 = vpop.f32.mrf.mxu0 }
0x2d2c   :  { %v5674_v40 = vpop.xlane.xlu0 %5673 }
0x2d2d   :  { %v5675_v48 = vsub.f32 %v5666_v16, %v5674_v40 }
0x2d2f   :  { %v5676_v13 = vmul.f32 1.442695, %v5675_v48 }
0x2d31   :  { %21680 = vpow2.f32 %v5676_v13 }
0x2d3e   :  { %v21681_v15 = vpop.eup %21680 }
0x2d3f   :  { %v5678_v43 = vsel %vm906_vm8, %v21681_v15, 0.0 }
0x2d4c   :  { %v22799_v38 = vpop.f32.mrf.mxu1 }
0x2d4e   :  { %v22801_v19 = vpop.f32.mrf.mxu1 }
0x2d50   :  { %v22803_v42 = vpop.f32.mrf.mxu1 }
0x2d52   :  { %v22805_v58 = vpop.f32.mrf.mxu1 }
0x2d54   :  { %v5602_v33 = vpop.f32.mrf.mxu1 }
0x2d55   :  { %v5606_v12 = vsel %vm965_vm6, %v5602_v33, -inf }
0x2d56   :  { %5607 = vmax.xlane.f32.xlu1 %v5606_v12  ;;  %v20580_v34 = vpop.f32.mrf.mxu1 }
0x2d5a   :  { %5679 = vadd.xlane.f32.xlu1 %v5678_v43 }
0x2d6b   :  { %5684 = vrot.lane.b32.xlu1 %v22092_v52, %s21942_s23 }
0x2ddf   :  { %v5608_v56 = vpop.xlane.xlu1 %5607 }
0x2de0   :  { %v5609_v22 = vsub.f32 %v5602_v33, %v5608_v56 }
0x2de2   :  { %v5610_v62 = vmul.f32 1.442695, %v5609_v22 }
0x2de3   :  { %v5680_v8 = vpop.xlane.xlu1 %5679 }
0x2de4   :  { %21682 = vpow2.f32 %v5610_v62 }
0x2de5   :  { %21684 = vrcp.f32 %v5680_v8 }
0x2de7   :  { %v5685_v21 = vpop.permute.xlu1 %5684 }
0x2df1   :  { %v21683_v46 = vpop.eup %21682 }
0x2df2   :  { %v5612_v55 = vsel %vm965_vm6, %v21683_v46, 0.0  ;;  %v21685_v41 = vpop.eup %21684 }
0x2df3   :  { %5613 = vadd.xlane.f32.xlu0 %v5612_v55  ;;  %v5682_v14 = vmul.f32 %v21685_v41, %v21681_v15 }
0x2df5   :  { %v5683_v17 = vpack.c.bf16 %v5682_v14, %v5682_v14 }
0x2e09   :  { %5686 = vrot.lane.b32.xlu0 %v22083_v49, %s21942_s23 }
0x2e28   :  { %5485 = vmax.xlane.f32.xlu0 %v5484_v30 }
0x2e2c   :  { %5488 = vmax.xlane.f32.xlu0 %v5487_v57 }
0x2e30   :  { %5491 = vmax.xlane.f32.xlu0 %v5490_v23 }
0x2e34   :  { %5494 = vmax.xlane.f32.xlu0 %v5493_v31 }
0x2e7c   :  { %v5614_v28 = vpop.xlane.xlu0 %5613 }
0x2e7d   :  { %21686 = vrcp.f32 %v5614_v28 }
0x2e80   :  { %v5687_v16 = vpop.permute.xlu0 %5686 }
0x2e81   :  { %20590 = vmatpush3.bf16.msra.mxu1 %v5687_v16 }
0x2e82   :  { %20591 = vmatprep.subr.bf16.mxu1 %v24392_v44 }
0x2e85   :  { %20592 = vmatpush3.bf16.msra.mxu1 %v5685_v21 }
0x2e86   :  { %20597 = vmatprep.subr.mxu1 %v24392_v44 }
0x2e88   :  { %20594 = vmatmul.mubr.msk.bf16.vlgmr.msra.gmra.mxu1 %vm906_vm8, %v5683_v17 }
0x2e89   :  { %20599 = vmatprep.mubr.msk.f32.mxu1 %vm21946_vm9, %v24392_v44 }
0x2e8a   :  { %v21687_v10 = vpop.eup %21686 }
0x2e8b   :  { %v22826_v40 = vmul.f32 %v21687_v10, %v21683_v46 }
0x2e8d   :  { %5733 = vxpose.xlu1.b32.start.end [1/1] (short) (narrow) %v22826_v40, 8 }
0x2eb1   :  { %v5486_v48 = vpop.xlane.xlu0 %5485 }
0x2eb2   :  { %v5496_v13 = vsub.f32 %v5469_v35, %v5486_v48 }
0x2eb4   :  { %v5500_v33 = vmul.f32 1.442695, %v5496_v13 }
0x2eb5   :  { %v5489_v12 = vpop.xlane.xlu0 %5488 }
0x2eb6   :  { %21688 = vpow2.f32 %v5500_v33  ;;  %v5497_v15 = vsub.f32 %v22796_v7, %v5489_v12 }
0x2eb8   :  { %v5502_v34 = vmul.f32 1.442695, %v5497_v15 }
0x2eb9   :  { %v5492_v43 = vpop.xlane.xlu0 %5491 }
0x2eba   :  { %21690 = vpow2.f32 %v5502_v34  ;;  %v5498_v56 = vsub.f32 %v22789_v20, %v5492_v43 }
0x2ebc   :  { %v5504_v22 = vmul.f32 1.442695, %v5498_v56 }
0x2ebd   :  { %v5495_v62 = vpop.xlane.xlu0 %5494 }
0x2ebe   :  { %21692 = vpow2.f32 %v5504_v22  ;;  %v5499_v46 = vsub.f32 %v22794_v27, %v5495_v62 }
0x2ec0   :  { %v5506_v55 = vmul.f32 1.442695, %v5499_v46 }
0x2ec2   :  { %21694 = vpow2.f32 %v5506_v55 }
0x2ec3   :  { %v22832_v30 = vpop.eup %21688 }
0x2ec4   :  { %v5508_v35 = vsel %vm965_vm6, %v22832_v30, 0.0 }
0x2ec5   :  { %5509 = vadd.xlane.f32.xlu1 %v5508_v35 }
0x2ec7   :  { %v22836_v57 = vpop.eup %21690 }
0x2ec8   :  { %v5511_v7 = vsel %vm965_vm6, %v22836_v57, 0.0 }
0x2ec9   :  { %5512 = vadd.xlane.f32.xlu0 %v5511_v7 }
0x2ecb   :  { %v22840_v20 = vpop.eup %21692 }
0x2ecc   :  { %v5514_v23 = vsel %vm965_vm6, %v22840_v20, 0.0 }
0x2ecd   :  { %5515 = vadd.xlane.f32.xlu0 %v5514_v23 }
0x2ecf   :  { %v22844_v27 = vpop.eup %21694 }
0x2ed0   :  { %v5517_v31 = vsel %vm965_vm6, %v22844_v27, 0.0 }
0x2ed1   :  { %5518 = vadd.xlane.f32.xlu0 %v5517_v31 }
0x2ed6   :  { %7683 = vrot.lane.b32.xlu1 %v22096_v53, %s21948_s29 }
0x2eda   :  { %7876 = vrot.lane.b32.xlu1 %v22133_v0, %s21948_s29 }
0x2ee7   :  { %7789 = vrot.lane.b32.xlu0 %v22087_v51, %s21948_s29 }
0x2eeb   :  { %7787 = vrot.lane.b32.xlu0 %v22117_v61, %s21948_s29 }
0x2eef   :  { %7679 = vrot.lane.b32.xlu0 %v22059_v24, %s21948_s29 }
0x2ef3   :  { %7880 = vrot.lane.b32.xlu0 %v22115_v60, %s21948_s29 }
0x2ef7   :  { %7681 = vrot.lane.b32.xlu0 %v22106_v59, %s21948_s29 }
0x2efb   :  { %7878 = vrot.lane.b32.xlu0 %v22126_v63, %s21948_s29 }
0x2f09   :  { %v5749_v53 = vpop.trf.xlu1 }
0x2f0a   :  { %v5765_v0 = vmul.f32 %v5749_v53, %v22330_v11 }
0x2f0c   :  { %20598 = vmatpush3.msra.mxu1 %v5765_v0 }
0x2f0d   :  { %20600 = vmatmul.mubr.msk.f32.vlgmr.msra.gmra.mxu1 %vm965_vm6, %v22826_v40  ;;  %20602 = vmatprep.subr.mxu1 %v24392_v44 }
0x2f0e   :  { %20604 = vmatprep.mubr.msk.f32.mxu1 %vm21946_vm9, %v24392_v44 }
0x2f48   :  { %v22870_v24 = vpop.f32.mrf.mxu1 }
0x2f4a   :  { %v20595_v51 = vpop.f32.mrf.mxu1 }
0x2f4c   :  { %v5730_v60 = vpop.f32.mrf.mxu1 }
0x2f4e   :  { %v20596_v59 = vpop.f32.mrf.mxu1 }
0x2fcd   :  { %v5835_v61 = vpop.f32.mrf.mxu1 }
0x2fce   :  { %v5839_v63 = vsub.f32 %v22385_v1, %v5835_v61 }
0x2fcf   :  { %v20601_v8 = vpop.f32.mrf.mxu1 }
0x2fd0   :  { %20603 = vmatpush3.msra.mxu1 %v5839_v63 }
0x2fd1   :  { %20605 = vmatmul.mubr.msk.f32.vlgmr.msra.gmra.mxu1 %vm965_vm6, %v5835_v61  ;;  %20612 = vmatprep.subr.mxu1 %v24392_v44 }
0x2fd2   :  { %20614 = vmatprep.mubr.msk.f32.mxu1 %vm21946_vm9, %v24392_v44 }
0x3091   :  { %v5909_v28 = vpop.f32.mrf.mxu1 }
0x3092   :  { %v5913_v41 = vsub.f32 %v22420_v3, %v5909_v28 }
0x3093   :  { %v20606_v16 = vpop.f32.mrf.mxu1 }
0x3094   :  { %20608 = vmatpush3.msra.mxu0 %v5913_v41 }
0x3095   :  { %20610 = vmatmul.mubr.msk.f32.vlgmr.msra.gmra.mxu0 %vm965_vm6, %v5835_v61  ;;  %20617 = vmatprep.subr.mxu0 %v24392_v44 }
0x3096   :  { %20619 = vmatprep.mubr.msk.f32.mxu0 %vm21946_vm9, %v24392_v44 }
0x3155   :  { %v5980_v14 = vpop.f32.mrf.mxu0 }
0x3156   :  { %v5984_v21 = vsub.f32 %v22433_v9, %v5980_v14 }
0x3157   :  { %v20611_v17 = vpop.f32.mrf.mxu0 }
0x3158   :  { %20613 = vmatpush3.msra.mxu1 %v5984_v21 }
0x3159   :  { %20615 = vmatmul.mubr.msk.f32.vlgmr.msra.gmra.mxu1 %vm965_vm6, %v5765_v0  ;;  %20622 = vmatprep.subr.mxu1 %v24392_v44 }
0x315a   :  { %20624 = vmatprep.mubr.msk.f32.mxu1 %vm21946_vm9, %v24392_v44 }
0x3219   :  { %v6054_v10 = vpop.f32.mrf.mxu1 }
0x321a   :  { %v6058_v48 = vmul.f32 0.25, %v6054_v10 }
0x321b   :  { %v20616_v13 = vpop.f32.mrf.mxu1 }
0x321c   :  { %20618 = vmatpush3.msra.mxu0 %v6058_v48 }
0x321d   :  { %20620 = vmatmul.mubr.msk.f32.vlgmr.msra.gmra.mxu0 %vm965_vm6, %v22826_v40  ;;  %20627 = vmatprep.subr.mxu0 %v24392_v44 }
0x321e   :  { %20629 = vmatprep.mubr.msk.f32.mxu0 %vm21946_vm9, %v24392_v44 }
0x32dd   :  { %v6125_v33 = vpop.f32.mrf.mxu0 }
0x32de   :  { %v6129_v12 = vsub.f32 %v22385_v1, %v6125_v33 }
0x32df   :  { %v20621_v15 = vpop.f32.mrf.mxu0 }
0x32e0   :  { %20623 = vmatpush3.msra.mxu1 %v6129_v12 }
0x32e1   :  { %20625 = vmatmul.mubr.msk.f32.vlgmr.msra.gmra.mxu1 %vm965_vm6, %v6125_v33  ;;  %20632 = vmatprep.subr.mxu1 %v24392_v44 }
0x32e2   :  { %20634 = vmatprep.mubr.msk.f32.mxu1 %vm21946_vm9, %v24392_v44 }
0x33a1   :  { %v6199_v34 = vpop.f32.mrf.mxu1 }
0x33a2   :  { %v6203_v43 = vsub.f32 %v22420_v3, %v6199_v34 }
0x33a3   :  { %v20626_v56 = vpop.f32.mrf.mxu1 }
0x33a4   :  { %20628 = vmatpush3.msra.mxu0 %v6203_v43 }
0x33a5   :  { %20630 = vmatmul.mubr.msk.f32.vlgmr.msra.gmra.mxu0 %vm965_vm6, %v6125_v33  ;;  %20637 = vmatprep.subr.mxu0 %v24392_v44 }
0x33a6   :  { %20639 = vmatprep.mubr.msk.f32.mxu0 %vm21946_vm9, %v24392_v44 }
0x3465   :  { %v6270_v22 = vpop.f32.mrf.mxu0 }
0x3466   :  { %v6274_v62 = vsub.f32 %v22433_v9, %v6270_v22 }
0x3467   :  { %v20631_v46 = vpop.f32.mrf.mxu0 }
0x3468   :  { %20633 = vmatpush3.msra.mxu1 %v6274_v62 }
0x3469   :  { %20635 = vmatmul.mubr.msk.f32.vlgmr.msra.gmra.mxu1 %vm965_vm6, %v6058_v48  ;;  %20642 = vmatprep.subr.mxu1 %v24392_v44 }
0x346a   :  { %20644 = vmatprep.mubr.msk.f32.mxu1 %vm21946_vm9, %v24392_v44 }
0x3529   :  { %v6344_v55 = vpop.f32.mrf.mxu1 }
0x352a   :  { %v6348_v35 = vmul.f32 0.25, %v6344_v55 }
0x352b   :  { %v20636_v7 = vpop.f32.mrf.mxu1 }
0x352c   :  { %20638 = vmatpush3.msra.mxu0 %v6348_v35 }
0x352d   :  { %20640 = vmatmul.mubr.msk.f32.vlgmr.msra.gmra.mxu0 %vm965_vm6, %v22826_v40  ;;  %20647 = vmatprep.subr.mxu0 %v24392_v44 }
0x352e   :  { %20649 = vmatprep.mubr.msk.f32.mxu0 %vm21946_vm9, %v24392_v44 }
0x35ed   :  { %v6415_v23 = vpop.f32.mrf.mxu0 }
0x35ee   :  { %v6419_v31 = vsub.f32 %v22385_v1, %v6415_v23 }
0x35ef   :  { %v20641_v53 = vpop.f32.mrf.mxu0 }
0x35f0   :  { %20643 = vmatpush3.msra.mxu1 %v6419_v31 }
0x35f1   :  { %20645 = vmatmul.mubr.msk.f32.vlgmr.msra.gmra.mxu1 %vm965_vm6, %v6415_v23  ;;  %20652 = vmatprep.subr.mxu1 %v24392_v44 }
0x35f2   :  { %20654 = vmatprep.mubr.msk.f32.mxu1 %vm21946_vm9, %v24392_v44 }
0x36b1   :  { %v6489_v0 = vpop.f32.mrf.mxu1 }
0x36b2   :  { %v6493_v51 = vsub.f32 %v22420_v3, %v6489_v0 }
0x36b3   :  { %v20646_v60 = vpop.f32.mrf.mxu1 }
0x36b4   :  { %20648 = vmatpush3.msra.mxu0 %v6493_v51 }
0x36b5   :  { %20650 = vmatmul.mubr.msk.f32.vlgmr.msra.gmra.mxu0 %vm965_vm6, %v6415_v23  ;;  %20657 = vmatprep.subr.mxu0 %v24392_v44 }
0x36b6   :  { %20659 = vmatprep.mubr.msk.f32.mxu0 %vm21946_vm9, %v24392_v44 }
0x3775   :  { %v6560_v59 = vpop.f32.mrf.mxu0 }
0x3776   :  { %v6564_v61 = vsub.f32 %v22433_v9, %v6560_v59 }
0x3777   :  { %v20651_v63 = vpop.f32.mrf.mxu0 }
0x3778   :  { %20653 = vmatpush3.msra.mxu1 %v6564_v61  ;;  %v5510_v63 = vpop.xlane.xlu1 %5509 }
0x3779   :  { %20655 = vmatmul.mubr.msk.f32.vlgmr.msra.gmra.mxu1 %vm965_vm6, %v6348_v35  ;;  %20662 = vmatprep.subr.mxu1 %v24392_v44  ;;  %21696 = vrcp.f32 %v5510_v63 }
0x377a   :  { %20664 = vmatprep.mubr.msk.f32.mxu1 %vm21946_vm9, %v24392_v44 }
0x3839   :  { %v6634_v8 = vpop.f32.mrf.mxu1 }
0x383a   :  { %v6638_v28 = vmul.f32 0.25, %v6634_v8 }
0x383b   :  { %v20656_v41 = vpop.f32.mrf.mxu1 }
0x383c   :  { %20658 = vmatpush3.msra.mxu0 %v6638_v28  ;;  %v7684_v41 = vpop.permute.xlu1 %7683 }
0x383d   :  { %20660 = vmatmul.mubr.msk.f32.vlgmr.msra.gmra.mxu0 %vm965_vm6, %v22826_v40  ;;  %20667 = vmatprep.subr.mxu0 %v24392_v44 }
0x383e   :  { %20669 = vmatprep.mubr.msk.f32.mxu0 %vm21946_vm9, %v24392_v44 }
0x38fd   :  { %v6705_v16 = vpop.f32.mrf.mxu0 }
0x38fe   :  { %v6709_v14 = vsub.f32 %v22385_v1, %v6705_v16 }
0x38ff   :  { %v20661_v21 = vpop.f32.mrf.mxu0 }
0x3900   :  { %20663 = vmatpush3.msra.mxu1 %v6709_v14 }
0x3901   :  { %20665 = vmatmul.mubr.msk.f32.vlgmr.msra.gmra.mxu1 %vm965_vm6, %v6705_v16  ;;  %20672 = vmatprep.subr.mxu1 %v24392_v44 }
0x3902   :  { %20674 = vmatprep.mubr.msk.f32.mxu1 %vm21946_vm9, %v24392_v44 }
0x39c1   :  { %v6779_v17 = vpop.f32.mrf.mxu1 }
0x39c2   :  { %v6783_v10 = vsub.f32 %v22420_v3, %v6779_v17 }
0x39c3   :  { %v20666_v48 = vpop.f32.mrf.mxu1 }
0x39c4   :  { %20668 = vmatpush3.msra.mxu0 %v6783_v10  ;;  %v5513_v48 = vpop.xlane.xlu0 %5512 }
0x39c5   :  { %20670 = vmatmul.mubr.msk.f32.vlgmr.msra.gmra.mxu0 %vm965_vm6, %v6705_v16  ;;  %20677 = vmatprep.subr.mxu0 %v24392_v44  ;;  %v21697_v16 = vpop.eup %21696  ;;  %21698 = vrcp.f32 %v5513_v48 }
0x39c6   :  { %20679 = vmatprep.mubr.msk.f32.mxu0 %vm21946_vm9, %v24392_v44  ;;  %v5521_v10 = vmul.f32 %v21697_v16, %v22832_v30 }
0x3a85   :  { %v6850_v13 = vpop.f32.mrf.mxu0 }
0x3a86   :  { %v6854_v33 = vsub.f32 %v22433_v9, %v6850_v13 }
0x3a87   :  { %v20671_v12 = vpop.f32.mrf.mxu0 }
0x3a88   :  { %20673 = vmatpush3.msra.mxu1 %v6854_v33 }
0x3a89   :  { %20675 = vmatmul.mubr.msk.f32.vlgmr.msra.gmra.mxu1 %vm965_vm6, %v6638_v28  ;;  %20682 = vmatprep.subr.mxu1 %v24392_v44 }
0x3a8a   :  { %20684 = vmatprep.mubr.msk.f32.mxu1 %vm21946_vm9, %v24392_v44 }
0x3b49   :  { %v6924_v15 = vpop.f32.mrf.mxu1 }
0x3b4a   :  { %v6928_v34 = vmul.f32 0.25, %v6924_v15 }
0x3b4b   :  { %v20676_v43 = vpop.f32.mrf.mxu1 }
0x3b4c   :  { %20678 = vmatpush3.msra.mxu0 %v6928_v34 }
0x3b4d   :  { %20680 = vmatmul.mubr.msk.f32.vlgmr.msra.gmra.mxu0 %vm965_vm6, %v22826_v40  ;;  %20687 = vmatprep.subr.mxu0 %v24392_v44 }
0x3b4e   :  { %20689 = vmatprep.mubr.msk.f32.mxu0 %vm21946_vm9, %v24392_v44 }
0x3c0d   :  { %v6995_v56 = vpop.f32.mrf.mxu0 }
0x3c0e   :  { %v6999_v22 = vsub.f32 %v22385_v1, %v6995_v56 }
0x3c0f   :  { %v20681_v62 = vpop.f32.mrf.mxu0 }
0x3c10   :  { %20683 = vmatpush3.msra.mxu1 %v6999_v22  ;;  %v7692_v22 = vsel %vm906_vm8, %v7684_v41, 0 }
0x3c11   :  { %20685 = vmatmul.mubr.msk.f32.vlgmr.msra.gmra.mxu1 %vm965_vm6, %v6995_v56  ;;  %20692 = vmatprep.subr.mxu1 %v24392_v44 }
0x3c12   :  { %20694 = vmatprep.mubr.msk.f32.mxu1 %vm21946_vm9, %v24392_v44 }
0x3cd1   :  { %v7069_v46 = vpop.f32.mrf.mxu1 }
0x3cd2   :  { %v7073_v55 = vsub.f32 %v22420_v3, %v7069_v46 }
0x3cd3   :  { %v20686_v35 = vpop.f32.mrf.mxu1 }
0x3cd4   :  { %20688 = vmatpush3.msra.mxu0 %v7073_v55 }
0x3cd5   :  { %20690 = vmatmul.mubr.msk.f32.vlgmr.msra.gmra.mxu0 %vm965_vm6, %v6995_v56  ;;  %20697 = vmatprep.subr.mxu0 %v24392_v44 }
0x3cd6   :  { %20699 = vmatprep.mubr.msk.f32.mxu0 %vm21946_vm9, %v24392_v44 }
0x3d95   :  { %v7140_v7 = vpop.f32.mrf.mxu0 }
0x3d96   :  { %v7144_v23 = vsub.f32 %v22433_v9, %v7140_v7  ;;  %v7877_v7 = vpop.permute.xlu1 %7876 }
0x3d97   :  { %v20691_v31 = vpop.f32.mrf.mxu0 }
0x3d98   :  { %20693 = vmatpush3.msra.mxu1 %v7144_v23  ;;  %v21699_v23 = vpop.eup %21698 }
0x3d99   :  { %20695 = vmatmul.mubr.msk.f32.vlgmr.msra.gmra.mxu1 %vm965_vm6, %v6928_v34  ;;  %20702 = vmatprep.subr.mxu1 %v24392_v44 }
0x3d9a   :  { %20704 = vmatprep.mubr.msk.f32.mxu1 %vm21946_vm9, %v24392_v44 }
0x3e59   :  { %v7214_v53 = vpop.f32.mrf.mxu1 }
0x3e5a   :  { %v7218_v0 = vmul.f32 0.25, %v7214_v53 }
0x3e5b   :  { %v20696_v51 = vpop.f32.mrf.mxu1 }
0x3e5c   :  { %20698 = vmatpush3.msra.mxu0 %v7218_v0 }
0x3e5d   :  { %20700 = vmatmul.mubr.msk.f32.vlgmr.msra.gmra.mxu0 %vm965_vm6, %v22826_v40  ;;  %20707 = vmatprep.subr.mxu0 %v24392_v44 }
0x3e5e   :  { %20709 = vmatprep.mubr.msk.f32.mxu0 %vm21946_vm9, %v24392_v44 }
0x3f1d   :  { %v7285_v60 = vpop.f32.mrf.mxu0 }
0x3f1e   :  { %v7289_v59 = vsub.f32 %v22385_v1, %v7285_v60 }
0x3f1f   :  { %v20701_v61 = vpop.f32.mrf.mxu0 }
0x3f20   :  { %20703 = vmatpush3.msra.mxu1 %v7289_v59 }
0x3f21   :  { %20705 = vmatmul.mubr.msk.f32.vlgmr.msra.gmra.mxu1 %vm965_vm6, %v7285_v60  ;;  %20712 = vmatprep.subr.mxu1 %v24392_v44 }
0x3f22   :  { %20714 = vmatprep.mubr.msk.f32.mxu1 %vm21946_vm9, %v24392_v44 }
0x3fe1   :  { %v7359_v8 = vpop.f32.mrf.mxu1 }
0x3fe2   :  { %v7363_v40 = vsub.f32 %v22420_v3, %v7359_v8 }
0x3fe3   :  { %v20706_v28 = vpop.f32.mrf.mxu1 }
0x3fe4   :  { %20708 = vmatpush3.msra.mxu0 %v7363_v40 }
0x3fe5   :  { %20710 = vmatmul.mubr.msk.f32.vlgmr.msra.gmra.mxu0 %vm965_vm6, %v7285_v60  ;;  %20717 = vmatprep.subr.mxu0 %v24392_v44 }
0x3fe6   :  { %20718 = vmatpush3.msra.mxu0 %v22870_v24  ;;  %20719 = vmatprep.mubr.msk.f32.mxu0 %vm21946_vm9, %v24392_v44  ;;  %v5516_v24 = vpop.xlane.xlu0 %5515 }
0x3fe7   :  { %21557 = vmatprep.subr.msk.bf16.mxu0 %vm906_vm8, %v7684_v41  ;;  %21700 = vrcp.f32 %v5516_v24 }
0x3fea   :  { %v5519_v13 = vpop.xlane.xlu0 %5518 }
0x3feb   :  { %21702 = vrcp.f32 %v5519_v13 }
0x3fee   :  { %v7790_v33 = vpop.permute.xlu0 %7789 }
0x3ff2   :  { %v7788_v12 = vpop.permute.xlu0 %7787 }
0x3ff4   :  { %v21701_v31 = vpop.eup %21700 }
0x3ff5   :  { %v5525_v59 = vmul.f32 %v21701_v31, %v22840_v20 }
0x3ff6   :  { %v7680_v15 = vpop.permute.xlu0 %7679 }
0x3ff8   :  { %v21703_v51 = vpop.eup %21702 }
0x3ff9   :  { %v5527_v61 = vmul.f32 %v21703_v51, %v22844_v27 }
0x3ffa   :  { %v7881_v62 = vpop.permute.xlu0 %7880 }
0x3ffb   :  { %v7889_v46 = vsel %vm906_vm8, %v7881_v62, 0 }
0x3ffe   :  { %v7682_v30 = vpop.permute.xlu0 %7681 }
0x4002   :  { %v7879_v55 = vpop.permute.xlu0 %7878 }
0x4003   :  { %v7886_v35 = vsel %vm906_vm8, %v7879_v55, 0 }
0x40a5   :  { %v7430_v14 = vpop.f32.mrf.mxu0 }
0x40a6   :  { %v7434_v21 = vsub.f32 %v22433_v9, %v7430_v14 }
0x40a7   :  { %v20711_v17 = vpop.f32.mrf.mxu0 }
0x40a8   :  { %20713 = vmatpush3.msra.mxu1 %v7434_v21 }
0x40a9   :  { %20715 = vmatmul.mubr.msk.f32.vlgmr.msra.gmra.mxu1 %vm965_vm6, %v7218_v0  ;;  %v5523_v0 = vmul.f32 %v21699_v23, %v22836_v57 }
0x40aa   :  { %20724 = vmatprep.mubr.msk.f32.mxu1 %vm965_vm6, %v5521_v10 }
0x4169   :  { %v7504_v34 = vpop.f32.mrf.mxu1 }
0x416a   :  { %v7508_v43 = vmul.f32 0.25, %v7504_v34 }
0x416b   :  { %v20716_v56 = vpop.f32.mrf.mxu1 }
0x416c   :  { %20720 = vmatmul.mubr.msk.f32.vlgmr.msra.gmra.mxu0 %vm965_vm6, %v7508_v43 }
0x416d   :  { %20731 = vmatpush3.bf16.xpose.msra.mxu0 %v7692_v22  ;;  %20732 = vmatprep.mubr.msk.bf16.mxu0 %vm906_vm8, %v7680_v15 }
0x416e   :  { %20741 = vmatprep.subr.bf16.mxu0 %v24392_v44 }
0x4174   :  { %20733 = vmatmul.mubr.msk.bf16.vlgmr.msra.gmra.mxu0 %vm906_vm8, %v7682_v30 }
0x4175   :  { %20742 = vmatpush3.bf16.xpose.msra.mxu0 %v7889_v46  ;;  %20745 = vmatprep.mubr.msk.bf16.mxu0 %vm21946_vm9, %v24392_v44 }
0x4176   :  { %20743 = vmatprep.subr.bf16.mxu0 %v24392_v44 }
0x417d   :  { %20744 = vmatpush3.bf16.xpose.msra.mxu0 %v7886_v35 }
0x417e   :  { %20767 = vmatprep.subr.mxu0 %v24392_v44 }
0x4184   :  { %20746 = vmatmul.mubr.msk.bf16.vlgmr.msra.gmra.mxu0 %vm906_vm8, %v7877_v7 }
0x4185   :  { %20769 = vmatprep.mubr.msk.f32.mxu0 %vm21946_vm9, %v24392_v44 }
0x422c   :  { %v7578_v53 = vpop.f32.mrf.mxu0 }
0x422d   :  { %20722 = vmatprep.subr.mxu1 %v7578_v53 }
0x422e   :  { %v20721_v60 = vpop.f32.mrf.mxu0  ;;  %20723 = vmatpush3.msra.mxu1 %v7578_v53 }
0x422f   :  { %20725 = vmatmul.mubr.msk.f32.vlgmr.msra.gmra.mxu1 %vm965_vm6, %v5523_v0  ;;  %20736 = vmatprep.subr.mxu1 %v24392_v44 }
0x4230   :  { %20727 = vmatprep.mubr.msk.f32.mxu1 %vm965_vm6, %v5525_v59  ;;  %20737 = vmatpush3.xpose.msk.msra.mxu1 %vm906_vm8, %v7790_v33 }
0x4231   :  { %20749 = vmatprep.subr.bf16.mxu1 %v24392_v44 }
0x4233   :  { %20728 = vmatmul.mubr.msk.f32.gmra.mxu1 %vm965_vm6, %v5527_v61 }
0x4234   :  { %20738 = vmatprep.mubr.msk.f32.mxu1 %vm21946_vm9, %v24392_v44  ;;  %v23013_v57 = vpop.f32.mrf.mxu0 }
0x4235   :  { %v7749_v7 = vsel %vm965_vm6, %v23013_v57, -inf }
0x4236   :  { %v7728_v20 = vpop.f32.mrf.mxu0 }
0x4237   :  { %20739 = vmatmul.mubr.msk.f32.vlgmr.msra.gmra.mxu1 %vm906_vm8, %v7788_v12  ;;  %v7743_v55 = vsel %vm965_vm6, %v7728_v20, -inf }
0x4238   :  { %20753 = vmatprep.mubr.msk.bf16.mxu1 %vm21946_vm9, %v24392_v44  ;;  %v23018_v63 = vpop.f32.mrf.mxu0 }
0x4239   :  { %v7752_v61 = vsel %vm965_vm6, %v23018_v63, -inf }
0x423a   :  { %v23020_v8 = vpop.f32.mrf.mxu0 }
0x423b   :  { %v7746_v35 = vsel %vm965_vm6, %v23020_v8, -inf }
0x4244   :  { %v7925_v27 = vpop.f32.mrf.mxu0 }
0x4245   :  { %v7931_v40 = vsel %vm906_vm8, %v7925_v27, -inf }
0x4246   :  { %7932 = vmax.xlane.f32.xlu1 %v7931_v40  ;;  %v20747_v28 = vpop.f32.mrf.mxu0 }
0x4248   :  { %v7928_v41 = vpop.f32.mrf.mxu0 }
0x424a   :  { %v20748_v16 = vpop.f32.mrf.mxu0 }
0x4257   :  { %7945 = vrot.lane.b32.xlu1 %v22083_v49, %s21948_s29 }
0x42cf   :  { %v7933_v14 = vpop.xlane.xlu1 %7932 }
0x42d0   :  { %v7934_v15 = vsub.f32 %v7925_v27, %v7933_v14 }
0x42d2   :  { %v7935_v43 = vmul.f32 1.442695, %v7934_v15 }
0x42d3   :  { %v7946_v21 = vpop.permute.xlu1 %7945 }
0x42d4   :  { %20750 = vmatpush3.bf16.msra.mxu1 %v7946_v21 }
0x42d5   :  { %20751 = vmatprep.subr.bf16.mxu1 %v24392_v44 }
0x42ef   :  { %v23026_v17 = vpop.f32.mrf.mxu1 }
0x42f1   :  { %v23028_v10 = vpop.f32.mrf.mxu1 }
0x42f3   :  { %v23030_v48 = vpop.f32.mrf.mxu1 }
0x42f5   :  { %v23032_v24 = vpop.f32.mrf.mxu1 }
0x42f7   :  { %v7861_v13 = vpop.f32.mrf.mxu1 }
0x42f8   :  { %v7865_v33 = vsel %vm965_vm6, %v7861_v13, -inf }
0x42f9   :  { %7866 = vmax.xlane.f32.xlu0 %v7865_v33  ;;  %v20740_v12 = vpop.f32.mrf.mxu1 }
0x4382   :  { %v7867_v49 = vpop.xlane.xlu0 %7866 }
0x4383   :  { %v7868_v34 = vsub.f32 %v7861_v13, %v7867_v49 }
0x4385   :  { %v7869_v56 = vmul.f32 1.442695, %v7868_v34 }
0x4387   :  { %21704 = vpow2.f32 %v7869_v56 }
0x4388   :  { %21706 = vpow2.f32 %v7935_v43 }
0x4394   :  { %v21705_v22 = vpop.eup %21704 }
0x4395   :  { %v7871_v62 = vsel %vm965_vm6, %v21705_v22, 0.0  ;;  %v21707_v30 = vpop.eup %21706 }
0x4396   :  { %7872 = vadd.xlane.f32.xlu0 %v7871_v62  ;;  %v7937_v46 = vsel %vm906_vm8, %v21707_v30, 0.0 }
0x439a   :  { %7938 = vadd.xlane.f32.xlu0 %v7937_v46 }
0x43b0   :  { %7943 = vrot.lane.b32.xlu0 %v22092_v52, %s21948_s29 }
0x43cf   :  { %7744 = vmax.xlane.f32.xlu0 %v7743_v55 }
0x43d3   :  { %7747 = vmax.xlane.f32.xlu0 %v7746_v35 }
0x43d7   :  { %7750 = vmax.xlane.f32.xlu0 %v7749_v7 }
0x441f   :  { %v7873_v23 = vpop.xlane.xlu0 %7872 }
0x4420   :  { %21708 = vrcp.f32 %v7873_v23 }
0x4423   :  { %v7939_v31 = vpop.xlane.xlu0 %7938 }
0x4424   :  { %21710 = vrcp.f32 %v7939_v31 }
0x4427   :  { %v7944_v53 = vpop.permute.xlu0 %7943 }
0x4428   :  { %20752 = vmatpush3.bf16.msra.mxu1 %v7944_v53 }
0x4429   :  { %20757 = vmatprep.subr.mxu1 %v24392_v44 }
0x442d   :  { %v21709_v52 = vpop.eup %21708 }
0x442e   :  { %v23045_v0 = vmul.f32 %v21709_v52, %v21705_v22 }
0x4430   :  { %7992 = vxpose.xlu1.b32.start.end [1/1] (short) (narrow) %v23045_v0, 8 }
0x4431   :  { %v21711_v51 = vpop.eup %21710 }
0x4432   :  { %v7941_v60 = vmul.f32 %v21711_v51, %v21707_v30 }
0x4434   :  { %v7942_v59 = vpack.c.bf16 %v7941_v60, %v7941_v60 }
0x4436   :  { %20754 = vmatmul.mubr.msk.bf16.vlgmr.msra.gmra.mxu1 %vm906_vm8, %v7942_v59 }
0x4437   :  { %20759 = vmatprep.mubr.msk.f32.mxu1 %vm21946_vm9, %v24392_v44 }
0x4457   :  { %7753 = vmax.xlane.f32.xlu1 %v7752_v61 }
0x4458   :  { %v7745_v27 = vpop.xlane.xlu0 %7744 }
0x4459   :  { %v7755_v40 = vsub.f32 %v7728_v20, %v7745_v27 }
0x445b   :  { %v7759_v28 = vmul.f32 1.442695, %v7755_v40 }
0x445c   :  { %v7748_v41 = vpop.xlane.xlu0 %7747 }
0x445d   :  { %21712 = vpow2.f32 %v7759_v28  ;;  %v7756_v16 = vsub.f32 %v23020_v8, %v7748_v41 }
0x445f   :  { %v7761_v14 = vmul.f32 1.442695, %v7756_v16 }
0x4460   :  { %v7751_v21 = vpop.xlane.xlu0 %7750 }
0x4461   :  { %21714 = vpow2.f32 %v7761_v14  ;;  %v7757_v13 = vsub.f32 %v23013_v57, %v7751_v21 }
0x4463   :  { %v7763_v33 = vmul.f32 1.442695, %v7757_v13 }
0x4465   :  { %21716 = vpow2.f32 %v7763_v33 }
0x446a   :  { %v23055_v12 = vpop.eup %21712 }
0x446b   :  { %v7767_v15 = vsel %vm965_vm6, %v23055_v12, 0.0 }
0x446c   :  { %7768 = vadd.xlane.f32.xlu0 %v7767_v15 }
0x446e   :  { %v23059_v49 = vpop.eup %21714 }
0x446f   :  { %v7770_v20 = vsel %vm965_vm6, %v23059_v49, 0.0 }
0x4470   :  { %7771 = vadd.xlane.f32.xlu0 %v7770_v20 }
0x4472   :  { %v23063_v8 = vpop.eup %21716 }
0x4473   :  { %v7773_v34 = vsel %vm965_vm6, %v23063_v8, 0.0 }
0x4474   :  { %7774 = vadd.xlane.f32.xlu0 %v7773_v34 }
0x44ac   :  { %v8008_v57 = vpop.trf.xlu1 }
0x44ad   :  { %v8024_v43 = vmul.f32 %v8008_v57, %v22330_v11 }
0x44af   :  { %20758 = vmatpush3.msra.mxu1 %v8024_v43 }
0x44b0   :  { %20760 = vmatmul.mubr.msk.f32.vlgmr.msra.gmra.mxu1 %vm965_vm6, %v23045_v0  ;;  %20762 = vmatprep.subr.mxu1 %v24392_v44 }
0x44b1   :  { %20764 = vmatprep.mubr.msk.f32.mxu1 %vm21946_vm9, %v24392_v44 }
0x44e0   :  { %v7754_v56 = vpop.xlane.xlu1 %7753 }
0x44e1   :  { %v7758_v22 = vsub.f32 %v23018_v63, %v7754_v56 }
0x44e3   :  { %v7765_v62 = vmul.f32 1.442695, %v7758_v22 }
0x44e5   :  { %21718 = vpow2.f32 %v7765_v62 }
0x44f2   :  { %v23074_v30 = vpop.eup %21718 }
0x44f3   :  { %v7776_v46 = vsel %vm965_vm6, %v23074_v30, 0.0 }
0x44f4   :  { %7777 = vadd.xlane.f32.xlu0 %v7776_v46 }
0x44f6   :  { %v23078_v55 = vpop.f32.mrf.mxu1 }
0x44f8   :  { %v20755_v35 = vpop.f32.mrf.mxu1 }
0x44fa   :  { %v7989_v7 = vpop.f32.mrf.mxu1 }
0x44fc   :  { %v20756_v23 = vpop.f32.mrf.mxu1 }
0x4570   :  { %v8094_v31 = vpop.f32.mrf.mxu1 }
0x4571   :  { %v8098_v53 = vsub.f32 %v22385_v1, %v8094_v31 }
0x4572   :  { %v20761_v52 = vpop.f32.mrf.mxu1 }
0x4573   :  { %20763 = vmatpush3.msra.mxu1 %v8098_v53 }
0x4574   :  { %20765 = vmatmul.mubr.msk.f32.vlgmr.msra.gmra.mxu1 %vm965_vm6, %v8094_v31  ;;  %20772 = vmatprep.subr.mxu1 %v24392_v44 }
0x4575   :  { %20774 = vmatprep.mubr.msk.f32.mxu1 %vm21946_vm9, %v24392_v44 }
0x4634   :  { %v8168_v63 = vpop.f32.mrf.mxu1 }
0x4635   :  { %v8172_v51 = vsub.f32 %v22420_v3, %v8168_v63 }
0x4636   :  { %v20766_v60 = vpop.f32.mrf.mxu1 }
0x4637   :  { %20768 = vmatpush3.msra.mxu0 %v8172_v51 }
0x4638   :  { %20770 = vmatmul.mubr.msk.f32.vlgmr.msra.gmra.mxu0 %vm965_vm6, %v8094_v31  ;;  %20777 = vmatprep.subr.mxu0 %v24392_v44 }
0x4639   :  { %20779 = vmatprep.mubr.msk.f32.mxu0 %vm21946_vm9, %v24392_v44 }
0x46f8   :  { %v8239_v59 = vpop.f32.mrf.mxu0 }
0x46f9   :  { %v8243_v61 = vsub.f32 %v22433_v9, %v8239_v59 }
0x46fa   :  { %v20771_v27 = vpop.f32.mrf.mxu0 }
0x46fb   :  { %20773 = vmatpush3.msra.mxu1 %v8243_v61 }
0x46fc   :  { %20775 = vmatmul.mubr.msk.f32.vlgmr.msra.gmra.mxu1 %vm965_vm6, %v8024_v43  ;;  %20782 = vmatprep.subr.mxu1 %v24392_v44 }
0x46fd   :  { %20784 = vmatprep.mubr.msk.f32.mxu1 %vm21946_vm9, %v24392_v44 }
0x47bc   :  { %v8313_v40 = vpop.f32.mrf.mxu1 }
0x47bd   :  { %v8317_v28 = vmul.f32 0.25, %v8313_v40 }
0x47be   :  { %v20776_v41 = vpop.f32.mrf.mxu1 }
0x47bf   :  { %20778 = vmatpush3.msra.mxu0 %v8317_v28 }
0x47c0   :  { %20780 = vmatmul.mubr.msk.f32.vlgmr.msra.gmra.mxu0 %vm965_vm6, %v23045_v0  ;;  %20787 = vmatprep.subr.mxu0 %v24392_v44 }
0x47c1   :  { %20789 = vmatprep.mubr.msk.f32.mxu0 %vm21946_vm9, %v24392_v44 }
0x4880   :  { %v8384_v16 = vpop.f32.mrf.mxu0 }
0x4881   :  { %v8388_v14 = vsub.f32 %v22385_v1, %v8384_v16 }
0x4882   :  { %v20781_v21 = vpop.f32.mrf.mxu0 }
0x4883   :  { %20783 = vmatpush3.msra.mxu1 %v8388_v14 }
0x4884   :  { %20785 = vmatmul.mubr.msk.f32.vlgmr.msra.gmra.mxu1 %vm965_vm6, %v8384_v16  ;;  %20792 = vmatprep.subr.mxu1 %v24392_v44 }
0x4885   :  { %20794 = vmatprep.mubr.msk.f32.mxu1 %vm21946_vm9, %v24392_v44 }
0x4944   :  { %v8458_v13 = vpop.f32.mrf.mxu1 }
0x4945   :  { %v8462_v33 = vsub.f32 %v22420_v3, %v8458_v13 }
0x4946   :  { %v20786_v15 = vpop.f32.mrf.mxu1 }
0x4947   :  { %20788 = vmatpush3.msra.mxu0 %v8462_v33 }
0x4948   :  { %20790 = vmatmul.mubr.msk.f32.vlgmr.msra.gmra.mxu0 %vm965_vm6, %v8384_v16  ;;  %20797 = vmatprep.subr.mxu0 %v24392_v44 }
0x4949   :  { %20799 = vmatprep.mubr.msk.f32.mxu0 %vm21946_vm9, %v24392_v44 }
0x4a08   :  { %v8529_v20 = vpop.f32.mrf.mxu0 }
0x4a09   :  { %v8533_v34 = vsub.f32 %v22433_v9, %v8529_v20 }
0x4a0a   :  { %v20791_v57 = vpop.f32.mrf.mxu0 }
0x4a0b   :  { %20793 = vmatpush3.msra.mxu1 %v8533_v34 }
0x4a0c   :  { %20795 = vmatmul.mubr.msk.f32.vlgmr.msra.gmra.mxu1 %vm965_vm6, %v8317_v28  ;;  %20802 = vmatprep.subr.mxu1 %v24392_v44 }
0x4a0d   :  { %20804 = vmatprep.mubr.msk.f32.mxu1 %vm21946_vm9, %v24392_v44 }
0x4acc   :  { %v8603_v43 = vpop.f32.mrf.mxu1 }
0x4acd   :  { %v8607_v56 = vmul.f32 0.25, %v8603_v43 }
0x4ace   :  { %v20796_v22 = vpop.f32.mrf.mxu1 }
0x4acf   :  { %20798 = vmatpush3.msra.mxu0 %v8607_v56 }
0x4ad0   :  { %20800 = vmatmul.mubr.msk.f32.vlgmr.msra.gmra.mxu0 %vm965_vm6, %v23045_v0  ;;  %20807 = vmatprep.subr.mxu0 %v24392_v44 }
0x4ad1   :  { %20809 = vmatprep.mubr.msk.f32.mxu0 %vm21946_vm9, %v24392_v44 }
0x4b90   :  { %v8674_v62 = vpop.f32.mrf.mxu0 }
0x4b91   :  { %v8678_v46 = vsub.f32 %v22385_v1, %v8674_v62 }
0x4b92   :  { %v20801_v35 = vpop.f32.mrf.mxu0 }
0x4b93   :  { %20803 = vmatpush3.msra.mxu1 %v8678_v46 }
0x4b94   :  { %20805 = vmatmul.mubr.msk.f32.vlgmr.msra.gmra.mxu1 %vm965_vm6, %v8674_v62  ;;  %20812 = vmatprep.subr.mxu1 %v24392_v44 }
0x4b95   :  { %20814 = vmatprep.mubr.msk.f32.mxu1 %vm21946_vm9, %v24392_v44 }
0x4c54   :  { %v8748_v7 = vpop.f32.mrf.mxu1 }
0x4c55   :  { %v8752_v23 = vsub.f32 %v22420_v3, %v8748_v7 }
0x4c56   :  { %v20806_v31 = vpop.f32.mrf.mxu1 }
0x4c57   :  { %20808 = vmatpush3.msra.mxu0 %v8752_v23 }
0x4c58   :  { %20810 = vmatmul.mubr.msk.f32.vlgmr.msra.gmra.mxu0 %vm965_vm6, %v8674_v62  ;;  %20817 = vmatprep.subr.mxu0 %v24392_v44 }
0x4c59   :  { %20819 = vmatprep.mubr.msk.f32.mxu0 %vm21946_vm9, %v24392_v44 }
0x4d18   :  { %v8819_v53 = vpop.f32.mrf.mxu0 }
0x4d19   :  { %v8823_v52 = vsub.f32 %v22433_v9, %v8819_v53 }
0x4d1a   :  { %v20811_v63 = vpop.f32.mrf.mxu0 }
0x4d1b   :  { %20813 = vmatpush3.msra.mxu1 %v8823_v52 }
0x4d1c   :  { %20815 = vmatmul.mubr.msk.f32.vlgmr.msra.gmra.mxu1 %vm965_vm6, %v8607_v56  ;;  %20822 = vmatprep.subr.mxu1 %v24392_v44 }
0x4d1d   :  { %20824 = vmatprep.mubr.msk.f32.mxu1 %vm21946_vm9, %v24392_v44 }
0x4ddc   :  { %v8893_v51 = vpop.f32.mrf.mxu1 }
0x4ddd   :  { %v8897_v60 = vmul.f32 0.25, %v8893_v51 }
0x4dde   :  { %v20816_v59 = vpop.f32.mrf.mxu1 }
0x4ddf   :  { %20818 = vmatpush3.msra.mxu0 %v8897_v60 }
0x4de0   :  { %20820 = vmatmul.mubr.msk.f32.vlgmr.msra.gmra.mxu0 %vm965_vm6, %v23045_v0  ;;  %20827 = vmatprep.subr.mxu0 %v24392_v44 }
0x4de1   :  { %20829 = vmatprep.mubr.msk.f32.mxu0 %vm21946_vm9, %v24392_v44 }
0x4ea0   :  { %v8964_v61 = vpop.f32.mrf.mxu0 }
0x4ea1   :  { %v8968_v27 = vsub.f32 %v22385_v1, %v8964_v61 }
0x4ea2   :  { %v20821_v40 = vpop.f32.mrf.mxu0 }
0x4ea3   :  { %20823 = vmatpush3.msra.mxu1 %v8968_v27  ;;  %v7769_v27 = vpop.xlane.xlu0 %7768 }
0x4ea4   :  { %20825 = vmatmul.mubr.msk.f32.vlgmr.msra.gmra.mxu1 %vm965_vm6, %v8964_v61  ;;  %20832 = vmatprep.subr.mxu1 %v24392_v44  ;;  %21720 = vrcp.f32 %v7769_v27 }
0x4ea5   :  { %20834 = vmatprep.mubr.msk.f32.mxu1 %vm21946_vm9, %v24392_v44 }
0x4eb1   :  { %v21721_v40 = vpop.eup %21720 }
0x4f64   :  { %v9038_v28 = vpop.f32.mrf.mxu1 }
0x4f65   :  { %v9042_v41 = vsub.f32 %v22420_v3, %v9038_v28 }
0x4f66   :  { %v20826_v16 = vpop.f32.mrf.mxu1 }
0x4f67   :  { %20828 = vmatpush3.msra.mxu0 %v9042_v41 }
0x4f68   :  { %20830 = vmatmul.mubr.msk.f32.vlgmr.msra.gmra.mxu0 %vm965_vm6, %v8964_v61  ;;  %20837 = vmatprep.subr.mxu0 %v24392_v44  ;;  %v23188_v61 = vpack.c.bf16 %v22429_v50, %v22429_v50 }
0x4f69   :  { %20839 = vmatprep.mubr.msk.f32.mxu0 %vm21946_vm9, %v24392_v44 }
0x5028   :  { %v9109_v14 = vpop.f32.mrf.mxu0 }
0x5029   :  { %v9113_v21 = vsub.f32 %v22433_v9, %v9109_v14  ;;  %v7780_v14 = vmul.f32 %v21721_v40, %v23055_v12  ;;  %v23209_v12 = vpack.c.bf16 %v22075_v45, %v22069_v39  ;;  %v23225_v45 = vmul.f32 0.17677669, %v22427_v18 }
0x502a   :  { %v20831_v13 = vpop.f32.mrf.mxu0 }
0x502b   :  { %20833 = vmatpush3.msra.mxu1 %v9113_v21 }
0x502c   :  { %20835 = vmatmul.mubr.msk.f32.vlgmr.msra.gmra.mxu1 %vm965_vm6, %v8897_v60  ;;  %20842 = vmatprep.subr.mxu1 %v24392_v44 }
0x502d   :  { %20844 = vmatprep.mubr.msk.f32.mxu1 %vm21946_vm9, %v24392_v44 }
0x50ec   :  { %v9183_v33 = vpop.f32.mrf.mxu1 }
0x50ed   :  { %v9187_v15 = vmul.f32 0.25, %v9183_v33  ;;  %v10107_v33 = vsel %vm906_vm8, %v23188_v61, 0 }
0x50ee   :  { %v20836_v20 = vpop.f32.mrf.mxu1 }
0x50ef   :  { %20838 = vmatpush3.msra.mxu0 %v9187_v15  ;;  %v23220_v20 = vpack.c.bf16 %v22065_v36, %v22063_v32  ;;  %v7772_v32 = vpop.xlane.xlu0 %7771 }
0x50f0   :  { %20840 = vmatmul.mubr.msk.f32.vlgmr.msra.gmra.mxu0 %vm965_vm6, %v23045_v0  ;;  %20847 = vmatprep.subr.mxu0 %v24392_v44  ;;  %21722 = vrcp.f32 %v7772_v32 }
0x50f1   :  { %20849 = vmatprep.mubr.msk.f32.mxu0 %vm21946_vm9, %v24392_v44  ;;  %v10296_v39 = vsel %vm906_vm8, %v23220_v20, 0 }
0x50f3   :  { %v7775_v36 = vpop.xlane.xlu0 %7774 }
0x50f4   :  { %21724 = vrcp.f32 %v7775_v36 }
0x50fd   :  { %v21723_v18 = vpop.eup %21722 }
0x51b0   :  { %v9254_v34 = vpop.f32.mrf.mxu0 }
0x51b1   :  { %v9258_v57 = vsub.f32 %v22385_v1, %v9254_v34 }
0x51b2   :  { %v20841_v43 = vpop.f32.mrf.mxu0 }
0x51b3   :  { %20843 = vmatpush3.msra.mxu1 %v9258_v57  ;;  %v7778_v57 = vpop.xlane.xlu0 %7777  ;;  %v21725_v43 = vpop.eup %21724 }
0x51b4   :  { %20845 = vmatmul.mubr.msk.f32.vlgmr.msra.gmra.mxu1 %vm965_vm6, %v9254_v34  ;;  %20852 = vmatprep.subr.mxu1 %v24392_v44  ;;  %21726 = vrcp.f32 %v7778_v57 }
0x51b5   :  { %20854 = vmatprep.mubr.msk.f32.mxu1 %vm21946_vm9, %v24392_v44 }
0x5274   :  { %v9328_v56 = vpop.f32.mrf.mxu1 }
0x5275   :  { %v9332_v22 = vsub.f32 %v22420_v3, %v9328_v56 }
0x5276   :  { %v20846_v62 = vpop.f32.mrf.mxu1 }
0x5277   :  { %20848 = vmatpush3.msra.mxu0 %v9332_v22  ;;  %v7782_v22 = vmul.f32 %v21723_v18, %v23059_v49  ;;  %v21727_v62 = vpop.eup %21726 }
0x5278   :  { %20850 = vmatmul.mubr.msk.f32.vlgmr.msra.gmra.mxu0 %vm965_vm6, %v9254_v34  ;;  %20857 = vmatprep.subr.mxu0 %v24392_v44  ;;  %v23230_v34 = vpack.c.bf16 %v23225_v45, %v23225_v45 }
0x5279   :  { %20859 = vmatprep.mubr.msk.f32.mxu0 %vm21946_vm9, %v24392_v44 }
0x5338   :  { %v9399_v46 = vpop.f32.mrf.mxu0 }
0x5339   :  { %v9403_v35 = vsub.f32 %v22433_v9, %v9399_v46 }
0x533a   :  { %v20851_v7 = vpop.f32.mrf.mxu0 }
0x533b   :  { %20853 = vmatpush3.msra.mxu1 %v9403_v35  ;;  %v7784_v35 = vmul.f32 %v21725_v43, %v23063_v8  ;;  %v7786_v7 = vmul.f32 %v21727_v62, %v23074_v30 }
0x533c   :  { %20855 = vmatmul.mubr.msk.f32.vlgmr.msra.gmra.mxu1 %vm965_vm6, %v9187_v15  ;;  %20862 = vmatprep.subr.mxu1 %v24392_v44  ;;  %v10299_v15 = vsel %vm906_vm8, %v23209_v12, 0 }
0x533d   :  { %20864 = vmatprep.mubr.msk.f32.mxu1 %vm21946_vm9, %v24392_v44 }
0x53fc   :  { %v9473_v23 = vpop.f32.mrf.mxu1 }
0x53fd   :  { %v9477_v31 = vmul.f32 0.25, %v9473_v23  ;;  %v23250_v23 = vpack.c.bf16 %v22146_v6, %v22139_v2 }
0x53fe   :  { %v20856_v53 = vpop.f32.mrf.mxu1 }
0x53ff   :  { %20858 = vmatpush3.msra.mxu0 %v9477_v31 }
0x5400   :  { %20860 = vmatmul.mubr.msk.f32.vlgmr.msra.gmra.mxu0 %vm965_vm6, %v23045_v0  ;;  %20867 = vmatprep.subr.mxu0 %v24392_v44 }
0x5401   :  { %20869 = vmatprep.mubr.msk.f32.mxu0 %vm21946_vm9, %v24392_v44 }
0x54c0   :  { %v9544_v52 = vpop.f32.mrf.mxu0 }
0x54c1   :  { %v9548_v63 = vsub.f32 %v22385_v1, %v9544_v52 }
0x54c2   :  { %v20861_v51 = vpop.f32.mrf.mxu0 }
0x54c3   :  { %20863 = vmatpush3.msra.mxu1 %v9548_v63 }
0x54c4   :  { %20865 = vmatmul.mubr.msk.f32.vlgmr.msra.gmra.mxu1 %vm965_vm6, %v9544_v52  ;;  %20872 = vmatprep.subr.mxu1 %v24392_v44 }
0x54c5   :  { %20874 = vmatprep.mubr.msk.f32.mxu1 %vm21946_vm9, %v24392_v44 }
0x5584   :  { %v9618_v60 = vpop.f32.mrf.mxu1 }
0x5585   :  { %v9622_v0 = vsub.f32 %v22420_v3, %v9618_v60 }
0x5586   :  { %v20866_v59 = vpop.f32.mrf.mxu1 }
0x5587   :  { %20868 = vmatpush3.msra.mxu0 %v9622_v0 }
0x5588   :  { %20870 = vmatmul.mubr.msk.f32.vlgmr.msra.gmra.mxu0 %vm965_vm6, %v9544_v52  ;;  %20877 = vmatprep.subr.mxu0 %v24392_v44  ;;  %v24396_v52 = vld [vmem:[#allocation20_spill] sm:$0xff] }
0x5589   :  { %20878 = vmatpush3.msra.mxu0 %v23078_v55  ;;  %20879 = vmatprep.mubr.msk.f32.mxu0 %vm21946_vm9, %v24392_v44  ;;  %v23261_v63 = vpack.c.bf16 %v24396_v52, %v22141_v4 }
0x558a   :  { %21558 = vmatprep.subr.msk.bf16.mxu0 %vm906_vm8, %v23188_v61 }
0x5648   :  { %v9689_v28 = vpop.f32.mrf.mxu0 }
0x5649   :  { %v9693_v41 = vsub.f32 %v22433_v9, %v9689_v28 }
0x564a   :  { %v20871_v16 = vpop.f32.mrf.mxu0 }
0x564b   :  { %20873 = vmatpush3.msra.mxu1 %v9693_v41 }
0x564c   :  { %20875 = vmatmul.mubr.msk.f32.vlgmr.msra.gmra.mxu1 %vm965_vm6, %v9477_v31 }
0x564d   :  { %20884 = vmatprep.mubr.msk.f32.mxu1 %vm965_vm6, %v7780_v14 }
0x570c   :  { %v9763_v55 = vpop.f32.mrf.mxu1 }
0x570d   :  { %v9767_v21 = vmul.f32 0.25, %v9763_v55 }
0x570e   :  { %v20876_v13 = vpop.f32.mrf.mxu1 }
0x570f   :  { %20880 = vmatmul.mubr.msk.f32.vlgmr.msra.gmra.mxu0 %vm965_vm6, %v9767_v21 }
0x5710   :  { %20891 = vmatpush3.bf16.xpose.msra.mxu0 %v10107_v33  ;;  %20892 = vmatprep.mubr.msk.bf16.mxu0 %vm906_vm8, %v22067_v37 }
0x5711   :  { %20901 = vmatprep.subr.bf16.mxu0 %v24392_v44 }
0x5717   :  { %20893 = vmatmul.mubr.msk.bf16.vlgmr.msra.gmra.mxu0 %vm906_vm8, %v22079_v47 }
0x5718   :  { %20902 = vmatpush3.bf16.xpose.msra.mxu0 %v10299_v15  ;;  %20905 = vmatprep.mubr.msk.bf16.mxu0 %vm21946_vm9, %v24392_v44 }
0x5719   :  { %20903 = vmatprep.subr.bf16.mxu0 %v24392_v44 }
0x5720   :  { %20904 = vmatpush3.bf16.xpose.msra.mxu0 %v10296_v39 }
0x5721   :  { %20927 = vmatprep.subr.mxu0 %v24392_v44 }
0x5727   :  { %20906 = vmatmul.mubr.msk.bf16.vlgmr.msra.gmra.mxu0 %vm906_vm8, %v23230_v34 }
0x5728   :  { %20929 = vmatprep.mubr.msk.f32.mxu0 %vm21946_vm9, %v24392_v44 }
0x57cf   :  { %v9837_v56 = vpop.f32.mrf.mxu0 }
0x57d0   :  { %20882 = vmatprep.subr.mxu1 %v9837_v56 }
0x57d1   :  { %v20881_v46 = vpop.f32.mrf.mxu0  ;;  %20883 = vmatpush3.msra.mxu1 %v9837_v56 }
0x57d2   :  { %20885 = vmatmul.mubr.msk.f32.vlgmr.msra.gmra.mxu1 %vm965_vm6, %v7782_v22  ;;  %20896 = vmatprep.subr.mxu1 %v24392_v44 }
0x57d3   :  { %20887 = vmatprep.mubr.msk.f32.mxu1 %vm965_vm6, %v7784_v35  ;;  %20897 = vmatpush3.xpose.msk.msra.mxu1 %vm906_vm8, %v22429_v50 }
0x57d4   :  { %20909 = vmatprep.subr.bf16.mxu1 %v24392_v44 }
0x57d6   :  { %20888 = vmatmul.mubr.msk.f32.gmra.mxu1 %vm965_vm6, %v7786_v7 }
0x57d7   :  { %v20894_v49 = vpop.f32.mrf.mxu0  ;;  %20898 = vmatprep.mubr.msk.f32.mxu1 %vm21946_vm9, %v24392_v44 }
0x57d8   :  { %v10164_v6 = vsel %vm965_vm6, %v20894_v49, -inf }
0x57d9   :  { %v10143_v8 = vpop.f32.mrf.mxu0 }
0x57da   :  { %20899 = vmatmul.mubr.msk.f32.vlgmr.msra.gmra.mxu1 %vm906_vm8, %v23225_v45  ;;  %v10158_v31 = vsel %vm965_vm6, %v10143_v8, -inf }
0x57db   :  { %20910 = vmatpush3.bf16.msra.mxu1 %v23250_v23  ;;  %10159 = vmax.xlane.f32.xlu1 %v10158_v31  ;;  %v20895_v30 = vpop.f32.mrf.mxu0 }
0x57dc   :  { %20911 = vmatprep.subr.bf16.mxu1 %v24392_v44  ;;  %20913 = vmatprep.mubr.msk.bf16.mxu1 %vm21946_vm9, %v24392_v44  ;;  %v10167_v51 = vsel %vm965_vm6, %v20895_v30, -inf }
0x57dd   :  { %v10146_v53 = vpop.f32.mrf.mxu0 }
0x57de   :  { %v10161_v2 = vsel %vm965_vm6, %v10146_v53, -inf }
0x57df   :  { %20912 = vmatpush3.bf16.msra.mxu1 %v23261_v63  ;;  %10162 = vmax.xlane.f32.xlu1 %v10161_v2 }
0x57e0   :  { %20917 = vmatprep.subr.mxu1 %v24392_v44 }
0x57e3   :  { %10165 = vmax.xlane.f32.xlu1 %v10164_v6 }
0x57e7   :  { %v10335_v60 = vpop.f32.mrf.mxu0  ;;  %10168 = vmax.xlane.f32.xlu1 %v10167_v51 }
0x57e9   :  { %v20907_v0 = vpop.f32.mrf.mxu0 }
0x57eb   :  { %v10338_v59 = vpop.f32.mrf.mxu0 }
0x57ed   :  { %v20908_v27 = vpop.f32.mrf.mxu0 }
0x5864   :  { %v10160_v40 = vpop.xlane.xlu1 %10159 }
0x5865   :  { %v10170_v4 = vsub.f32 %v10143_v8, %v10160_v40 }
0x5867   :  { %v10174_v28 = vmul.f32 1.442695, %v10170_v4 }
0x5868   :  { %v10163_v41 = vpop.xlane.xlu1 %10162 }
0x5869   :  { %21728 = vpow2.f32 %v10174_v28  ;;  %v10171_v16 = vsub.f32 %v10146_v53, %v10163_v41  ;;  %v10341_v53 = vsel %vm906_vm8, %v10335_v60, -inf }
0x586b   :  { %v10176_v14 = vmul.f32 1.442695, %v10171_v16 }
0x586c   :  { %v10166_v55 = vpop.xlane.xlu1 %10165 }
0x586d   :  { %21730 = vpow2.f32 %v10176_v14  ;;  %v10172_v21 = vsub.f32 %v20894_v49, %v10166_v55 }
0x586f   :  { %v10178_v13 = vmul.f32 1.442695, %v10172_v21 }
0x5870   :  { %v10169_v33 = vpop.xlane.xlu1 %10168 }
0x5871   :  { %21732 = vpow2.f32 %v10178_v13  ;;  %v10173_v15 = vsub.f32 %v20895_v30, %v10169_v33 }
0x5873   :  { %v10180_v39 = vmul.f32 1.442695, %v10173_v15 }
0x5875   :  { %21734 = vpow2.f32 %v10180_v39 }
0x5876   :  { %v23268_v32 = vpop.eup %21728 }
0x5877   :  { %v10182_v36 = vsel %vm965_vm6, %v23268_v32, 0.0 }
0x5878   :  { %10183 = vadd.xlane.f32.xlu1 %v10182_v36 }
0x587a   :  { %v23272_v57 = vpop.eup %21730 }
0x587b   :  { %v10185_v18 = vsel %vm965_vm6, %v23272_v57, 0.0 }
0x587c   :  { %10186 = vadd.xlane.f32.xlu1 %v10185_v18 }
0x587e   :  { %v23276_v43 = vpop.eup %21732 }
0x587f   :  { %v10188_v56 = vsel %vm965_vm6, %v23276_v43, 0.0 }
0x5880   :  { %10189 = vadd.xlane.f32.xlu1 %v10188_v56 }
0x5882   :  { %v23280_v22 = vpop.eup %21734 }
0x5883   :  { %v10191_v62 = vsel %vm965_vm6, %v23280_v22, 0.0 }
0x5884   :  { %10192 = vadd.xlane.f32.xlu1 %v10191_v62 }
0x5892   :  { %v23284_v46 = vpop.f32.mrf.mxu1 }
0x5894   :  { %v23286_v35 = vpop.f32.mrf.mxu1 }
0x5895   :  { %12457 = vrot.lane.b32.xlu1 %v22429_v50, %s21947_s28 }
0x5896   :  { %v23290_v7 = vpop.f32.mrf.mxu1 }
0x5898   :  { %v23292_v49 = vpop.f32.mrf.mxu1 }
0x5899   :  { %12351 = vrot.lane.b32.xlu1 %v23188_v61, %s21947_s28 }
0x589a   :  { %v10274_v8 = vpop.f32.mrf.mxu1 }
0x589b   :  { %v10278_v31 = vsel %vm965_vm6, %v10274_v8, -inf }
0x589c   :  { %10279 = vmax.xlane.f32.xlu0 %v10278_v31  ;;  %v20900_v30 = vpop.f32.mrf.mxu1 }
0x589d   :  { %12346 = vrot.lane.b32.xlu1 %v22067_v37, %s21947_s28 }
0x58a0   :  { %10342 = vmax.xlane.f32.xlu0 %v10341_v53 }
0x58a1   :  { %12551 = vrot.lane.b32.xlu1 %v23209_v12, %s21947_s28 }
0x58a5   :  { %12348 = vrot.lane.b32.xlu1 %v22079_v47, %s21947_s28 }
0x58a9   :  { %12549 = vrot.lane.b32.xlu1 %v23220_v20, %s21947_s28 }
0x58ad   :  { %12545 = vrot.lane.b32.xlu1 %v23230_v34, %s21947_s28 }
0x5925   :  { %v10280_v52 = vpop.xlane.xlu0 %10279 }
0x5926   :  { %v10281_v2 = vsub.f32 %v10274_v8, %v10280_v52 }
0x5928   :  { %v10282_v6 = vmul.f32 1.442695, %v10281_v2 }
0x5929   :  { %v10343_v51 = vpop.xlane.xlu0 %10342 }
0x592a   :  { %21736 = vpow2.f32 %v10282_v6  ;;  %v10344_v0 = vsub.f32 %v10335_v60, %v10343_v51 }
0x592c   :  { %v10345_v59 = vmul.f32 1.442695, %v10344_v0 }
0x592e   :  { %21738 = vpow2.f32 %v10345_v59 }
0x5937   :  { %v21737_v27 = vpop.eup %21736 }
0x5938   :  { %v10284_v40 = vsel %vm965_vm6, %v21737_v27, 0.0 }
0x5939   :  { %10285 = vadd.xlane.f32.xlu0 %v10284_v40 }
0x593b   :  { %v21739_v4 = vpop.eup %21738 }
0x593c   :  { %v10347_v28 = vsel %vm906_vm8, %v21739_v4, 0.0 }
0x593d   :  { %10348 = vadd.xlane.f32.xlu0 %v10347_v28 }
0x59c2   :  { %v10286_v41 = vpop.xlane.xlu0 %10285 }
0x59c3   :  { %21740 = vrcp.f32 %v10286_v41 }
0x59c6   :  { %v10349_v16 = vpop.xlane.xlu0 %10348 }
0x59c7   :  { %21742 = vrcp.f32 %v10349_v16 }
0x59d0   :  { %v21741_v14 = vpop.eup %21740 }
0x59d1   :  { %v23310_v55 = vmul.f32 %v21741_v14, %v21737_v27 }
0x59d3   :  { %10398 = vxpose.xlu0.b32.start.end [1/1] (short) (narrow) %v23310_v55, 8 }
0x59d4   :  { %v21743_v60 = vpop.eup %21742 }
0x59d5   :  { %v10351_v21 = vmul.f32 %v21743_v60, %v21739_v4 }
0x59d7   :  { %v10352_v13 = vpack.c.bf16 %v10351_v21, %v10351_v21 }
0x59d9   :  { %20914 = vmatmul.mubr.msk.bf16.vlgmr.msra.gmra.mxu1 %vm906_vm8, %v10352_v13 }
0x59da   :  { %20919 = vmatprep.mubr.msk.f32.mxu1 %vm21946_vm9, %v24392_v44 }
0x59fc   :  { %12455 = vrot.lane.b32.xlu0 %v23225_v45, %s21947_s28 }
0x5a4f   :  { %v10414_v33 = vpop.trf.xlu0 }
0x5a50   :  { %v10430_v15 = vmul.f32 %v10414_v33, %v22330_v11 }
0x5a52   :  { %20918 = vmatpush3.msra.mxu1 %v10430_v15 }
0x5a53   :  { %20920 = vmatmul.mubr.msk.f32.vlgmr.msra.gmra.mxu1 %vm965_vm6, %v23310_v55  ;;  %20922 = vmatprep.subr.mxu1 %v24392_v44 }
0x5a54   :  { %20924 = vmatprep.mubr.msk.f32.mxu1 %vm21946_vm9, %v24392_v44 }
0x5a99   :  { %v23324_v39 = vpop.f32.mrf.mxu1 }
0x5a9b   :  { %v20915_v36 = vpop.f32.mrf.mxu1 }
0x5a9d   :  { %v10395_v18 = vpop.f32.mrf.mxu1 }
0x5a9f   :  { %v20916_v56 = vpop.f32.mrf.mxu1 }
0x5b13   :  { %v10500_v62 = vpop.f32.mrf.mxu1 }
0x5b14   :  { %v10504_v8 = vsub.f32 %v22385_v1, %v10500_v62 }
0x5b15   :  { %v20921_v31 = vpop.f32.mrf.mxu1 }
0x5b16   :  { %20923 = vmatpush3.msra.mxu1 %v10504_v8 }
0x5b17   :  { %20925 = vmatmul.mubr.msk.f32.vlgmr.msra.gmra.mxu1 %vm965_vm6, %v10500_v62  ;;  %20932 = vmatprep.subr.mxu1 %v24392_v44 }
0x5b18   :  { %20934 = vmatprep.mubr.msk.f32.mxu1 %vm21946_vm9, %v24392_v44 }
0x5bd7   :  { %v10574_v30 = vpop.f32.mrf.mxu1 }
0x5bd8   :  { %v10578_v53 = vsub.f32 %v22420_v3, %v10574_v30 }
0x5bd9   :  { %v20926_v52 = vpop.f32.mrf.mxu1 }
0x5bda   :  { %20928 = vmatpush3.msra.mxu0 %v10578_v53 }
0x5bdb   :  { %20930 = vmatmul.mubr.msk.f32.vlgmr.msra.gmra.mxu0 %vm965_vm6, %v10500_v62  ;;  %20937 = vmatprep.subr.mxu0 %v24392_v44 }
0x5bdc   :  { %20939 = vmatprep.mubr.msk.f32.mxu0 %vm21946_vm9, %v24392_v44 }
0x5c9b   :  { %v10645_v2 = vpop.f32.mrf.mxu0 }
0x5c9c   :  { %v10649_v6 = vsub.f32 %v22433_v9, %v10645_v2 }
0x5c9d   :  { %v20931_v51 = vpop.f32.mrf.mxu0 }
0x5c9e   :  { %20933 = vmatpush3.msra.mxu1 %v10649_v6 }
0x5c9f   :  { %20935 = vmatmul.mubr.msk.f32.vlgmr.msra.gmra.mxu1 %vm965_vm6, %v10430_v15  ;;  %20942 = vmatprep.subr.mxu1 %v24392_v44 }
0x5ca0   :  { %20944 = vmatprep.mubr.msk.f32.mxu1 %vm21946_vm9, %v24392_v44 }
0x5d5f   :  { %v10719_v0 = vpop.f32.mrf.mxu1 }
0x5d60   :  { %v10723_v59 = vmul.f32 0.25, %v10719_v0 }
0x5d61   :  { %v20936_v27 = vpop.f32.mrf.mxu1 }
0x5d62   :  { %20938 = vmatpush3.msra.mxu0 %v10723_v59 }
0x5d63   :  { %20940 = vmatmul.mubr.msk.f32.vlgmr.msra.gmra.mxu0 %vm965_vm6, %v23310_v55  ;;  %20947 = vmatprep.subr.mxu0 %v24392_v44 }
0x5d64   :  { %20949 = vmatprep.mubr.msk.f32.mxu0 %vm21946_vm9, %v24392_v44 }
0x5e23   :  { %v10790_v40 = vpop.f32.mrf.mxu0 }
0x5e24   :  { %v10794_v4 = vsub.f32 %v22385_v1, %v10790_v40 }
0x5e25   :  { %v20941_v28 = vpop.f32.mrf.mxu0 }
0x5e26   :  { %20943 = vmatpush3.msra.mxu1 %v10794_v4 }
0x5e27   :  { %20945 = vmatmul.mubr.msk.f32.vlgmr.msra.gmra.mxu1 %vm965_vm6, %v10790_v40  ;;  %20952 = vmatprep.subr.mxu1 %v24392_v44 }
0x5e28   :  { %20954 = vmatprep.mubr.msk.f32.mxu1 %vm21946_vm9, %v24392_v44 }
0x5ee7   :  { %v10864_v41 = vpop.f32.mrf.mxu1 }
0x5ee8   :  { %v10868_v16 = vsub.f32 %v22420_v3, %v10864_v41 }
0x5ee9   :  { %v20946_v14 = vpop.f32.mrf.mxu1 }
0x5eea   :  { %20948 = vmatpush3.msra.mxu0 %v10868_v16 }
0x5eeb   :  { %20950 = vmatmul.mubr.msk.f32.vlgmr.msra.gmra.mxu0 %vm965_vm6, %v10790_v40  ;;  %20957 = vmatprep.subr.mxu0 %v24392_v44 }
0x5eec   :  { %20959 = vmatprep.mubr.msk.f32.mxu0 %vm21946_vm9, %v24392_v44 }
0x5fab   :  { %v10935_v60 = vpop.f32.mrf.mxu0 }
0x5fac   :  { %v10939_v21 = vsub.f32 %v22433_v9, %v10935_v60 }
0x5fad   :  { %v20951_v13 = vpop.f32.mrf.mxu0 }
0x5fae   :  { %20953 = vmatpush3.msra.mxu1 %v10939_v21 }
0x5faf   :  { %20955 = vmatmul.mubr.msk.f32.vlgmr.msra.gmra.mxu1 %vm965_vm6, %v10723_v59  ;;  %20962 = vmatprep.subr.mxu1 %v24392_v44 }
0x5fb0   :  { %20964 = vmatprep.mubr.msk.f32.mxu1 %vm21946_vm9, %v24392_v44 }
0x606f   :  { %v11009_v33 = vpop.f32.mrf.mxu1 }
0x6070   :  { %v11013_v15 = vmul.f32 0.25, %v11009_v33 }
0x6071   :  { %v20956_v36 = vpop.f32.mrf.mxu1 }
0x6072   :  { %20958 = vmatpush3.msra.mxu0 %v11013_v15 }
0x6073   :  { %20960 = vmatmul.mubr.msk.f32.vlgmr.msra.gmra.mxu0 %vm965_vm6, %v23310_v55  ;;  %20967 = vmatprep.subr.mxu0 %v24392_v44 }
0x6074   :  { %20969 = vmatprep.mubr.msk.f32.mxu0 %vm21946_vm9, %v24392_v44 }
0x6133   :  { %v11080_v18 = vpop.f32.mrf.mxu0 }
0x6134   :  { %v11084_v56 = vsub.f32 %v22385_v1, %v11080_v18 }
0x6135   :  { %v20961_v62 = vpop.f32.mrf.mxu0 }
0x6136   :  { %20963 = vmatpush3.msra.mxu1 %v11084_v56 }
0x6137   :  { %20965 = vmatmul.mubr.msk.f32.vlgmr.msra.gmra.mxu1 %vm965_vm6, %v11080_v18  ;;  %20972 = vmatprep.subr.mxu1 %v24392_v44 }
0x6138   :  { %20974 = vmatprep.mubr.msk.f32.mxu1 %vm21946_vm9, %v24392_v44 }
0x61f7   :  { %v11154_v8 = vpop.f32.mrf.mxu1 }
0x61f8   :  { %v11158_v31 = vsub.f32 %v22420_v3, %v11154_v8 }
0x61f9   :  { %v20966_v30 = vpop.f32.mrf.mxu1 }
0x61fa   :  { %20968 = vmatpush3.msra.mxu0 %v11158_v31 }
0x61fb   :  { %20970 = vmatmul.mubr.msk.f32.vlgmr.msra.gmra.mxu0 %vm965_vm6, %v11080_v18  ;;  %20977 = vmatprep.subr.mxu0 %v24392_v44 }
0x61fc   :  { %20979 = vmatprep.mubr.msk.f32.mxu0 %vm21946_vm9, %v24392_v44 }
0x62bb   :  { %v11225_v53 = vpop.f32.mrf.mxu0 }
0x62bc   :  { %v11229_v52 = vsub.f32 %v22433_v9, %v11225_v53 }
0x62bd   :  { %v20971_v2 = vpop.f32.mrf.mxu0 }
0x62be   :  { %20973 = vmatpush3.msra.mxu1 %v11229_v52 }
0x62bf   :  { %20975 = vmatmul.mubr.msk.f32.vlgmr.msra.gmra.mxu1 %vm965_vm6, %v11013_v15  ;;  %20982 = vmatprep.subr.mxu1 %v24392_v44 }
0x62c0   :  { %20984 = vmatprep.mubr.msk.f32.mxu1 %vm21946_vm9, %v24392_v44 }
0x637f   :  { %v11299_v6 = vpop.f32.mrf.mxu1 }
0x6380   :  { %v11303_v51 = vmul.f32 0.25, %v11299_v6 }
0x6381   :  { %v20976_v0 = vpop.f32.mrf.mxu1 }
0x6382   :  { %20978 = vmatpush3.msra.mxu0 %v11303_v51 }
0x6383   :  { %20980 = vmatmul.mubr.msk.f32.vlgmr.msra.gmra.mxu0 %vm965_vm6, %v23310_v55  ;;  %20987 = vmatprep.subr.mxu0 %v24392_v44 }
0x6384   :  { %20989 = vmatprep.mubr.msk.f32.mxu0 %vm21946_vm9, %v24392_v44 }
0x6443   :  { %v11370_v59 = vpop.f32.mrf.mxu0 }
0x6444   :  { %v11374_v27 = vsub.f32 %v22385_v1, %v11370_v59 }
0x6445   :  { %v20981_v40 = vpop.f32.mrf.mxu0 }
0x6446   :  { %20983 = vmatpush3.msra.mxu1 %v11374_v27  ;;  %v10184_v27 = vpop.xlane.xlu1 %10183 }
0x6447   :  { %20985 = vmatmul.mubr.msk.f32.vlgmr.msra.gmra.mxu1 %vm965_vm6, %v11370_v59  ;;  %20992 = vmatprep.subr.mxu1 %v24392_v44  ;;  %21744 = vrcp.f32 %v10184_v27 }
0x6448   :  { %20994 = vmatprep.mubr.msk.f32.mxu1 %vm21946_vm9, %v24392_v44 }
0x644a   :  { %v10187_v40 = vpop.xlane.xlu1 %10186 }
0x644b   :  { %21746 = vrcp.f32 %v10187_v40 }
0x6507   :  { %v11444_v4 = vpop.f32.mrf.mxu1 }
0x6508   :  { %v11448_v28 = vsub.f32 %v22420_v3, %v11444_v4 }
0x6509   :  { %v20986_v41 = vpop.f32.mrf.mxu1 }
0x650a   :  { %20988 = vmatpush3.msra.mxu0 %v11448_v28 }
0x650b   :  { %20990 = vmatmul.mubr.msk.f32.vlgmr.msra.gmra.mxu0 %vm965_vm6, %v11370_v59  ;;  %20997 = vmatprep.subr.mxu0 %v24392_v44 }
0x650c   :  { %20999 = vmatprep.mubr.msk.f32.mxu0 %vm21946_vm9, %v24392_v44 }
0x65cb   :  { %v11515_v16 = vpop.f32.mrf.mxu0 }
0x65cc   :  { %v11519_v14 = vsub.f32 %v22433_v9, %v11515_v16 }
0x65cd   :  { %v20991_v60 = vpop.f32.mrf.mxu0 }
0x65ce   :  { %20993 = vmatpush3.msra.mxu1 %v11519_v14 }
0x65cf   :  { %20995 = vmatmul.mubr.msk.f32.vlgmr.msra.gmra.mxu1 %vm965_vm6, %v11303_v51  ;;  %21002 = vmatprep.subr.mxu1 %v24392_v44 }
0x65d0   :  { %21004 = vmatprep.mubr.msk.f32.mxu1 %vm21946_vm9, %v24392_v44 }
0x668f   :  { %v11589_v21 = vpop.f32.mrf.mxu1 }
0x6690   :  { %v11593_v13 = vmul.f32 0.25, %v11589_v21  ;;  %v21745_v21 = vpop.eup %21744 }
0x6691   :  { %v20996_v33 = vpop.f32.mrf.mxu1 }
0x6692   :  { %20998 = vmatpush3.msra.mxu0 %v11593_v13 }
0x6693   :  { %21000 = vmatmul.mubr.msk.f32.vlgmr.msra.gmra.mxu0 %vm965_vm6, %v23310_v55  ;;  %21007 = vmatprep.subr.mxu0 %v24392_v44 }
0x6694   :  { %21009 = vmatprep.mubr.msk.f32.mxu0 %vm21946_vm9, %v24392_v44 }
0x6753   :  { %v11660_v15 = vpop.f32.mrf.mxu0 }
0x6754   :  { %v11664_v36 = vsub.f32 %v22385_v1, %v11660_v15 }
0x6755   :  { %v21001_v18 = vpop.f32.mrf.mxu0 }
0x6756   :  { %21003 = vmatpush3.msra.mxu1 %v11664_v36  ;;  %v10195_v36 = vmul.f32 %v21745_v21, %v23268_v32 }
0x6757   :  { %21005 = vmatmul.mubr.msk.f32.vlgmr.msra.gmra.mxu1 %vm965_vm6, %v11660_v15  ;;  %21012 = vmatprep.subr.mxu1 %v24392_v44 }
0x6758   :  { %21014 = vmatprep.mubr.msk.f32.mxu1 %vm21946_vm9, %v24392_v44 }
0x6817   :  { %v11734_v56 = vpop.f32.mrf.mxu1 }
0x6818   :  { %v11738_v62 = vsub.f32 %v22420_v3, %v11734_v56 }
0x6819   :  { %v21006_v8 = vpop.f32.mrf.mxu1 }
0x681a   :  { %21008 = vmatpush3.msra.mxu0 %v11738_v62 }
0x681b   :  { %21010 = vmatmul.mubr.msk.f32.vlgmr.msra.gmra.mxu0 %vm965_vm6, %v11660_v15  ;;  %21017 = vmatprep.subr.mxu0 %v24392_v44 }
0x681c   :  { %21019 = vmatprep.mubr.msk.f32.mxu0 %vm21946_vm9, %v24392_v44 }
0x68db   :  { %v11805_v31 = vpop.f32.mrf.mxu0 }
0x68dc   :  { %v11809_v30 = vsub.f32 %v22433_v9, %v11805_v31 }
0x68dd   :  { %v21011_v53 = vpop.f32.mrf.mxu0 }
0x68de   :  { %21013 = vmatpush3.msra.mxu1 %v11809_v30 }
0x68df   :  { %21015 = vmatmul.mubr.msk.f32.vlgmr.msra.gmra.mxu1 %vm965_vm6, %v11593_v13  ;;  %21022 = vmatprep.subr.mxu1 %v24392_v44 }
0x68e0   :  { %21024 = vmatprep.mubr.msk.f32.mxu1 %vm21946_vm9, %v24392_v44 }
0x699f   :  { %v11879_v52 = vpop.f32.mrf.mxu1 }
0x69a0   :  { %v11883_v2 = vmul.f32 0.25, %v11879_v52 }
0x69a1   :  { %v21016_v6 = vpop.f32.mrf.mxu1 }
0x69a2   :  { %21018 = vmatpush3.msra.mxu0 %v11883_v2  ;;  %v21747_v6 = vpop.eup %21746 }
0x69a3   :  { %21020 = vmatmul.mubr.msk.f32.vlgmr.msra.gmra.mxu0 %vm965_vm6, %v23310_v55  ;;  %21027 = vmatprep.subr.mxu0 %v24392_v44  ;;  %v10190_v55 = vpop.xlane.xlu1 %10189 }
0x69a4   :  { %21029 = vmatprep.mubr.msk.f32.mxu0 %vm21946_vm9, %v24392_v44  ;;  %21748 = vrcp.f32 %v10190_v55 }
0x69a7   :  { %v10193_v4 = vpop.xlane.xlu1 %10192 }
0x69a8   :  { %21750 = vrcp.f32 %v10193_v4 }
0x69ab   :  { %v12458_v28 = vpop.permute.xlu1 %12457 }
0x69af   :  { %v12352_v60 = vpop.permute.xlu1 %12351 }
0x69b0   :  { %v12360_v8 = vsel %vm906_vm8, %v12352_v60, 0 }
0x69b3   :  { %v12347_v18 = vpop.permute.xlu1 %12346 }
0x69b7   :  { %v12552_v31 = vpop.permute.xlu1 %12551 }
0x69b8   :  { %v12560_v32 = vsel %vm906_vm8, %v12552_v31, 0 }
0x69bb   :  { %v12349_v30 = vpop.permute.xlu1 %12348 }
0x69bf   :  { %v12550_v53 = vpop.permute.xlu1 %12549 }
0x69c0   :  { %v12557_v52 = vsel %vm906_vm8, %v12550_v53, 0 }
0x6a63   :  { %v11950_v51 = vpop.f32.mrf.mxu0 }
0x6a64   :  { %v11954_v0 = vsub.f32 %v22385_v1, %v11950_v51 }
0x6a65   :  { %v21021_v59 = vpop.f32.mrf.mxu0 }
0x6a66   :  { %21023 = vmatpush3.msra.mxu1 %v11954_v0  ;;  %v10197_v59 = vmul.f32 %v21747_v6, %v23272_v57  ;;  %v12456_v57 = vpop.permute.xlu0 %12455 }
0x6a67   :  { %21025 = vmatmul.mubr.msk.f32.vlgmr.msra.gmra.mxu1 %vm965_vm6, %v11950_v51  ;;  %21032 = vmatprep.subr.mxu1 %v24392_v44 }
0x6a68   :  { %21034 = vmatprep.mubr.msk.f32.mxu1 %vm21946_vm9, %v24392_v44 }
0x6b27   :  { %v12024_v41 = vpop.f32.mrf.mxu1 }
0x6b28   :  { %v12028_v16 = vsub.f32 %v22420_v3, %v12024_v41 }
0x6b29   :  { %v21026_v14 = vpop.f32.mrf.mxu1 }
0x6b2a   :  { %21028 = vmatpush3.msra.mxu0 %v12028_v16 }
0x6b2b   :  { %21030 = vmatmul.mubr.msk.f32.vlgmr.msra.gmra.mxu0 %vm965_vm6, %v11950_v51  ;;  %21037 = vmatprep.subr.mxu0 %v24392_v44  ;;  %v21749_v51 = vpop.eup %21748 }
0x6b2c   :  { %21038 = vmatpush3.msra.mxu0 %v23324_v39  ;;  %21039 = vmatprep.mubr.msk.f32.mxu0 %vm21946_vm9, %v24392_v44  ;;  %v21751_v27 = vpop.eup %21750  ;;  %v10199_v16 = vmul.f32 %v21749_v51, %v23276_v43 }
0x6b2d   :  { %21559 = vmatprep.subr.msk.bf16.mxu0 %vm906_vm8, %v12352_v60  ;;  %v10201_v40 = vmul.f32 %v21751_v27, %v23280_v22 }
0x6beb   :  { %v12095_v13 = vpop.f32.mrf.mxu0 }
0x6bec   :  { %v12099_v33 = vsub.f32 %v22433_v9, %v12095_v13 }
0x6bed   :  { %v21031_v15 = vpop.f32.mrf.mxu0 }
0x6bee   :  { %21033 = vmatpush3.msra.mxu1 %v12099_v33 }
0x6bef   :  { %21035 = vmatmul.mubr.msk.f32.vlgmr.msra.gmra.mxu1 %vm965_vm6, %v11883_v2  ;;  %v12546_v2 = vpop.permute.xlu1 %12545 }
0x6bf0   :  { %21044 = vmatprep.mubr.msk.f32.mxu1 %vm965_vm6, %v10195_v36 }
0x6caf   :  { %v12169_v39 = vpop.f32.mrf.mxu1 }
0x6cb0   :  { %v12173_v56 = vmul.f32 0.25, %v12169_v39 }
0x6cb1   :  { %v21036_v62 = vpop.f32.mrf.mxu1 }
0x6cb2   :  { %21040 = vmatmul.mubr.msk.f32.vlgmr.msra.gmra.mxu0 %vm965_vm6, %v12173_v56 }
0x6cb3   :  { %21051 = vmatpush3.bf16.xpose.msra.mxu0 %v12360_v8  ;;  %21052 = vmatprep.mubr.msk.bf16.mxu0 %vm906_vm8, %v12347_v18 }
0x6cb4   :  { %21061 = vmatprep.subr.bf16.mxu0 %v24392_v44 }
0x6cba   :  { %21053 = vmatmul.mubr.msk.bf16.vlgmr.msra.gmra.mxu0 %vm906_vm8, %v12349_v30 }
0x6cbb   :  { %21062 = vmatpush3.bf16.xpose.msra.mxu0 %v12560_v32  ;;  %21065 = vmatprep.mubr.msk.bf16.mxu0 %vm21946_vm9, %v24392_v44 }
0x6cbc   :  { %21063 = vmatprep.subr.bf16.mxu0 %v24392_v44 }
0x6cc3   :  { %21064 = vmatpush3.bf16.xpose.msra.mxu0 %v12557_v52 }
0x6cc4   :  { %21087 = vmatprep.subr.mxu0 %v24392_v44 }
0x6cca   :  { %21066 = vmatmul.mubr.msk.bf16.vlgmr.msra.gmra.mxu0 %vm906_vm8, %v12546_v2 }
0x6ccb   :  { %21089 = vmatprep.mubr.msk.f32.mxu0 %vm21946_vm9, %v24392_v44 }
0x6d72   :  { %v12243_v0 = vpop.f32.mrf.mxu0 }
0x6d73   :  { %21042 = vmatprep.subr.mxu1 %v12243_v0 }
0x6d74   :  { %v21041_v41 = vpop.f32.mrf.mxu0  ;;  %21043 = vmatpush3.msra.mxu1 %v12243_v0 }
0x6d75   :  { %21045 = vmatmul.mubr.msk.f32.vlgmr.msra.gmra.mxu1 %vm965_vm6, %v10197_v59  ;;  %21056 = vmatprep.subr.mxu1 %v24392_v44 }
0x6d76   :  { %21047 = vmatprep.mubr.msk.f32.mxu1 %vm965_vm6, %v10199_v16  ;;  %21057 = vmatpush3.xpose.msk.msra.mxu1 %vm906_vm8, %v12458_v28 }
0x6d77   :  { %21069 = vmatprep.subr.bf16.mxu1 %v24392_v44 }
0x6d79   :  { %21048 = vmatmul.mubr.msk.f32.gmra.mxu1 %vm965_vm6, %v10201_v40 }
0x6d7a   :  { %21058 = vmatprep.mubr.msk.f32.mxu1 %vm21946_vm9, %v24392_v44  ;;  %v21054_v55 = vpop.f32.mrf.mxu0 }
0x6d7b   :  { %v12417_v36 = vsel %vm965_vm6, %v21054_v55, -inf }
0x6d7c   :  { %v23470_v43 = vpop.f32.mrf.mxu0 }
0x6d7d   :  { %21059 = vmatmul.mubr.msk.f32.vlgmr.msra.gmra.mxu1 %vm906_vm8, %v12456_v57  ;;  %v12411_v33 = vsel %vm965_vm6, %v23470_v43, -inf }
0x6d7e   :  { %21073 = vmatprep.mubr.msk.bf16.mxu1 %vm21946_vm9, %v24392_v44  ;;  %v21055_v4 = vpop.f32.mrf.mxu0 }
0x6d7f   :  { %v12420_v18 = vsel %vm965_vm6, %v21055_v4, -inf }
0x6d80   :  { %v12399_v28 = vpop.f32.mrf.mxu0 }
0x6d81   :  { %v12414_v15 = vsel %vm965_vm6, %v12399_v28, -inf }
0x6d8a   :  { %v12596_v14 = vpop.f32.mrf.mxu0 }
0x6d8b   :  { %v12602_v22 = vsel %vm906_vm8, %v12596_v14, -inf }
0x6d8c   :  { %12603 = vmax.xlane.f32.xlu0 %v12602_v22  ;;  %v21067_v60 = vpop.f32.mrf.mxu0 }
0x6d8e   :  { %v12599_v21 = vpop.f32.mrf.mxu0 }
0x6d90   :  { %v21068_v13 = vpop.f32.mrf.mxu0 }
0x6da2   :  { %12618 = vrot.lane.b32.xlu0 %v23250_v23, %s21947_s28 }
0x6dc1   :  { %12412 = vmax.xlane.f32.xlu0 %v12411_v33 }
0x6dc5   :  { %12415 = vmax.xlane.f32.xlu0 %v12414_v15 }
0x6dc9   :  { %12418 = vmax.xlane.f32.xlu0 %v12417_v36 }
0x6dcd   :  { %12421 = vmax.xlane.f32.xlu0 %v12420_v18 }
0x6e15   :  { %v12604_v39 = vpop.xlane.xlu0 %12603 }
0x6e19   :  { %v12619_v56 = vpop.permute.xlu0 %12618 }
0x6e1a   :  { %21070 = vmatpush3.bf16.msra.mxu1 %v12619_v56 }
0x6e1b   :  { %21071 = vmatprep.subr.bf16.mxu1 %v24392_v44 }
0x6e35   :  { %v23481_v62 = vpop.f32.mrf.mxu1 }
0x6e37   :  { %v23483_v8 = vpop.f32.mrf.mxu1 }
0x6e39   :  { %v23485_v31 = vpop.f32.mrf.mxu1 }
0x6e3b   :  { %v23487_v30 = vpop.f32.mrf.mxu1 }
0x6e3d   :  { %v12529_v32 = vpop.f32.mrf.mxu1 }
0x6e3e   :  { %v12533_v53 = vsel %vm965_vm6, %v12529_v32, -inf }
0x6e3f   :  { %12534 = vmax.xlane.f32.xlu1 %v12533_v53  ;;  %v21060_v52 = vpop.f32.mrf.mxu1 }
0x6e4a   :  { %v12413_v2 = vpop.xlane.xlu0 %12412 }
0x6e4e   :  { %v12416_v6 = vpop.xlane.xlu0 %12415 }
0x6e4f   :  { %v12424_v51 = vsub.f32 %v12399_v28, %v12416_v6 }
0x6e51   :  { %v12429_v0 = vmul.f32 1.442695, %v12424_v51 }
0x6e52   :  { %v12419_v59 = vpop.xlane.xlu0 %12418 }
0x6e53   :  { %21752 = vpow2.f32 %v12429_v0  ;;  %v12425_v27 = vsub.f32 %v21054_v55, %v12419_v59 }
0x6e55   :  { %v12431_v41 = vmul.f32 1.442695, %v12425_v27 }
0x6e56   :  { %v12422_v16 = vpop.xlane.xlu0 %12421 }
0x6e57   :  { %21754 = vpow2.f32 %v12431_v41  ;;  %v12426_v40 = vsub.f32 %v21055_v4, %v12422_v16  ;;  %v12605_v4 = vsub.f32 %v12596_v14, %v12604_v39  ;;  %v12423_v16 = vsub.f32 %v23470_v43, %v12413_v2 }
0x6e59   :  { %v12433_v57 = vmul.f32 1.442695, %v12426_v40  ;;  %v12606_v36 = vmul.f32 1.442695, %v12605_v4  ;;  %v12427_v40 = vmul.f32 1.442695, %v12423_v16 }
0x6e5b   :  { %21756 = vpow2.f32 %v12433_v57 }
0x6e60   :  { %v23490_v22 = vpop.eup %21752 }
0x6e61   :  { %v12438_v60 = vsel %vm965_vm6, %v23490_v22, 0.0 }
0x6e62   :  { %12439 = vadd.xlane.f32.xlu0 %v12438_v60 }
0x6e64   :  { %v23494_v21 = vpop.eup %21754 }
0x6e65   :  { %v12441_v28 = vsel %vm965_vm6, %v23494_v21, 0.0 }
0x6e66   :  { %12442 = vadd.xlane.f32.xlu0 %v12441_v28 }
0x6e68   :  { %v23498_v13 = vpop.eup %21756 }
0x6e69   :  { %v12444_v55 = vsel %vm965_vm6, %v23498_v13, 0.0 }
0x6e6a   :  { %12445 = vadd.xlane.f32.xlu0 %v12444_v55 }
0x6e80   :  { %14721 = vrot.lane.b32.xlu0 %v22429_v50, %s21942_s23 }
0x6e84   :  { %14719 = vrot.lane.b32.xlu0 %v23225_v45, %s21942_s23 }
0x6e88   :  { %14611 = vrot.lane.b32.xlu0 %v22067_v37, %s21942_s23 }
0x6e8c   :  { %14812 = vrot.lane.b32.xlu0 %v23209_v12, %s21942_s23 }
0x6e90   :  { %14613 = vrot.lane.b32.xlu0 %v22079_v47, %s21942_s23 }
0x6e94   :  { %14810 = vrot.lane.b32.xlu0 %v23220_v20, %s21942_s23 }
0x6ec8   :  { %v12535_v33 = vpop.xlane.xlu1 %12534 }
0x6ec9   :  { %v12536_v15 = vsub.f32 %v12529_v32, %v12535_v33 }
0x6ecb   :  { %v12537_v18 = vmul.f32 1.442695, %v12536_v15 }
0x6ecd   :  { %21758 = vpow2.f32 %v12537_v18 }
0x6ece   :  { %21760 = vpow2.f32 %v12606_v36 }
0x6eda   :  { %v21759_v56 = vpop.eup %21758 }
0x6edb   :  { %v12539_v53 = vsel %vm965_vm6, %v21759_v56, 0.0  ;;  %v21761_v52 = vpop.eup %21760 }
0x6edc   :  { %12540 = vadd.xlane.f32.xlu1 %v12539_v53  ;;  %v12608_v6 = vsel %vm906_vm8, %v21761_v52, 0.0 }
0x6ee0   :  { %12609 = vadd.xlane.f32.xlu1 %v12608_v6 }
0x6ef1   :  { %12616 = vrot.lane.b32.xlu1 %v23261_v63, %s21947_s28 }
0x6f65   :  { %v12541_v51 = vpop.xlane.xlu1 %12540 }
0x6f66   :  { %21762 = vrcp.f32 %v12541_v51 }
0x6f69   :  { %v12610_v14 = vpop.xlane.xlu1 %12609 }
0x6f6a   :  { %21764 = vrcp.f32 %v12610_v14 }
0x6f6b   :  { %21766 = vpow2.f32 %v12427_v40 }
0x6f6d   :  { %v12617_v39 = vpop.permute.xlu1 %12616 }
0x6f6e   :  { %21072 = vmatpush3.bf16.msra.mxu1 %v12617_v39 }
0x6f6f   :  { %21077 = vmatprep.subr.mxu1 %v24392_v44 }
0x6f73   :  { %v21763_v32 = vpop.eup %21762 }
0x6f74   :  { %v23519_v0 = vmul.f32 %v21763_v32, %v21759_v56 }
0x6f76   :  { %12665 = vxpose.xlu1.b32.start.end [1/1] (short) (narrow) %v23519_v0, 8 }
0x6f77   :  { %v21765_v59 = vpop.eup %21764 }
0x6f78   :  { %v12612_v27 = vmul.f32 %v21765_v59, %v21761_v52  ;;  %v23526_v57 = vpop.eup %21766 }
0x6f79   :  { %v12435_v60 = vsel %vm965_vm6, %v23526_v57, 0.0 }
0x6f7a   :  { %v12613_v41 = vpack.c.bf16 %v12612_v27, %v12612_v27 }
0x6f7c   :  { %21074 = vmatmul.mubr.msk.bf16.vlgmr.msra.gmra.mxu1 %vm906_vm8, %v12613_v41 }
0x6f7d   :  { %21079 = vmatprep.mubr.msk.f32.mxu1 %vm21946_vm9, %v24392_v44 }
0x6f9d   :  { %12436 = vadd.xlane.f32.xlu1 %v12435_v60 }
0x6fae   :  { %14615 = vrot.lane.b32.xlu1 %v23188_v61, %s21942_s23 }
0x6fb2   :  { %14808 = vrot.lane.b32.xlu1 %v23230_v34, %s21942_s23 }
0x6ff2   :  { %v12681_v28 = vpop.trf.xlu1 }
0x6ff3   :  { %v12697_v55 = vmul.f32 %v12681_v28, %v22330_v11 }
0x6ff5   :  { %21078 = vmatpush3.msra.mxu1 %v12697_v55 }
0x6ff6   :  { %21080 = vmatmul.mubr.msk.f32.vlgmr.msra.gmra.mxu1 %vm965_vm6, %v23519_v0  ;;  %21082 = vmatprep.subr.mxu1 %v24392_v44 }
0x6ff7   :  { %21084 = vmatprep.mubr.msk.f32.mxu1 %vm21946_vm9, %v24392_v44 }
0x703c   :  { %v23540_v43 = vpop.f32.mrf.mxu1 }
0x703e   :  { %v21075_v2 = vpop.f32.mrf.mxu1 }
0x7040   :  { %v12662_v4 = vpop.f32.mrf.mxu1 }
0x7042   :  { %v21076_v33 = vpop.f32.mrf.mxu1 }
0x70b6   :  { %v12767_v15 = vpop.f32.mrf.mxu1 }
0x70b7   :  { %v12771_v36 = vsub.f32 %v22385_v1, %v12767_v15 }
0x70b8   :  { %v21081_v18 = vpop.f32.mrf.mxu1 }
0x70b9   :  { %21083 = vmatpush3.msra.mxu1 %v12771_v36 }
0x70ba   :  { %21085 = vmatmul.mubr.msk.f32.vlgmr.msra.gmra.mxu1 %vm965_vm6, %v12767_v15  ;;  %21092 = vmatprep.subr.mxu1 %v24392_v44 }
0x70bb   :  { %21094 = vmatprep.mubr.msk.f32.mxu1 %vm21946_vm9, %v24392_v44 }
0x717a   :  { %v12841_v56 = vpop.f32.mrf.mxu1 }
0x717b   :  { %v12845_v53 = vsub.f32 %v22420_v3, %v12841_v56 }
0x717c   :  { %v21086_v52 = vpop.f32.mrf.mxu1 }
0x717d   :  { %21088 = vmatpush3.msra.mxu0 %v12845_v53 }
0x717e   :  { %21090 = vmatmul.mubr.msk.f32.vlgmr.msra.gmra.mxu0 %vm965_vm6, %v12767_v15  ;;  %21097 = vmatprep.subr.mxu0 %v24392_v44 }
0x717f   :  { %21099 = vmatprep.mubr.msk.f32.mxu0 %vm21946_vm9, %v24392_v44 }
0x723e   :  { %v12912_v6 = vpop.f32.mrf.mxu0 }
0x723f   :  { %v12916_v51 = vsub.f32 %v22433_v9, %v12912_v6 }
0x7240   :  { %v21091_v14 = vpop.f32.mrf.mxu0 }
0x7241   :  { %21093 = vmatpush3.msra.mxu1 %v12916_v51 }
0x7242   :  { %21095 = vmatmul.mubr.msk.f32.vlgmr.msra.gmra.mxu1 %vm965_vm6, %v12697_v55  ;;  %21102 = vmatprep.subr.mxu1 %v24392_v44 }
0x7243   :  { %21104 = vmatprep.mubr.msk.f32.mxu1 %vm21946_vm9, %v24392_v44 }
0x7302   :  { %v12986_v39 = vpop.f32.mrf.mxu1 }
0x7303   :  { %v12990_v32 = vmul.f32 0.25, %v12986_v39 }
0x7304   :  { %v21096_v59 = vpop.f32.mrf.mxu1 }
0x7305   :  { %21098 = vmatpush3.msra.mxu0 %v12990_v32 }
0x7306   :  { %21100 = vmatmul.mubr.msk.f32.vlgmr.msra.gmra.mxu0 %vm965_vm6, %v23519_v0  ;;  %21107 = vmatprep.subr.mxu0 %v24392_v44 }
0x7307   :  { %21109 = vmatprep.mubr.msk.f32.mxu0 %vm21946_vm9, %v24392_v44 }
0x73c6   :  { %v13057_v27 = vpop.f32.mrf.mxu0 }
0x73c7   :  { %v13061_v41 = vsub.f32 %v22385_v1, %v13057_v27 }
0x73c8   :  { %v21101_v16 = vpop.f32.mrf.mxu0 }
0x73c9   :  { %21103 = vmatpush3.msra.mxu1 %v13061_v41 }
0x73ca   :  { %21105 = vmatmul.mubr.msk.f32.vlgmr.msra.gmra.mxu1 %vm965_vm6, %v13057_v27  ;;  %21112 = vmatprep.subr.mxu1 %v24392_v44 }
0x73cb   :  { %21114 = vmatprep.mubr.msk.f32.mxu1 %vm21946_vm9, %v24392_v44 }
0x748a   :  { %v13131_v40 = vpop.f32.mrf.mxu1 }
0x748b   :  { %v13135_v60 = vsub.f32 %v22420_v3, %v13131_v40 }
0x748c   :  { %v21106_v28 = vpop.f32.mrf.mxu1 }
0x748d   :  { %21108 = vmatpush3.msra.mxu0 %v13135_v60 }
0x748e   :  { %21110 = vmatmul.mubr.msk.f32.vlgmr.msra.gmra.mxu0 %vm965_vm6, %v13057_v27  ;;  %21117 = vmatprep.subr.mxu0 %v24392_v44 }
0x748f   :  { %21119 = vmatprep.mubr.msk.f32.mxu0 %vm21946_vm9, %v24392_v44 }
0x754e   :  { %v13202_v55 = vpop.f32.mrf.mxu0 }
0x754f   :  { %v13206_v2 = vsub.f32 %v22433_v9, %v13202_v55 }
0x7550   :  { %v21111_v4 = vpop.f32.mrf.mxu0 }
0x7551   :  { %21113 = vmatpush3.msra.mxu1 %v13206_v2 }
0x7552   :  { %21115 = vmatmul.mubr.msk.f32.vlgmr.msra.gmra.mxu1 %vm965_vm6, %v12990_v32  ;;  %21122 = vmatprep.subr.mxu1 %v24392_v44 }
0x7553   :  { %21124 = vmatprep.mubr.msk.f32.mxu1 %vm21946_vm9, %v24392_v44 }
0x7612   :  { %v13276_v33 = vpop.f32.mrf.mxu1 }
0x7613   :  { %v13280_v15 = vmul.f32 0.25, %v13276_v33 }
0x7614   :  { %v21116_v36 = vpop.f32.mrf.mxu1 }
0x7615   :  { %21118 = vmatpush3.msra.mxu0 %v13280_v15 }
0x7616   :  { %21120 = vmatmul.mubr.msk.f32.vlgmr.msra.gmra.mxu0 %vm965_vm6, %v23519_v0  ;;  %21127 = vmatprep.subr.mxu0 %v24392_v44 }
0x7617   :  { %21129 = vmatprep.mubr.msk.f32.mxu0 %vm21946_vm9, %v24392_v44 }
0x76d6   :  { %v13347_v18 = vpop.f32.mrf.mxu0 }
0x76d7   :  { %v13351_v56 = vsub.f32 %v22385_v1, %v13347_v18 }
0x76d8   :  { %v21121_v53 = vpop.f32.mrf.mxu0 }
0x76d9   :  { %21123 = vmatpush3.msra.mxu1 %v13351_v56 }
0x76da   :  { %21125 = vmatmul.mubr.msk.f32.vlgmr.msra.gmra.mxu1 %vm965_vm6, %v13347_v18  ;;  %21132 = vmatprep.subr.mxu1 %v24392_v44 }
0x76db   :  { %21134 = vmatprep.mubr.msk.f32.mxu1 %vm21946_vm9, %v24392_v44 }
0x779a   :  { %v13421_v52 = vpop.f32.mrf.mxu1 }
0x779b   :  { %v13425_v6 = vsub.f32 %v22420_v3, %v13421_v52 }
0x779c   :  { %v21126_v51 = vpop.f32.mrf.mxu1 }
0x779d   :  { %21128 = vmatpush3.msra.mxu0 %v13425_v6 }
0x779e   :  { %21130 = vmatmul.mubr.msk.f32.vlgmr.msra.gmra.mxu0 %vm965_vm6, %v13347_v18  ;;  %21137 = vmatprep.subr.mxu0 %v24392_v44 }
0x779f   :  { %21139 = vmatprep.mubr.msk.f32.mxu0 %vm21946_vm9, %v24392_v44 }
0x785e   :  { %v13492_v14 = vpop.f32.mrf.mxu0 }
0x785f   :  { %v13496_v39 = vsub.f32 %v22433_v9, %v13492_v14 }
0x7860   :  { %v21131_v32 = vpop.f32.mrf.mxu0 }
0x7861   :  { %21133 = vmatpush3.msra.mxu1 %v13496_v39 }
0x7862   :  { %21135 = vmatmul.mubr.msk.f32.vlgmr.msra.gmra.mxu1 %vm965_vm6, %v13280_v15  ;;  %21142 = vmatprep.subr.mxu1 %v24392_v44 }
0x7863   :  { %21144 = vmatprep.mubr.msk.f32.mxu1 %vm21946_vm9, %v24392_v44 }
0x7922   :  { %v13566_v59 = vpop.f32.mrf.mxu1 }
0x7923   :  { %v13570_v27 = vmul.f32 0.25, %v13566_v59 }
0x7924   :  { %v21136_v41 = vpop.f32.mrf.mxu1 }
0x7925   :  { %21138 = vmatpush3.msra.mxu0 %v13570_v27 }
0x7926   :  { %21140 = vmatmul.mubr.msk.f32.vlgmr.msra.gmra.mxu0 %vm965_vm6, %v23519_v0  ;;  %21147 = vmatprep.subr.mxu0 %v24392_v44 }
0x7927   :  { %21149 = vmatprep.mubr.msk.f32.mxu0 %vm21946_vm9, %v24392_v44 }
0x79e6   :  { %v13637_v16 = vpop.f32.mrf.mxu0 }
0x79e7   :  { %v13641_v40 = vsub.f32 %v22385_v1, %v13637_v16 }
0x79e8   :  { %v21141_v60 = vpop.f32.mrf.mxu0 }
0x79e9   :  { %21143 = vmatpush3.msra.mxu1 %v13641_v40 }
0x79ea   :  { %21145 = vmatmul.mubr.msk.f32.vlgmr.msra.gmra.mxu1 %vm965_vm6, %v13637_v16  ;;  %21152 = vmatprep.subr.mxu1 %v24392_v44 }
0x79eb   :  { %21154 = vmatprep.mubr.msk.f32.mxu1 %vm21946_vm9, %v24392_v44 }
0x7aaa   :  { %v13711_v28 = vpop.f32.mrf.mxu1 }
0x7aab   :  { %v13715_v55 = vsub.f32 %v22420_v3, %v13711_v28 }
0x7aac   :  { %v21146_v2 = vpop.f32.mrf.mxu1 }
0x7aad   :  { %21148 = vmatpush3.msra.mxu0 %v13715_v55  ;;  %v12437_v2 = vpop.xlane.xlu1 %12436 }
0x7aae   :  { %21150 = vmatmul.mubr.msk.f32.vlgmr.msra.gmra.mxu0 %vm965_vm6, %v13637_v16  ;;  %21157 = vmatprep.subr.mxu0 %v24392_v44  ;;  %21768 = vrcp.f32 %v12437_v2 }
0x7aaf   :  { %21159 = vmatprep.mubr.msk.f32.mxu0 %vm21946_vm9, %v24392_v44 }
0x7b6e   :  { %v13782_v4 = vpop.f32.mrf.mxu0 }
0x7b6f   :  { %v13786_v33 = vsub.f32 %v22433_v9, %v13782_v4 }
0x7b70   :  { %v21151_v15 = vpop.f32.mrf.mxu0 }
0x7b71   :  { %21153 = vmatpush3.msra.mxu1 %v13786_v33  ;;  %v14616_v15 = vpop.permute.xlu1 %14615 }
0x7b72   :  { %21155 = vmatmul.mubr.msk.f32.vlgmr.msra.gmra.mxu1 %vm965_vm6, %v13570_v27  ;;  %21162 = vmatprep.subr.mxu1 %v24392_v44 }
0x7b73   :  { %21164 = vmatprep.mubr.msk.f32.mxu1 %vm21946_vm9, %v24392_v44 }
0x7b75   :  { %v14809_v2 = vpop.permute.xlu1 %14808 }
0x7c32   :  { %v13856_v36 = vpop.f32.mrf.mxu1 }
0x7c33   :  { %v13860_v18 = vmul.f32 0.25, %v13856_v36  ;;  %v21769_v36 = vpop.eup %21768 }
0x7c34   :  { %v21156_v56 = vpop.f32.mrf.mxu1 }
0x7c35   :  { %21158 = vmatpush3.msra.mxu0 %v13860_v18 }
0x7c36   :  { %21160 = vmatmul.mubr.msk.f32.vlgmr.msra.gmra.mxu0 %vm965_vm6, %v23519_v0  ;;  %21167 = vmatprep.subr.mxu0 %v24392_v44 }
0x7c37   :  { %21169 = vmatprep.mubr.msk.f32.mxu0 %vm21946_vm9, %v24392_v44 }
0x7cf6   :  { %v13927_v53 = vpop.f32.mrf.mxu0 }
0x7cf7   :  { %v13931_v52 = vsub.f32 %v22385_v1, %v13927_v53 }
0x7cf8   :  { %v21161_v6 = vpop.f32.mrf.mxu0 }
0x7cf9   :  { %21163 = vmatpush3.msra.mxu1 %v13931_v52  ;;  %v12448_v52 = vmul.f32 %v21769_v36, %v23526_v57  ;;  %v12440_v6 = vpop.xlane.xlu0 %12439 }
0x7cfa   :  { %21165 = vmatmul.mubr.msk.f32.vlgmr.msra.gmra.mxu1 %vm965_vm6, %v13927_v53  ;;  %21172 = vmatprep.subr.mxu1 %v24392_v44  ;;  %21770 = vrcp.f32 %v12440_v6 }
0x7cfb   :  { %21174 = vmatprep.mubr.msk.f32.mxu1 %vm21946_vm9, %v24392_v44 }
0x7dba   :  { %v14001_v51 = vpop.f32.mrf.mxu1 }
0x7dbb   :  { %v14005_v14 = vsub.f32 %v22420_v3, %v14001_v51 }
0x7dbc   :  { %v21166_v39 = vpop.f32.mrf.mxu1 }
0x7dbd   :  { %21168 = vmatpush3.msra.mxu0 %v14005_v14 }
0x7dbe   :  { %21170 = vmatmul.mubr.msk.f32.vlgmr.msra.gmra.mxu0 %vm965_vm6, %v13927_v53  ;;  %21177 = vmatprep.subr.mxu0 %v24392_v44 }
0x7dbf   :  { %21179 = vmatprep.mubr.msk.f32.mxu0 %vm21946_vm9, %v24392_v44 }
0x7e7e   :  { %v14072_v32 = vpop.f32.mrf.mxu0 }
0x7e7f   :  { %v14076_v59 = vsub.f32 %v22433_v9, %v14072_v32 }
0x7e80   :  { %v21171_v27 = vpop.f32.mrf.mxu0 }
0x7e81   :  { %21173 = vmatpush3.msra.mxu1 %v14076_v59 }
0x7e82   :  { %21175 = vmatmul.mubr.msk.f32.vlgmr.msra.gmra.mxu1 %vm965_vm6, %v13860_v18  ;;  %21182 = vmatprep.subr.mxu1 %v24392_v44 }
0x7e83   :  { %21184 = vmatprep.mubr.msk.f32.mxu1 %vm21946_vm9, %v24392_v44 }
0x7f42   :  { %v14146_v41 = vpop.f32.mrf.mxu1 }
0x7f43   :  { %v14150_v16 = vmul.f32 0.25, %v14146_v41 }
0x7f44   :  { %v21176_v40 = vpop.f32.mrf.mxu1 }
0x7f45   :  { %21178 = vmatpush3.msra.mxu0 %v14150_v16  ;;  %v14624_v40 = vsel %vm906_vm8, %v14616_v15, 0 }
0x7f46   :  { %21180 = vmatmul.mubr.msk.f32.vlgmr.msra.gmra.mxu0 %vm965_vm6, %v23519_v0  ;;  %21187 = vmatprep.subr.mxu0 %v24392_v44 }
0x7f47   :  { %21189 = vmatprep.mubr.msk.f32.mxu0 %vm21946_vm9, %v24392_v44 }
0x8006   :  { %v14217_v60 = vpop.f32.mrf.mxu0 }
0x8007   :  { %v14221_v28 = vsub.f32 %v22385_v1, %v14217_v60 }
0x8008   :  { %v21181_v55 = vpop.f32.mrf.mxu0 }
0x8009   :  { %21183 = vmatpush3.msra.mxu1 %v14221_v28 }
0x800a   :  { %21185 = vmatmul.mubr.msk.f32.vlgmr.msra.gmra.mxu1 %vm965_vm6, %v14217_v60  ;;  %21192 = vmatprep.subr.mxu1 %v24392_v44 }
0x800b   :  { %21194 = vmatprep.mubr.msk.f32.mxu1 %vm21946_vm9, %v24392_v44 }
0x80ca   :  { %v14291_v4 = vpop.f32.mrf.mxu1 }
0x80cb   :  { %v14295_v0 = vsub.f32 %v22420_v3, %v14291_v4  ;;  %v21771_v4 = vpop.eup %21770 }
0x80cc   :  { %v21186_v33 = vpop.f32.mrf.mxu1 }
0x80cd   :  { %21188 = vmatpush3.msra.mxu0 %v14295_v0 }
0x80ce   :  { %21190 = vmatmul.mubr.msk.f32.vlgmr.msra.gmra.mxu0 %vm965_vm6, %v14217_v60  ;;  %21197 = vmatprep.subr.mxu0 %v24392_v44 }
0x80cf   :  { %21198 = vmatpush3.msra.mxu0 %v23540_v43  ;;  %21199 = vmatprep.mubr.msk.f32.mxu0 %vm21946_vm9, %v24392_v44  ;;  %v12443_v43 = vpop.xlane.xlu0 %12442 }
0x80d0   :  { %21560 = vmatprep.subr.msk.bf16.mxu0 %vm906_vm8, %v14616_v15  ;;  %21772 = vrcp.f32 %v12443_v43  ;;  %v12450_v15 = vmul.f32 %v21771_v4, %v23490_v22 }
0x80d3   :  { %v12446_v51 = vpop.xlane.xlu0 %12445 }
0x80d4   :  { %21774 = vrcp.f32 %v12446_v51 }
0x80d7   :  { %v14722_v14 = vpop.permute.xlu0 %14721 }
0x80db   :  { %v14720_v39 = vpop.permute.xlu0 %14719 }
0x80dd   :  { %v21773_v0 = vpop.eup %21772 }
0x80df   :  { %v14612_v32 = vpop.permute.xlu0 %14611 }
0x80e1   :  { %v21775_v36 = vpop.eup %21774 }
0x80e3   :  { %v14813_v60 = vpop.permute.xlu0 %14812 }
0x80e7   :  { %v14614_v57 = vpop.permute.xlu0 %14613 }
0x80eb   :  { %v14811_v28 = vpop.permute.xlu0 %14810 }
0x80ec   :  { %v14818_v55 = vsel %vm906_vm8, %v14811_v28, 0 }
0x818e   :  { %v14362_v18 = vpop.f32.mrf.mxu0 }
0x818f   :  { %v14366_v56 = vsub.f32 %v22433_v9, %v14362_v18 }
0x8190   :  { %v21191_v53 = vpop.f32.mrf.mxu0 }
0x8191   :  { %21193 = vmatpush3.msra.mxu1 %v14366_v56  ;;  %v12452_v56 = vmul.f32 %v21773_v0, %v23494_v21  ;;  %v12454_v53 = vmul.f32 %v21775_v36, %v23498_v13 }
0x8192   :  { %21195 = vmatmul.mubr.msk.f32.vlgmr.msra.gmra.mxu1 %vm965_vm6, %v14150_v16  ;;  %v14821_v16 = vsel %vm906_vm8, %v14813_v60, 0 }
0x8193   :  { %21204 = vmatprep.mubr.msk.f32.mxu1 %vm965_vm6, %v12448_v52 }
0x8252   :  { %v14436_v59 = vpop.f32.mrf.mxu1 }
0x8253   :  { %v14440_v27 = vmul.f32 0.25, %v14436_v59 }
0x8254   :  { %v21196_v41 = vpop.f32.mrf.mxu1 }
0x8255   :  { %21200 = vmatmul.mubr.msk.f32.vlgmr.msra.gmra.mxu0 %vm965_vm6, %v14440_v27 }
0x8256   :  { %21211 = vmatpush3.bf16.xpose.msra.mxu0 %v14624_v40  ;;  %21212 = vmatprep.mubr.msk.bf16.mxu0 %vm906_vm8, %v14612_v32 }
0x8257   :  { %21221 = vmatprep.subr.bf16.mxu0 %v24392_v44 }
0x825d   :  { %21213 = vmatmul.mubr.msk.bf16.vlgmr.msra.gmra.mxu0 %vm906_vm8, %v14614_v57 }
0x825e   :  { %21222 = vmatpush3.bf16.xpose.msra.mxu0 %v14821_v16  ;;  %21225 = vmatprep.mubr.msk.bf16.mxu0 %vm21946_vm9, %v24392_v44 }
0x825f   :  { %21223 = vmatprep.subr.bf16.mxu0 %v24392_v44 }
0x8266   :  { %21224 = vmatpush3.bf16.xpose.msra.mxu0 %v14818_v55 }
0x8267   :  { %21247 = vmatprep.subr.mxu0 %v24392_v44 }
0x826d   :  { %21226 = vmatmul.mubr.msk.bf16.vlgmr.msra.gmra.mxu0 %vm906_vm8, %v14809_v2 }
0x826e   :  { %21249 = vmatprep.mubr.msk.f32.mxu0 %vm21946_vm9, %v24392_v44 }
0x8315   :  { %v14510_v33 = vpop.f32.mrf.mxu0 }
0x8316   :  { %21202 = vmatprep.subr.mxu1 %v14510_v33 }
0x8317   :  { %v21201_v18 = vpop.f32.mrf.mxu0  ;;  %21203 = vmatpush3.msra.mxu1 %v14510_v33 }
0x8318   :  { %21205 = vmatmul.mubr.msk.f32.vlgmr.msra.gmra.mxu1 %vm965_vm6, %v12450_v15  ;;  %21216 = vmatprep.subr.mxu1 %v24392_v44 }
0x8319   :  { %21207 = vmatprep.mubr.msk.f32.mxu1 %vm965_vm6, %v12452_v56  ;;  %21217 = vmatpush3.xpose.msk.msra.mxu1 %vm906_vm8, %v14722_v14 }
0x831a   :  { %21229 = vmatprep.subr.bf16.mxu1 %v24392_v44 }
0x831c   :  { %21208 = vmatmul.mubr.msk.f32.gmra.mxu1 %vm965_vm6, %v12454_v53 }
0x831d   :  { %21218 = vmatprep.mubr.msk.f32.mxu1 %vm21946_vm9, %v24392_v44  ;;  %v23683_v22 = vpop.f32.mrf.mxu0 }
0x831f   :  { %v14660_v21 = vpop.f32.mrf.mxu0 }
0x8320   :  { %21219 = vmatmul.mubr.msk.f32.vlgmr.msra.gmra.mxu1 %vm906_vm8, %v14720_v39  ;;  %v14675_v53 = vsel %vm965_vm6, %v14660_v21, -inf }
0x8321   :  { %21233 = vmatprep.mubr.msk.bf16.mxu1 %vm21946_vm9, %v24392_v44  ;;  %v23688_v52 = vpop.f32.mrf.mxu0 }
0x8323   :  { %v23690_v6 = vpop.f32.mrf.mxu0 }
0x832d   :  { %v14857_v13 = vpop.f32.mrf.mxu0 }
0x832e   :  { %v14863_v43 = vsel %vm906_vm8, %v14857_v13, -inf }
0x832f   :  { %14864 = vmax.xlane.f32.xlu1 %v14863_v43  ;;  %v21227_v51 = vpop.f32.mrf.mxu0  ;;  %v14681_v43 = vsel %vm965_vm6, %v23683_v22, -inf }
0x8331   :  { %v14860_v14 = vpop.f32.mrf.mxu0 }
0x8333   :  { %v21228_v32 = vpop.f32.mrf.mxu0 }
0x8340   :  { %14877 = vrot.lane.b32.xlu1 %v23250_v23, %s21942_s23 }
0x83b8   :  { %v14865_v59 = vpop.xlane.xlu1 %14864 }
0x83b9   :  { %v14866_v55 = vsub.f32 %v14857_v13, %v14865_v59  ;;  %v14678_v13 = vsel %vm965_vm6, %v23690_v6, -inf }
0x83bb   :  { %v14867_v0 = vmul.f32 1.442695, %v14866_v55  ;;  %v14684_v55 = vsel %vm965_vm6, %v23688_v52, -inf }
0x83bc   :  { %v14878_v39 = vpop.permute.xlu1 %14877 }
0x83bd   :  { %21230 = vmatpush3.bf16.msra.mxu1 %v14878_v39 }
0x83be   :  { %21231 = vmatprep.subr.bf16.mxu1 %v24392_v44 }
0x83d8   :  { %v23696_v27 = vpop.f32.mrf.mxu1 }
0x83da   :  { %v23698_v41 = vpop.f32.mrf.mxu1 }
0x83dc   :  { %v23700_v40 = vpop.f32.mrf.mxu1 }
0x83de   :  { %v23702_v60 = vpop.f32.mrf.mxu1 }
0x83e0   :  { %v14793_v57 = vpop.f32.mrf.mxu1 }
0x83e1   :  { %v14797_v16 = vsel %vm965_vm6, %v14793_v57, -inf }
0x83e2   :  { %14798 = vmax.xlane.f32.xlu0 %v14797_v16  ;;  %v21220_v28 = vpop.f32.mrf.mxu1 }
0x846b   :  { %v14799_v2 = vpop.xlane.xlu0 %14798 }
0x846c   :  { %v14800_v4 = vsub.f32 %v14793_v57, %v14799_v2 }
0x846e   :  { %v14801_v33 = vmul.f32 1.442695, %v14800_v4 }
0x8470   :  { %21776 = vpow2.f32 %v14801_v33 }
0x8471   :  { %21778 = vpow2.f32 %v14867_v0 }
0x847d   :  { %v21777_v15 = vpop.eup %21776 }
0x847e   :  { %v14803_v36 = vsel %vm965_vm6, %v21777_v15, 0.0  ;;  %v21779_v18 = vpop.eup %21778 }
0x847f   :  { %14804 = vadd.xlane.f32.xlu0 %v14803_v36  ;;  %v14869_v56 = vsel %vm906_vm8, %v21779_v18, 0.0 }
0x8483   :  { %14870 = vadd.xlane.f32.xlu0 %v14869_v56 }
0x8499   :  { %14875 = vrot.lane.b32.xlu0 %v23261_v63, %s21942_s23 }
0x84b8   :  { %14676 = vmax.xlane.f32.xlu0 %v14675_v53 }
0x84bc   :  { %14679 = vmax.xlane.f32.xlu0 %v14678_v13 }
0x84c0   :  { %14682 = vmax.xlane.f32.xlu0 %v14681_v43 }
0x8508   :  { %v14805_v51 = vpop.xlane.xlu0 %14804 }
0x8509   :  { %21780 = vrcp.f32 %v14805_v51 }
0x850c   :  { %v14871_v14 = vpop.xlane.xlu0 %14870 }
0x850d   :  { %21782 = vrcp.f32 %v14871_v14 }
0x8510   :  { %v14876_v32 = vpop.permute.xlu0 %14875 }
0x8511   :  { %21232 = vmatpush3.bf16.msra.mxu1 %v14876_v32 }
0x8512   :  { %21237 = vmatprep.subr.mxu1 %v24392_v44 }
0x8516   :  { %v21781_v59 = vpop.eup %21780 }
0x8517   :  { %v23715_v39 = vmul.f32 %v21781_v59, %v21777_v15 }
0x8519   :  { %14924 = vxpose.xlu1.b32.start.end [1/1] (short) (narrow) %v23715_v39, 8 }
0x851a   :  { %v21783_v57 = vpop.eup %21782 }
0x851b   :  { %v14873_v16 = vmul.f32 %v21783_v57, %v21779_v18 }
0x851d   :  { %v14874_v28 = vpack.c.bf16 %v14873_v16, %v14873_v16 }
0x851f   :  { %21234 = vmatmul.mubr.msk.bf16.vlgmr.msra.gmra.mxu1 %vm906_vm8, %v14874_v28 }
0x8520   :  { %21239 = vmatprep.mubr.msk.f32.mxu1 %vm21946_vm9, %v24392_v44 }
0x8540   :  { %14685 = vmax.xlane.f32.xlu1 %v14684_v55 }
0x8541   :  { %v14677_v2 = vpop.xlane.xlu0 %14676 }
0x8542   :  { %v14687_v4 = vsub.f32 %v14660_v21, %v14677_v2 }
0x8544   :  { %v14691_v0 = vmul.f32 1.442695, %v14687_v4 }
0x8545   :  { %v14680_v33 = vpop.xlane.xlu0 %14679 }
0x8546   :  { %21784 = vpow2.f32 %v14691_v0  ;;  %v14688_v15 = vsub.f32 %v23690_v6, %v14680_v33 }
0x8548   :  { %v14693_v36 = vmul.f32 1.442695, %v14688_v15 }
0x8549   :  { %v14683_v56 = vpop.xlane.xlu0 %14682 }
0x854a   :  { %21786 = vpow2.f32 %v14693_v36  ;;  %v14689_v18 = vsub.f32 %v23683_v22, %v14683_v56 }
0x854c   :  { %v14695_v53 = vmul.f32 1.442695, %v14689_v18 }
0x854e   :  { %21788 = vpow2.f32 %v14695_v53 }
0x8551   :  { %16978 = vrot.lane.b32.xlu1 %v23225_v45, %s21948_s29 }
0x8553   :  { %v23727_v13 = vpop.eup %21784 }
0x8554   :  { %v14699_v21 = vsel %vm965_vm6, %v23727_v13, 0.0 }
0x8555   :  { %17069 = vrot.lane.b32.xlu1 %v23220_v20, %s21948_s29  ;;  %14700 = vadd.xlane.f32.xlu0 %v14699_v21 }
0x8557   :  { %v23733_v6 = vpop.eup %21786 }
0x8558   :  { %v14702_v43 = vsel %vm965_vm6, %v23733_v6, 0.0 }
0x8559   :  { %14703 = vadd.xlane.f32.xlu0 %v14702_v43 }
0x855b   :  { %v23737_v22 = vpop.eup %21788 }
0x855c   :  { %v14705_v45 = vsel %vm965_vm6, %v23737_v22, 0.0 }
0x855d   :  { %14706 = vadd.xlane.f32.xlu0 %v14705_v45 }
0x8595   :  { %v14940_v51 = vpop.trf.xlu1 }
0x8596   :  { %v14956_v14 = vmul.f32 %v14940_v51, %v22330_v11 }
0x8598   :  { %21238 = vmatpush3.msra.mxu1 %v14956_v14 }
0x8599   :  { %21240 = vmatmul.mubr.msk.f32.vlgmr.msra.gmra.mxu1 %vm965_vm6, %v23715_v39  ;;  %21242 = vmatprep.subr.mxu1 %v24392_v44 }
0x859a   :  { %21244 = vmatprep.mubr.msk.f32.mxu1 %vm21946_vm9, %v24392_v44 }
0x85c9   :  { %v14686_v20 = vpop.xlane.xlu1 %14685 }
0x85ca   :  { %v14690_v32 = vsub.f32 %v23688_v52, %v14686_v20 }
0x85cc   :  { %v14697_v59 = vmul.f32 1.442695, %v14690_v32 }
0x85ce   :  { %21790 = vpow2.f32 %v14697_v59 }
0x85db   :  { %v23748_v57 = vpop.eup %21790 }
0x85dc   :  { %v14708_v16 = vsel %vm965_vm6, %v23748_v57, 0.0 }
0x85dd   :  { %14709 = vadd.xlane.f32.xlu0 %v14708_v16 }
0x85df   :  { %v23752_v28 = vpop.f32.mrf.mxu1 }
0x85e1   :  { %v21235_v55 = vpop.f32.mrf.mxu1 }
0x85e3   :  { %v14921_v2 = vpop.f32.mrf.mxu1 }
0x85e5   :  { %v21236_v4 = vpop.f32.mrf.mxu1 }
0x85f3   :  { %16980 = vrot.lane.b32.xlu0 %v22429_v50, %s21948_s29 }
0x85f7   :  { %16874 = vrot.lane.b32.xlu0 %v23188_v61, %s21948_s29 }
0x85fb   :  { %16870 = vrot.lane.b32.xlu0 %v22067_v37, %s21948_s29 }
0x85ff   :  { %17071 = vrot.lane.b32.xlu0 %v23209_v12, %s21948_s29 }
0x8603   :  { %16872 = vrot.lane.b32.xlu0 %v22079_v47, %s21948_s29 }
0x8607   :  { %17067 = vrot.lane.b32.xlu0 %v23230_v34, %s21948_s29 }
0x8659   :  { %v15026_v52 = vpop.f32.mrf.mxu1 }
0x865a   :  { %v15030_v0 = vsub.f32 %v22385_v1, %v15026_v52 }
0x865b   :  { %v21241_v33 = vpop.f32.mrf.mxu1 }
0x865c   :  { %21243 = vmatpush3.msra.mxu1 %v15030_v0 }
0x865d   :  { %21245 = vmatmul.mubr.msk.f32.vlgmr.msra.gmra.mxu1 %vm965_vm6, %v15026_v52  ;;  %21252 = vmatprep.subr.mxu1 %v24392_v44 }
0x865e   :  { %21254 = vmatprep.mubr.msk.f32.mxu1 %vm21946_vm9, %v24392_v44 }
0x871d   :  { %v15100_v37 = vpop.f32.mrf.mxu1 }
0x871e   :  { %v15104_v50 = vsub.f32 %v22420_v3, %v15100_v37 }
0x871f   :  { %v21246_v61 = vpop.f32.mrf.mxu1 }
0x8720   :  { %21248 = vmatpush3.msra.mxu0 %v15104_v50 }
0x8721   :  { %21250 = vmatmul.mubr.msk.f32.vlgmr.msra.gmra.mxu0 %vm965_vm6, %v15026_v52  ;;  %21257 = vmatprep.subr.mxu0 %v24392_v44 }
0x8722   :  { %21259 = vmatprep.mubr.msk.f32.mxu0 %vm21946_vm9, %v24392_v44 }
0x87e1   :  { %v15171_v47 = vpop.f32.mrf.mxu0 }
0x87e2   :  { %v15175_v12 = vsub.f32 %v22433_v9, %v15171_v47 }
0x87e3   :  { %v21251_v34 = vpop.f32.mrf.mxu0 }
0x87e4   :  { %21253 = vmatpush3.msra.mxu1 %v15175_v12 }
0x87e5   :  { %21255 = vmatmul.mubr.msk.f32.vlgmr.msra.gmra.mxu1 %vm965_vm6, %v14956_v14  ;;  %21262 = vmatprep.subr.mxu1 %v24392_v44 }
0x87e6   :  { %21264 = vmatprep.mubr.msk.f32.mxu1 %vm21946_vm9, %v24392_v44 }
0x88a5   :  { %v15245_v15 = vpop.f32.mrf.mxu1 }
0x88a6   :  { %v15249_v36 = vmul.f32 0.25, %v15245_v15 }
0x88a7   :  { %v21256_v56 = vpop.f32.mrf.mxu1 }
0x88a8   :  { %21258 = vmatpush3.msra.mxu0 %v15249_v36 }
0x88a9   :  { %21260 = vmatmul.mubr.msk.f32.vlgmr.msra.gmra.mxu0 %vm965_vm6, %v23715_v39  ;;  %21267 = vmatprep.subr.mxu0 %v24392_v44 }
0x88aa   :  { %21269 = vmatprep.mubr.msk.f32.mxu0 %vm21946_vm9, %v24392_v44 }
0x8969   :  { %v15316_v18 = vpop.f32.mrf.mxu0 }
0x896a   :  { %v15320_v53 = vsub.f32 %v22385_v1, %v15316_v18 }
0x896b   :  { %v21261_v21 = vpop.f32.mrf.mxu0 }
0x896c   :  { %21263 = vmatpush3.msra.mxu1 %v15320_v53 }
0x896d   :  { %21265 = vmatmul.mubr.msk.f32.vlgmr.msra.gmra.mxu1 %vm965_vm6, %v15316_v18  ;;  %21272 = vmatprep.subr.mxu1 %v24392_v44 }
0x896e   :  { %21274 = vmatprep.mubr.msk.f32.mxu1 %vm21946_vm9, %v24392_v44 }
0x8a2d   :  { %v15390_v43 = vpop.f32.mrf.mxu1 }
0x8a2e   :  { %v15394_v45 = vsub.f32 %v22420_v3, %v15390_v43 }
0x8a2f   :  { %v21266_v51 = vpop.f32.mrf.mxu1 }
0x8a30   :  { %21268 = vmatpush3.msra.mxu0 %v15394_v45 }
0x8a31   :  { %21270 = vmatmul.mubr.msk.f32.vlgmr.msra.gmra.mxu0 %vm965_vm6, %v15316_v18  ;;  %21277 = vmatprep.subr.mxu0 %v24392_v44 }
0x8a32   :  { %21279 = vmatprep.mubr.msk.f32.mxu0 %vm21946_vm9, %v24392_v44 }
0x8af1   :  { %v15461_v14 = vpop.f32.mrf.mxu0 }
0x8af2   :  { %v15465_v20 = vsub.f32 %v22433_v9, %v15461_v14 }
0x8af3   :  { %v21271_v32 = vpop.f32.mrf.mxu0 }
0x8af4   :  { %21273 = vmatpush3.msra.mxu1 %v15465_v20 }
0x8af5   :  { %21275 = vmatmul.mubr.msk.f32.vlgmr.msra.gmra.mxu1 %vm965_vm6, %v15249_v36  ;;  %21282 = vmatprep.subr.mxu1 %v24392_v44 }
0x8af6   :  { %21284 = vmatprep.mubr.msk.f32.mxu1 %vm21946_vm9, %v24392_v44 }
0x8bb5   :  { %v15535_v59 = vpop.f32.mrf.mxu1 }
0x8bb6   :  { %v15539_v16 = vmul.f32 0.25, %v15535_v59 }
0x8bb7   :  { %v21276_v55 = vpop.f32.mrf.mxu1 }
0x8bb8   :  { %21278 = vmatpush3.msra.mxu0 %v15539_v16 }
0x8bb9   :  { %21280 = vmatmul.mubr.msk.f32.vlgmr.msra.gmra.mxu0 %vm965_vm6, %v23715_v39  ;;  %21287 = vmatprep.subr.mxu0 %v24392_v44 }
0x8bba   :  { %21289 = vmatprep.mubr.msk.f32.mxu0 %vm21946_vm9, %v24392_v44 }
0x8c79   :  { %v15606_v2 = vpop.f32.mrf.mxu0 }
0x8c7a   :  { %v15610_v4 = vsub.f32 %v22385_v1, %v15606_v2 }
0x8c7b   :  { %v21281_v52 = vpop.f32.mrf.mxu0 }
0x8c7c   :  { %21283 = vmatpush3.msra.mxu1 %v15610_v4 }
0x8c7d   :  { %21285 = vmatmul.mubr.msk.f32.vlgmr.msra.gmra.mxu1 %vm965_vm6, %v15606_v2  ;;  %21292 = vmatprep.subr.mxu1 %v24392_v44 }
0x8c7e   :  { %21294 = vmatprep.mubr.msk.f32.mxu1 %vm21946_vm9, %v24392_v44 }
0x8d3d   :  { %v15680_v0 = vpop.f32.mrf.mxu1 }
0x8d3e   :  { %v15684_v33 = vsub.f32 %v22420_v3, %v15680_v0 }
0x8d3f   :  { %v21286_v37 = vpop.f32.mrf.mxu1 }
0x8d40   :  { %21288 = vmatpush3.msra.mxu0 %v15684_v33 }
0x8d41   :  { %21290 = vmatmul.mubr.msk.f32.vlgmr.msra.gmra.mxu0 %vm965_vm6, %v15606_v2  ;;  %21297 = vmatprep.subr.mxu0 %v24392_v44 }
0x8d42   :  { %21299 = vmatprep.mubr.msk.f32.mxu0 %vm21946_vm9, %v24392_v44 }
0x8e01   :  { %v15751_v50 = vpop.f32.mrf.mxu0 }
0x8e02   :  { %v15755_v61 = vsub.f32 %v22433_v9, %v15751_v50 }
0x8e03   :  { %v21291_v47 = vpop.f32.mrf.mxu0 }
0x8e04   :  { %21293 = vmatpush3.msra.mxu1 %v15755_v61 }
0x8e05   :  { %21295 = vmatmul.mubr.msk.f32.vlgmr.msra.gmra.mxu1 %vm965_vm6, %v15539_v16  ;;  %21302 = vmatprep.subr.mxu1 %v24392_v44 }
0x8e06   :  { %21304 = vmatprep.mubr.msk.f32.mxu1 %vm21946_vm9, %v24392_v44 }
0x8ec5   :  { %v15825_v12 = vpop.f32.mrf.mxu1 }
0x8ec6   :  { %v15829_v34 = vmul.f32 0.25, %v15825_v12 }
0x8ec7   :  { %v21296_v15 = vpop.f32.mrf.mxu1 }
0x8ec8   :  { %21298 = vmatpush3.msra.mxu0 %v15829_v34 }
0x8ec9   :  { %21300 = vmatmul.mubr.msk.f32.vlgmr.msra.gmra.mxu0 %vm965_vm6, %v23715_v39  ;;  %21307 = vmatprep.subr.mxu0 %v24392_v44 }
0x8eca   :  { %21309 = vmatprep.mubr.msk.f32.mxu0 %vm21946_vm9, %v24392_v44 }
0x8f89   :  { %v15896_v36 = vpop.f32.mrf.mxu0 }
0x8f8a   :  { %v15900_v56 = vsub.f32 %v22385_v1, %v15896_v36 }
0x8f8b   :  { %v21301_v18 = vpop.f32.mrf.mxu0 }
0x8f8c   :  { %21303 = vmatpush3.msra.mxu1 %v15900_v56  ;;  %v14701_v56 = vpop.xlane.xlu0 %14700 }
0x8f8d   :  { %21305 = vmatmul.mubr.msk.f32.vlgmr.msra.gmra.mxu1 %vm965_vm6, %v15896_v36  ;;  %21312 = vmatprep.subr.mxu1 %v24392_v44  ;;  %21792 = vrcp.f32 %v14701_v56 }
0x8f8e   :  { %21314 = vmatprep.mubr.msk.f32.mxu1 %vm21946_vm9, %v24392_v44 }
0x8f90   :  { %v14704_v18 = vpop.xlane.xlu0 %14703 }
0x8f91   :  { %21794 = vrcp.f32 %v14704_v18 }
0x904d   :  { %v15970_v53 = vpop.f32.mrf.mxu1 }
0x904e   :  { %v15974_v21 = vsub.f32 %v22420_v3, %v15970_v53 }
0x904f   :  { %v21306_v43 = vpop.f32.mrf.mxu1 }
0x9050   :  { %21308 = vmatpush3.msra.mxu0 %v15974_v21 }
0x9051   :  { %21310 = vmatmul.mubr.msk.f32.vlgmr.msra.gmra.mxu0 %vm965_vm6, %v15896_v36  ;;  %21317 = vmatprep.subr.mxu0 %v24392_v44 }
0x9052   :  { %21319 = vmatprep.mubr.msk.f32.mxu0 %vm21946_vm9, %v24392_v44 }
0x9111   :  { %v16041_v45 = vpop.f32.mrf.mxu0 }
0x9112   :  { %v16045_v51 = vsub.f32 %v22433_v9, %v16041_v45 }
0x9113   :  { %v21311_v14 = vpop.f32.mrf.mxu0 }
0x9114   :  { %21313 = vmatpush3.msra.mxu1 %v16045_v51 }
0x9115   :  { %21315 = vmatmul.mubr.msk.f32.vlgmr.msra.gmra.mxu1 %vm965_vm6, %v15829_v34  ;;  %21322 = vmatprep.subr.mxu1 %v24392_v44 }
0x9116   :  { %21324 = vmatprep.mubr.msk.f32.mxu1 %vm21946_vm9, %v24392_v44 }
0x91d5   :  { %v16115_v20 = vpop.f32.mrf.mxu1 }
0x91d6   :  { %v16119_v32 = vmul.f32 0.25, %v16115_v20  ;;  %v21793_v20 = vpop.eup %21792 }
0x91d7   :  { %v21316_v59 = vpop.f32.mrf.mxu1 }
0x91d8   :  { %21318 = vmatpush3.msra.mxu0 %v16119_v32 }
0x91d9   :  { %21320 = vmatmul.mubr.msk.f32.vlgmr.msra.gmra.mxu0 %vm965_vm6, %v23715_v39  ;;  %21327 = vmatprep.subr.mxu0 %v24392_v44 }
0x91da   :  { %21329 = vmatprep.mubr.msk.f32.mxu0 %vm21946_vm9, %v24392_v44 }
0x9299   :  { %v16186_v16 = vpop.f32.mrf.mxu0 }
0x929a   :  { %v16190_v55 = vsub.f32 %v22385_v1, %v16186_v16 }
0x929b   :  { %v21321_v2 = vpop.f32.mrf.mxu0 }
0x929c   :  { %21323 = vmatpush3.msra.mxu1 %v16190_v55  ;;  %v14712_v55 = vmul.f32 %v21793_v20, %v23727_v13 }
0x929d   :  { %21325 = vmatmul.mubr.msk.f32.vlgmr.msra.gmra.mxu1 %vm965_vm6, %v16186_v16  ;;  %21332 = vmatprep.subr.mxu1 %v24392_v44 }
0x929e   :  { %21334 = vmatprep.mubr.msk.f32.mxu1 %vm21946_vm9, %v24392_v44 }
0x935d   :  { %v16260_v4 = vpop.f32.mrf.mxu1 }
0x935e   :  { %v16264_v52 = vsub.f32 %v22420_v3, %v16260_v4 }
0x935f   :  { %v21326_v0 = vpop.f32.mrf.mxu1 }
0x9360   :  { %21328 = vmatpush3.msra.mxu0 %v16264_v52 }
0x9361   :  { %21330 = vmatmul.mubr.msk.f32.vlgmr.msra.gmra.mxu0 %vm965_vm6, %v16186_v16  ;;  %21337 = vmatprep.subr.mxu0 %v24392_v44 }
0x9362   :  { %21339 = vmatprep.mubr.msk.f32.mxu0 %vm21946_vm9, %v24392_v44 }
0x9421   :  { %v16331_v33 = vpop.f32.mrf.mxu0 }
0x9422   :  { %v16335_v37 = vsub.f32 %v22433_v9, %v16331_v33 }
0x9423   :  { %v21331_v50 = vpop.f32.mrf.mxu0 }
0x9424   :  { %21333 = vmatpush3.msra.mxu1 %v16335_v37  ;;  %v16979_v37 = vpop.permute.xlu1 %16978 }
0x9425   :  { %21335 = vmatmul.mubr.msk.f32.vlgmr.msra.gmra.mxu1 %vm965_vm6, %v16119_v32  ;;  %21342 = vmatprep.subr.mxu1 %v24392_v44 }
0x9426   :  { %21344 = vmatprep.mubr.msk.f32.mxu1 %vm21946_vm9, %v24392_v44 }
0x94e5   :  { %v16405_v61 = vpop.f32.mrf.mxu1 }
0x94e6   :  { %v16409_v47 = vmul.f32 0.25, %v16405_v61  ;;  %v17070_v61 = vpop.permute.xlu1 %17069 }
0x94e7   :  { %v21336_v12 = vpop.f32.mrf.mxu1 }
0x94e8   :  { %21338 = vmatpush3.msra.mxu0 %v16409_v47 }
0x94e9   :  { %21340 = vmatmul.mubr.msk.f32.vlgmr.msra.gmra.mxu0 %vm965_vm6, %v23715_v39  ;;  %21347 = vmatprep.subr.mxu0 %v24392_v44  ;;  %v14707_v39 = vpop.xlane.xlu0 %14706 }
0x94ea   :  { %21349 = vmatprep.mubr.msk.f32.mxu0 %vm21946_vm9, %v24392_v44  ;;  %21796 = vrcp.f32 %v14707_v39 }
0x94ed   :  { %v14710_v53 = vpop.xlane.xlu0 %14709 }
0x94ee   :  { %21798 = vrcp.f32 %v14710_v53 }
0x94f1   :  { %v16981_v21 = vpop.permute.xlu0 %16980 }
0x94f5   :  { %v16875_v14 = vpop.permute.xlu0 %16874 }
0x94f6   :  { %v16883_v0 = vsel %vm906_vm8, %v16875_v14, 0 }
0x94f9   :  { %v16871_v2 = vpop.permute.xlu0 %16870 }
0x94fd   :  { %v17072_v33 = vpop.permute.xlu0 %17071 }
0x94fe   :  { %v17080_v50 = vsel %vm906_vm8, %v17072_v33, 0 }
0x9501   :  { %v16873_v13 = vpop.permute.xlu0 %16872 }
0x9505   :  { %v17068_v12 = vpop.permute.xlu0 %17067 }
0x95a9   :  { %v16476_v34 = vpop.f32.mrf.mxu0 }
0x95aa   :  { %v16480_v15 = vsub.f32 %v22385_v1, %v16476_v34 }
0x95ab   :  { %v21341_v36 = vpop.f32.mrf.mxu0 }
0x95ac   :  { %21343 = vmatpush3.msra.mxu1 %v16480_v15 }
0x95ad   :  { %21345 = vmatmul.mubr.msk.f32.vlgmr.msra.gmra.mxu1 %vm965_vm6, %v16476_v34  ;;  %21352 = vmatprep.subr.mxu1 %v24392_v44 }
0x95ae   :  { %21354 = vmatprep.mubr.msk.f32.mxu1 %vm21946_vm9, %v24392_v44 }
0x966d   :  { %v16550_v43 = vpop.f32.mrf.mxu1 }
0x966e   :  { %v16554_v45 = vsub.f32 %v22420_v3, %v16550_v43 }
0x966f   :  { %v21346_v51 = vpop.f32.mrf.mxu1 }
0x9670   :  { %21348 = vmatpush3.msra.mxu0 %v16554_v45 }
0x9671   :  { %21350 = vmatmul.mubr.msk.f32.vlgmr.msra.gmra.mxu0 %vm965_vm6, %v16476_v34  ;;  %21357 = vmatprep.subr.mxu0 %v24392_v44  ;;  %v21795_v34 = vpop.eup %21794 }
0x9672   :  { %21358 = vmatpush3.msra.mxu0 %v23752_v28  ;;  %21359 = vmatprep.mubr.msk.f32.mxu0 %vm21946_vm9, %v24392_v44  ;;  %v21797_v15 = vpop.eup %21796  ;;  %v14714_v56 = vmul.f32 %v21795_v34, %v23733_v6 }
0x9673   :  { %21561 = vmatprep.subr.msk.bf16.mxu0 %vm906_vm8, %v16875_v14  ;;  %v21799_v43 = vpop.eup %21798  ;;  %v14716_v51 = vmul.f32 %v21797_v15, %v23737_v22 }
0x9674   :  { %v14718_v18 = vmul.f32 %v21799_v43, %v23748_v57 }
0x9731   :  { %v16621_v32 = vpop.f32.mrf.mxu0 }
0x9732   :  { %v16625_v59 = vsub.f32 %v22433_v9, %v16621_v32 }
0x9733   :  { %v21351_v16 = vpop.f32.mrf.mxu0 }
0x9734   :  { %21353 = vmatpush3.msra.mxu1 %v16625_v59 }
0x9735   :  { %21355 = vmatmul.mubr.msk.f32.vlgmr.msra.gmra.mxu1 %vm965_vm6, %v16409_v47  ;;  %v17077_v47 = vsel %vm906_vm8, %v17070_v61, 0 }
0x9736   :  { %21364 = vmatprep.mubr.msk.f32.mxu1 %vm965_vm6, %v14712_v55 }
0x97f5   :  { %v16695_v28 = vpop.f32.mrf.mxu1 }
0x97f6   :  { %v16699_v4 = vmul.f32 0.25, %v16695_v28 }
0x97f7   :  { %v21356_v52 = vpop.f32.mrf.mxu1 }
0x97f8   :  { %21360 = vmatmul.mubr.msk.f32.vlgmr.msra.gmra.mxu0 %vm965_vm6, %v16699_v4 }
0x97f9   :  { %21371 = vmatpush3.bf16.xpose.msra.mxu0 %v16883_v0  ;;  %21372 = vmatprep.mubr.msk.bf16.mxu0 %vm906_vm8, %v16871_v2 }
0x97fa   :  { %21381 = vmatprep.subr.bf16.mxu0 %v24392_v44 }
0x9800   :  { %21373 = vmatmul.mubr.msk.bf16.vlgmr.msra.gmra.mxu0 %vm906_vm8, %v16873_v13 }
0x9801   :  { %21382 = vmatpush3.bf16.xpose.msra.mxu0 %v17080_v50  ;;  %21385 = vmatprep.mubr.msk.bf16.mxu0 %vm21946_vm9, %v24392_v44 }
0x9802   :  { %21383 = vmatprep.subr.bf16.mxu0 %v24392_v44 }
0x9809   :  { %21384 = vmatpush3.bf16.xpose.msra.mxu0 %v17077_v47 }
0x980a   :  { %21407 = vmatprep.subr.mxu0 %v24392_v44 }
0x9810   :  { %21386 = vmatmul.mubr.msk.bf16.vlgmr.msra.gmra.mxu0 %vm906_vm8, %v17068_v12 }
0x9811   :  { %21409 = vmatprep.mubr.msk.f32.mxu0 %vm21946_vm9, %v24392_v44 }
0x98b8   :  { %v16769_v36 = vpop.f32.mrf.mxu0 }
0x98b9   :  { %21362 = vmatprep.subr.mxu1 %v16769_v36 }
0x98ba   :  { %v21361_v45 = vpop.f32.mrf.mxu0  ;;  %21363 = vmatpush3.msra.mxu1 %v16769_v36 }
0x98bb   :  { %21365 = vmatmul.mubr.msk.f32.vlgmr.msra.gmra.mxu1 %vm965_vm6, %v14714_v56  ;;  %21376 = vmatprep.subr.mxu1 %v24392_v44 }
0x98bc   :  { %21367 = vmatprep.mubr.msk.f32.mxu1 %vm965_vm6, %v14716_v51  ;;  %21377 = vmatpush3.xpose.msk.msra.mxu1 %vm906_vm8, %v16981_v21 }
0x98bd   :  { %21389 = vmatprep.subr.bf16.mxu1 %v24392_v44 }
0x98bf   :  { %21368 = vmatmul.mubr.msk.f32.gmra.mxu1 %vm965_vm6, %v14718_v18 }
0x98c0   :  { %21378 = vmatprep.mubr.msk.f32.mxu1 %vm21946_vm9, %v24392_v44  ;;  %v23907_v6 = vpop.f32.mrf.mxu0 }
0x98c2   :  { %v16919_v22 = vpop.f32.mrf.mxu0 }
0x98c3   :  { %21379 = vmatmul.mubr.msk.f32.vlgmr.msra.gmra.mxu1 %vm906_vm8, %v16979_v37  ;;  %v16934_v36 = vsel %vm965_vm6, %v16919_v22, -inf }
0x98c4   :  { %21393 = vmatprep.mubr.msk.bf16.mxu1 %vm21946_vm9, %v24392_v44  ;;  %v23912_v39 = vpop.f32.mrf.mxu0 }
0x98c5   :  { %v16943_v43 = vsel %vm965_vm6, %v23912_v39, -inf }
0x98c6   :  { %v23914_v53 = vpop.f32.mrf.mxu0 }
0x98c7   :  { %v16937_v56 = vsel %vm965_vm6, %v23914_v53, -inf }
0x98d0   :  { %v17116_v57 = vpop.f32.mrf.mxu0 }
0x98d1   :  { %v17122_v21 = vsel %vm906_vm8, %v17116_v57, -inf }
0x98d2   :  { %17123 = vmax.xlane.f32.xlu0 %v17122_v21  ;;  %v21387_v14 = vpop.f32.mrf.mxu0 }
0x98d4   :  { %v17119_v20 = vpop.f32.mrf.mxu0 }
0x98d6   :  { %v21388_v32 = vpop.f32.mrf.mxu0 }
0x995b   :  { %v17124_v59 = vpop.xlane.xlu0 %17123 }
0x995c   :  { %v17125_v16 = vsub.f32 %v17116_v57, %v17124_v59 }
0x995e   :  { %v17126_v55 = vmul.f32 1.442695, %v17125_v16 }
0x9960   :  { %21800 = vpow2.f32 %v17126_v55 }
0x996d   :  { %v21801_v37 = vpop.eup %21800 }
0x996e   :  { %v17128_v50 = vsel %vm906_vm8, %v21801_v37, 0.0 }
0x997b   :  { %v23917_v2 = vpop.f32.mrf.mxu1 }
0x997d   :  { %v23919_v28 = vpop.f32.mrf.mxu1 }
0x997f   :  { %v23921_v4 = vpop.f32.mrf.mxu1 }
0x9981   :  { %v23923_v52 = vpop.f32.mrf.mxu1 }
0x9983   :  { %v17052_v0 = vpop.f32.mrf.mxu1 }
0x9984   :  { %v17056_v33 = vsel %vm965_vm6, %v17052_v0, -inf }
0x9985   :  { %17057 = vmax.xlane.f32.xlu1 %v17056_v33  ;;  %v21380_v13 = vpop.f32.mrf.mxu1 }
0x9989   :  { %17129 = vadd.xlane.f32.xlu1 %v17128_v50 }
0x999a   :  { %17134 = vrot.lane.b32.xlu1 %v23261_v63, %s21948_s29  ;;  %v16940_v63 = vsel %vm965_vm6, %v23907_v6, -inf }
0x9a0e   :  { %v17058_v61 = vpop.xlane.xlu1 %17057 }
0x9a0f   :  { %v17059_v47 = vsub.f32 %v17052_v0, %v17058_v61 }
0x9a11   :  { %v17060_v12 = vmul.f32 1.442695, %v17059_v47 }
0x9a12   :  { %v17130_v45 = vpop.xlane.xlu1 %17129 }
0x9a13   :  { %21802 = vpow2.f32 %v17060_v12 }
0x9a14   :  { %21804 = vrcp.f32 %v17130_v45 }
0x9a16   :  { %v17135_v21 = vpop.permute.xlu1 %17134 }
0x9a20   :  { %v21803_v34 = vpop.eup %21802 }
0x9a21   :  { %v17062_v15 = vsel %vm965_vm6, %v21803_v34, 0.0 }
0x9a22   :  { %17063 = vadd.xlane.f32.xlu0 %v17062_v15 }
0x9a38   :  { %17136 = vrot.lane.b32.xlu0 %v23250_v23, %s21948_s29  ;;  %v21805_v23 = vpop.eup %21804 }
0x9a39   :  { %v17132_v57 = vmul.f32 %v21805_v23, %v21801_v37 }
0x9a3b   :  { %v17133_v14 = vpack.c.bf16 %v17132_v57, %v17132_v57 }
0x9a57   :  { %16935 = vmax.xlane.f32.xlu0 %v16934_v36 }
0x9a5b   :  { %16938 = vmax.xlane.f32.xlu0 %v16937_v56 }
0x9a5f   :  { %16941 = vmax.xlane.f32.xlu0 %v16940_v63 }
0x9a63   :  { %16944 = vmax.xlane.f32.xlu0 %v16943_v43 }
0x9aab   :  { %v17064_v51 = vpop.xlane.xlu0 %17063 }
0x9aac   :  { %21806 = vrcp.f32 %v17064_v51 }
0x9aaf   :  { %v17137_v18 = vpop.permute.xlu0 %17136 }
0x9ab0   :  { %21390 = vmatpush3.bf16.msra.mxu1 %v17137_v18 }
0x9ab1   :  { %21391 = vmatprep.subr.bf16.mxu1 %v24392_v44 }
0x9ab4   :  { %21392 = vmatpush3.bf16.msra.mxu1 %v17135_v21 }
0x9ab5   :  { %21397 = vmatprep.subr.mxu1 %v24392_v44 }
0x9ab7   :  { %21394 = vmatmul.mubr.msk.bf16.vlgmr.msra.gmra.mxu1 %vm906_vm8, %v17133_v14 }
0x9ab8   :  { %21399 = vmatprep.mubr.msk.f32.mxu1 %vm21946_vm9, %v24392_v44 }
0x9ab9   :  { %v21807_v20 = vpop.eup %21806 }
0x9aba   :  { %v23944_v32 = vmul.f32 %v21807_v20, %v21803_v34 }
0x9abc   :  { %17183 = vxpose.xlu1.b32.start.end [1/1] (short) (narrow) %v23944_v32, 8 }
0x9ae0   :  { %v16936_v59 = vpop.xlane.xlu0 %16935 }
0x9ae1   :  { %v16946_v16 = vsub.f32 %v16919_v22, %v16936_v59 }
0x9ae3   :  { %v16950_v55 = vmul.f32 1.442695, %v16946_v16 }
0x9ae4   :  { %v16939_v0 = vpop.xlane.xlu0 %16938 }
0x9ae5   :  { %21808 = vpow2.f32 %v16950_v55  ;;  %v16947_v33 = vsub.f32 %v23914_v53, %v16939_v0 }
0x9ae7   :  { %v16952_v37 = vmul.f32 1.442695, %v16947_v33 }
0x9ae8   :  { %v16942_v13 = vpop.xlane.xlu0 %16941 }
0x9ae9   :  { %21810 = vpow2.f32 %v16952_v37  ;;  %v16948_v50 = vsub.f32 %v23907_v6, %v16942_v13 }
0x9aeb   :  { %v16954_v61 = vmul.f32 1.442695, %v16948_v50 }
0x9aec   :  { %v16945_v47 = vpop.xlane.xlu0 %16944 }
0x9aed   :  { %21812 = vpow2.f32 %v16954_v61  ;;  %v16949_v12 = vsub.f32 %v23912_v39, %v16945_v47 }
0x9aef   :  { %v16956_v34 = vmul.f32 1.442695, %v16949_v12 }
0x9af1   :  { %21814 = vpow2.f32 %v16956_v34 }
0x9af2   :  { %v23950_v15 = vpop.eup %21808 }
0x9af3   :  { %v16958_v22 = vsel %vm965_vm6, %v23950_v15, 0.0 }
0x9af4   :  { %16959 = vadd.xlane.f32.xlu1 %v16958_v22 }
0x9af6   :  { %v23954_v36 = vpop.eup %21810 }
0x9af7   :  { %v16961_v53 = vsel %vm965_vm6, %v23954_v36, 0.0 }
0x9af8   :  { %16962 = vadd.xlane.f32.xlu0 %v16961_v53 }
0x9afa   :  { %v23958_v6 = vpop.eup %21812 }
0x9afb   :  { %v16964_v56 = vsel %vm965_vm6, %v23958_v6, 0.0 }
0x9afc   :  { %16965 = vadd.xlane.f32.xlu0 %v16964_v56 }
0x9afe   :  { %v23962_v39 = vpop.eup %21814 }
0x9aff   :  { %v16967_v63 = vsel %vm965_vm6, %v23962_v39, 0.0 }
0x9b00   :  { %16968 = vadd.xlane.f32.xlu0 %v16967_v63 }
0x9b05   :  { %9946 = vrot.lane.b32.xlu1 %v22805_v58, %s21948_s29 }
0x9b09   :  { %9964 = vrot.lane.b32.xlu1 %v23030_v48, %s21942_s23 }
0x9b0d   :  { %9976 = vrot.lane.b32.xlu1 %v23284_v46, %s21947_s28 }
0x9b11   :  { %9980 = vrot.lane.b32.xlu1 %v23290_v7, %s21947_s28 }
0x9b15   :  { %19135 = vrot.lane.b32.xlu1 %v23696_v27, %s21948_s29 }
0x9b16   :  { %9942 = vrot.lane.b32.xlu0 %v22801_v19, %s21948_s29 }
0x9b19   :  { %19139 = vrot.lane.b32.xlu1 %v23700_v40, %s21948_s29 }
0x9b1a   :  { %9944 = vrot.lane.b32.xlu0 %v22799_v38, %s21948_s29 }
0x9b1d   :  { %19151 = vrot.lane.b32.xlu1 %v23917_v2, %s21942_s23 }
0x9b1e   :  { %9948 = vrot.lane.b32.xlu0 %v22803_v42, %s21948_s29 }
0x9b21   :  { %19155 = vrot.lane.b32.xlu1 %v23921_v4, %s21942_s23 }
0x9b22   :  { %9958 = vrot.lane.b32.xlu0 %v23028_v10, %s21942_s23 }
0x9b26   :  { %9960 = vrot.lane.b32.xlu0 %v23026_v17, %s21942_s23 }
0x9b2a   :  { %9962 = vrot.lane.b32.xlu0 %v23032_v24, %s21942_s23 }
0x9b2e   :  { %9974 = vrot.lane.b32.xlu0 %v23286_v35, %s21947_s28 }
0x9b32   :  { %9978 = vrot.lane.b32.xlu0 %v23292_v49, %s21947_s28 }
0x9b36   :  { %19133 = vrot.lane.b32.xlu0 %v23698_v41, %s21948_s29 }
0x9b38   :  { %v17199_v38 = vpop.trf.xlu1 }
0x9b39   :  { %v17215_v19 = vmul.f32 %v17199_v38, %v22330_v11 }
0x9b3a   :  { %19137 = vrot.lane.b32.xlu0 %v23702_v60, %s21948_s29 }
0x9b3b   :  { %21398 = vmatpush3.msra.mxu1 %v17215_v19 }
0x9b3c   :  { %21400 = vmatmul.mubr.msk.f32.vlgmr.msra.gmra.mxu1 %vm965_vm6, %v23944_v32  ;;  %21402 = vmatprep.subr.mxu1 %v24392_v44 }
0x9b3d   :  { %21404 = vmatprep.mubr.msk.f32.mxu1 %vm21946_vm9, %v24392_v44 }
0x9b3e   :  { %19149 = vrot.lane.b32.xlu0 %v23919_v28, %s21942_s23 }
0x9b42   :  { %19153 = vrot.lane.b32.xlu0 %v23923_v52, %s21942_s23 }
0x9b77   :  { %v24012_v42 = vpop.f32.mrf.mxu1 }
0x9b79   :  { %v21395_v11 = vpop.f32.mrf.mxu1 }
0x9b7b   :  { %v17180_v58 = vpop.f32.mrf.mxu1 }
0x9b7d   :  { %v21396_v17 = vpop.f32.mrf.mxu1 }
0x9bfc   :  { %v17285_v10 = vpop.f32.mrf.mxu1 }
0x9bfd   :  { %v17289_v48 = vsub.f32 %v22385_v1, %v17285_v10 }
0x9bfe   :  { %v21401_v24 = vpop.f32.mrf.mxu1 }
0x9bff   :  { %21403 = vmatpush3.msra.mxu1 %v17289_v48 }
0x9c00   :  { %21405 = vmatmul.mubr.msk.f32.vlgmr.msra.gmra.mxu1 %vm965_vm6, %v17285_v10  ;;  %21412 = vmatprep.subr.mxu1 %v24392_v44 }
0x9c01   :  { %21414 = vmatprep.mubr.msk.f32.mxu1 %vm21946_vm9, %v24392_v44 }
0x9cc0   :  { %v17359_v46 = vpop.f32.mrf.mxu1 }
0x9cc1   :  { %v17363_v35 = vsub.f32 %v22420_v3, %v17359_v46 }
0x9cc2   :  { %v21406_v7 = vpop.f32.mrf.mxu1 }
0x9cc3   :  { %21408 = vmatpush3.msra.mxu0 %v17363_v35 }
0x9cc4   :  { %21410 = vmatmul.mubr.msk.f32.vlgmr.msra.gmra.mxu0 %vm965_vm6, %v17285_v10  ;;  %21417 = vmatprep.subr.mxu0 %v24392_v44 }
0x9cc5   :  { %21419 = vmatprep.mubr.msk.f32.mxu0 %vm21946_vm9, %v24392_v44 }
0x9d84   :  { %v17430_v49 = vpop.f32.mrf.mxu0 }
0x9d85   :  { %v17434_v27 = vsub.f32 %v22433_v9, %v17430_v49 }
0x9d86   :  { %v21411_v41 = vpop.f32.mrf.mxu0 }
0x9d87   :  { %21413 = vmatpush3.msra.mxu1 %v17434_v27 }
0x9d88   :  { %21415 = vmatmul.mubr.msk.f32.vlgmr.msra.gmra.mxu1 %vm965_vm6, %v17215_v19  ;;  %21422 = vmatprep.subr.mxu1 %v24392_v44 }
0x9d89   :  { %21424 = vmatprep.mubr.msk.f32.mxu1 %vm21946_vm9, %v24392_v44 }
0x9e48   :  { %v17504_v40 = vpop.f32.mrf.mxu1 }
0x9e49   :  { %v17508_v60 = vmul.f32 0.25, %v17504_v40 }
0x9e4a   :  { %v21416_v2 = vpop.f32.mrf.mxu1 }
0x9e4b   :  { %21418 = vmatpush3.msra.mxu0 %v17508_v60 }
0x9e4c   :  { %21420 = vmatmul.mubr.msk.f32.vlgmr.msra.gmra.mxu0 %vm965_vm6, %v23944_v32  ;;  %21427 = vmatprep.subr.mxu0 %v24392_v44 }
0x9e4d   :  { %21429 = vmatprep.mubr.msk.f32.mxu0 %vm21946_vm9, %v24392_v44 }
0x9f0c   :  { %v17575_v28 = vpop.f32.mrf.mxu0 }
0x9f0d   :  { %v17579_v4 = vsub.f32 %v22385_v1, %v17575_v28 }
0x9f0e   :  { %v21421_v52 = vpop.f32.mrf.mxu0 }
0x9f0f   :  { %21423 = vmatpush3.msra.mxu1 %v17579_v4 }
0x9f10   :  { %21425 = vmatmul.mubr.msk.f32.vlgmr.msra.gmra.mxu1 %vm965_vm6, %v17575_v28  ;;  %21432 = vmatprep.subr.mxu1 %v24392_v44 }
0x9f11   :  { %21434 = vmatprep.mubr.msk.f32.mxu1 %vm21946_vm9, %v24392_v44 }
0x9fd0   :  { %v17649_v43 = vpop.f32.mrf.mxu1 }
0x9fd1   :  { %v17653_v45 = vsub.f32 %v22420_v3, %v17649_v43 }
0x9fd2   :  { %v21426_v51 = vpop.f32.mrf.mxu1 }
0x9fd3   :  { %21428 = vmatpush3.msra.mxu0 %v17653_v45 }
0x9fd4   :  { %21430 = vmatmul.mubr.msk.f32.vlgmr.msra.gmra.mxu0 %vm965_vm6, %v17575_v28  ;;  %21437 = vmatprep.subr.mxu0 %v24392_v44 }
0x9fd5   :  { %21439 = vmatprep.mubr.msk.f32.mxu0 %vm21946_vm9, %v24392_v44 }
0xa094   :  { %v17720_v23 = vpop.f32.mrf.mxu0 }
0xa095   :  { %v17724_v18 = vsub.f32 %v22433_v9, %v17720_v23 }
0xa096   :  { %v21431_v57 = vpop.f32.mrf.mxu0 }
0xa097   :  { %21433 = vmatpush3.msra.mxu1 %v17724_v18 }
0xa098   :  { %21435 = vmatmul.mubr.msk.f32.vlgmr.msra.gmra.mxu1 %vm965_vm6, %v17508_v60  ;;  %21442 = vmatprep.subr.mxu1 %v24392_v44 }
0xa099   :  { %21444 = vmatprep.mubr.msk.f32.mxu1 %vm21946_vm9, %v24392_v44 }
0xa158   :  { %v17794_v21 = vpop.f32.mrf.mxu1 }
0xa159   :  { %v17798_v14 = vmul.f32 0.25, %v17794_v21 }
0xa15a   :  { %v21436_v20 = vpop.f32.mrf.mxu1 }
0xa15b   :  { %21438 = vmatpush3.msra.mxu0 %v17798_v14 }
0xa15c   :  { %21440 = vmatmul.mubr.msk.f32.vlgmr.msra.gmra.mxu0 %vm965_vm6, %v23944_v32  ;;  %21447 = vmatprep.subr.mxu0 %v24392_v44 }
0xa15d   :  { %21449 = vmatprep.mubr.msk.f32.mxu0 %vm21946_vm9, %v24392_v44 }
0xa21c   :  { %v17865_v59 = vpop.f32.mrf.mxu0 }
0xa21d   :  { %v17869_v16 = vsub.f32 %v22385_v1, %v17865_v59 }
0xa21e   :  { %v21441_v55 = vpop.f32.mrf.mxu0 }
0xa21f   :  { %21443 = vmatpush3.msra.mxu1 %v17869_v16 }
0xa220   :  { %21445 = vmatmul.mubr.msk.f32.vlgmr.msra.gmra.mxu1 %vm965_vm6, %v17865_v59  ;;  %21452 = vmatprep.subr.mxu1 %v24392_v44 }
0xa221   :  { %21454 = vmatprep.mubr.msk.f32.mxu1 %vm21946_vm9, %v24392_v44 }
0xa2e0   :  { %v17939_v0 = vpop.f32.mrf.mxu1 }
0xa2e1   :  { %v17943_v33 = vsub.f32 %v22420_v3, %v17939_v0 }
0xa2e2   :  { %v21446_v37 = vpop.f32.mrf.mxu1 }
0xa2e3   :  { %21448 = vmatpush3.msra.mxu0 %v17943_v33  ;;  %v24397_v33 = vld [vmem:[#allocation17_spill] sm:$0xff] }
0xa2e4   :  { %21450 = vmatmul.mubr.msk.f32.vlgmr.msra.gmra.mxu0 %vm965_vm6, %v17865_v59  ;;  %21457 = vmatprep.subr.mxu0 %v24392_v44  ;;  %v24129_v59 = vld [vmem:[#allocation9 + $0x38] sm:$0xff]   ;;  %v763_v37 = vrot.slane %v24397_v33, 7 }
0xa2e5   :  { %21459 = vmatprep.mubr.msk.f32.mxu0 %vm21946_vm9, %v24392_v44 }
0xa3a4   :  { %v18010_v13 = vpop.f32.mrf.mxu0 }
0xa3a5   :  { %v18014_v50 = vsub.f32 %v22433_v9, %v18010_v13  ;;  %v24398_v13 = vld [vmem:[#allocation18_spill] sm:$0xff] }
0xa3a6   :  { %v21451_v61 = vpop.f32.mrf.mxu0 }
0xa3a7   :  { %21453 = vmatpush3.msra.mxu1 %v18014_v50  ;;  %v725_v50 = vrot.slane %v24398_v13, 6  ;;  %v766_v61 = vrot.slane %v24398_v13, 7 }
0xa3a8   :  { %21455 = vmatmul.mubr.msk.f32.vlgmr.msra.gmra.mxu1 %vm965_vm6, %v17798_v14  ;;  %21462 = vmatprep.subr.mxu1 %v24392_v44 }
0xa3a9   :  { %21464 = vmatprep.mubr.msk.f32.mxu1 %vm21946_vm9, %v24392_v44 }
0xa468   :  { %v18084_v47 = vpop.f32.mrf.mxu1 }
0xa469   :  { %v18088_v12 = vmul.f32 0.25, %v18084_v47  ;;  %v24399_v47 = vld [vmem:[#allocation19_spill] sm:$0xff] }
0xa46a   :  { %v21456_v34 = vpop.f32.mrf.mxu1 }
0xa46b   :  { %21458 = vmatpush3.msra.mxu0 %v18088_v12  ;;  %v764_v34 = vrot.slane %v24399_v47, 7 }
0xa46c   :  { %21460 = vmatmul.mubr.msk.f32.vlgmr.msra.gmra.mxu0 %vm965_vm6, %v23944_v32  ;;  %21467 = vmatprep.subr.mxu0 %v24392_v44 }
0xa46d   :  { %21469 = vmatprep.mubr.msk.f32.mxu0 %vm21946_vm9, %v24392_v44 }
0xa52c   :  { %v18155_v22 = vpop.f32.mrf.mxu0 }
0xa52d   :  { %v18159_v53 = vsub.f32 %v22385_v1, %v18155_v22 }
0xa52e   :  { %v21461_v56 = vpop.f32.mrf.mxu0 }
0xa52f   :  { %21463 = vmatpush3.msra.mxu1 %v18159_v53  ;;  %v771_v56 = vsel %vm767_vm11, %v766_v61, %v763_v37 }
0xa530   :  { %21465 = vmatmul.mubr.msk.f32.vlgmr.msra.gmra.mxu1 %vm965_vm6, %v18155_v22  ;;  %21472 = vmatprep.subr.mxu1 %v24392_v44 }
0xa531   :  { %21474 = vmatprep.mubr.msk.f32.mxu1 %vm21946_vm9, %v24392_v44 }
0xa5f0   :  { %v18229_v63 = vpop.f32.mrf.mxu1 }
0xa5f1   :  { %v18233_v38 = vsub.f32 %v22420_v3, %v18229_v63 }
0xa5f2   :  { %v21466_v19 = vpop.f32.mrf.mxu1 }
0xa5f3   :  { %21468 = vmatpush3.msra.mxu0 %v18233_v38  ;;  %v770_v38 = vsel %vm767_vm11, %v763_v37, %v764_v34 }
0xa5f4   :  { %21470 = vmatmul.mubr.msk.f32.vlgmr.msra.gmra.mxu0 %vm965_vm6, %v18155_v22  ;;  %21477 = vmatprep.subr.mxu0 %v24392_v44 }
0xa5f5   :  { %21479 = vmatprep.mubr.msk.f32.mxu0 %vm21946_vm9, %v24392_v44 }
0xa6b4   :  { %v18300_v11 = vpop.f32.mrf.mxu0 }
0xa6b5   :  { %v18304_v58 = vsub.f32 %v22433_v9, %v18300_v11 }
0xa6b6   :  { %v21471_v17 = vpop.f32.mrf.mxu0 }
0xa6b7   :  { %21473 = vmatpush3.msra.mxu1 %v18304_v58  ;;  %v788_v17 = vsel %vm776_vm13, %v771_v56, 0.0 }
0xa6b8   :  { %21475 = vmatmul.mubr.msk.f32.vlgmr.msra.gmra.mxu1 %vm965_vm6, %v18088_v12  ;;  %21482 = vmatprep.subr.mxu1 %v24392_v44  ;;  %v723_v12 = vrot.slane %v24399_v47, 6 }
0xa6b9   :  { %21484 = vmatprep.mubr.msk.f32.mxu1 %vm21946_vm9, %v24392_v44 }
0xa778   :  { %v18374_v10 = vpop.f32.mrf.mxu1 }
0xa779   :  { %v18378_v48 = vmul.f32 0.25, %v18374_v10  ;;  %v24402_v10 = vld [vmem:[#allocation24_spill] sm:$0xff] }
0xa77a   :  { %v21476_v24 = vpop.f32.mrf.mxu1 }
0xa77b   :  { %21478 = vmatpush3.msra.mxu0 %v18378_v48  ;;  %v24403_v24 = vld [vmem:[#allocation25_spill] sm:$0xff] }
0xa77c   :  { %21480 = vmatmul.mubr.msk.f32.vlgmr.msra.gmra.mxu0 %vm965_vm6, %v23944_v32  ;;  %21487 = vmatprep.subr.mxu0 %v24392_v44 }
0xa77d   :  { %21489 = vmatprep.mubr.msk.f32.mxu0 %vm21946_vm9, %v24392_v44 }
0xa83c   :  { %v18445_v46 = vpop.f32.mrf.mxu0 }
0xa83d   :  { %v18449_v35 = vsub.f32 %v22385_v1, %v18445_v46 }
0xa83e   :  { %v21481_v7 = vpop.f32.mrf.mxu0 }
0xa83f   :  { %21483 = vmatpush3.msra.mxu1 %v18449_v35 }
0xa840   :  { %21485 = vmatmul.mubr.msk.f32.vlgmr.msra.gmra.mxu1 %vm965_vm6, %v18445_v46  ;;  %21492 = vmatprep.subr.mxu1 %v24392_v44 }
0xa841   :  { %21494 = vmatprep.mubr.msk.f32.mxu1 %vm21946_vm9, %v24392_v44 }
0xa900   :  { %v18519_v49 = vpop.f32.mrf.mxu1 }
0xa901   :  { %v18523_v27 = vsub.f32 %v22420_v3, %v18519_v49  ;;  %v796_v49 = vmul.f32 %v24403_v24, %v788_v17 }
0xa902   :  { %v21486_v41 = vpop.f32.mrf.mxu1 }
0xa903   :  { %21488 = vmatpush3.msra.mxu0 %v18523_v27  ;;  %v817_v27 = vrot.slane %v24399_v47, 1  ;;  %v816_v41 = vrot.slane %v24397_v33, 1 }
0xa904   :  { %21490 = vmatmul.mubr.msk.f32.vlgmr.msra.gmra.mxu0 %vm965_vm6, %v18445_v46  ;;  %21497 = vmatprep.subr.mxu0 %v24392_v44  ;;  %v797_v46 = vmul.f32 %v24403_v24, %v770_v38  ;;  %v24407_v38 = vld [vmem:[#allocation29_spill] sm:$0xff] }
0xa905   :  { %21499 = vmatprep.mubr.msk.f32.mxu0 %vm21946_vm9, %v24392_v44 }
0xa9c4   :  { %v18590_v40 = vpop.f32.mrf.mxu0 }
0xa9c5   :  { %v18594_v60 = vsub.f32 %v22433_v9, %v18590_v40  ;;  %v24404_v40 = vld [vmem:[#allocation16_spill] sm:$0xff] }
0xa9c6   :  { %v21491_v2 = vpop.f32.mrf.mxu0 }
0xa9c7   :  { %21493 = vmatpush3.msra.mxu1 %v18594_v60  ;;  %v818_v60 = vrot.slane %v24404_v40, 1 }
0xa9c8   :  { %21495 = vmatmul.mubr.msk.f32.vlgmr.msra.gmra.mxu1 %vm965_vm6, %v18378_v48  ;;  %21502 = vmatprep.subr.mxu1 %v24392_v44 }
0xa9c9   :  { %21504 = vmatprep.mubr.msk.f32.mxu1 %vm21946_vm9, %v24392_v44 }
0xaa88   :  { %v18664_v28 = vpop.f32.mrf.mxu1 }
0xaa89   :  { %v18668_v4 = vmul.f32 0.25, %v18664_v28 }
0xaa8a   :  { %v21496_v52 = vpop.f32.mrf.mxu1 }
0xaa8b   :  { %21498 = vmatpush3.msra.mxu0 %v18668_v4  ;;  %v24405_v52 = vld [vmem:[#allocation21_spill] sm:$0xff] }
0xaa8c   :  { %21500 = vmatmul.mubr.msk.f32.vlgmr.msra.gmra.mxu0 %vm965_vm6, %v23944_v32  ;;  %21507 = vmatprep.subr.mxu0 %v24392_v44 }
0xaa8d   :  { %21509 = vmatprep.mubr.msk.f32.mxu0 %vm21946_vm9, %v24392_v44 }
0xab4c   :  { %v18735_v43 = vpop.f32.mrf.mxu0 }
0xab4d   :  { %v18739_v45 = vsub.f32 %v22385_v1, %v18735_v43  ;;  %v16960_v1 = vpop.xlane.xlu1 %16959 }
0xab4e   :  { %v21501_v51 = vpop.f32.mrf.mxu0  ;;  %21816 = vrcp.f32 %v16960_v1 }
0xab4f   :  { %21503 = vmatpush3.msra.mxu1 %v18739_v45  ;;  %v809_v45 = vmul.f32 %v24405_v52, %v24399_v47  ;;  %v858_v51 = vrot.slane %v24399_v47, 2 }
0xab50   :  { %21505 = vmatmul.mubr.msk.f32.vlgmr.msra.gmra.mxu1 %vm965_vm6, %v18735_v43  ;;  %21512 = vmatprep.subr.mxu1 %v24392_v44 }
0xab51   :  { %21514 = vmatprep.mubr.msk.f32.mxu1 %vm21946_vm9, %v24392_v44  ;;  %v24173_v2 = vpop.permute.xlu1 %9946 }
0xab52   :  { %v9988_v5 = vsel %vm906_vm8, %v22569_v25, %v24173_v2 }
0xab5b   :  { %v21817_v57 = vpop.eup %21816 }
0xac10   :  { %v18809_v23 = vpop.f32.mrf.mxu1 }
0xac11   :  { %v18813_v32 = vsub.f32 %v22420_v3, %v18809_v23  ;;  %v16971_v3 = vmul.f32 %v21817_v57, %v23950_v15  ;;  %v722_v15 = vrot.slane %v24397_v33, 6  ;;  %v823_v23 = vsel %vm820_vm14, %v816_v41, %v817_v27 }
0xac12   :  { %v21506_v18 = vpop.f32.mrf.mxu1  ;;  %v859_v57 = vrot.slane %v24404_v40, 2 }
0xac13   :  { %21508 = vmatpush3.msra.mxu0 %v18813_v32  ;;  %v730_v53 = vsel %vm726_vm10, %v725_v50, %v722_v15  ;;  %v729_v63 = vsel %vm726_vm10, %v722_v15, %v723_v12  ;;  %v857_v32 = vrot.slane %v24397_v33, 2  ;;  %v822_v18 = vsel %vm820_vm14, %v817_v27, %v818_v60 }
0xac14   :  { %21510 = vmatmul.mubr.msk.f32.vlgmr.msra.gmra.mxu0 %vm965_vm6, %v18735_v43  ;;  %21517 = vmatprep.subr.mxu0 %v24392_v44  ;;  %v747_v11 = vsel %vm735_vm12, %v730_v53, 0.0  ;;  %v756_v48 = vmul.f32 %v24402_v10, %v729_v63  ;;  %v808_v43 = vmul.f32 %v24405_v52, %v24397_v33  ;;  %v24198_v53 = vpop.permute.xlu1 %9964  ;;  %v863_v56 = vsel %vm861_vm15, %v858_v51, %v859_v57 }
0xac15   :  { %21518 = vmatpush3.msra.mxu0 %v24012_v42  ;;  %21519 = vmatprep.mubr.msk.f32.mxu0 %vm21946_vm9, %v24392_v44  ;;  %v24132_v42 = vpop.xlane.xlu0 %16962  ;;  %v755_v7 = vmul.f32 %v24402_v10, %v747_v11  ;;  %v864_v37 = vsel %vm861_vm15, %v857_v32, %v858_v51 }
0xac16   :  { %21530 = vmatprep.subr.bf16.mxu0 %v24129_v59  ;;  %v801_v28 = vadd.f32 %v797_v46, %v756_v48  ;;  %v890_v19 = vmul.f32 %v24407_v38, %v864_v37  ;;  %21818 = vrcp.f32 %v24132_v42 }
0xac19   :  { %v24134_v44 = vpop.xlane.xlu0 %16965 }
0xac1a   :  { %21820 = vrcp.f32 %v24134_v44  ;;  %v24292_v44 = vld [vmem:[%s24336_s4] ss:$0 sm:$0xff]  ;;  %s21949_s4 = smov [#allocation11]  }
0xac1b   :  { %s19346_s9 = sshll.u32 %s21949_s4, 4  ;;  %s19347_s9 = int_to_ptr.vmem [resolvable:$true] %s19346_s9 }
0xac1c   :  { %s21904_s10 = scalar_lea.vmem %s19347_s9, 1024  ;;  %p21909_p7 = scmp.lt.s32.totalorder %s19347_s9, %s19347_s9 }
0xac1d   :  { %v24136_v16 = vpop.xlane.xlu0 %16968  ;;  %p21905_p6 = scmp.ne.s32.totalorder %s19347_s9, %s21904_s10  ;;  %p21910_p8 = scmp.lt.s32.totalorder %s21904_s10, %s21904_s10 }
0xac1e   :  { %21822 = vrcp.f32 %v24136_v16 }
0xac1f   :  { %p21911_p9 = por %p21910_p8, %p21909_p7 }
0xac21   :  { %v9943_v55 = vpop.permute.xlu0 %9942  ;;  %p21912_p10 = pnand %p21911_p9, %p21905_p6 }
0xac22   :  { %v9986_v58 = vsel %vm906_vm8, %v22565_v29, %v9943_v55 }
0xacd4   :  { %v18880_v21 = vpop.f32.mrf.mxu0 }
0xacd5   :  { %v18884_v14 = vsub.f32 %v22433_v9, %v18880_v21  ;;  %v9945_v9 = vpop.permute.xlu0 %9944 }
0xacd6   :  { %v21511_v20 = vpop.f32.mrf.mxu0  ;;  %v9987_v17 = vsel %vm906_vm8, %v22563_v26, %v9945_v9  ;;  %v21623_v9 = vld [vmem:[#allocation9 + $0x30] sm:$0xff]  }
0xacd7   :  { %21513 = vmatpush3.msra.mxu1 %v18884_v14  ;;  %v24406_v14 = vld [vmem:[#allocation28_spill] sm:$0xff] }
0xacd8   :  { %21515 = vmatmul.mubr.msk.f32.vlgmr.msra.gmra.mxu1 %vm965_vm6, %v18668_v4  ;;  %v800_v4 = vadd.f32 %v796_v49, %v755_v7  ;;  %v849_v20 = vmul.f32 %v24406_v14, %v823_v23  ;;  %v850_v15 = vmul.f32 %v24406_v14, %v822_v18  ;;  %v891_v7 = vmul.f32 %v24407_v38, %v863_v56 }
0xacd9   :  { %21524 = vmatprep.mubr.msk.f32.mxu1 %vm965_vm6, %v16971_v3  ;;  %v24138_v0 = vpop.permute.xlu0 %9948  ;;  %v813_v3 = vadd.f32 %v809_v45, %v801_v28  ;;  %v9977_v28 = vpop.permute.xlu1 %9976 }
0xacda   :  { %v812_v21 = vadd.f32 %v808_v43, %v800_v4 }
0xacdb   :  { %v854_v48 = vadd.f32 %v850_v15, %v813_v3  ;;  %v21625_v15 = vld [vmem:[#allocation9 + $0x20] sm:$0xff]  }
0xacdc   :  { %v853_v63 = vadd.f32 %v849_v20, %v812_v21  ;;  %v21624_v21 = vld [vmem:[#allocation9 + $0x28] sm:$0xff]  }
0xacdd   :  { %v9959_v22 = vpop.permute.xlu0 %9958  ;;  %v895_v45 = vadd.f32 %v891_v7, %v854_v48  ;;  %v21627_v48 = vld [vmem:[#allocation9 + $0x10] sm:$0xff]  }
0xacde   :  { %v9991_v46 = vsel %vm9990_vm2, %v9986_v58, %v9959_v22  ;;  %v894_v4 = vadd.f32 %v890_v19, %v853_v63  ;;  %v724_v22 = vrot.slane %v24404_v40, 6  ;;  %v21626_v19 = vld [vmem:[#allocation9 + $0x18] sm:$0xff]   ;;  %v810_v58 = vmul.f32 %v24404_v40, %v24405_v52 }
0xace0   :  { %v728_v20 = vsel %vm726_vm10, %v723_v12, %v724_v22  ;;  %v819_v12 = vrot.slane %v24398_v13, 1 }
0xace1   :  { %v9961_v35 = vpop.permute.xlu0 %9960  ;;  %v757_v47 = vmul.f32 %v24402_v10, %v728_v20 }
0xace2   :  { %v9992_v49 = vsel %vm9990_vm2, %v9987_v17, %v9961_v35  ;;  %v765_v35 = vrot.slane %v24404_v40, 7 }
0xace3   :  { %v9997_v43 = vsel %vm9995_vm3, %v9992_v49, %v9977_v28  ;;  %v21628_v28 = vld [vmem:[#allocation9 + $0x8] sm:$0xff]  }
0xace4   :  { %v10001_v55 = vadd.f32 %v9997_v43, %v895_v45  ;;  %v769_v3 = vsel %vm767_vm11, %v764_v34, %v765_v35  ;;  %v768_v37 = vsel %vm767_vm11, %v765_v35, %v766_v61  ;;  %v824_v61 = vsel %vm820_vm14, %v819_v12, %v816_v41  ;;  %v24410_v43 = vld [vmem:[#allocation27_spill] sm:$0xff] }
0xace5   :  { %v24189_v1 = vpop.permute.xlu0 %9962  ;;  %v798_v56 = vmul.f32 %v24403_v24, %v769_v3  ;;  %v799_v63 = vmul.f32 %v24403_v24, %v768_v37  ;;  %v811_v24 = vmul.f32 %v24398_v13, %v24405_v52  ;;  %vm24411_vm5 = vcmp.lt.s32.totalorder %v24410_v43, 32 }
0xace9   :  { %v9975_v11 = vpop.permute.xlu0 %9974 }
0xacea   :  { %v9996_v27 = vsel %vm9995_vm3, %v9991_v46, %v9975_v11  ;;  %v802_v11 = vadd.f32 %v798_v56, %v757_v47  ;;  %v24408_v46 = vld [vmem:[#allocation26_spill] sm:$0xff] }
0xaceb   :  { %v10000_v29 = vadd.f32 %v9996_v27, %v894_v4  ;;  %vm24409_vm4 = vcmp.lt.s32.totalorder %v24408_v46, 32  ;;  %v9989_v4 = vsel %vm906_vm8, %v22567_v54, %v24138_v0  ;;  %v21629_v0 = vld [vmem:[#allocation9] sm:$0xff]  }
0xacec   :  { %v844_v7 = vsel %vm24409_vm4, %v824_v61, 0.0  ;;  %v814_v49 = vadd.f32 %v810_v58, %v802_v11 }
0xaced   :  { %v19193_v18 = vpack.c.bf16 %v10001_v55, %v10000_v29  ;;  %v852_v52 = vmul.f32 %v24406_v14, %v844_v7  ;;  %v9979_v40 = vpop.permute.xlu0 %9978 }
0xad98   :  { %v18954_v51 = vpop.f32.mrf.mxu1 }
0xad99   :  { %v18958_v26 = vmul.f32 0.25, %v18954_v51  ;;  %v9981_v51 = vpop.permute.xlu1 %9980 }
0xad9a   :  { %v21516_v23 = vpop.f32.mrf.mxu1 }
0xad9b   :  { %21520 = vmatmul.mubr.msk.f32.vlgmr.msra.gmra.mxu0 %vm965_vm6, %v18958_v26 }
0xad9c   :  { %21531 = vmatpush3.bf16.msra.mxu0 %v24129_v59  ;;  %21546 = vmatprep.mubr.bf16.mxu0 %v19193_v18  ;;  %v727_v59 = vsel %vm726_vm10, %v724_v22, %v725_v50  ;;  %v860_v50 = vrot.slane %v24398_v13, 2 }
0xad9d   :  { %21532 = vmatprep.subr.bf16.mxu0 %v21623_v9  ;;  %v758_v34 = vmul.f32 %v24402_v10, %v727_v59  ;;  %v821_v10 = vsel %vm820_vm14, %v818_v60, %v819_v12 }
0xad9e   :  { %v851_v27 = vmul.f32 %v24406_v14, %v821_v10  ;;  %v865_v41 = vsel %vm861_vm15, %v860_v50, %v857_v32  ;;  %v862_v60 = vsel %vm861_vm15, %v859_v57, %v860_v50  ;;  %v9994_v57 = vsel %vm9990_vm2, %v9989_v4, %v24198_v53  ;;  %v24413_v4 = vld [vmem:[#allocation31_spill] sm:$0xff] }
0xad9f   :  { %v803_v17 = vadd.f32 %v799_v63, %v758_v34  ;;  %v885_v33 = vsel %vm24411_vm5, %v865_v41, 0.0  ;;  %v892_v32 = vmul.f32 %v24407_v38, %v862_v60  ;;  %v9993_v14 = vsel %vm9990_vm2, %v9988_v5, %v24189_v1  ;;  %v21819_v1 = vpop.eup %21818  ;;  %v19136_v63 = vpop.permute.xlu1 %19135  ;;  %v24412_v41 = vld [vmem:[#allocation30_spill] sm:$0xff] }
0xada0   :  { %21533 = vmatpush3.bf16.msra.mxu0 %v21623_v9  ;;  %v855_v45 = vadd.f32 %v851_v27, %v814_v49  ;;  %v893_v54 = vmul.f32 %v24407_v38, %v885_v33  ;;  %v9998_v55 = vsel %vm9995_vm3, %v9993_v14, %v9979_v40  ;;  %v9999_v9 = vsel %vm9995_vm3, %v9994_v57, %v9981_v51  ;;  %v21821_v38 = vpop.eup %21820  ;;  %v24414_v40 = vld [vmem:[#allocation32_spill] sm:$0xff] }
0xada1   :  { %21534 = vmatprep.subr.bf16.mxu0 %v21624_v21  ;;  %v815_v13 = vadd.f32 %v811_v24, %v803_v17  ;;  %v16973_v22 = vmul.f32 %v21819_v1, %v23954_v36  ;;  %v21823_v35 = vpop.eup %21822  ;;  %v16975_v20 = vmul.f32 %v21821_v38, %v23958_v6  ;;  %v19178_v17 = vsel %vm906_vm8, %v23481_v62, %v19136_v63 }
0xada2   :  { %v896_v26 = vadd.f32 %v892_v32, %v855_v45  ;;  %v16977_v42 = vmul.f32 %v21823_v35, %v23962_v39 }
0xada3   :  { %v856_v29 = vadd.f32 %v852_v52, %v815_v13  ;;  %v19140_v50 = vpop.permute.xlu1 %19139 }
0xada4   :  { %21535 = vmatpush3.bf16.msra.mxu0 %v21624_v21  ;;  %v10002_v2 = vadd.f32 %v9998_v55, %v896_v26  ;;  %v19180_v52 = vsel %vm906_vm8, %v23485_v31, %v19140_v50 }
0xada5   :  { %21536 = vmatprep.subr.bf16.mxu0 %v21625_v15  ;;  %v897_v25 = vadd.f32 %v893_v54, %v856_v29  ;;  %v24415_v29 = vld [vmem:[#allocation33_spill] sm:$0xff] }
0xada7   :  { %v10003_v23 = vadd.f32 %v9999_v9, %v897_v25  ;;  %v19152_v58 = vpop.permute.xlu1 %19151 }
0xada8   :  { %21537 = vmatpush3.bf16.msra.mxu0 %v21625_v15 }
0xada9   :  { %21538 = vmatprep.subr.bf16.mxu0 %v21626_v19  ;;  %v19194_v53 = vpack.c.bf16 %v10003_v23, %v10002_v2 }
0xadab   :  { %v19156_v10 = vpop.permute.xlu1 %19155 }
0xadac   :  { %21539 = vmatpush3.bf16.msra.mxu0 %v21626_v19  ;;  %v19134_v19 = vpop.permute.xlu0 %19133  ;;  %v19184_v62 = vsel %vm9990_vm2, %v19180_v52, %v19156_v10 }
0xadad   :  { %21540 = vmatprep.subr.bf16.mxu0 %v21627_v48  ;;  %v19177_v7 = vsel %vm906_vm8, %v23483_v8, %v19134_v19 }
0xadb0   :  { %21541 = vmatpush3.bf16.msra.mxu0 %v21627_v48  ;;  %v19138_v11 = vpop.permute.xlu0 %19137  ;;  %v19182_v48 = vsel %vm9990_vm2, %v19178_v17, %v19152_v58 }
0xadb1   :  { %21542 = vmatprep.subr.bf16.mxu0 %v21628_v28  ;;  %v19179_v8 = vsel %vm906_vm8, %v23487_v30, %v19138_v11 }
0xadb4   :  { %21543 = vmatpush3.bf16.msra.mxu0 %v21628_v28  ;;  %v19150_v61 = vpop.permute.xlu0 %19149 }
0xadb5   :  { %21544 = vmatprep.subr.bf16.mxu0 %v21629_v0  ;;  %v19181_v27 = vsel %vm9990_vm2, %v19177_v7, %v19150_v61 }
0xadb8   :  { %21545 = vmatpush3.bf16.msra.mxu0 %v21629_v0  ;;  %v19154_v24 = vpop.permute.xlu0 %19153 }
0xadb9   :  { %v19183_v32 = vsel %vm9990_vm2, %v19179_v8, %v19154_v24 }
0xadbb   :  { %21547 = vmatmul.mubr.bf16.vlgmr.msra.gmra.mxu0 %v19194_v53 }
0xae5b   :  { %v19028_v18 = vpop.f32.mrf.mxu0 }
0xae5c   :  { %21522 = vmatprep.subr.mxu1 %v19028_v18 }
0xae5d   :  { %v21521_v21 = vpop.f32.mrf.mxu0  ;;  %21523 = vmatpush3.msra.mxu1 %v19028_v18 }
0xae5e   :  { %21525 = vmatmul.mubr.msk.f32.vlgmr.msra.gmra.mxu1 %vm965_vm6, %v16973_v22 }
0xae5f   :  { %21527 = vmatprep.mubr.msk.f32.mxu1 %vm965_vm6, %v16975_v20 }
0xae62   :  { %21528 = vmatmul.mubr.msk.f32.gmra.mxu1 %vm965_vm6, %v16977_v42 }
0xae7b   :  { %v21548_v36 = vpop.f32.mrf.mxu0 }
0xae7c   :  { %v19311_v16 = vadd.f32 %v21548_v36, %v24292_v44 }
0xae7d   :  { %v19302_v3 = vpop.f32.mrf.mxu0 }
0xae7e   :  { %19335 = vst [vmem:[#allocation11 + $0x10] sm:$0xff] %v19311_v16  ;;  %v19303_v6 = vadd.f32 %v24292_v44, %v19302_v3 }
0xae7f   :  { %v21549_v15 = vpop.f32.mrf.mxu0 }
0xae80   :  { %19333 = vst [vmem:[#allocation11] sm:$0xff] %v19303_v6  ;;  %v19314_v59 = vadd.f32 %v21549_v15, %v24292_v44 }
0xae81   :  { %v19305_v37 = vpop.f32.mrf.mxu0 }
0xae82   :  { %19336 = vst [vmem:[#allocation11 + $0x18] sm:$0xff] %v19314_v59  ;;  %v19306_v39 = vadd.f32 %v24292_v44, %v19305_v37 }
0xae84   :  { %19334 = vst [vmem:[#allocation11 + $0x8] sm:$0xff] %v19306_v39 }
0xaf1e   :  { %v21526_v12 = vpop.f32.mrf.mxu1 }
0xaf1f   :  { %19167 = vrot.lane.b32.xlu1 %v21526_v12, %s21947_s28 }
0xaf20   :  { %v19110_v47 = vpop.f32.mrf.mxu1 }
0xaf21   :  { %19165 = vrot.lane.b32.xlu0 %v19110_v47, %s21947_s28 }
0xaf22   :  { %v21529_v56 = vpop.f32.mrf.mxu1 }
0xaf23   :  { %19171 = vrot.lane.b32.xlu1 %v21529_v56, %s21947_s28 }
0xaf24   :  { %v19120_v34 = vpop.f32.mrf.mxu1 }
0xaf25   :  { %19169 = vrot.lane.b32.xlu0 %v19120_v34, %s21947_s28 }
0xaf91   :  { %v19168_v46 = vpop.permute.xlu1 %19167 }
0xaf92   :  { %v19186_v49 = vsel %vm9995_vm3, %v19182_v48, %v19168_v46 }
0xaf93   :  { %v19190_v60 = vadd.f32 %v19186_v49, %v24412_v41  ;;  %v19166_v13 = vpop.permute.xlu0 %19165 }
0xaf94   :  { %v19185_v28 = vsel %vm9995_vm3, %v19181_v27, %v19166_v13 }
0xaf95   :  { %v19189_v43 = vadd.f32 %v19185_v28, %v24413_v4  ;;  %v19172_v33 = vpop.permute.xlu1 %19171 }
0xaf96   :  { %v19188_v45 = vsel %vm9995_vm3, %v19184_v62, %v19172_v33 }
0xaf97   :  { %v19192_v5 = vadd.f32 %v19188_v45, %v24414_v40  ;;  %v19170_v57 = vpop.permute.xlu0 %19169  ;;  %v19195_v14 = vpack.c.bf16 %v19190_v60, %v19189_v43 }
0xaf98   :  { %v19187_v31 = vsel %vm9995_vm3, %v19183_v32, %v19170_v57 }
0xaf99   :  { %v19191_v54 = vadd.f32 %v19187_v31, %v24415_v29  ;;  %21550 = vmatprep.mubr.bf16.mxu0 %v19195_v14 }
0xaf9b   :  { %v19196_v0 = vpack.c.bf16 %v19192_v5, %v19191_v54 }
0xaf9d   :  { %21551 = vmatmul.mubr.bf16.gmra.mxu0 %v19196_v0 }
0xb05d   :  { %v21552_v55 = vpop.f32.mrf.mxu0 }
0xb05e   :  { %v19327_v51 = vadd.f32 %v21552_v55, %v24292_v44 }
0xb05f   :  { %v19318_v26 = vpop.f32.mrf.mxu0 }
0xb060   :  { %19339 = vst [vmem:[#allocation11 + $0x30] sm:$0xff] %v19327_v51  ;;  %v19319_v30 = vadd.f32 %v24292_v44, %v19318_v26 }
0xb061   :  { %v21553_v9 = vpop.f32.mrf.mxu0 }
0xb062   :  { %19337 = vst [vmem:[#allocation11 + $0x20] sm:$0xff] %v19319_v30  ;;  %v19330_v25 = vadd.f32 %v21553_v9, %v24292_v44 }
0xb063   :  { %v19321_v2 = vpop.f32.mrf.mxu0 }
0xb064   :  { %19340 = vst [vmem:[#allocation11 + $0x38] sm:$0xff] %v19330_v25  ;;  %v19322_v23 = vadd.f32 %v24292_v44, %v19321_v2 }
0xb066   :  { %19338 = vst [vmem:[#allocation11 + $0x28] sm:$0xff] %v19322_v23 }
0xb067   :  { %21915 = shalt.err (!%p21912_p10)
}
0xb068   :  { %19352 = dma.vmem_to_hbm [thread:$0]  %s19347_s9, 1024, %s24339_s7, [#allocation5], %s21936_s11, %s21936_s11, %s21937_s12  }
0xb069   :  { %21930 = dma.done.wait [#allocation5], 1024  }
0xb06a   :  { %21931 = vsyncadd [#allocation5], 4294966272 }
0xb06b   :  { %19356 = vsyncpa [#allocation4], 1 }
0xb06c   :  { %19357 = vsyncpa [#allocation7], 1 }
0xb06d   :  { %19358 = vsyncpa [#allocation10], 1 }
0xb06e   :  { %19359 = vsyncpa [#allocation5], 1 }

</bundles_post_ra>
